<compile_context>
chip_gen: v5e
topology: v5e:2x2
jax: 0.10.0
libtpu: 0.0.40
codegen_flags: <defaults>
</compile_context>

<pallas_src>
import functools

import numpy as np
import jax
import jax.numpy as jnp
from jax.experimental import pallas as pl
from jax.experimental.pallas import tpu as pltpu


# ----------------------------------------------------------------------------
# small helpers
# ----------------------------------------------------------------------------
def _sigmoid(x):
    e = jnp.exp(-x)                      # EUP
    if hasattr(pl, "reciprocal"):
        return pl.reciprocal(1.0 + e, approx=True)   # EUP, VALU-free
    return 1.0 / (1.0 + e)


def _compiler_params():
    cls = getattr(pltpu, "CompilerParams", None) or getattr(
        pltpu, "TPUCompilerParams", None)
    if cls is None:
        return None
    return cls(dimension_semantics=("parallel",))


# ----------------------------------------------------------------------------
# The fused kernel (one grid step == one batch sample)
# ----------------------------------------------------------------------------
def _lenet_kernel(patches_ref,          # (1, 784, 25) bf16  im2col of conv1 input
                  w1_ref, b1_ref,       # (25, 6) bf16, (1, 6) f32
                  w2_ref, b2_ref,       # (150, 16) bf16, (1, 16) f32
                  wf1_ref, bf1_ref,     # (400, 120) bf16, (1, 120) f32
                  wf2_ref, bf2_ref,     # (120, 84) bf16, (1, 84) f32
                  wf3_ref, bf3_ref,     # (84, 10) bf16, (1, 10) f32
                  out_ref,              # (1, 1, 10) f32
                  s_ref,                # VMEM (56, 6)  f32 : conv1 2-row tile
                  p1_ref,               # VMEM (196, 6) f32 : pool1 out (14*14, C=6)
                  a2_ref,               # VMEM (100, 16) f32: conv2+sigmoid (10*10, C=16)
                  pr_ref):              # VMEM (5, 16)  f32 : pool2 row buffer
    f32 = jnp.float32
    bf16 = jnp.bfloat16

    w1 = w1_ref[...]                    # (25, 6) bf16
    b1 = b1_ref[...]                    # (1, 6)  f32

    # ---------------- conv1 (5x5, pad 2) + sigmoid + 2x2 avg-pool -------------
    # Process two image rows (56 output pixels) per step; pool them immediately
    # so the (784, 6) activation never has to live in registers.
    for ph in range(14):
        rows = patches_ref[0, pl.ds(ph * 56, 56), :]              # (56, 25) bf16
        z = jnp.dot(rows, w1, preferred_element_type=f32)         # (56, 6) MXU
        s_ref[...] = _sigmoid(z + b1)
        # rows of s_ref: (h - 2*ph) * 28 + w ; average the 2x2 window on the VPU
        pooled = (s_ref[pl.ds(0, 14, stride=2), :] +
                  s_ref[pl.ds(1, 14, stride=2), :] +
                  s_ref[pl.ds(28, 14, stride=2), :] +
                  s_ref[pl.ds(29, 14, stride=2), :]) * 0.25       # (14, 6)
        p1_ref[pl.ds(ph * 14, 14), :] = pooled

    # ---------------- conv2 (5x5, valid) + sigmoid ----------------------------
    # conv2 = sum over the 25 kernel offsets (i, j) of a (196,6)@(6,16) matmul,
    # followed by shifted accumulation into the 10 output rows.
    p1 = p1_ref[...].astype(bf16)                                  # (196, 6)
    accs = [jnp.zeros((10, 16), f32) for _ in range(10)]
    for i in range(5):
        for j in range(5):
            w_ij = w2_ref[pl.ds((i * 5 + j) * 6, 6), :]            # (6, 16) bf16
            pmap = jnp.dot(p1, w_ij, preferred_element_type=f32)   # (196, 16)
            for oh in range(10):
                a = (oh + i) * 14 + j
                accs[oh] = accs[oh] + pmap[a:a + 10, :]
    b2 = b2_ref[...]                                               # (1, 16)
    for oh in range(10):
        a2_ref[pl.ds(oh * 10, 10), :] = _sigmoid(accs[oh] + b2)

    # ---------------- 2x2 avg-pool + flatten + fc1 ----------------------------
    # fc1 is accumulated directly from the pooled rows; wf1 rows were remapped
    # at init-time to the kernel's (ph, pw, c) flatten order.
    fc1 = bf1_ref[...]                                             # (1, 120) f32
    for poh in range(5):
        base = poh * 20
        pooled = (a2_ref[pl.ds(base, 5, stride=2), :] +
                  a2_ref[pl.ds(base + 1, 5, stride=2), :] +
                  a2_ref[pl.ds(base + 10, 5, stride=2), :] +
                  a2_ref[pl.ds(base + 11, 5, stride=2), :]) * 0.25  # (5, 16)
        pr_ref[...] = pooled
        for pw in range(5):
            row = pr_ref[pl.ds(pw, 1), :].astype(bf16)             # (1, 16)
            wrow = wf1_ref[pl.ds((poh * 5 + pw) * 16, 16), :]      # (16, 120)
            fc1 = fc1 + jnp.dot(row, wrow, preferred_element_type=f32)

    # ---------------- fc2, fc3 (no activations, as in the PyTorch module) -----
    h2 = jnp.dot(fc1.astype(bf16), wf2_ref[...],
                 preferred_element_type=f32) + bf2_ref[...]        # (1, 84)
    h3 = jnp.dot(h2.astype(bf16), wf3_ref[...],
                 preferred_element_type=f32) + bf3_ref[...]        # (1, 10)
    out_ref[0] = h3.astype(out_ref.dtype)


# ----------------------------------------------------------------------------
# Parameters (PyTorch-convention shapes) + hoisted kernel-ready constants
# ----------------------------------------------------------------------------
def init_params(key):
    ks = jax.random.split(key, 10)

    def u(k, shape, fan_in):
        bound = 1.0 / np.sqrt(fan_in)
        return jax.random.uniform(k, shape, jnp.float32, -bound, bound)

    return dict(
        w1=u(ks[0], (6, 1, 5, 5), 25),   b1=u(ks[1], (6,), 25),
        w2=u(ks[2], (16, 6, 5, 5), 150), b2=u(ks[3], (16,), 150),
        wf1=u(ks[4], (400, 120), 400),   bf1=u(ks[5], (120,), 400),
        wf2=u(ks[6], (120, 84), 120),    bf2=u(ks[7], (84,), 120),
        wf3=u(ks[8], (84, 10), 84),      bf3=u(ks[9], (10,), 84),
    )


def prepare_constants(params):
    """Init-time remapping: matmul-ready, bf16 weights / f32 (1,K) biases."""
    bf16, f32 = jnp.bfloat16, jnp.float32
    return dict(
        # conv1: features ordered (kh, kw)  (Cin == 1)
        w1=params["w1"].reshape(6, 25).T.astype(bf16),                       # (25, 6)
        b1=params["b1"].reshape(1, 6).astype(f32),
        # conv2: rows ordered (kh, kw, cin)
        w2=params["w2"].transpose(2, 3, 1, 0).reshape(150, 16).astype(bf16),  # (150, 16)
        b2=params["b2"].reshape(1, 16).astype(f32),
        # fc1: PyTorch flatten order (c, ph, pw) -> kernel order (ph, pw, c)
        wf1=params["wf1"].reshape(16, 5, 5, 120).transpose(1, 2, 0, 3)
                          .reshape(400, 120).astype(bf16),
        bf1=params["bf1"].reshape(1, 120).astype(f32),
        wf2=params["wf2"].astype(bf16),
        bf2=params["bf2"].reshape(1, 84).astype(f32),
        wf3=params["wf3"].astype(bf16),
        bf3=params["bf3"].reshape(1, 10).astype(f32),
    )


# ----------------------------------------------------------------------------
# Forward pass: host-side conv1 im2col (XLA) + one fused Pallas call
# ----------------------------------------------------------------------------
@jax.jit
def lenet_forward(x, c):
    N = x.shape[0]
    xs = x[:, 0, :, :]                                             # (N, 28, 28)
    xp = jnp.pad(xs, ((0, 0), (2, 2), (2, 2)))                     # (N, 32, 32)
    cols = [xp[:, i:i + 28, j:j + 28] for i in range(5) for j in range(5)]
    patches = jnp.stack(cols, axis=-1).reshape(N, 784, 25).astype(jnp.bfloat16)

    grid_spec = pltpu.PrefetchScalarGridSpec(
        num_scalar_prefetch=0,
        grid=(N,),
        in_specs=[
            pl.BlockSpec((1, 784, 25), lambda n: (n, 0, 0)),
            pl.BlockSpec((25, 6),   lambda n: (0, 0)),
            pl.BlockSpec((1, 6),    lambda n: (0, 0)),
            pl.BlockSpec((150, 16), lambda n: (0, 0)),
            pl.BlockSpec((1, 16),   lambda n: (0, 0)),
            pl.BlockSpec((400, 120), lambda n: (0, 0)),
            pl.BlockSpec((1, 120),  lambda n: (0, 0)),
            pl.BlockSpec((120, 84), lambda n: (0, 0)),
            pl.BlockSpec((1, 84),   lambda n: (0, 0)),
            pl.BlockSpec((84, 10),  lambda n: (0, 0)),
            pl.BlockSpec((1, 10),   lambda n: (0, 0)),
        ],
        out_specs=pl.BlockSpec((1, 1, 10), lambda n: (n, 0, 0)),
        scratch_shapes=[
            pltpu.VMEM((56, 6), jnp.float32),    # conv1 two-row tile
            pltpu.VMEM((196, 6), jnp.float32),   # pool1 output (14*14, 6)
            pltpu.VMEM((100, 16), jnp.float32),  # conv2+sigmoid (10*10, 16)
            pltpu.VMEM((5, 16), jnp.float32),    # pool2 row buffer
        ],
    )

    out3 = pl.pallas_call(
        _lenet_kernel,
        out_shape=jax.ShapeDtypeStruct((N, 1, 10), jnp.float32),
        grid_spec=grid_spec,
        compiler_params=_compiler_params(),
    )(patches, c["w1"], c["b1"], c["w2"], c["b2"],
      c["wf1"], c["bf1"], c["wf2"], c["bf2"], c["wf3"], c["bf3"])
    return out3[:, 0, :]


# ----------------------------------------------------------------------------
# Pure-JAX reference (PyTorch semantics) for a sanity check
# ----------------------------------------------------------------------------
def lenet_reference(x, params):
    N = x.shape[0]
    dn = ("NCHW", "OIHW", "NCHW")
    y = jax.lax.conv_general_dilated(x, params["w1"], (1, 1), ((2, 2), (2, 2)),
                                     dimension_numbers=dn)
    y = jax.nn.sigmoid(y + params["b1"].reshape(1, 6, 1, 1))
    y = y.reshape(N, 6, 14, 2, 14, 2).mean(axis=(3, 5))
    y = jax.lax.conv_general_dilated(y, params["w2"], (1, 1), ((0, 0), (0, 0)),
                                     dimension_numbers=dn)
    y = jax.nn.sigmoid(y + params["b2"].reshape(1, 16, 1, 1))
    y = y.reshape(N, 16, 5, 2, 5, 2).mean(axis=(3, 5))
    y = y.reshape(N, 400)
    y = y @ params["wf1"] + params["bf1"]
    y = y @ params["wf2"] + params["bf2"]
    y = y @ params["wf3"] + params["bf3"]
    return y


if __name__ == "__main__":
    key = jax.random.PRNGKey(0)
    k_params, k_x = jax.random.split(key)
    params = init_params(k_params)
    consts = prepare_constants(params)
    # LeNet's 400-dim flatten forces a 28x28 single-channel input.
    x = jax.random.normal(k_x, (2, 1, 28, 28), dtype=jnp.float32)

    out = lenet_forward(x, consts)
    out = jax.block_until_ready(out)
    assert out.shape == (2, 10), out.shape
    assert out.dtype == jnp.float32

    ref = lenet_reference(x, params)
    np.testing.assert_allclose(np.asarray(out), np.asarray(ref),
                               atol=0.25, rtol=0.05)
    print("KERNEL_OK")
</pallas_src>

<mosaic_0001>
module attributes {stable_mosaic.version = 11 : i64} {
  func.func @_lenet_kernel(%arg0: i32, %arg1: memref<1x784x25xbf16, #tpu.memory_space<vmem>>, %arg2: memref<25x6xbf16, #tpu.memory_space<vmem>>, %arg3: memref<1x6xf32, #tpu.memory_space<vmem>>, %arg4: memref<150x16xbf16, #tpu.memory_space<vmem>>, %arg5: memref<1x16xf32, #tpu.memory_space<vmem>>, %arg6: memref<400x120xbf16, #tpu.memory_space<vmem>>, %arg7: memref<1x120xf32, #tpu.memory_space<vmem>>, %arg8: memref<120x84xbf16, #tpu.memory_space<vmem>>, %arg9: memref<1x84xf32, #tpu.memory_space<vmem>>, %arg10: memref<84x10xbf16, #tpu.memory_space<vmem>>, %arg11: memref<1x10xf32, #tpu.memory_space<vmem>>, %arg12: memref<1x1x10xf32, #tpu.memory_space<vmem>>, %arg13: memref<56x6xf32, #tpu.memory_space<vmem>>, %arg14: memref<196x6xf32, #tpu.memory_space<vmem>>, %arg15: memref<100x16xf32, #tpu.memory_space<vmem>>, %arg16: memref<5x16xf32, #tpu.memory_space<vmem>>) attributes {dimension_semantics = [#tpu.dimension_semantics<parallel>], iteration_bounds = array<i64: 2>, scalar_prefetch = 0 : i64, scratch_operands = 4 : i64, tpu.core_type = #tpu.core_type<tc>, window_params = [{transform_indices = @transform_0, window_bounds = array<i64: 1, 784, 25>}, {pipeline_mode = #tpu.pipeline_mode<synchronous>, transform_indices = @transform_1, window_bounds = array<i64: 25, 6>}, {pipeline_mode = #tpu.pipeline_mode<synchronous>, transform_indices = @transform_2, window_bounds = array<i64: 1, 6>}, {pipeline_mode = #tpu.pipeline_mode<synchronous>, transform_indices = @transform_3, window_bounds = array<i64: 150, 16>}, {pipeline_mode = #tpu.pipeline_mode<synchronous>, transform_indices = @transform_4, window_bounds = array<i64: 1, 16>}, {pipeline_mode = #tpu.pipeline_mode<synchronous>, transform_indices = @transform_5, window_bounds = array<i64: 400, 120>}, {pipeline_mode = #tpu.pipeline_mode<synchronous>, transform_indices = @transform_6, window_bounds = array<i64: 1, 120>}, {pipeline_mode = #tpu.pipeline_mode<synchronous>, transform_indices = @transform_7, window_bounds = array<i64: 120, 84>}, {pipeline_mode = #tpu.pipeline_mode<synchronous>, transform_indices = @transform_8, window_bounds = array<i64: 1, 84>}, {pipeline_mode = #tpu.pipeline_mode<synchronous>, transform_indices = @transform_9, window_bounds = array<i64: 84, 10>}, {pipeline_mode = #tpu.pipeline_mode<synchronous>, transform_indices = @transform_10, window_bounds = array<i64: 1, 10>}, {transform_indices = @transform_11, window_bounds = array<i64: 1, 1, 10>}]} {
    %c0 = arith.constant 0 : index
    %c0_0 = arith.constant 0 : index
    %0 = vector.load %arg2[%c0, %c0_0] : memref<25x6xbf16, #tpu.memory_space<vmem>>, vector<25x6xbf16>
    %c0_1 = arith.constant 0 : index
    %c0_2 = arith.constant 0 : index
    %1 = vector.load %arg3[%c0_1, %c0_2] : memref<1x6xf32, #tpu.memory_space<vmem>>, vector<1x6xf32>
    %c0_3 = arith.constant 0 : index
    %c0_4 = arith.constant 0 : index
    %c0_5 = arith.constant 0 : index
    %2 = vector.load %arg1[%c0_3, %c0_4, %c0_5] : memref<1x784x25xbf16, #tpu.memory_space<vmem>>, vector<1x56x25xbf16>
    %3 = vector.shape_cast %2 : vector<1x56x25xbf16> to vector<56x25xbf16>
    %cst = arith.constant dense<0.000000e+00> : vector<56x6xf32>
    %4 = tpu.matmul %3, %0, %cst {dimension_numbers = #tpu.dot_dimension_numbers<[1], [0], [0], [1], [0, 0, 1, 1], [], []>} : vector<56x25xbf16>, vector<25x6xbf16>, vector<56x6xf32> -> vector<56x6xf32>
    %5 = vector.broadcast %1 : vector<1x6xf32> to vector<56x6xf32>
    %6 = arith.addf %4, %5 : vector<56x6xf32>
    %cst_6 = arith.constant 0.000000e+00 : f32
    %7 = vector.broadcast %cst_6 : f32 to vector<56x6xf32>
    %8 = arith.subf %7, %6 : vector<56x6xf32>
    %9 = math.exp %8 : vector<56x6xf32>
    %cst_7 = arith.constant 1.000000e+00 : f32
    %10 = vector.broadcast %cst_7 : f32 to vector<56x6xf32>
    %11 = arith.addf %10, %9 : vector<56x6xf32>
    %12 = tpu.reciprocal %11 {approx = true} : vector<56x6xf32> -> vector<56x6xf32>
    %c0_8 = arith.constant 0 : index
    %c0_9 = arith.constant 0 : index
    %13 = vector.load %arg13[%c0_8, %c0_9] : memref<56x6xf32, #tpu.memory_space<vmem>>, vector<56x6xf32>
    tpu.vector_store %arg13[%c0_8, %c0_9], %12 {strides = array<i32>} : memref<56x6xf32, #tpu.memory_space<vmem>>, vector<56x6xf32>,
    %c0_10 = arith.constant 0 : index
    %c0_11 = arith.constant 0 : index
    %14 = tpu.strided_load %arg13[%c0_10, %c0_11] {strides = array<i32: 2, 1>} : memref<56x6xf32, #tpu.memory_space<vmem>>, vector<14x6xf32>
    %c1 = arith.constant 1 : index
    %c0_12 = arith.constant 0 : index
    %15 = tpu.strided_load %arg13[%c1, %c0_12] {strides = array<i32: 2, 1>} : memref<56x6xf32, #tpu.memory_space<vmem>>, vector<14x6xf32>
    %16 = arith.addf %14, %15 : vector<14x6xf32>
    %c28 = arith.constant 28 : index
    %c0_13 = arith.constant 0 : index
    %17 = tpu.strided_load %arg13[%c28, %c0_13] {strides = array<i32: 2, 1>} : memref<56x6xf32, #tpu.memory_space<vmem>>, vector<14x6xf32>
    %18 = arith.addf %16, %17 : vector<14x6xf32>
    %c29 = arith.constant 29 : index
    %c0_14 = arith.constant 0 : index
    %19 = tpu.strided_load %arg13[%c29, %c0_14] {strides = array<i32: 2, 1>} : memref<56x6xf32, #tpu.memory_space<vmem>>, vector<14x6xf32>
    %20 = arith.addf %18, %19 : vector<14x6xf32>
    %cst_15 = arith.constant 2.500000e-01 : f32
    %21 = vector.broadcast %cst_15 : f32 to vector<14x6xf32>
    %22 = arith.mulf %20, %21 : vector<14x6xf32>
    %c0_16 = arith.constant 0 : index
    %c0_17 = arith.constant 0 : index
    %23 = vector.load %arg14[%c0_16, %c0_17] : memref<196x6xf32, #tpu.memory_space<vmem>>, vector<14x6xf32>
    tpu.vector_store %arg14[%c0_16, %c0_17], %22 {strides = array<i32>} : memref<196x6xf32, #tpu.memory_space<vmem>>, vector<14x6xf32>,
    %c0_18 = arith.constant 0 : index
    %c56 = arith.constant 56 : index
    %c0_19 = arith.constant 0 : index
    %24 = vector.load %arg1[%c0_18, %c56, %c0_19] : memref<1x784x25xbf16, #tpu.memory_space<vmem>>, vector<1x56x25xbf16>
    %25 = vector.shape_cast %24 : vector<1x56x25xbf16> to vector<56x25xbf16>
    %cst_20 = arith.constant dense<0.000000e+00> : vector<56x6xf32>
    %26 = tpu.matmul %25, %0, %cst_20 {dimension_numbers = #tpu.dot_dimension_numbers<[1], [0], [0], [1], [0, 0, 1, 1], [], []>} : vector<56x25xbf16>, vector<25x6xbf16>, vector<56x6xf32> -> vector<56x6xf32>
    %27 = vector.broadcast %1 : vector<1x6xf32> to vector<56x6xf32>
    %28 = arith.addf %26, %27 : vector<56x6xf32>
    %cst_21 = arith.constant 0.000000e+00 : f32
    %29 = vector.broadcast %cst_21 : f32 to vector<56x6xf32>
    %30 = arith.subf %29, %28 : vector<56x6xf32>
    %31 = math.exp %30 : vector<56x6xf32>
    %cst_22 = arith.constant 1.000000e+00 : f32
    %32 = vector.broadcast %cst_22 : f32 to vector<56x6xf32>
    %33 = arith.addf %32, %31 : vector<56x6xf32>
    %34 = tpu.reciprocal %33 {approx = true} : vector<56x6xf32> -> vector<56x6xf32>
    %c0_23 = arith.constant 0 : index
    %c0_24 = arith.constant 0 : index
    %35 = vector.load %arg13[%c0_23, %c0_24] : memref<56x6xf32, #tpu.memory_space<vmem>>, vector<56x6xf32>
    tpu.vector_store %arg13[%c0_23, %c0_24], %34 {strides = array<i32>} : memref<56x6xf32, #tpu.memory_space<vmem>>, vector<56x6xf32>,
    %c0_25 = arith.constant 0 : index
    %c0_26 = arith.constant 0 : index
    %36 = tpu.strided_load %arg13[%c0_25, %c0_26] {strides = array<i32: 2, 1>} : memref<56x6xf32, #tpu.memory_space<vmem>>, vector<14x6xf32>
    %c1_27 = arith.constant 1 : index
    %c0_28 = arith.constant 0 : index
    %37 = tpu.strided_load %arg13[%c1_27, %c0_28] {strides = array<i32: 2, 1>} : memref<56x6xf32, #tpu.memory_space<vmem>>, vector<14x6xf32>
    %38 = arith.addf %36, %37 : vector<14x6xf32>
    %c28_29 = arith.constant 28 : index
    %c0_30 = arith.constant 0 : index
    %39 = tpu.strided_load %arg13[%c28_29, %c0_30] {strides = array<i32: 2, 1>} : memref<56x6xf32, #tpu.memory_space<vmem>>, vector<14x6xf32>
    %40 = arith.addf %38, %39 : vector<14x6xf32>
    %c29_31 = arith.constant 29 : index
    %c0_32 = arith.constant 0 : index
    %41 = tpu.strided_load %arg13[%c29_31, %c0_32] {strides = array<i32: 2, 1>} : memref<56x6xf32, #tpu.memory_space<vmem>>, vector<14x6xf32>
    %42 = arith.addf %40, %41 : vector<14x6xf32>
    %cst_33 = arith.constant 2.500000e-01 : f32
    %43 = vector.broadcast %cst_33 : f32 to vector<14x6xf32>
    %44 = arith.mulf %42, %43 : vector<14x6xf32>
    %c14 = arith.constant 14 : index
    %c0_34 = arith.constant 0 : index
    %45 = vector.load %arg14[%c14, %c0_34] : memref<196x6xf32, #tpu.memory_space<vmem>>, vector<14x6xf32>
    tpu.vector_store %arg14[%c14, %c0_34], %44 {strides = array<i32>} : memref<196x6xf32, #tpu.memory_space<vmem>>, vector<14x6xf32>,
    %c0_35 = arith.constant 0 : index
    %c112 = arith.constant 112 : index
    %c0_36 = arith.constant 0 : index
    %46 = vector.load %arg1[%c0_35, %c112, %c0_36] : memref<1x784x25xbf16, #tpu.memory_space<vmem>>, vector<1x56x25xbf16>
    %47 = vector.shape_cast %46 : vector<1x56x25xbf16> to vector<56x25xbf16>
    %cst_37 = arith.constant dense<0.000000e+00> : vector<56x6xf32>
    %48 = tpu.matmul %47, %0, %cst_37 {dimension_numbers = #tpu.dot_dimension_numbers<[1], [0], [0], [1], [0, 0, 1, 1], [], []>} : vector<56x25xbf16>, vector<25x6xbf16>, vector<56x6xf32> -> vector<56x6xf32>
    %49 = vector.broadcast %1 : vector<1x6xf32> to vector<56x6xf32>
    %50 = arith.addf %48, %49 : vector<56x6xf32>
    %cst_38 = arith.constant 0.000000e+00 : f32
    %51 = vector.broadcast %cst_38 : f32 to vector<56x6xf32>
    %52 = arith.subf %51, %50 : vector<56x6xf32>
    %53 = math.exp %52 : vector<56x6xf32>
    %cst_39 = arith.constant 1.000000e+00 : f32
    %54 = vector.broadcast %cst_39 : f32 to vector<56x6xf32>
    %55 = arith.addf %54, %53 : vector<56x6xf32>
    %56 = tpu.reciprocal %55 {approx = true} : vector<56x6xf32> -> vector<56x6xf32>
    %c0_40 = arith.constant 0 : index
    %c0_41 = arith.constant 0 : index
    %57 = vector.load %arg13[%c0_40, %c0_41] : memref<56x6xf32, #tpu.memory_space<vmem>>, vector<56x6xf32>
    tpu.vector_store %arg13[%c0_40, %c0_41], %56 {strides = array<i32>} : memref<56x6xf32, #tpu.memory_space<vmem>>, vector<56x6xf32>,
    %c0_42 = arith.constant 0 : index
    %c0_43 = arith.constant 0 : index
    %58 = tpu.strided_load %arg13[%c0_42, %c0_43] {strides = array<i32: 2, 1>} : memref<56x6xf32, #tpu.memory_space<vmem>>, vector<14x6xf32>
    %c1_44 = arith.constant 1 : index
    %c0_45 = arith.constant 0 : index
    %59 = tpu.strided_load %arg13[%c1_44, %c0_45] {strides = array<i32: 2, 1>} : memref<56x6xf32, #tpu.memory_space<vmem>>, vector<14x6xf32>
    %60 = arith.addf %58, %59 : vector<14x6xf32>
    %c28_46 = arith.constant 28 : index
    %c0_47 = arith.constant 0 : index
    %61 = tpu.strided_load %arg13[%c28_46, %c0_47] {strides = array<i32: 2, 1>} : memref<56x6xf32, #tpu.memory_space<vmem>>, vector<14x6xf32>
    %62 = arith.addf %60, %61 : vector<14x6xf32>
    %c29_48 = arith.constant 29 : index
    %c0_49 = arith.constant 0 : index
    %63 = tpu.strided_load %arg13[%c29_48, %c0_49] {strides = array<i32: 2, 1>} : memref<56x6xf32, #tpu.memory_space<vmem>>, vector<14x6xf32>
    %64 = arith.addf %62, %63 : vector<14x6xf32>
    %cst_50 = arith.constant 2.500000e-01 : f32
    %65 = vector.broadcast %cst_50 : f32 to vector<14x6xf32>
    %66 = arith.mulf %64, %65 : vector<14x6xf32>
    %c28_51 = arith.constant 28 : index
    %c0_52 = arith.constant 0 : index
    %67 = vector.load %arg14[%c28_51, %c0_52] : memref<196x6xf32, #tpu.memory_space<vmem>>, vector<14x6xf32>
    tpu.vector_store %arg14[%c28_51, %c0_52], %66 {strides = array<i32>} : memref<196x6xf32, #tpu.memory_space<vmem>>, vector<14x6xf32>,
    %c0_53 = arith.constant 0 : index
    %c168 = arith.constant 168 : index
    %c0_54 = arith.constant 0 : index
    %68 = vector.load %arg1[%c0_53, %c168, %c0_54] : memref<1x784x25xbf16, #tpu.memory_space<vmem>>, vector<1x56x25xbf16>
    %69 = vector.shape_cast %68 : vector<1x56x25xbf16> to vector<56x25xbf16>
    %cst_55 = arith.constant dense<0.000000e+00> : vector<56x6xf32>
    %70 = tpu.matmul %69, %0, %cst_55 {dimension_numbers = #tpu.dot_dimension_numbers<[1], [0], [0], [1], [0, 0, 1, 1], [], []>} : vector<56x25xbf16>, vector<25x6xbf16>, vector<56x6xf32> -> vector<56x6xf32>
    %71 = vector.broadcast %1 : vector<1x6xf32> to vector<56x6xf32>
    %72 = arith.addf %70, %71 : vector<56x6xf32>
    %cst_56 = arith.constant 0.000000e+00 : f32
    %73 = vector.broadcast %cst_56 : f32 to vector<56x6xf32>
    %74 = arith.subf %73, %72 : vector<56x6xf32>
    %75 = math.exp %74 : vector<56x6xf32>
    %cst_57 = arith.constant 1.000000e+00 : f32
    %76 = vector.broadcast %cst_57 : f32 to vector<56x6xf32>
    %77 = arith.addf %76, %75 : vector<56x6xf32>
    %78 = tpu.reciprocal %77 {approx = true} : vector<56x6xf32> -> vector<56x6xf32>
    %c0_58 = arith.constant 0 : index
    %c0_59 = arith.constant 0 : index
    %79 = vector.load %arg13[%c0_58, %c0_59] : memref<56x6xf32, #tpu.memory_space<vmem>>, vector<56x6xf32>
    tpu.vector_store %arg13[%c0_58, %c0_59], %78 {strides = array<i32>} : memref<56x6xf32, #tpu.memory_space<vmem>>, vector<56x6xf32>,
    %c0_60 = arith.constant 0 : index
    %c0_61 = arith.constant 0 : index
    %80 = tpu.strided_load %arg13[%c0_60, %c0_61] {strides = array<i32: 2, 1>} : memref<56x6xf32, #tpu.memory_space<vmem>>, vector<14x6xf32>
    %c1_62 = arith.constant 1 : index
    %c0_63 = arith.constant 0 : index
    %81 = tpu.strided_load %arg13[%c1_62, %c0_63] {strides = array<i32: 2, 1>} : memref<56x6xf32, #tpu.memory_space<vmem>>, vector<14x6xf32>
    %82 = arith.addf %80, %81 : vector<14x6xf32>
    %c28_64 = arith.constant 28 : index
    %c0_65 = arith.constant 0 : index
    %83 = tpu.strided_load %arg13[%c28_64, %c0_65] {strides = array<i32: 2, 1>} : memref<56x6xf32, #tpu.memory_space<vmem>>, vector<14x6xf32>
    %84 = arith.addf %82, %83 : vector<14x6xf32>
    %c29_66 = arith.constant 29 : index
    %c0_67 = arith.constant 0 : index
    %85 = tpu.strided_load %arg13[%c29_66, %c0_67] {strides = array<i32: 2, 1>} : memref<56x6xf32, #tpu.memory_space<vmem>>, vector<14x6xf32>
    %86 = arith.addf %84, %85 : vector<14x6xf32>
    %cst_68 = arith.constant 2.500000e-01 : f32
    %87 = vector.broadcast %cst_68 : f32 to vector<14x6xf32>
    %88 = arith.mulf %86, %87 : vector<14x6xf32>
    %c42 = arith.constant 42 : index
    %c0_69 = arith.constant 0 : index
    %89 = vector.load %arg14[%c42, %c0_69] : memref<196x6xf32, #tpu.memory_space<vmem>>, vector<14x6xf32>
    tpu.vector_store %arg14[%c42, %c0_69], %88 {strides = array<i32>} : memref<196x6xf32, #tpu.memory_space<vmem>>, vector<14x6xf32>,
    %c0_70 = arith.constant 0 : index
    %c224 = arith.constant 224 : index
    %c0_71 = arith.constant 0 : index
    %90 = vector.load %arg1[%c0_70, %c224, %c0_71] : memref<1x784x25xbf16, #tpu.memory_space<vmem>>, vector<1x56x25xbf16>
    %91 = vector.shape_cast %90 : vector<1x56x25xbf16> to vector<56x25xbf16>
    %cst_72 = arith.constant dense<0.000000e+00> : vector<56x6xf32>
    %92 = tpu.matmul %91, %0, %cst_72 {dimension_numbers = #tpu.dot_dimension_numbers<[1], [0], [0], [1], [0, 0, 1, 1], [], []>} : vector<56x25xbf16>, vector<25x6xbf16>, vector<56x6xf32> -> vector<56x6xf32>
    %93 = vector.broadcast %1 : vector<1x6xf32> to vector<56x6xf32>
    %94 = arith.addf %92, %93 : vector<56x6xf32>
    %cst_73 = arith.constant 0.000000e+00 : f32
    %95 = vector.broadcast %cst_73 : f32 to vector<56x6xf32>
    %96 = arith.subf %95, %94 : vector<56x6xf32>
    %97 = math.exp %96 : vector<56x6xf32>
    %cst_74 = arith.constant 1.000000e+00 : f32
    %98 = vector.broadcast %cst_74 : f32 to vector<56x6xf32>
    %99 = arith.addf %98, %97 : vector<56x6xf32>
    %100 = tpu.reciprocal %99 {approx = true} : vector<56x6xf32> -> vector<56x6xf32>
    %c0_75 = arith.constant 0 : index
    %c0_76 = arith.constant 0 : index
    %101 = vector.load %arg13[%c0_75, %c0_76] : memref<56x6xf32, #tpu.memory_space<vmem>>, vector<56x6xf32>
    tpu.vector_store %arg13[%c0_75, %c0_76], %100 {strides = array<i32>} : memref<56x6xf32, #tpu.memory_space<vmem>>, vector<56x6xf32>,
    %c0_77 = arith.constant 0 : index
    %c0_78 = arith.constant 0 : index
    %102 = tpu.strided_load %arg13[%c0_77, %c0_78] {strides = array<i32: 2, 1>} : memref<56x6xf32, #tpu.memory_space<vmem>>, vector<14x6xf32>
    %c1_79 = arith.constant 1 : index
    %c0_80 = arith.constant 0 : index
    %103 = tpu.strided_load %arg13[%c1_79, %c0_80] {strides = array<i32: 2, 1>} : memref<56x6xf32, #tpu.memory_space<vmem>>, vector<14x6xf32>
    %104 = arith.addf %102, %103 : vector<14x6xf32>
    %c28_81 = arith.constant 28 : index
    %c0_82 = arith.constant 0 : index
    %105 = tpu.strided_load %arg13[%c28_81, %c0_82] {strides = array<i32: 2, 1>} : memref<56x6xf32, #tpu.memory_space<vmem>>, vector<14x6xf32>
    %106 = arith.addf %104, %105 : vector<14x6xf32>
    %c29_83 = arith.constant 29 : index
    %c0_84 = arith.constant 0 : index
    %107 = tpu.strided_load %arg13[%c29_83, %c0_84] {strides = array<i32: 2, 1>} : memref<56x6xf32, #tpu.memory_space<vmem>>, vector<14x6xf32>
    %108 = arith.addf %106, %107 : vector<14x6xf32>
    %cst_85 = arith.constant 2.500000e-01 : f32
    %109 = vector.broadcast %cst_85 : f32 to vector<14x6xf32>
    %110 = arith.mulf %108, %109 : vector<14x6xf32>
    %c56_86 = arith.constant 56 : index
    %c0_87 = arith.constant 0 : index
    %111 = vector.load %arg14[%c56_86, %c0_87] : memref<196x6xf32, #tpu.memory_space<vmem>>, vector<14x6xf32>
    tpu.vector_store %arg14[%c56_86, %c0_87], %110 {strides = array<i32>} : memref<196x6xf32, #tpu.memory_space<vmem>>, vector<14x6xf32>,
    %c0_88 = arith.constant 0 : index
    %c280 = arith.constant 280 : index
    %c0_89 = arith.constant 0 : index
    %112 = vector.load %arg1[%c0_88, %c280, %c0_89] : memref<1x784x25xbf16, #tpu.memory_space<vmem>>, vector<1x56x25xbf16>
    %113 = vector.shape_cast %112 : vector<1x56x25xbf16> to vector<56x25xbf16>
    %cst_90 = arith.constant dense<0.000000e+00> : vector<56x6xf32>
    %114 = tpu.matmul %113, %0, %cst_90 {dimension_numbers = #tpu.dot_dimension_numbers<[1], [0], [0], [1], [0, 0, 1, 1], [], []>} : vector<56x25xbf16>, vector<25x6xbf16>, vector<56x6xf32> -> vector<56x6xf32>
    %115 = vector.broadcast %1 : vector<1x6xf32> to vector<56x6xf32>
    %116 = arith.addf %114, %115 : vector<56x6xf32>
    %cst_91 = arith.constant 0.000000e+00 : f32
    %117 = vector.broadcast %cst_91 : f32 to vector<56x6xf32>
    %118 = arith.subf %117, %116 : vector<56x6xf32>
    %119 = math.exp %118 : vector<56x6xf32>
    %cst_92 = arith.constant 1.000000e+00 : f32
    %120 = vector.broadcast %cst_92 : f32 to vector<56x6xf32>
    %121 = arith.addf %120, %119 : vector<56x6xf32>
    %122 = tpu.reciprocal %121 {approx = true} : vector<56x6xf32> -> vector<56x6xf32>
    %c0_93 = arith.constant 0 : index
    %c0_94 = arith.constant 0 : index
    %123 = vector.load %arg13[%c0_93, %c0_94] : memref<56x6xf32, #tpu.memory_space<vmem>>, vector<56x6xf32>
    tpu.vector_store %arg13[%c0_93, %c0_94], %122 {strides = array<i32>} : memref<56x6xf32, #tpu.memory_space<vmem>>, vector<56x6xf32>,
    %c0_95 = arith.constant 0 : index
    %c0_96 = arith.constant 0 : index
    %124 = tpu.strided_load %arg13[%c0_95, %c0_96] {strides = array<i32: 2, 1>} : memref<56x6xf32, #tpu.memory_space<vmem>>, vector<14x6xf32>
    %c1_97 = arith.constant 1 : index
    %c0_98 = arith.constant 0 : index
    %125 = tpu.strided_load %arg13[%c1_97, %c0_98] {strides = array<i32: 2, 1>} : memref<56x6xf32, #tpu.memory_space<vmem>>, vector<14x6xf32>
    %126 = arith.addf %124, %125 : vector<14x6xf32>
    %c28_99 = arith.constant 28 : index
    %c0_100 = arith.constant 0 : index
    %127 = tpu.strided_load %arg13[%c28_99, %c0_100] {strides = array<i32: 2, 1>} : memref<56x6xf32, #tpu.memory_space<vmem>>, vector<14x6xf32>
    %128 = arith.addf %126, %127 : vector<14x6xf32>
    %c29_101 = arith.constant 29 : index
    %c0_102 = arith.constant 0 : index
    %129 = tpu.strided_load %arg13[%c29_101, %c0_102] {strides = array<i32: 2, 1>} : memref<56x6xf32, #tpu.memory_space<vmem>>, vector<14x6xf32>
    %130 = arith.addf %128, %129 : vector<14x6xf32>
    %cst_103 = arith.constant 2.500000e-01 : f32
    %131 = vector.broadcast %cst_103 : f32 to vector<14x6xf32>
    %132 = arith.mulf %130, %131 : vector<14x6xf32>
    %c70 = arith.constant 70 : index
    %c0_104 = arith.constant 0 : index
    %133 = vector.load %arg14[%c70, %c0_104] : memref<196x6xf32, #tpu.memory_space<vmem>>, vector<14x6xf32>
    tpu.vector_store %arg14[%c70, %c0_104], %132 {strides = array<i32>} : memref<196x6xf32, #tpu.memory_space<vmem>>, vector<14x6xf32>,
    %c0_105 = arith.constant 0 : index
    %c336 = arith.constant 336 : index
    %c0_106 = arith.constant 0 : index
    %134 = vector.load %arg1[%c0_105, %c336, %c0_106] : memref<1x784x25xbf16, #tpu.memory_space<vmem>>, vector<1x56x25xbf16>
    %135 = vector.shape_cast %134 : vector<1x56x25xbf16> to vector<56x25xbf16>
    %cst_107 = arith.constant dense<0.000000e+00> : vector<56x6xf32>
    %136 = tpu.matmul %135, %0, %cst_107 {dimension_numbers = #tpu.dot_dimension_numbers<[1], [0], [0], [1], [0, 0, 1, 1], [], []>} : vector<56x25xbf16>, vector<25x6xbf16>, vector<56x6xf32> -> vector<56x6xf32>
    %137 = vector.broadcast %1 : vector<1x6xf32> to vector<56x6xf32>
    %138 = arith.addf %136, %137 : vector<56x6xf32>
    %cst_108 = arith.constant 0.000000e+00 : f32
    %139 = vector.broadcast %cst_108 : f32 to vector<56x6xf32>
    %140 = arith.subf %139, %138 : vector<56x6xf32>
    %141 = math.exp %140 : vector<56x6xf32>
    %cst_109 = arith.constant 1.000000e+00 : f32
    %142 = vector.broadcast %cst_109 : f32 to vector<56x6xf32>
    %143 = arith.addf %142, %141 : vector<56x6xf32>
    %144 = tpu.reciprocal %143 {approx = true} : vector<56x6xf32> -> vector<56x6xf32>
    %c0_110 = arith.constant 0 : index
    %c0_111 = arith.constant 0 : index
    %145 = vector.load %arg13[%c0_110, %c0_111] : memref<56x6xf32, #tpu.memory_space<vmem>>, vector<56x6xf32>
    tpu.vector_store %arg13[%c0_110, %c0_111], %144 {strides = array<i32>} : memref<56x6xf32, #tpu.memory_space<vmem>>, vector<56x6xf32>,
    %c0_112 = arith.constant 0 : index
    %c0_113 = arith.constant 0 : index
    %146 = tpu.strided_load %arg13[%c0_112, %c0_113] {strides = array<i32: 2, 1>} : memref<56x6xf32, #tpu.memory_space<vmem>>, vector<14x6xf32>
    %c1_114 = arith.constant 1 : index
    %c0_115 = arith.constant 0 : index
    %147 = tpu.strided_load %arg13[%c1_114, %c0_115] {strides = array<i32: 2, 1>} : memref<56x6xf32, #tpu.memory_space<vmem>>, vector<14x6xf32>
    %148 = arith.addf %146, %147 : vector<14x6xf32>
    %c28_116 = arith.constant 28 : index
    %c0_117 = arith.constant 0 : index
    %149 = tpu.strided_load %arg13[%c28_116, %c0_117] {strides = array<i32: 2, 1>} : memref<56x6xf32, #tpu.memory_space<vmem>>, vector<14x6xf32>
    %150 = arith.addf %148, %149 : vector<14x6xf32>
    %c29_118 = arith.constant 29 : index
    %c0_119 = arith.constant 0 : index
    %151 = tpu.strided_load %arg13[%c29_118, %c0_119] {strides = array<i32: 2, 1>} : memref<56x6xf32, #tpu.memory_space<vmem>>, vector<14x6xf32>
    %152 = arith.addf %150, %151 : vector<14x6xf32>
    %cst_120 = arith.constant 2.500000e-01 : f32
    %153 = vector.broadcast %cst_120 : f32 to vector<14x6xf32>
    %154 = arith.mulf %152, %153 : vector<14x6xf32>
    %c84 = arith.constant 84 : index
    %c0_121 = arith.constant 0 : index
    %155 = vector.load %arg14[%c84, %c0_121] : memref<196x6xf32, #tpu.memory_space<vmem>>, vector<14x6xf32>
    tpu.vector_store %arg14[%c84, %c0_121], %154 {strides = array<i32>} : memref<196x6xf32, #tpu.memory_space<vmem>>, vector<14x6xf32>,
    %c0_122 = arith.constant 0 : index
    %c392 = arith.constant 392 : index
    %c0_123 = arith.constant 0 : index
    %156 = vector.load %arg1[%c0_122, %c392, %c0_123] : memref<1x784x25xbf16, #tpu.memory_space<vmem>>, vector<1x56x25xbf16>
    %157 = vector.shape_cast %156 : vector<1x56x25xbf16> to vector<56x25xbf16>
    %cst_124 = arith.constant dense<0.000000e+00> : vector<56x6xf32>
    %158 = tpu.matmul %157, %0, %cst_124 {dimension_numbers = #tpu.dot_dimension_numbers<[1], [0], [0], [1], [0, 0, 1, 1], [], []>} : vector<56x25xbf16>, vector<25x6xbf16>, vector<56x6xf32> -> vector<56x6xf32>
    %159 = vector.broadcast %1 : vector<1x6xf32> to vector<56x6xf32>
    %160 = arith.addf %158, %159 : vector<56x6xf32>
    %cst_125 = arith.constant 0.000000e+00 : f32
    %161 = vector.broadcast %cst_125 : f32 to vector<56x6xf32>
    %162 = arith.subf %161, %160 : vector<56x6xf32>
    %163 = math.exp %162 : vector<56x6xf32>
    %cst_126 = arith.constant 1.000000e+00 : f32
    %164 = vector.broadcast %cst_126 : f32 to vector<56x6xf32>
    %165 = arith.addf %164, %163 : vector<56x6xf32>
    %166 = tpu.reciprocal %165 {approx = true} : vector<56x6xf32> -> vector<56x6xf32>
    %c0_127 = arith.constant 0 : index
    %c0_128 = arith.constant 0 : index
    %167 = vector.load %arg13[%c0_127, %c0_128] : memref<56x6xf32, #tpu.memory_space<vmem>>, vector<56x6xf32>
    tpu.vector_store %arg13[%c0_127, %c0_128], %166 {strides = array<i32>} : memref<56x6xf32, #tpu.memory_space<vmem>>, vector<56x6xf32>,
    %c0_129 = arith.constant 0 : index
    %c0_130 = arith.constant 0 : index
    %168 = tpu.strided_load %arg13[%c0_129, %c0_130] {strides = array<i32: 2, 1>} : memref<56x6xf32, #tpu.memory_space<vmem>>, vector<14x6xf32>
    %c1_131 = arith.constant 1 : index
    %c0_132 = arith.constant 0 : index
    %169 = tpu.strided_load %arg13[%c1_131, %c0_132] {strides = array<i32: 2, 1>} : memref<56x6xf32, #tpu.memory_space<vmem>>, vector<14x6xf32>
    %170 = arith.addf %168, %169 : vector<14x6xf32>
    %c28_133 = arith.constant 28 : index
    %c0_134 = arith.constant 0 : index
    %171 = tpu.strided_load %arg13[%c28_133, %c0_134] {strides = array<i32: 2, 1>} : memref<56x6xf32, #tpu.memory_space<vmem>>, vector<14x6xf32>
    %172 = arith.addf %170, %171 : vector<14x6xf32>
    %c29_135 = arith.constant 29 : index
    %c0_136 = arith.constant 0 : index
    %173 = tpu.strided_load %arg13[%c29_135, %c0_136] {strides = array<i32: 2, 1>} : memref<56x6xf32, #tpu.memory_space<vmem>>, vector<14x6xf32>
    %174 = arith.addf %172, %173 : vector<14x6xf32>
    %cst_137 = arith.constant 2.500000e-01 : f32
    %175 = vector.broadcast %cst_137 : f32 to vector<14x6xf32>
    %176 = arith.mulf %174, %175 : vector<14x6xf32>
    %c98 = arith.constant 98 : index
    %c0_138 = arith.constant 0 : index
    %177 = vector.load %arg14[%c98, %c0_138] : memref<196x6xf32, #tpu.memory_space<vmem>>, vector<14x6xf32>
    tpu.vector_store %arg14[%c98, %c0_138], %176 {strides = array<i32>} : memref<196x6xf32, #tpu.memory_space<vmem>>, vector<14x6xf32>,
    %c0_139 = arith.constant 0 : index
    %c448 = arith.constant 448 : index
    %c0_140 = arith.constant 0 : index
    %178 = vector.load %arg1[%c0_139, %c448, %c0_140] : memref<1x784x25xbf16, #tpu.memory_space<vmem>>, vector<1x56x25xbf16>
    %179 = vector.shape_cast %178 : vector<1x56x25xbf16> to vector<56x25xbf16>
    %cst_141 = arith.constant dense<0.000000e+00> : vector<56x6xf32>
    %180 = tpu.matmul %179, %0, %cst_141 {dimension_numbers = #tpu.dot_dimension_numbers<[1], [0], [0], [1], [0, 0, 1, 1], [], []>} : vector<56x25xbf16>, vector<25x6xbf16>, vector<56x6xf32> -> vector<56x6xf32>
    %181 = vector.broadcast %1 : vector<1x6xf32> to vector<56x6xf32>
    %182 = arith.addf %180, %181 : vector<56x6xf32>
    %cst_142 = arith.constant 0.000000e+00 : f32
    %183 = vector.broadcast %cst_142 : f32 to vector<56x6xf32>
    %184 = arith.subf %183, %182 : vector<56x6xf32>
    %185 = math.exp %184 : vector<56x6xf32>
    %cst_143 = arith.constant 1.000000e+00 : f32
    %186 = vector.broadcast %cst_143 : f32 to vector<56x6xf32>
    %187 = arith.addf %186, %185 : vector<56x6xf32>
    %188 = tpu.reciprocal %187 {approx = true} : vector<56x6xf32> -> vector<56x6xf32>
    %c0_144 = arith.constant 0 : index
    %c0_145 = arith.constant 0 : index
    %189 = vector.load %arg13[%c0_144, %c0_145] : memref<56x6xf32, #tpu.memory_space<vmem>>, vector<56x6xf32>
    tpu.vector_store %arg13[%c0_144, %c0_145], %188 {strides = array<i32>} : memref<56x6xf32, #tpu.memory_space<vmem>>, vector<56x6xf32>,
    %c0_146 = arith.constant 0 : index
    %c0_147 = arith.constant 0 : index
    %190 = tpu.strided_load %arg13[%c0_146, %c0_147] {strides = array<i32: 2, 1>} : memref<56x6xf32, #tpu.memory_space<vmem>>, vector<14x6xf32>
    %c1_148 = arith.constant 1 : index
    %c0_149 = arith.constant 0 : index
    %191 = tpu.strided_load %arg13[%c1_148, %c0_149] {strides = array<i32: 2, 1>} : memref<56x6xf32, #tpu.memory_space<vmem>>, vector<14x6xf32>
    %192 = arith.addf %190, %191 : vector<14x6xf32>
    %c28_150 = arith.constant 28 : index
    %c0_151 = arith.constant 0 : index
    %193 = tpu.strided_load %arg13[%c28_150, %c0_151] {strides = array<i32: 2, 1>} : memref<56x6xf32, #tpu.memory_space<vmem>>, vector<14x6xf32>
    %194 = arith.addf %192, %193 : vector<14x6xf32>
    %c29_152 = arith.constant 29 : index
    %c0_153 = arith.constant 0 : index
    %195 = tpu.strided_load %arg13[%c29_152, %c0_153] {strides = array<i32: 2, 1>} : memref<56x6xf32, #tpu.memory_space<vmem>>, vector<14x6xf32>
    %196 = arith.addf %194, %195 : vector<14x6xf32>
    %cst_154 = arith.constant 2.500000e-01 : f32
    %197 = vector.broadcast %cst_154 : f32 to vector<14x6xf32>
    %198 = arith.mulf %196, %197 : vector<14x6xf32>
    %c112_155 = arith.constant 112 : index
    %c0_156 = arith.constant 0 : index
    %199 = vector.load %arg14[%c112_155, %c0_156] : memref<196x6xf32, #tpu.memory_space<vmem>>, vector<14x6xf32>
    tpu.vector_store %arg14[%c112_155, %c0_156], %198 {strides = array<i32>} : memref<196x6xf32, #tpu.memory_space<vmem>>, vector<14x6xf32>,
    %c0_157 = arith.constant 0 : index
    %c504 = arith.constant 504 : index
    %c0_158 = arith.constant 0 : index
    %200 = vector.load %arg1[%c0_157, %c504, %c0_158] : memref<1x784x25xbf16, #tpu.memory_space<vmem>>, vector<1x56x25xbf16>
    %201 = vector.shape_cast %200 : vector<1x56x25xbf16> to vector<56x25xbf16>
    %cst_159 = arith.constant dense<0.000000e+00> : vector<56x6xf32>
    %202 = tpu.matmul %201, %0, %cst_159 {dimension_numbers = #tpu.dot_dimension_numbers<[1], [0], [0], [1], [0, 0, 1, 1], [], []>} : vector<56x25xbf16>, vector<25x6xbf16>, vector<56x6xf32> -> vector<56x6xf32>
    %203 = vector.broadcast %1 : vector<1x6xf32> to vector<56x6xf32>
    %204 = arith.addf %202, %203 : vector<56x6xf32>
    %cst_160 = arith.constant 0.000000e+00 : f32
    %205 = vector.broadcast %cst_160 : f32 to vector<56x6xf32>
    %206 = arith.subf %205, %204 : vector<56x6xf32>
    %207 = math.exp %206 : vector<56x6xf32>
    %cst_161 = arith.constant 1.000000e+00 : f32
    %208 = vector.broadcast %cst_161 : f32 to vector<56x6xf32>
    %209 = arith.addf %208, %207 : vector<56x6xf32>
    %210 = tpu.reciprocal %209 {approx = true} : vector<56x6xf32> -> vector<56x6xf32>
    %c0_162 = arith.constant 0 : index
    %c0_163 = arith.constant 0 : index
    %211 = vector.load %arg13[%c0_162, %c0_163] : memref<56x6xf32, #tpu.memory_space<vmem>>, vector<56x6xf32>
    tpu.vector_store %arg13[%c0_162, %c0_163], %210 {strides = array<i32>} : memref<56x6xf32, #tpu.memory_space<vmem>>, vector<56x6xf32>,
    %c0_164 = arith.constant 0 : index
    %c0_165 = arith.constant 0 : index
    %212 = tpu.strided_load %arg13[%c0_164, %c0_165] {strides = array<i32: 2, 1>} : memref<56x6xf32, #tpu.memory_space<vmem>>, vector<14x6xf32>
    %c1_166 = arith.constant 1 : index
    %c0_167 = arith.constant 0 : index
    %213 = tpu.strided_load %arg13[%c1_166, %c0_167] {strides = array<i32: 2, 1>} : memref<56x6xf32, #tpu.memory_space<vmem>>, vector<14x6xf32>
    %214 = arith.addf %212, %213 : vector<14x6xf32>
    %c28_168 = arith.constant 28 : index
    %c0_169 = arith.constant 0 : index
    %215 = tpu.strided_load %arg13[%c28_168, %c0_169] {strides = array<i32: 2, 1>} : memref<56x6xf32, #tpu.memory_space<vmem>>, vector<14x6xf32>
    %216 = arith.addf %214, %215 : vector<14x6xf32>
    %c29_170 = arith.constant 29 : index
    %c0_171 = arith.constant 0 : index
    %217 = tpu.strided_load %arg13[%c29_170, %c0_171] {strides = array<i32: 2, 1>} : memref<56x6xf32, #tpu.memory_space<vmem>>, vector<14x6xf32>
    %218 = arith.addf %216, %217 : vector<14x6xf32>
    %cst_172 = arith.constant 2.500000e-01 : f32
    %219 = vector.broadcast %cst_172 : f32 to vector<14x6xf32>
    %220 = arith.mulf %218, %219 : vector<14x6xf32>
    %c126 = arith.constant 126 : index
    %c0_173 = arith.constant 0 : index
    %221 = vector.load %arg14[%c126, %c0_173] : memref<196x6xf32, #tpu.memory_space<vmem>>, vector<14x6xf32>
    tpu.vector_store %arg14[%c126, %c0_173], %220 {strides = array<i32>} : memref<196x6xf32, #tpu.memory_space<vmem>>, vector<14x6xf32>,
    %c0_174 = arith.constant 0 : index
    %c560 = arith.constant 560 : index
    %c0_175 = arith.constant 0 : index
    %222 = vector.load %arg1[%c0_174, %c560, %c0_175] : memref<1x784x25xbf16, #tpu.memory_space<vmem>>, vector<1x56x25xbf16>
    %223 = vector.shape_cast %222 : vector<1x56x25xbf16> to vector<56x25xbf16>
    %cst_176 = arith.constant dense<0.000000e+00> : vector<56x6xf32>
    %224 = tpu.matmul %223, %0, %cst_176 {dimension_numbers = #tpu.dot_dimension_numbers<[1], [0], [0], [1], [0, 0, 1, 1], [], []>} : vector<56x25xbf16>, vector<25x6xbf16>, vector<56x6xf32> -> vector<56x6xf32>
    %225 = vector.broadcast %1 : vector<1x6xf32> to vector<56x6xf32>
    %226 = arith.addf %224, %225 : vector<56x6xf32>
    %cst_177 = arith.constant 0.000000e+00 : f32
    %227 = vector.broadcast %cst_177 : f32 to vector<56x6xf32>
    %228 = arith.subf %227, %226 : vector<56x6xf32>
    %229 = math.exp %228 : vector<56x6xf32>
    %cst_178 = arith.constant 1.000000e+00 : f32
    %230 = vector.broadcast %cst_178 : f32 to vector<56x6xf32>
    %231 = arith.addf %230, %229 : vector<56x6xf32>
    %232 = tpu.reciprocal %231 {approx = true} : vector<56x6xf32> -> vector<56x6xf32>
    %c0_179 = arith.constant 0 : index
    %c0_180 = arith.constant 0 : index
    %233 = vector.load %arg13[%c0_179, %c0_180] : memref<56x6xf32, #tpu.memory_space<vmem>>, vector<56x6xf32>
    tpu.vector_store %arg13[%c0_179, %c0_180], %232 {strides = array<i32>} : memref<56x6xf32, #tpu.memory_space<vmem>>, vector<56x6xf32>,
    %c0_181 = arith.constant 0 : index
    %c0_182 = arith.constant 0 : index
    %234 = tpu.strided_load %arg13[%c0_181, %c0_182] {strides = array<i32: 2, 1>} : memref<56x6xf32, #tpu.memory_space<vmem>>, vector<14x6xf32>
    %c1_183 = arith.constant 1 : index
    %c0_184 = arith.constant 0 : index
    %235 = tpu.strided_load %arg13[%c1_183, %c0_184] {strides = array<i32: 2, 1>} : memref<56x6xf32, #tpu.memory_space<vmem>>, vector<14x6xf32>
    %236 = arith.addf %234, %235 : vector<14x6xf32>
    %c28_185 = arith.constant 28 : index
    %c0_186 = arith.constant 0 : index
    %237 = tpu.strided_load %arg13[%c28_185, %c0_186] {strides = array<i32: 2, 1>} : memref<56x6xf32, #tpu.memory_space<vmem>>, vector<14x6xf32>
    %238 = arith.addf %236, %237 : vector<14x6xf32>
    %c29_187 = arith.constant 29 : index
    %c0_188 = arith.constant 0 : index
    %239 = tpu.strided_load %arg13[%c29_187, %c0_188] {strides = array<i32: 2, 1>} : memref<56x6xf32, #tpu.memory_space<vmem>>, vector<14x6xf32>
    %240 = arith.addf %238, %239 : vector<14x6xf32>
    %cst_189 = arith.constant 2.500000e-01 : f32
    %241 = vector.broadcast %cst_189 : f32 to vector<14x6xf32>
    %242 = arith.mulf %240, %241 : vector<14x6xf32>
    %c140 = arith.constant 140 : index
    %c0_190 = arith.constant 0 : index
    %243 = vector.load %arg14[%c140, %c0_190] : memref<196x6xf32, #tpu.memory_space<vmem>>, vector<14x6xf32>
    tpu.vector_store %arg14[%c140, %c0_190], %242 {strides = array<i32>} : memref<196x6xf32, #tpu.memory_space<vmem>>, vector<14x6xf32>,
    %c0_191 = arith.constant 0 : index
    %c616 = arith.constant 616 : index
    %c0_192 = arith.constant 0 : index
    %244 = vector.load %arg1[%c0_191, %c616, %c0_192] : memref<1x784x25xbf16, #tpu.memory_space<vmem>>, vector<1x56x25xbf16>
    %245 = vector.shape_cast %244 : vector<1x56x25xbf16> to vector<56x25xbf16>
    %cst_193 = arith.constant dense<0.000000e+00> : vector<56x6xf32>
    %246 = tpu.matmul %245, %0, %cst_193 {dimension_numbers = #tpu.dot_dimension_numbers<[1], [0], [0], [1], [0, 0, 1, 1], [], []>} : vector<56x25xbf16>, vector<25x6xbf16>, vector<56x6xf32> -> vector<56x6xf32>
    %247 = vector.broadcast %1 : vector<1x6xf32> to vector<56x6xf32>
    %248 = arith.addf %246, %247 : vector<56x6xf32>
    %cst_194 = arith.constant 0.000000e+00 : f32
    %249 = vector.broadcast %cst_194 : f32 to vector<56x6xf32>
    %250 = arith.subf %249, %248 : vector<56x6xf32>
    %251 = math.exp %250 : vector<56x6xf32>
    %cst_195 = arith.constant 1.000000e+00 : f32
    %252 = vector.broadcast %cst_195 : f32 to vector<56x6xf32>
    %253 = arith.addf %252, %251 : vector<56x6xf32>
    %254 = tpu.reciprocal %253 {approx = true} : vector<56x6xf32> -> vector<56x6xf32>
    %c0_196 = arith.constant 0 : index
    %c0_197 = arith.constant 0 : index
    %255 = vector.load %arg13[%c0_196, %c0_197] : memref<56x6xf32, #tpu.memory_space<vmem>>, vector<56x6xf32>
    tpu.vector_store %arg13[%c0_196, %c0_197], %254 {strides = array<i32>} : memref<56x6xf32, #tpu.memory_space<vmem>>, vector<56x6xf32>,
    %c0_198 = arith.constant 0 : index
    %c0_199 = arith.constant 0 : index
    %256 = tpu.strided_load %arg13[%c0_198, %c0_199] {strides = array<i32: 2, 1>} : memref<56x6xf32, #tpu.memory_space<vmem>>, vector<14x6xf32>
    %c1_200 = arith.constant 1 : index
    %c0_201 = arith.constant 0 : index
    %257 = tpu.strided_load %arg13[%c1_200, %c0_201] {strides = array<i32: 2, 1>} : memref<56x6xf32, #tpu.memory_space<vmem>>, vector<14x6xf32>
    %258 = arith.addf %256, %257 : vector<14x6xf32>
    %c28_202 = arith.constant 28 : index
    %c0_203 = arith.constant 0 : index
    %259 = tpu.strided_load %arg13[%c28_202, %c0_203] {strides = array<i32: 2, 1>} : memref<56x6xf32, #tpu.memory_space<vmem>>, vector<14x6xf32>
    %260 = arith.addf %258, %259 : vector<14x6xf32>
    %c29_204 = arith.constant 29 : index
    %c0_205 = arith.constant 0 : index
    %261 = tpu.strided_load %arg13[%c29_204, %c0_205] {strides = array<i32: 2, 1>} : memref<56x6xf32, #tpu.memory_space<vmem>>, vector<14x6xf32>
    %262 = arith.addf %260, %261 : vector<14x6xf32>
    %cst_206 = arith.constant 2.500000e-01 : f32
    %263 = vector.broadcast %cst_206 : f32 to vector<14x6xf32>
    %264 = arith.mulf %262, %263 : vector<14x6xf32>
    %c154 = arith.constant 154 : index
    %c0_207 = arith.constant 0 : index
    %265 = vector.load %arg14[%c154, %c0_207] : memref<196x6xf32, #tpu.memory_space<vmem>>, vector<14x6xf32>
    tpu.vector_store %arg14[%c154, %c0_207], %264 {strides = array<i32>} : memref<196x6xf32, #tpu.memory_space<vmem>>, vector<14x6xf32>,
    %c0_208 = arith.constant 0 : index
    %c672 = arith.constant 672 : index
    %c0_209 = arith.constant 0 : index
    %266 = vector.load %arg1[%c0_208, %c672, %c0_209] : memref<1x784x25xbf16, #tpu.memory_space<vmem>>, vector<1x56x25xbf16>
    %267 = vector.shape_cast %266 : vector<1x56x25xbf16> to vector<56x25xbf16>
    %cst_210 = arith.constant dense<0.000000e+00> : vector<56x6xf32>
    %268 = tpu.matmul %267, %0, %cst_210 {dimension_numbers = #tpu.dot_dimension_numbers<[1], [0], [0], [1], [0, 0, 1, 1], [], []>} : vector<56x25xbf16>, vector<25x6xbf16>, vector<56x6xf32> -> vector<56x6xf32>
    %269 = vector.broadcast %1 : vector<1x6xf32> to vector<56x6xf32>
    %270 = arith.addf %268, %269 : vector<56x6xf32>
    %cst_211 = arith.constant 0.000000e+00 : f32
    %271 = vector.broadcast %cst_211 : f32 to vector<56x6xf32>
    %272 = arith.subf %271, %270 : vector<56x6xf32>
    %273 = math.exp %272 : vector<56x6xf32>
    %cst_212 = arith.constant 1.000000e+00 : f32
    %274 = vector.broadcast %cst_212 : f32 to vector<56x6xf32>
    %275 = arith.addf %274, %273 : vector<56x6xf32>
    %276 = tpu.reciprocal %275 {approx = true} : vector<56x6xf32> -> vector<56x6xf32>
    %c0_213 = arith.constant 0 : index
    %c0_214 = arith.constant 0 : index
    %277 = vector.load %arg13[%c0_213, %c0_214] : memref<56x6xf32, #tpu.memory_space<vmem>>, vector<56x6xf32>
    tpu.vector_store %arg13[%c0_213, %c0_214], %276 {strides = array<i32>} : memref<56x6xf32, #tpu.memory_space<vmem>>, vector<56x6xf32>,
    %c0_215 = arith.constant 0 : index
    %c0_216 = arith.constant 0 : index
    %278 = tpu.strided_load %arg13[%c0_215, %c0_216] {strides = array<i32: 2, 1>} : memref<56x6xf32, #tpu.memory_space<vmem>>, vector<14x6xf32>
    %c1_217 = arith.constant 1 : index
    %c0_218 = arith.constant 0 : index
    %279 = tpu.strided_load %arg13[%c1_217, %c0_218] {strides = array<i32: 2, 1>} : memref<56x6xf32, #tpu.memory_space<vmem>>, vector<14x6xf32>
    %280 = arith.addf %278, %279 : vector<14x6xf32>
    %c28_219 = arith.constant 28 : index
    %c0_220 = arith.constant 0 : index
    %281 = tpu.strided_load %arg13[%c28_219, %c0_220] {strides = array<i32: 2, 1>} : memref<56x6xf32, #tpu.memory_space<vmem>>, vector<14x6xf32>
    %282 = arith.addf %280, %281 : vector<14x6xf32>
    %c29_221 = arith.constant 29 : index
    %c0_222 = arith.constant 0 : index
    %283 = tpu.strided_load %arg13[%c29_221, %c0_222] {strides = array<i32: 2, 1>} : memref<56x6xf32, #tpu.memory_space<vmem>>, vector<14x6xf32>
    %284 = arith.addf %282, %283 : vector<14x6xf32>
    %cst_223 = arith.constant 2.500000e-01 : f32
    %285 = vector.broadcast %cst_223 : f32 to vector<14x6xf32>
    %286 = arith.mulf %284, %285 : vector<14x6xf32>
    %c168_224 = arith.constant 168 : index
    %c0_225 = arith.constant 0 : index
    %287 = vector.load %arg14[%c168_224, %c0_225] : memref<196x6xf32, #tpu.memory_space<vmem>>, vector<14x6xf32>
    tpu.vector_store %arg14[%c168_224, %c0_225], %286 {strides = array<i32>} : memref<196x6xf32, #tpu.memory_space<vmem>>, vector<14x6xf32>,
    %c0_226 = arith.constant 0 : index
    %c728 = arith.constant 728 : index
    %c0_227 = arith.constant 0 : index
    %288 = vector.load %arg1[%c0_226, %c728, %c0_227] : memref<1x784x25xbf16, #tpu.memory_space<vmem>>, vector<1x56x25xbf16>
    %289 = vector.shape_cast %288 : vector<1x56x25xbf16> to vector<56x25xbf16>
    %cst_228 = arith.constant dense<0.000000e+00> : vector<56x6xf32>
    %290 = tpu.matmul %289, %0, %cst_228 {dimension_numbers = #tpu.dot_dimension_numbers<[1], [0], [0], [1], [0, 0, 1, 1], [], []>} : vector<56x25xbf16>, vector<25x6xbf16>, vector<56x6xf32> -> vector<56x6xf32>
    %291 = vector.broadcast %1 : vector<1x6xf32> to vector<56x6xf32>
    %292 = arith.addf %290, %291 : vector<56x6xf32>
    %cst_229 = arith.constant 0.000000e+00 : f32
    %293 = vector.broadcast %cst_229 : f32 to vector<56x6xf32>
    %294 = arith.subf %293, %292 : vector<56x6xf32>
    %295 = math.exp %294 : vector<56x6xf32>
    %cst_230 = arith.constant 1.000000e+00 : f32
    %296 = vector.broadcast %cst_230 : f32 to vector<56x6xf32>
    %297 = arith.addf %296, %295 : vector<56x6xf32>
    %298 = tpu.reciprocal %297 {approx = true} : vector<56x6xf32> -> vector<56x6xf32>
    %c0_231 = arith.constant 0 : index
    %c0_232 = arith.constant 0 : index
    %299 = vector.load %arg13[%c0_231, %c0_232] : memref<56x6xf32, #tpu.memory_space<vmem>>, vector<56x6xf32>
    tpu.vector_store %arg13[%c0_231, %c0_232], %298 {strides = array<i32>} : memref<56x6xf32, #tpu.memory_space<vmem>>, vector<56x6xf32>,
    %c0_233 = arith.constant 0 : index
    %c0_234 = arith.constant 0 : index
    %300 = tpu.strided_load %arg13[%c0_233, %c0_234] {strides = array<i32: 2, 1>} : memref<56x6xf32, #tpu.memory_space<vmem>>, vector<14x6xf32>
    %c1_235 = arith.constant 1 : index
    %c0_236 = arith.constant 0 : index
    %301 = tpu.strided_load %arg13[%c1_235, %c0_236] {strides = array<i32: 2, 1>} : memref<56x6xf32, #tpu.memory_space<vmem>>, vector<14x6xf32>
    %302 = arith.addf %300, %301 : vector<14x6xf32>
    %c28_237 = arith.constant 28 : index
    %c0_238 = arith.constant 0 : index
    %303 = tpu.strided_load %arg13[%c28_237, %c0_238] {strides = array<i32: 2, 1>} : memref<56x6xf32, #tpu.memory_space<vmem>>, vector<14x6xf32>
    %304 = arith.addf %302, %303 : vector<14x6xf32>
    %c29_239 = arith.constant 29 : index
    %c0_240 = arith.constant 0 : index
    %305 = tpu.strided_load %arg13[%c29_239, %c0_240] {strides = array<i32: 2, 1>} : memref<56x6xf32, #tpu.memory_space<vmem>>, vector<14x6xf32>
    %306 = arith.addf %304, %305 : vector<14x6xf32>
    %cst_241 = arith.constant 2.500000e-01 : f32
    %307 = vector.broadcast %cst_241 : f32 to vector<14x6xf32>
    %308 = arith.mulf %306, %307 : vector<14x6xf32>
    %c182 = arith.constant 182 : index
    %c0_242 = arith.constant 0 : index
    %309 = vector.load %arg14[%c182, %c0_242] : memref<196x6xf32, #tpu.memory_space<vmem>>, vector<14x6xf32>
    tpu.vector_store %arg14[%c182, %c0_242], %308 {strides = array<i32>} : memref<196x6xf32, #tpu.memory_space<vmem>>, vector<14x6xf32>,
    %c0_243 = arith.constant 0 : index
    %c0_244 = arith.constant 0 : index
    %310 = vector.load %arg14[%c0_243, %c0_244] : memref<196x6xf32, #tpu.memory_space<vmem>>, vector<196x6xf32>
    %311 = arith.truncf %310 : vector<196x6xf32> to vector<196x6xbf16>
    %cst_245 = arith.constant 0.000000e+00 : f32
    %312 = vector.broadcast %cst_245 : f32 to vector<10x16xf32>
    %cst_246 = arith.constant 0.000000e+00 : f32
    %313 = vector.broadcast %cst_246 : f32 to vector<10x16xf32>
    %cst_247 = arith.constant 0.000000e+00 : f32
    %314 = vector.broadcast %cst_247 : f32 to vector<10x16xf32>
    %cst_248 = arith.constant 0.000000e+00 : f32
    %315 = vector.broadcast %cst_248 : f32 to vector<10x16xf32>
    %cst_249 = arith.constant 0.000000e+00 : f32
    %316 = vector.broadcast %cst_249 : f32 to vector<10x16xf32>
    %cst_250 = arith.constant 0.000000e+00 : f32
    %317 = vector.broadcast %cst_250 : f32 to vector<10x16xf32>
    %cst_251 = arith.constant 0.000000e+00 : f32
    %318 = vector.broadcast %cst_251 : f32 to vector<10x16xf32>
    %cst_252 = arith.constant 0.000000e+00 : f32
    %319 = vector.broadcast %cst_252 : f32 to vector<10x16xf32>
    %cst_253 = arith.constant 0.000000e+00 : f32
    %320 = vector.broadcast %cst_253 : f32 to vector<10x16xf32>
    %cst_254 = arith.constant 0.000000e+00 : f32
    %321 = vector.broadcast %cst_254 : f32 to vector<10x16xf32>
    %c0_255 = arith.constant 0 : index
    %c0_256 = arith.constant 0 : index
    %322 = vector.load %arg4[%c0_255, %c0_256] : memref<150x16xbf16, #tpu.memory_space<vmem>>, vector<6x16xbf16>
    %cst_257 = arith.constant dense<0.000000e+00> : vector<196x16xf32>
    %323 = tpu.matmul %311, %322, %cst_257 {dimension_numbers = #tpu.dot_dimension_numbers<[1], [0], [0], [1], [0, 0, 1, 1], [], []>} : vector<196x6xbf16>, vector<6x16xbf16>, vector<196x16xf32> -> vector<196x16xf32>
    %324 = vector.extract_strided_slice %323 {offsets = [0, 0], sizes = [10, 16], strides = [1, 1]} : vector<196x16xf32> to vector<10x16xf32>
    %325 = arith.addf %312, %324 : vector<10x16xf32>
    %326 = vector.extract_strided_slice %323 {offsets = [14, 0], sizes = [10, 16], strides = [1, 1]} : vector<196x16xf32> to vector<10x16xf32>
    %327 = arith.addf %313, %326 : vector<10x16xf32>
    %328 = vector.extract_strided_slice %323 {offsets = [28, 0], sizes = [10, 16], strides = [1, 1]} : vector<196x16xf32> to vector<10x16xf32>
    %329 = arith.addf %314, %328 : vector<10x16xf32>
    %330 = vector.extract_strided_slice %323 {offsets = [42, 0], sizes = [10, 16], strides = [1, 1]} : vector<196x16xf32> to vector<10x16xf32>
    %331 = arith.addf %315, %330 : vector<10x16xf32>
    %332 = vector.extract_strided_slice %323 {offsets = [56, 0], sizes = [10, 16], strides = [1, 1]} : vector<196x16xf32> to vector<10x16xf32>
    %333 = arith.addf %316, %332 : vector<10x16xf32>
    %334 = vector.extract_strided_slice %323 {offsets = [70, 0], sizes = [10, 16], strides = [1, 1]} : vector<196x16xf32> to vector<10x16xf32>
    %335 = arith.addf %317, %334 : vector<10x16xf32>
    %336 = vector.extract_strided_slice %323 {offsets = [84, 0], sizes = [10, 16], strides = [1, 1]} : vector<196x16xf32> to vector<10x16xf32>
    %337 = arith.addf %318, %336 : vector<10x16xf32>
    %338 = vector.extract_strided_slice %323 {offsets = [98, 0], sizes = [10, 16], strides = [1, 1]} : vector<196x16xf32> to vector<10x16xf32>
    %339 = arith.addf %319, %338 : vector<10x16xf32>
    %340 = vector.extract_strided_slice %323 {offsets = [112, 0], sizes = [10, 16], strides = [1, 1]} : vector<196x16xf32> to vector<10x16xf32>
    %341 = arith.addf %320, %340 : vector<10x16xf32>
    %342 = vector.extract_strided_slice %323 {offsets = [126, 0], sizes = [10, 16], strides = [1, 1]} : vector<196x16xf32> to vector<10x16xf32>
    %343 = arith.addf %321, %342 : vector<10x16xf32>
    %c6 = arith.constant 6 : index
    %c0_258 = arith.constant 0 : index
    %344 = vector.load %arg4[%c6, %c0_258] : memref<150x16xbf16, #tpu.memory_space<vmem>>, vector<6x16xbf16>
    %cst_259 = arith.constant dense<0.000000e+00> : vector<196x16xf32>
    %345 = tpu.matmul %311, %344, %cst_259 {dimension_numbers = #tpu.dot_dimension_numbers<[1], [0], [0], [1], [0, 0, 1, 1], [], []>} : vector<196x6xbf16>, vector<6x16xbf16>, vector<196x16xf32> -> vector<196x16xf32>
    %346 = vector.extract_strided_slice %345 {offsets = [1, 0], sizes = [10, 16], strides = [1, 1]} : vector<196x16xf32> to vector<10x16xf32>
    %347 = arith.addf %325, %346 : vector<10x16xf32>
    %348 = vector.extract_strided_slice %345 {offsets = [15, 0], sizes = [10, 16], strides = [1, 1]} : vector<196x16xf32> to vector<10x16xf32>
    %349 = arith.addf %327, %348 : vector<10x16xf32>
    %350 = vector.extract_strided_slice %345 {offsets = [29, 0], sizes = [10, 16], strides = [1, 1]} : vector<196x16xf32> to vector<10x16xf32>
    %351 = arith.addf %329, %350 : vector<10x16xf32>
    %352 = vector.extract_strided_slice %345 {offsets = [43, 0], sizes = [10, 16], strides = [1, 1]} : vector<196x16xf32> to vector<10x16xf32>
    %353 = arith.addf %331, %352 : vector<10x16xf32>
    %354 = vector.extract_strided_slice %345 {offsets = [57, 0], sizes = [10, 16], strides = [1, 1]} : vector<196x16xf32> to vector<10x16xf32>
    %355 = arith.addf %333, %354 : vector<10x16xf32>
    %356 = vector.extract_strided_slice %345 {offsets = [71, 0], sizes = [10, 16], strides = [1, 1]} : vector<196x16xf32> to vector<10x16xf32>
    %357 = arith.addf %335, %356 : vector<10x16xf32>
    %358 = vector.extract_strided_slice %345 {offsets = [85, 0], sizes = [10, 16], strides = [1, 1]} : vector<196x16xf32> to vector<10x16xf32>
    %359 = arith.addf %337, %358 : vector<10x16xf32>
    %360 = vector.extract_strided_slice %345 {offsets = [99, 0], sizes = [10, 16], strides = [1, 1]} : vector<196x16xf32> to vector<10x16xf32>
    %361 = arith.addf %339, %360 : vector<10x16xf32>
    %362 = vector.extract_strided_slice %345 {offsets = [113, 0], sizes = [10, 16], strides = [1, 1]} : vector<196x16xf32> to vector<10x16xf32>
    %363 = arith.addf %341, %362 : vector<10x16xf32>
    %364 = vector.extract_strided_slice %345 {offsets = [127, 0], sizes = [10, 16], strides = [1, 1]} : vector<196x16xf32> to vector<10x16xf32>
    %365 = arith.addf %343, %364 : vector<10x16xf32>
    %c12 = arith.constant 12 : index
    %c0_260 = arith.constant 0 : index
    %366 = vector.load %arg4[%c12, %c0_260] : memref<150x16xbf16, #tpu.memory_space<vmem>>, vector<6x16xbf16>
    %cst_261 = arith.constant dense<0.000000e+00> : vector<196x16xf32>
    %367 = tpu.matmul %311, %366, %cst_261 {dimension_numbers = #tpu.dot_dimension_numbers<[1], [0], [0], [1], [0, 0, 1, 1], [], []>} : vector<196x6xbf16>, vector<6x16xbf16>, vector<196x16xf32> -> vector<196x16xf32>
    %368 = vector.extract_strided_slice %367 {offsets = [2, 0], sizes = [10, 16], strides = [1, 1]} : vector<196x16xf32> to vector<10x16xf32>
    %369 = arith.addf %347, %368 : vector<10x16xf32>
    %370 = vector.extract_strided_slice %367 {offsets = [16, 0], sizes = [10, 16], strides = [1, 1]} : vector<196x16xf32> to vector<10x16xf32>
    %371 = arith.addf %349, %370 : vector<10x16xf32>
    %372 = vector.extract_strided_slice %367 {offsets = [30, 0], sizes = [10, 16], strides = [1, 1]} : vector<196x16xf32> to vector<10x16xf32>
    %373 = arith.addf %351, %372 : vector<10x16xf32>
    %374 = vector.extract_strided_slice %367 {offsets = [44, 0], sizes = [10, 16], strides = [1, 1]} : vector<196x16xf32> to vector<10x16xf32>
    %375 = arith.addf %353, %374 : vector<10x16xf32>
    %376 = vector.extract_strided_slice %367 {offsets = [58, 0], sizes = [10, 16], strides = [1, 1]} : vector<196x16xf32> to vector<10x16xf32>
    %377 = arith.addf %355, %376 : vector<10x16xf32>
    %378 = vector.extract_strided_slice %367 {offsets = [72, 0], sizes = [10, 16], strides = [1, 1]} : vector<196x16xf32> to vector<10x16xf32>
    %379 = arith.addf %357, %378 : vector<10x16xf32>
    %380 = vector.extract_strided_slice %367 {offsets = [86, 0], sizes = [10, 16], strides = [1, 1]} : vector<196x16xf32> to vector<10x16xf32>
    %381 = arith.addf %359, %380 : vector<10x16xf32>
    %382 = vector.extract_strided_slice %367 {offsets = [100, 0], sizes = [10, 16], strides = [1, 1]} : vector<196x16xf32> to vector<10x16xf32>
    %383 = arith.addf %361, %382 : vector<10x16xf32>
    %384 = vector.extract_strided_slice %367 {offsets = [114, 0], sizes = [10, 16], strides = [1, 1]} : vector<196x16xf32> to vector<10x16xf32>
    %385 = arith.addf %363, %384 : vector<10x16xf32>
    %386 = vector.extract_strided_slice %367 {offsets = [128, 0], sizes = [10, 16], strides = [1, 1]} : vector<196x16xf32> to vector<10x16xf32>
    %387 = arith.addf %365, %386 : vector<10x16xf32>
    %c18 = arith.constant 18 : index
    %c0_262 = arith.constant 0 : index
    %388 = vector.load %arg4[%c18, %c0_262] : memref<150x16xbf16, #tpu.memory_space<vmem>>, vector<6x16xbf16>
    %cst_263 = arith.constant dense<0.000000e+00> : vector<196x16xf32>
    %389 = tpu.matmul %311, %388, %cst_263 {dimension_numbers = #tpu.dot_dimension_numbers<[1], [0], [0], [1], [0, 0, 1, 1], [], []>} : vector<196x6xbf16>, vector<6x16xbf16>, vector<196x16xf32> -> vector<196x16xf32>
    %390 = vector.extract_strided_slice %389 {offsets = [3, 0], sizes = [10, 16], strides = [1, 1]} : vector<196x16xf32> to vector<10x16xf32>
    %391 = arith.addf %369, %390 : vector<10x16xf32>
    %392 = vector.extract_strided_slice %389 {offsets = [17, 0], sizes = [10, 16], strides = [1, 1]} : vector<196x16xf32> to vector<10x16xf32>
    %393 = arith.addf %371, %392 : vector<10x16xf32>
    %394 = vector.extract_strided_slice %389 {offsets = [31, 0], sizes = [10, 16], strides = [1, 1]} : vector<196x16xf32> to vector<10x16xf32>
    %395 = arith.addf %373, %394 : vector<10x16xf32>
    %396 = vector.extract_strided_slice %389 {offsets = [45, 0], sizes = [10, 16], strides = [1, 1]} : vector<196x16xf32> to vector<10x16xf32>
    %397 = arith.addf %375, %396 : vector<10x16xf32>
    %398 = vector.extract_strided_slice %389 {offsets = [59, 0], sizes = [10, 16], strides = [1, 1]} : vector<196x16xf32> to vector<10x16xf32>
    %399 = arith.addf %377, %398 : vector<10x16xf32>
    %400 = vector.extract_strided_slice %389 {offsets = [73, 0], sizes = [10, 16], strides = [1, 1]} : vector<196x16xf32> to vector<10x16xf32>
    %401 = arith.addf %379, %400 : vector<10x16xf32>
    %402 = vector.extract_strided_slice %389 {offsets = [87, 0], sizes = [10, 16], strides = [1, 1]} : vector<196x16xf32> to vector<10x16xf32>
    %403 = arith.addf %381, %402 : vector<10x16xf32>
    %404 = vector.extract_strided_slice %389 {offsets = [101, 0], sizes = [10, 16], strides = [1, 1]} : vector<196x16xf32> to vector<10x16xf32>
    %405 = arith.addf %383, %404 : vector<10x16xf32>
    %406 = vector.extract_strided_slice %389 {offsets = [115, 0], sizes = [10, 16], strides = [1, 1]} : vector<196x16xf32> to vector<10x16xf32>
    %407 = arith.addf %385, %406 : vector<10x16xf32>
    %408 = vector.extract_strided_slice %389 {offsets = [129, 0], sizes = [10, 16], strides = [1, 1]} : vector<196x16xf32> to vector<10x16xf32>
    %409 = arith.addf %387, %408 : vector<10x16xf32>
    %c24 = arith.constant 24 : index
    %c0_264 = arith.constant 0 : index
    %410 = vector.load %arg4[%c24, %c0_264] : memref<150x16xbf16, #tpu.memory_space<vmem>>, vector<6x16xbf16>
    %cst_265 = arith.constant dense<0.000000e+00> : vector<196x16xf32>
    %411 = tpu.matmul %311, %410, %cst_265 {dimension_numbers = #tpu.dot_dimension_numbers<[1], [0], [0], [1], [0, 0, 1, 1], [], []>} : vector<196x6xbf16>, vector<6x16xbf16>, vector<196x16xf32> -> vector<196x16xf32>
    %412 = vector.extract_strided_slice %411 {offsets = [4, 0], sizes = [10, 16], strides = [1, 1]} : vector<196x16xf32> to vector<10x16xf32>
    %413 = arith.addf %391, %412 : vector<10x16xf32>
    %414 = vector.extract_strided_slice %411 {offsets = [18, 0], sizes = [10, 16], strides = [1, 1]} : vector<196x16xf32> to vector<10x16xf32>
    %415 = arith.addf %393, %414 : vector<10x16xf32>
    %416 = vector.extract_strided_slice %411 {offsets = [32, 0], sizes = [10, 16], strides = [1, 1]} : vector<196x16xf32> to vector<10x16xf32>
    %417 = arith.addf %395, %416 : vector<10x16xf32>
    %418 = vector.extract_strided_slice %411 {offsets = [46, 0], sizes = [10, 16], strides = [1, 1]} : vector<196x16xf32> to vector<10x16xf32>
    %419 = arith.addf %397, %418 : vector<10x16xf32>
    %420 = vector.extract_strided_slice %411 {offsets = [60, 0], sizes = [10, 16], strides = [1, 1]} : vector<196x16xf32> to vector<10x16xf32>
    %421 = arith.addf %399, %420 : vector<10x16xf32>
    %422 = vector.extract_strided_slice %411 {offsets = [74, 0], sizes = [10, 16], strides = [1, 1]} : vector<196x16xf32> to vector<10x16xf32>
    %423 = arith.addf %401, %422 : vector<10x16xf32>
    %424 = vector.extract_strided_slice %411 {offsets = [88, 0], sizes = [10, 16], strides = [1, 1]} : vector<196x16xf32> to vector<10x16xf32>
    %425 = arith.addf %403, %424 : vector<10x16xf32>
    %426 = vector.extract_strided_slice %411 {offsets = [102, 0], sizes = [10, 16], strides = [1, 1]} : vector<196x16xf32> to vector<10x16xf32>
    %427 = arith.addf %405, %426 : vector<10x16xf32>
    %428 = vector.extract_strided_slice %411 {offsets = [116, 0], sizes = [10, 16], strides = [1, 1]} : vector<196x16xf32> to vector<10x16xf32>
    %429 = arith.addf %407, %428 : vector<10x16xf32>
    %430 = vector.extract_strided_slice %411 {offsets = [130, 0], sizes = [10, 16], strides = [1, 1]} : vector<196x16xf32> to vector<10x16xf32>
    %431 = arith.addf %409, %430 : vector<10x16xf32>
    %c30 = arith.constant 30 : index
    %c0_266 = arith.constant 0 : index
    %432 = vector.load %arg4[%c30, %c0_266] : memref<150x16xbf16, #tpu.memory_space<vmem>>, vector<6x16xbf16>
    %cst_267 = arith.constant dense<0.000000e+00> : vector<196x16xf32>
    %433 = tpu.matmul %311, %432, %cst_267 {dimension_numbers = #tpu.dot_dimension_numbers<[1], [0], [0], [1], [0, 0, 1, 1], [], []>} : vector<196x6xbf16>, vector<6x16xbf16>, vector<196x16xf32> -> vector<196x16xf32>
    %434 = vector.extract_strided_slice %433 {offsets = [14, 0], sizes = [10, 16], strides = [1, 1]} : vector<196x16xf32> to vector<10x16xf32>
    %435 = arith.addf %413, %434 : vector<10x16xf32>
    %436 = vector.extract_strided_slice %433 {offsets = [28, 0], sizes = [10, 16], strides = [1, 1]} : vector<196x16xf32> to vector<10x16xf32>
    %437 = arith.addf %415, %436 : vector<10x16xf32>
    %438 = vector.extract_strided_slice %433 {offsets = [42, 0], sizes = [10, 16], strides = [1, 1]} : vector<196x16xf32> to vector<10x16xf32>
    %439 = arith.addf %417, %438 : vector<10x16xf32>
    %440 = vector.extract_strided_slice %433 {offsets = [56, 0], sizes = [10, 16], strides = [1, 1]} : vector<196x16xf32> to vector<10x16xf32>
    %441 = arith.addf %419, %440 : vector<10x16xf32>
    %442 = vector.extract_strided_slice %433 {offsets = [70, 0], sizes = [10, 16], strides = [1, 1]} : vector<196x16xf32> to vector<10x16xf32>
    %443 = arith.addf %421, %442 : vector<10x16xf32>
    %444 = vector.extract_strided_slice %433 {offsets = [84, 0], sizes = [10, 16], strides = [1, 1]} : vector<196x16xf32> to vector<10x16xf32>
    %445 = arith.addf %423, %444 : vector<10x16xf32>
    %446 = vector.extract_strided_slice %433 {offsets = [98, 0], sizes = [10, 16], strides = [1, 1]} : vector<196x16xf32> to vector<10x16xf32>
    %447 = arith.addf %425, %446 : vector<10x16xf32>
    %448 = vector.extract_strided_slice %433 {offsets = [112, 0], sizes = [10, 16], strides = [1, 1]} : vector<196x16xf32> to vector<10x16xf32>
    %449 = arith.addf %427, %448 : vector<10x16xf32>
    %450 = vector.extract_strided_slice %433 {offsets = [126, 0], sizes = [10, 16], strides = [1, 1]} : vector<196x16xf32> to vector<10x16xf32>
    %451 = arith.addf %429, %450 : vector<10x16xf32>
    %452 = vector.extract_strided_slice %433 {offsets = [140, 0], sizes = [10, 16], strides = [1, 1]} : vector<196x16xf32> to vector<10x16xf32>
    %453 = arith.addf %431, %452 : vector<10x16xf32>
    %c36 = arith.constant 36 : index
    %c0_268 = arith.constant 0 : index
    %454 = vector.load %arg4[%c36, %c0_268] : memref<150x16xbf16, #tpu.memory_space<vmem>>, vector<6x16xbf16>
    %cst_269 = arith.constant dense<0.000000e+00> : vector<196x16xf32>
    %455 = tpu.matmul %311, %454, %cst_269 {dimension_numbers = #tpu.dot_dimension_numbers<[1], [0], [0], [1], [0, 0, 1, 1], [], []>} : vector<196x6xbf16>, vector<6x16xbf16>, vector<196x16xf32> -> vector<196x16xf32>
    %456 = vector.extract_strided_slice %455 {offsets = [15, 0], sizes = [10, 16], strides = [1, 1]} : vector<196x16xf32> to vector<10x16xf32>
    %457 = arith.addf %435, %456 : vector<10x16xf32>
    %458 = vector.extract_strided_slice %455 {offsets = [29, 0], sizes = [10, 16], strides = [1, 1]} : vector<196x16xf32> to vector<10x16xf32>
    %459 = arith.addf %437, %458 : vector<10x16xf32>
    %460 = vector.extract_strided_slice %455 {offsets = [43, 0], sizes = [10, 16], strides = [1, 1]} : vector<196x16xf32> to vector<10x16xf32>
    %461 = arith.addf %439, %460 : vector<10x16xf32>
    %462 = vector.extract_strided_slice %455 {offsets = [57, 0], sizes = [10, 16], strides = [1, 1]} : vector<196x16xf32> to vector<10x16xf32>
    %463 = arith.addf %441, %462 : vector<10x16xf32>
    %464 = vector.extract_strided_slice %455 {offsets = [71, 0], sizes = [10, 16], strides = [1, 1]} : vector<196x16xf32> to vector<10x16xf32>
    %465 = arith.addf %443, %464 : vector<10x16xf32>
    %466 = vector.extract_strided_slice %455 {offsets = [85, 0], sizes = [10, 16], strides = [1, 1]} : vector<196x16xf32> to vector<10x16xf32>
    %467 = arith.addf %445, %466 : vector<10x16xf32>
    %468 = vector.extract_strided_slice %455 {offsets = [99, 0], sizes = [10, 16], strides = [1, 1]} : vector<196x16xf32> to vector<10x16xf32>
    %469 = arith.addf %447, %468 : vector<10x16xf32>
    %470 = vector.extract_strided_slice %455 {offsets = [113, 0], sizes = [10, 16], strides = [1, 1]} : vector<196x16xf32> to vector<10x16xf32>
    %471 = arith.addf %449, %470 : vector<10x16xf32>
    %472 = vector.extract_strided_slice %455 {offsets = [127, 0], sizes = [10, 16], strides = [1, 1]} : vector<196x16xf32> to vector<10x16xf32>
    %473 = arith.addf %451, %472 : vector<10x16xf32>
    %474 = vector.extract_strided_slice %455 {offsets = [141, 0], sizes = [10, 16], strides = [1, 1]} : vector<196x16xf32> to vector<10x16xf32>
    %475 = arith.addf %453, %474 : vector<10x16xf32>
    %c42_270 = arith.constant 42 : index
    %c0_271 = arith.constant 0 : index
    %476 = vector.load %arg4[%c42_270, %c0_271] : memref<150x16xbf16, #tpu.memory_space<vmem>>, vector<6x16xbf16>
    %cst_272 = arith.constant dense<0.000000e+00> : vector<196x16xf32>
    %477 = tpu.matmul %311, %476, %cst_272 {dimension_numbers = #tpu.dot_dimension_numbers<[1], [0], [0], [1], [0, 0, 1, 1], [], []>} : vector<196x6xbf16>, vector<6x16xbf16>, vector<196x16xf32> -> vector<196x16xf32>
    %478 = vector.extract_strided_slice %477 {offsets = [16, 0], sizes = [10, 16], strides = [1, 1]} : vector<196x16xf32> to vector<10x16xf32>
    %479 = arith.addf %457, %478 : vector<10x16xf32>
    %480 = vector.extract_strided_slice %477 {offsets = [30, 0], sizes = [10, 16], strides = [1, 1]} : vector<196x16xf32> to vector<10x16xf32>
    %481 = arith.addf %459, %480 : vector<10x16xf32>
    %482 = vector.extract_strided_slice %477 {offsets = [44, 0], sizes = [10, 16], strides = [1, 1]} : vector<196x16xf32> to vector<10x16xf32>
    %483 = arith.addf %461, %482 : vector<10x16xf32>
    %484 = vector.extract_strided_slice %477 {offsets = [58, 0], sizes = [10, 16], strides = [1, 1]} : vector<196x16xf32> to vector<10x16xf32>
    %485 = arith.addf %463, %484 : vector<10x16xf32>
    %486 = vector.extract_strided_slice %477 {offsets = [72, 0], sizes = [10, 16], strides = [1, 1]} : vector<196x16xf32> to vector<10x16xf32>
    %487 = arith.addf %465, %486 : vector<10x16xf32>
    %488 = vector.extract_strided_slice %477 {offsets = [86, 0], sizes = [10, 16], strides = [1, 1]} : vector<196x16xf32> to vector<10x16xf32>
    %489 = arith.addf %467, %488 : vector<10x16xf32>
    %490 = vector.extract_strided_slice %477 {offsets = [100, 0], sizes = [10, 16], strides = [1, 1]} : vector<196x16xf32> to vector<10x16xf32>
    %491 = arith.addf %469, %490 : vector<10x16xf32>
    %492 = vector.extract_strided_slice %477 {offsets = [114, 0], sizes = [10, 16], strides = [1, 1]} : vector<196x16xf32> to vector<10x16xf32>
    %493 = arith.addf %471, %492 : vector<10x16xf32>
    %494 = vector.extract_strided_slice %477 {offsets = [128, 0], sizes = [10, 16], strides = [1, 1]} : vector<196x16xf32> to vector<10x16xf32>
    %495 = arith.addf %473, %494 : vector<10x16xf32>
    %496 = vector.extract_strided_slice %477 {offsets = [142, 0], sizes = [10, 16], strides = [1, 1]} : vector<196x16xf32> to vector<10x16xf32>
    %497 = arith.addf %475, %496 : vector<10x16xf32>
    %c48 = arith.constant 48 : index
    %c0_273 = arith.constant 0 : index
    %498 = vector.load %arg4[%c48, %c0_273] : memref<150x16xbf16, #tpu.memory_space<vmem>>, vector<6x16xbf16>
    %cst_274 = arith.constant dense<0.000000e+00> : vector<196x16xf32>
    %499 = tpu.matmul %311, %498, %cst_274 {dimension_numbers = #tpu.dot_dimension_numbers<[1], [0], [0], [1], [0, 0, 1, 1], [], []>} : vector<196x6xbf16>, vector<6x16xbf16>, vector<196x16xf32> -> vector<196x16xf32>
    %500 = vector.extract_strided_slice %499 {offsets = [17, 0], sizes = [10, 16], strides = [1, 1]} : vector<196x16xf32> to vector<10x16xf32>
    %501 = arith.addf %479, %500 : vector<10x16xf32>
    %502 = vector.extract_strided_slice %499 {offsets = [31, 0], sizes = [10, 16], strides = [1, 1]} : vector<196x16xf32> to vector<10x16xf32>
    %503 = arith.addf %481, %502 : vector<10x16xf32>
    %504 = vector.extract_strided_slice %499 {offsets = [45, 0], sizes = [10, 16], strides = [1, 1]} : vector<196x16xf32> to vector<10x16xf32>
    %505 = arith.addf %483, %504 : vector<10x16xf32>
    %506 = vector.extract_strided_slice %499 {offsets = [59, 0], sizes = [10, 16], strides = [1, 1]} : vector<196x16xf32> to vector<10x16xf32>
    %507 = arith.addf %485, %506 : vector<10x16xf32>
    %508 = vector.extract_strided_slice %499 {offsets = [73, 0], sizes = [10, 16], strides = [1, 1]} : vector<196x16xf32> to vector<10x16xf32>
    %509 = arith.addf %487, %508 : vector<10x16xf32>
    %510 = vector.extract_strided_slice %499 {offsets = [87, 0], sizes = [10, 16], strides = [1, 1]} : vector<196x16xf32> to vector<10x16xf32>
    %511 = arith.addf %489, %510 : vector<10x16xf32>
    %512 = vector.extract_strided_slice %499 {offsets = [101, 0], sizes = [10, 16], strides = [1, 1]} : vector<196x16xf32> to vector<10x16xf32>
    %513 = arith.addf %491, %512 : vector<10x16xf32>
    %514 = vector.extract_strided_slice %499 {offsets = [115, 0], sizes = [10, 16], strides = [1, 1]} : vector<196x16xf32> to vector<10x16xf32>
    %515 = arith.addf %493, %514 : vector<10x16xf32>
    %516 = vector.extract_strided_slice %499 {offsets = [129, 0], sizes = [10, 16], strides = [1, 1]} : vector<196x16xf32> to vector<10x16xf32>
    %517 = arith.addf %495, %516 : vector<10x16xf32>
    %518 = vector.extract_strided_slice %499 {offsets = [143, 0], sizes = [10, 16], strides = [1, 1]} : vector<196x16xf32> to vector<10x16xf32>
    %519 = arith.addf %497, %518 : vector<10x16xf32>
    %c54 = arith.constant 54 : index
    %c0_275 = arith.constant 0 : index
    %520 = vector.load %arg4[%c54, %c0_275] : memref<150x16xbf16, #tpu.memory_space<vmem>>, vector<6x16xbf16>
    %cst_276 = arith.constant dense<0.000000e+00> : vector<196x16xf32>
    %521 = tpu.matmul %311, %520, %cst_276 {dimension_numbers = #tpu.dot_dimension_numbers<[1], [0], [0], [1], [0, 0, 1, 1], [], []>} : vector<196x6xbf16>, vector<6x16xbf16>, vector<196x16xf32> -> vector<196x16xf32>
    %522 = vector.extract_strided_slice %521 {offsets = [18, 0], sizes = [10, 16], strides = [1, 1]} : vector<196x16xf32> to vector<10x16xf32>
    %523 = arith.addf %501, %522 : vector<10x16xf32>
    %524 = vector.extract_strided_slice %521 {offsets = [32, 0], sizes = [10, 16], strides = [1, 1]} : vector<196x16xf32> to vector<10x16xf32>
    %525 = arith.addf %503, %524 : vector<10x16xf32>
    %526 = vector.extract_strided_slice %521 {offsets = [46, 0], sizes = [10, 16], strides = [1, 1]} : vector<196x16xf32> to vector<10x16xf32>
    %527 = arith.addf %505, %526 : vector<10x16xf32>
    %528 = vector.extract_strided_slice %521 {offsets = [60, 0], sizes = [10, 16], strides = [1, 1]} : vector<196x16xf32> to vector<10x16xf32>
    %529 = arith.addf %507, %528 : vector<10x16xf32>
    %530 = vector.extract_strided_slice %521 {offsets = [74, 0], sizes = [10, 16], strides = [1, 1]} : vector<196x16xf32> to vector<10x16xf32>
    %531 = arith.addf %509, %530 : vector<10x16xf32>
    %532 = vector.extract_strided_slice %521 {offsets = [88, 0], sizes = [10, 16], strides = [1, 1]} : vector<196x16xf32> to vector<10x16xf32>
    %533 = arith.addf %511, %532 : vector<10x16xf32>
    %534 = vector.extract_strided_slice %521 {offsets = [102, 0], sizes = [10, 16], strides = [1, 1]} : vector<196x16xf32> to vector<10x16xf32>
    %535 = arith.addf %513, %534 : vector<10x16xf32>
    %536 = vector.extract_strided_slice %521 {offsets = [116, 0], sizes = [10, 16], strides = [1, 1]} : vector<196x16xf32> to vector<10x16xf32>
    %537 = arith.addf %515, %536 : vector<10x16xf32>
    %538 = vector.extract_strided_slice %521 {offsets = [130, 0], sizes = [10, 16], strides = [1, 1]} : vector<196x16xf32> to vector<10x16xf32>
    %539 = arith.addf %517, %538 : vector<10x16xf32>
    %540 = vector.extract_strided_slice %521 {offsets = [144, 0], sizes = [10, 16], strides = [1, 1]} : vector<196x16xf32> to vector<10x16xf32>
    %541 = arith.addf %519, %540 : vector<10x16xf32>
    %c60 = arith.constant 60 : index
    %c0_277 = arith.constant 0 : index
    %542 = vector.load %arg4[%c60, %c0_277] : memref<150x16xbf16, #tpu.memory_space<vmem>>, vector<6x16xbf16>
    %cst_278 = arith.constant dense<0.000000e+00> : vector<196x16xf32>
    %543 = tpu.matmul %311, %542, %cst_278 {dimension_numbers = #tpu.dot_dimension_numbers<[1], [0], [0], [1], [0, 0, 1, 1], [], []>} : vector<196x6xbf16>, vector<6x16xbf16>, vector<196x16xf32> -> vector<196x16xf32>
    %544 = vector.extract_strided_slice %543 {offsets = [28, 0], sizes = [10, 16], strides = [1, 1]} : vector<196x16xf32> to vector<10x16xf32>
    %545 = arith.addf %523, %544 : vector<10x16xf32>
    %546 = vector.extract_strided_slice %543 {offsets = [42, 0], sizes = [10, 16], strides = [1, 1]} : vector<196x16xf32> to vector<10x16xf32>
    %547 = arith.addf %525, %546 : vector<10x16xf32>
    %548 = vector.extract_strided_slice %543 {offsets = [56, 0], sizes = [10, 16], strides = [1, 1]} : vector<196x16xf32> to vector<10x16xf32>
    %549 = arith.addf %527, %548 : vector<10x16xf32>
    %550 = vector.extract_strided_slice %543 {offsets = [70, 0], sizes = [10, 16], strides = [1, 1]} : vector<196x16xf32> to vector<10x16xf32>
    %551 = arith.addf %529, %550 : vector<10x16xf32>
    %552 = vector.extract_strided_slice %543 {offsets = [84, 0], sizes = [10, 16], strides = [1, 1]} : vector<196x16xf32> to vector<10x16xf32>
    %553 = arith.addf %531, %552 : vector<10x16xf32>
    %554 = vector.extract_strided_slice %543 {offsets = [98, 0], sizes = [10, 16], strides = [1, 1]} : vector<196x16xf32> to vector<10x16xf32>
    %555 = arith.addf %533, %554 : vector<10x16xf32>
    %556 = vector.extract_strided_slice %543 {offsets = [112, 0], sizes = [10, 16], strides = [1, 1]} : vector<196x16xf32> to vector<10x16xf32>
    %557 = arith.addf %535, %556 : vector<10x16xf32>
    %558 = vector.extract_strided_slice %543 {offsets = [126, 0], sizes = [10, 16], strides = [1, 1]} : vector<196x16xf32> to vector<10x16xf32>
    %559 = arith.addf %537, %558 : vector<10x16xf32>
    %560 = vector.extract_strided_slice %543 {offsets = [140, 0], sizes = [10, 16], strides = [1, 1]} : vector<196x16xf32> to vector<10x16xf32>
    %561 = arith.addf %539, %560 : vector<10x16xf32>
    %562 = vector.extract_strided_slice %543 {offsets = [154, 0], sizes = [10, 16], strides = [1, 1]} : vector<196x16xf32> to vector<10x16xf32>
    %563 = arith.addf %541, %562 : vector<10x16xf32>
    %c66 = arith.constant 66 : index
    %c0_279 = arith.constant 0 : index
    %564 = vector.load %arg4[%c66, %c0_279] : memref<150x16xbf16, #tpu.memory_space<vmem>>, vector<6x16xbf16>
    %cst_280 = arith.constant dense<0.000000e+00> : vector<196x16xf32>
    %565 = tpu.matmul %311, %564, %cst_280 {dimension_numbers = #tpu.dot_dimension_numbers<[1], [0], [0], [1], [0, 0, 1, 1], [], []>} : vector<196x6xbf16>, vector<6x16xbf16>, vector<196x16xf32> -> vector<196x16xf32>
    %566 = vector.extract_strided_slice %565 {offsets = [29, 0], sizes = [10, 16], strides = [1, 1]} : vector<196x16xf32> to vector<10x16xf32>
    %567 = arith.addf %545, %566 : vector<10x16xf32>
    %568 = vector.extract_strided_slice %565 {offsets = [43, 0], sizes = [10, 16], strides = [1, 1]} : vector<196x16xf32> to vector<10x16xf32>
    %569 = arith.addf %547, %568 : vector<10x16xf32>
    %570 = vector.extract_strided_slice %565 {offsets = [57, 0], sizes = [10, 16], strides = [1, 1]} : vector<196x16xf32> to vector<10x16xf32>
    %571 = arith.addf %549, %570 : vector<10x16xf32>
    %572 = vector.extract_strided_slice %565 {offsets = [71, 0], sizes = [10, 16], strides = [1, 1]} : vector<196x16xf32> to vector<10x16xf32>
    %573 = arith.addf %551, %572 : vector<10x16xf32>
    %574 = vector.extract_strided_slice %565 {offsets = [85, 0], sizes = [10, 16], strides = [1, 1]} : vector<196x16xf32> to vector<10x16xf32>
    %575 = arith.addf %553, %574 : vector<10x16xf32>
    %576 = vector.extract_strided_slice %565 {offsets = [99, 0], sizes = [10, 16], strides = [1, 1]} : vector<196x16xf32> to vector<10x16xf32>
    %577 = arith.addf %555, %576 : vector<10x16xf32>
    %578 = vector.extract_strided_slice %565 {offsets = [113, 0], sizes = [10, 16], strides = [1, 1]} : vector<196x16xf32> to vector<10x16xf32>
    %579 = arith.addf %557, %578 : vector<10x16xf32>
    %580 = vector.extract_strided_slice %565 {offsets = [127, 0], sizes = [10, 16], strides = [1, 1]} : vector<196x16xf32> to vector<10x16xf32>
    %581 = arith.addf %559, %580 : vector<10x16xf32>
    %582 = vector.extract_strided_slice %565 {offsets = [141, 0], sizes = [10, 16], strides = [1, 1]} : vector<196x16xf32> to vector<10x16xf32>
    %583 = arith.addf %561, %582 : vector<10x16xf32>
    %584 = vector.extract_strided_slice %565 {offsets = [155, 0], sizes = [10, 16], strides = [1, 1]} : vector<196x16xf32> to vector<10x16xf32>
    %585 = arith.addf %563, %584 : vector<10x16xf32>
    %c72 = arith.constant 72 : index
    %c0_281 = arith.constant 0 : index
    %586 = vector.load %arg4[%c72, %c0_281] : memref<150x16xbf16, #tpu.memory_space<vmem>>, vector<6x16xbf16>
    %cst_282 = arith.constant dense<0.000000e+00> : vector<196x16xf32>
    %587 = tpu.matmul %311, %586, %cst_282 {dimension_numbers = #tpu.dot_dimension_numbers<[1], [0], [0], [1], [0, 0, 1, 1], [], []>} : vector<196x6xbf16>, vector<6x16xbf16>, vector<196x16xf32> -> vector<196x16xf32>
    %588 = vector.extract_strided_slice %587 {offsets = [30, 0], sizes = [10, 16], strides = [1, 1]} : vector<196x16xf32> to vector<10x16xf32>
    %589 = arith.addf %567, %588 : vector<10x16xf32>
    %590 = vector.extract_strided_slice %587 {offsets = [44, 0], sizes = [10, 16], strides = [1, 1]} : vector<196x16xf32> to vector<10x16xf32>
    %591 = arith.addf %569, %590 : vector<10x16xf32>
    %592 = vector.extract_strided_slice %587 {offsets = [58, 0], sizes = [10, 16], strides = [1, 1]} : vector<196x16xf32> to vector<10x16xf32>
    %593 = arith.addf %571, %592 : vector<10x16xf32>
    %594 = vector.extract_strided_slice %587 {offsets = [72, 0], sizes = [10, 16], strides = [1, 1]} : vector<196x16xf32> to vector<10x16xf32>
    %595 = arith.addf %573, %594 : vector<10x16xf32>
    %596 = vector.extract_strided_slice %587 {offsets = [86, 0], sizes = [10, 16], strides = [1, 1]} : vector<196x16xf32> to vector<10x16xf32>
    %597 = arith.addf %575, %596 : vector<10x16xf32>
    %598 = vector.extract_strided_slice %587 {offsets = [100, 0], sizes = [10, 16], strides = [1, 1]} : vector<196x16xf32> to vector<10x16xf32>
    %599 = arith.addf %577, %598 : vector<10x16xf32>
    %600 = vector.extract_strided_slice %587 {offsets = [114, 0], sizes = [10, 16], strides = [1, 1]} : vector<196x16xf32> to vector<10x16xf32>
    %601 = arith.addf %579, %600 : vector<10x16xf32>
    %602 = vector.extract_strided_slice %587 {offsets = [128, 0], sizes = [10, 16], strides = [1, 1]} : vector<196x16xf32> to vector<10x16xf32>
    %603 = arith.addf %581, %602 : vector<10x16xf32>
    %604 = vector.extract_strided_slice %587 {offsets = [142, 0], sizes = [10, 16], strides = [1, 1]} : vector<196x16xf32> to vector<10x16xf32>
    %605 = arith.addf %583, %604 : vector<10x16xf32>
    %606 = vector.extract_strided_slice %587 {offsets = [156, 0], sizes = [10, 16], strides = [1, 1]} : vector<196x16xf32> to vector<10x16xf32>
    %607 = arith.addf %585, %606 : vector<10x16xf32>
    %c78 = arith.constant 78 : index
    %c0_283 = arith.constant 0 : index
    %608 = vector.load %arg4[%c78, %c0_283] : memref<150x16xbf16, #tpu.memory_space<vmem>>, vector<6x16xbf16>
    %cst_284 = arith.constant dense<0.000000e+00> : vector<196x16xf32>
    %609 = tpu.matmul %311, %608, %cst_284 {dimension_numbers = #tpu.dot_dimension_numbers<[1], [0], [0], [1], [0, 0, 1, 1], [], []>} : vector<196x6xbf16>, vector<6x16xbf16>, vector<196x16xf32> -> vector<196x16xf32>
    %610 = vector.extract_strided_slice %609 {offsets = [31, 0], sizes = [10, 16], strides = [1, 1]} : vector<196x16xf32> to vector<10x16xf32>
    %611 = arith.addf %589, %610 : vector<10x16xf32>
    %612 = vector.extract_strided_slice %609 {offsets = [45, 0], sizes = [10, 16], strides = [1, 1]} : vector<196x16xf32> to vector<10x16xf32>
    %613 = arith.addf %591, %612 : vector<10x16xf32>
    %614 = vector.extract_strided_slice %609 {offsets = [59, 0], sizes = [10, 16], strides = [1, 1]} : vector<196x16xf32> to vector<10x16xf32>
    %615 = arith.addf %593, %614 : vector<10x16xf32>
    %616 = vector.extract_strided_slice %609 {offsets = [73, 0], sizes = [10, 16], strides = [1, 1]} : vector<196x16xf32> to vector<10x16xf32>
    %617 = arith.addf %595, %616 : vector<10x16xf32>
    %618 = vector.extract_strided_slice %609 {offsets = [87, 0], sizes = [10, 16], strides = [1, 1]} : vector<196x16xf32> to vector<10x16xf32>
    %619 = arith.addf %597, %618 : vector<10x16xf32>
    %620 = vector.extract_strided_slice %609 {offsets = [101, 0], sizes = [10, 16], strides = [1, 1]} : vector<196x16xf32> to vector<10x16xf32>
    %621 = arith.addf %599, %620 : vector<10x16xf32>
    %622 = vector.extract_strided_slice %609 {offsets = [115, 0], sizes = [10, 16], strides = [1, 1]} : vector<196x16xf32> to vector<10x16xf32>
    %623 = arith.addf %601, %622 : vector<10x16xf32>
    %624 = vector.extract_strided_slice %609 {offsets = [129, 0], sizes = [10, 16], strides = [1, 1]} : vector<196x16xf32> to vector<10x16xf32>
    %625 = arith.addf %603, %624 : vector<10x16xf32>
    %626 = vector.extract_strided_slice %609 {offsets = [143, 0], sizes = [10, 16], strides = [1, 1]} : vector<196x16xf32> to vector<10x16xf32>
    %627 = arith.addf %605, %626 : vector<10x16xf32>
    %628 = vector.extract_strided_slice %609 {offsets = [157, 0], sizes = [10, 16], strides = [1, 1]} : vector<196x16xf32> to vector<10x16xf32>
    %629 = arith.addf %607, %628 : vector<10x16xf32>
    %c84_285 = arith.constant 84 : index
    %c0_286 = arith.constant 0 : index
    %630 = vector.load %arg4[%c84_285, %c0_286] : memref<150x16xbf16, #tpu.memory_space<vmem>>, vector<6x16xbf16>
    %cst_287 = arith.constant dense<0.000000e+00> : vector<196x16xf32>
    %631 = tpu.matmul %311, %630, %cst_287 {dimension_numbers = #tpu.dot_dimension_numbers<[1], [0], [0], [1], [0, 0, 1, 1], [], []>} : vector<196x6xbf16>, vector<6x16xbf16>, vector<196x16xf32> -> vector<196x16xf32>
    %632 = vector.extract_strided_slice %631 {offsets = [32, 0], sizes = [10, 16], strides = [1, 1]} : vector<196x16xf32> to vector<10x16xf32>
    %633 = arith.addf %611, %632 : vector<10x16xf32>
    %634 = vector.extract_strided_slice %631 {offsets = [46, 0], sizes = [10, 16], strides = [1, 1]} : vector<196x16xf32> to vector<10x16xf32>
    %635 = arith.addf %613, %634 : vector<10x16xf32>
    %636 = vector.extract_strided_slice %631 {offsets = [60, 0], sizes = [10, 16], strides = [1, 1]} : vector<196x16xf32> to vector<10x16xf32>
    %637 = arith.addf %615, %636 : vector<10x16xf32>
    %638 = vector.extract_strided_slice %631 {offsets = [74, 0], sizes = [10, 16], strides = [1, 1]} : vector<196x16xf32> to vector<10x16xf32>
    %639 = arith.addf %617, %638 : vector<10x16xf32>
    %640 = vector.extract_strided_slice %631 {offsets = [88, 0], sizes = [10, 16], strides = [1, 1]} : vector<196x16xf32> to vector<10x16xf32>
    %641 = arith.addf %619, %640 : vector<10x16xf32>
    %642 = vector.extract_strided_slice %631 {offsets = [102, 0], sizes = [10, 16], strides = [1, 1]} : vector<196x16xf32> to vector<10x16xf32>
    %643 = arith.addf %621, %642 : vector<10x16xf32>
    %644 = vector.extract_strided_slice %631 {offsets = [116, 0], sizes = [10, 16], strides = [1, 1]} : vector<196x16xf32> to vector<10x16xf32>
    %645 = arith.addf %623, %644 : vector<10x16xf32>
    %646 = vector.extract_strided_slice %631 {offsets = [130, 0], sizes = [10, 16], strides = [1, 1]} : vector<196x16xf32> to vector<10x16xf32>
    %647 = arith.addf %625, %646 : vector<10x16xf32>
    %648 = vector.extract_strided_slice %631 {offsets = [144, 0], sizes = [10, 16], strides = [1, 1]} : vector<196x16xf32> to vector<10x16xf32>
    %649 = arith.addf %627, %648 : vector<10x16xf32>
    %650 = vector.extract_strided_slice %631 {offsets = [158, 0], sizes = [10, 16], strides = [1, 1]} : vector<196x16xf32> to vector<10x16xf32>
    %651 = arith.addf %629, %650 : vector<10x16xf32>
    %c90 = arith.constant 90 : index
    %c0_288 = arith.constant 0 : index
    %652 = vector.load %arg4[%c90, %c0_288] : memref<150x16xbf16, #tpu.memory_space<vmem>>, vector<6x16xbf16>
    %cst_289 = arith.constant dense<0.000000e+00> : vector<196x16xf32>
    %653 = tpu.matmul %311, %652, %cst_289 {dimension_numbers = #tpu.dot_dimension_numbers<[1], [0], [0], [1], [0, 0, 1, 1], [], []>} : vector<196x6xbf16>, vector<6x16xbf16>, vector<196x16xf32> -> vector<196x16xf32>
    %654 = vector.extract_strided_slice %653 {offsets = [42, 0], sizes = [10, 16], strides = [1, 1]} : vector<196x16xf32> to vector<10x16xf32>
    %655 = arith.addf %633, %654 : vector<10x16xf32>
    %656 = vector.extract_strided_slice %653 {offsets = [56, 0], sizes = [10, 16], strides = [1, 1]} : vector<196x16xf32> to vector<10x16xf32>
    %657 = arith.addf %635, %656 : vector<10x16xf32>
    %658 = vector.extract_strided_slice %653 {offsets = [70, 0], sizes = [10, 16], strides = [1, 1]} : vector<196x16xf32> to vector<10x16xf32>
    %659 = arith.addf %637, %658 : vector<10x16xf32>
    %660 = vector.extract_strided_slice %653 {offsets = [84, 0], sizes = [10, 16], strides = [1, 1]} : vector<196x16xf32> to vector<10x16xf32>
    %661 = arith.addf %639, %660 : vector<10x16xf32>
    %662 = vector.extract_strided_slice %653 {offsets = [98, 0], sizes = [10, 16], strides = [1, 1]} : vector<196x16xf32> to vector<10x16xf32>
    %663 = arith.addf %641, %662 : vector<10x16xf32>
    %664 = vector.extract_strided_slice %653 {offsets = [112, 0], sizes = [10, 16], strides = [1, 1]} : vector<196x16xf32> to vector<10x16xf32>
    %665 = arith.addf %643, %664 : vector<10x16xf32>
    %666 = vector.extract_strided_slice %653 {offsets = [126, 0], sizes = [10, 16], strides = [1, 1]} : vector<196x16xf32> to vector<10x16xf32>
    %667 = arith.addf %645, %666 : vector<10x16xf32>
    %668 = vector.extract_strided_slice %653 {offsets = [140, 0], sizes = [10, 16], strides = [1, 1]} : vector<196x16xf32> to vector<10x16xf32>
    %669 = arith.addf %647, %668 : vector<10x16xf32>
    %670 = vector.extract_strided_slice %653 {offsets = [154, 0], sizes = [10, 16], strides = [1, 1]} : vector<196x16xf32> to vector<10x16xf32>
    %671 = arith.addf %649, %670 : vector<10x16xf32>
    %672 = vector.extract_strided_slice %653 {offsets = [168, 0], sizes = [10, 16], strides = [1, 1]} : vector<196x16xf32> to vector<10x16xf32>
    %673 = arith.addf %651, %672 : vector<10x16xf32>
    %c96 = arith.constant 96 : index
    %c0_290 = arith.constant 0 : index
    %674 = vector.load %arg4[%c96, %c0_290] : memref<150x16xbf16, #tpu.memory_space<vmem>>, vector<6x16xbf16>
    %cst_291 = arith.constant dense<0.000000e+00> : vector<196x16xf32>
    %675 = tpu.matmul %311, %674, %cst_291 {dimension_numbers = #tpu.dot_dimension_numbers<[1], [0], [0], [1], [0, 0, 1, 1], [], []>} : vector<196x6xbf16>, vector<6x16xbf16>, vector<196x16xf32> -> vector<196x16xf32>
    %676 = vector.extract_strided_slice %675 {offsets = [43, 0], sizes = [10, 16], strides = [1, 1]} : vector<196x16xf32> to vector<10x16xf32>
    %677 = arith.addf %655, %676 : vector<10x16xf32>
    %678 = vector.extract_strided_slice %675 {offsets = [57, 0], sizes = [10, 16], strides = [1, 1]} : vector<196x16xf32> to vector<10x16xf32>
    %679 = arith.addf %657, %678 : vector<10x16xf32>
    %680 = vector.extract_strided_slice %675 {offsets = [71, 0], sizes = [10, 16], strides = [1, 1]} : vector<196x16xf32> to vector<10x16xf32>
    %681 = arith.addf %659, %680 : vector<10x16xf32>
    %682 = vector.extract_strided_slice %675 {offsets = [85, 0], sizes = [10, 16], strides = [1, 1]} : vector<196x16xf32> to vector<10x16xf32>
    %683 = arith.addf %661, %682 : vector<10x16xf32>
    %684 = vector.extract_strided_slice %675 {offsets = [99, 0], sizes = [10, 16], strides = [1, 1]} : vector<196x16xf32> to vector<10x16xf32>
    %685 = arith.addf %663, %684 : vector<10x16xf32>
    %686 = vector.extract_strided_slice %675 {offsets = [113, 0], sizes = [10, 16], strides = [1, 1]} : vector<196x16xf32> to vector<10x16xf32>
    %687 = arith.addf %665, %686 : vector<10x16xf32>
    %688 = vector.extract_strided_slice %675 {offsets = [127, 0], sizes = [10, 16], strides = [1, 1]} : vector<196x16xf32> to vector<10x16xf32>
    %689 = arith.addf %667, %688 : vector<10x16xf32>
    %690 = vector.extract_strided_slice %675 {offsets = [141, 0], sizes = [10, 16], strides = [1, 1]} : vector<196x16xf32> to vector<10x16xf32>
    %691 = arith.addf %669, %690 : vector<10x16xf32>
    %692 = vector.extract_strided_slice %675 {offsets = [155, 0], sizes = [10, 16], strides = [1, 1]} : vector<196x16xf32> to vector<10x16xf32>
    %693 = arith.addf %671, %692 : vector<10x16xf32>
    %694 = vector.extract_strided_slice %675 {offsets = [169, 0], sizes = [10, 16], strides = [1, 1]} : vector<196x16xf32> to vector<10x16xf32>
    %695 = arith.addf %673, %694 : vector<10x16xf32>
    %c102 = arith.constant 102 : index
    %c0_292 = arith.constant 0 : index
    %696 = vector.load %arg4[%c102, %c0_292] : memref<150x16xbf16, #tpu.memory_space<vmem>>, vector<6x16xbf16>
    %cst_293 = arith.constant dense<0.000000e+00> : vector<196x16xf32>
    %697 = tpu.matmul %311, %696, %cst_293 {dimension_numbers = #tpu.dot_dimension_numbers<[1], [0], [0], [1], [0, 0, 1, 1], [], []>} : vector<196x6xbf16>, vector<6x16xbf16>, vector<196x16xf32> -> vector<196x16xf32>
    %698 = vector.extract_strided_slice %697 {offsets = [44, 0], sizes = [10, 16], strides = [1, 1]} : vector<196x16xf32> to vector<10x16xf32>
    %699 = arith.addf %677, %698 : vector<10x16xf32>
    %700 = vector.extract_strided_slice %697 {offsets = [58, 0], sizes = [10, 16], strides = [1, 1]} : vector<196x16xf32> to vector<10x16xf32>
    %701 = arith.addf %679, %700 : vector<10x16xf32>
    %702 = vector.extract_strided_slice %697 {offsets = [72, 0], sizes = [10, 16], strides = [1, 1]} : vector<196x16xf32> to vector<10x16xf32>
    %703 = arith.addf %681, %702 : vector<10x16xf32>
    %704 = vector.extract_strided_slice %697 {offsets = [86, 0], sizes = [10, 16], strides = [1, 1]} : vector<196x16xf32> to vector<10x16xf32>
    %705 = arith.addf %683, %704 : vector<10x16xf32>
    %706 = vector.extract_strided_slice %697 {offsets = [100, 0], sizes = [10, 16], strides = [1, 1]} : vector<196x16xf32> to vector<10x16xf32>
    %707 = arith.addf %685, %706 : vector<10x16xf32>
    %708 = vector.extract_strided_slice %697 {offsets = [114, 0], sizes = [10, 16], strides = [1, 1]} : vector<196x16xf32> to vector<10x16xf32>
    %709 = arith.addf %687, %708 : vector<10x16xf32>
    %710 = vector.extract_strided_slice %697 {offsets = [128, 0], sizes = [10, 16], strides = [1, 1]} : vector<196x16xf32> to vector<10x16xf32>
    %711 = arith.addf %689, %710 : vector<10x16xf32>
    %712 = vector.extract_strided_slice %697 {offsets = [142, 0], sizes = [10, 16], strides = [1, 1]} : vector<196x16xf32> to vector<10x16xf32>
    %713 = arith.addf %691, %712 : vector<10x16xf32>
    %714 = vector.extract_strided_slice %697 {offsets = [156, 0], sizes = [10, 16], strides = [1, 1]} : vector<196x16xf32> to vector<10x16xf32>
    %715 = arith.addf %693, %714 : vector<10x16xf32>
    %716 = vector.extract_strided_slice %697 {offsets = [170, 0], sizes = [10, 16], strides = [1, 1]} : vector<196x16xf32> to vector<10x16xf32>
    %717 = arith.addf %695, %716 : vector<10x16xf32>
    %c108 = arith.constant 108 : index
    %c0_294 = arith.constant 0 : index
    %718 = vector.load %arg4[%c108, %c0_294] : memref<150x16xbf16, #tpu.memory_space<vmem>>, vector<6x16xbf16>
    %cst_295 = arith.constant dense<0.000000e+00> : vector<196x16xf32>
    %719 = tpu.matmul %311, %718, %cst_295 {dimension_numbers = #tpu.dot_dimension_numbers<[1], [0], [0], [1], [0, 0, 1, 1], [], []>} : vector<196x6xbf16>, vector<6x16xbf16>, vector<196x16xf32> -> vector<196x16xf32>
    %720 = vector.extract_strided_slice %719 {offsets = [45, 0], sizes = [10, 16], strides = [1, 1]} : vector<196x16xf32> to vector<10x16xf32>
    %721 = arith.addf %699, %720 : vector<10x16xf32>
    %722 = vector.extract_strided_slice %719 {offsets = [59, 0], sizes = [10, 16], strides = [1, 1]} : vector<196x16xf32> to vector<10x16xf32>
    %723 = arith.addf %701, %722 : vector<10x16xf32>
    %724 = vector.extract_strided_slice %719 {offsets = [73, 0], sizes = [10, 16], strides = [1, 1]} : vector<196x16xf32> to vector<10x16xf32>
    %725 = arith.addf %703, %724 : vector<10x16xf32>
    %726 = vector.extract_strided_slice %719 {offsets = [87, 0], sizes = [10, 16], strides = [1, 1]} : vector<196x16xf32> to vector<10x16xf32>
    %727 = arith.addf %705, %726 : vector<10x16xf32>
    %728 = vector.extract_strided_slice %719 {offsets = [101, 0], sizes = [10, 16], strides = [1, 1]} : vector<196x16xf32> to vector<10x16xf32>
    %729 = arith.addf %707, %728 : vector<10x16xf32>
    %730 = vector.extract_strided_slice %719 {offsets = [115, 0], sizes = [10, 16], strides = [1, 1]} : vector<196x16xf32> to vector<10x16xf32>
    %731 = arith.addf %709, %730 : vector<10x16xf32>
    %732 = vector.extract_strided_slice %719 {offsets = [129, 0], sizes = [10, 16], strides = [1, 1]} : vector<196x16xf32> to vector<10x16xf32>
    %733 = arith.addf %711, %732 : vector<10x16xf32>
    %734 = vector.extract_strided_slice %719 {offsets = [143, 0], sizes = [10, 16], strides = [1, 1]} : vector<196x16xf32> to vector<10x16xf32>
    %735 = arith.addf %713, %734 : vector<10x16xf32>
    %736 = vector.extract_strided_slice %719 {offsets = [157, 0], sizes = [10, 16], strides = [1, 1]} : vector<196x16xf32> to vector<10x16xf32>
    %737 = arith.addf %715, %736 : vector<10x16xf32>
    %738 = vector.extract_strided_slice %719 {offsets = [171, 0], sizes = [10, 16], strides = [1, 1]} : vector<196x16xf32> to vector<10x16xf32>
    %739 = arith.addf %717, %738 : vector<10x16xf32>
    %c114 = arith.constant 114 : index
    %c0_296 = arith.constant 0 : index
    %740 = vector.load %arg4[%c114, %c0_296] : memref<150x16xbf16, #tpu.memory_space<vmem>>, vector<6x16xbf16>
    %cst_297 = arith.constant dense<0.000000e+00> : vector<196x16xf32>
    %741 = tpu.matmul %311, %740, %cst_297 {dimension_numbers = #tpu.dot_dimension_numbers<[1], [0], [0], [1], [0, 0, 1, 1], [], []>} : vector<196x6xbf16>, vector<6x16xbf16>, vector<196x16xf32> -> vector<196x16xf32>
    %742 = vector.extract_strided_slice %741 {offsets = [46, 0], sizes = [10, 16], strides = [1, 1]} : vector<196x16xf32> to vector<10x16xf32>
    %743 = arith.addf %721, %742 : vector<10x16xf32>
    %744 = vector.extract_strided_slice %741 {offsets = [60, 0], sizes = [10, 16], strides = [1, 1]} : vector<196x16xf32> to vector<10x16xf32>
    %745 = arith.addf %723, %744 : vector<10x16xf32>
    %746 = vector.extract_strided_slice %741 {offsets = [74, 0], sizes = [10, 16], strides = [1, 1]} : vector<196x16xf32> to vector<10x16xf32>
    %747 = arith.addf %725, %746 : vector<10x16xf32>
    %748 = vector.extract_strided_slice %741 {offsets = [88, 0], sizes = [10, 16], strides = [1, 1]} : vector<196x16xf32> to vector<10x16xf32>
    %749 = arith.addf %727, %748 : vector<10x16xf32>
    %750 = vector.extract_strided_slice %741 {offsets = [102, 0], sizes = [10, 16], strides = [1, 1]} : vector<196x16xf32> to vector<10x16xf32>
    %751 = arith.addf %729, %750 : vector<10x16xf32>
    %752 = vector.extract_strided_slice %741 {offsets = [116, 0], sizes = [10, 16], strides = [1, 1]} : vector<196x16xf32> to vector<10x16xf32>
    %753 = arith.addf %731, %752 : vector<10x16xf32>
    %754 = vector.extract_strided_slice %741 {offsets = [130, 0], sizes = [10, 16], strides = [1, 1]} : vector<196x16xf32> to vector<10x16xf32>
    %755 = arith.addf %733, %754 : vector<10x16xf32>
    %756 = vector.extract_strided_slice %741 {offsets = [144, 0], sizes = [10, 16], strides = [1, 1]} : vector<196x16xf32> to vector<10x16xf32>
    %757 = arith.addf %735, %756 : vector<10x16xf32>
    %758 = vector.extract_strided_slice %741 {offsets = [158, 0], sizes = [10, 16], strides = [1, 1]} : vector<196x16xf32> to vector<10x16xf32>
    %759 = arith.addf %737, %758 : vector<10x16xf32>
    %760 = vector.extract_strided_slice %741 {offsets = [172, 0], sizes = [10, 16], strides = [1, 1]} : vector<196x16xf32> to vector<10x16xf32>
    %761 = arith.addf %739, %760 : vector<10x16xf32>
    %c120 = arith.constant 120 : index
    %c0_298 = arith.constant 0 : index
    %762 = vector.load %arg4[%c120, %c0_298] : memref<150x16xbf16, #tpu.memory_space<vmem>>, vector<6x16xbf16>
    %cst_299 = arith.constant dense<0.000000e+00> : vector<196x16xf32>
    %763 = tpu.matmul %311, %762, %cst_299 {dimension_numbers = #tpu.dot_dimension_numbers<[1], [0], [0], [1], [0, 0, 1, 1], [], []>} : vector<196x6xbf16>, vector<6x16xbf16>, vector<196x16xf32> -> vector<196x16xf32>
    %764 = vector.extract_strided_slice %763 {offsets = [56, 0], sizes = [10, 16], strides = [1, 1]} : vector<196x16xf32> to vector<10x16xf32>
    %765 = arith.addf %743, %764 : vector<10x16xf32>
    %766 = vector.extract_strided_slice %763 {offsets = [70, 0], sizes = [10, 16], strides = [1, 1]} : vector<196x16xf32> to vector<10x16xf32>
    %767 = arith.addf %745, %766 : vector<10x16xf32>
    %768 = vector.extract_strided_slice %763 {offsets = [84, 0], sizes = [10, 16], strides = [1, 1]} : vector<196x16xf32> to vector<10x16xf32>
    %769 = arith.addf %747, %768 : vector<10x16xf32>
    %770 = vector.extract_strided_slice %763 {offsets = [98, 0], sizes = [10, 16], strides = [1, 1]} : vector<196x16xf32> to vector<10x16xf32>
    %771 = arith.addf %749, %770 : vector<10x16xf32>
    %772 = vector.extract_strided_slice %763 {offsets = [112, 0], sizes = [10, 16], strides = [1, 1]} : vector<196x16xf32> to vector<10x16xf32>
    %773 = arith.addf %751, %772 : vector<10x16xf32>
    %774 = vector.extract_strided_slice %763 {offsets = [126, 0], sizes = [10, 16], strides = [1, 1]} : vector<196x16xf32> to vector<10x16xf32>
    %775 = arith.addf %753, %774 : vector<10x16xf32>
    %776 = vector.extract_strided_slice %763 {offsets = [140, 0], sizes = [10, 16], strides = [1, 1]} : vector<196x16xf32> to vector<10x16xf32>
    %777 = arith.addf %755, %776 : vector<10x16xf32>
    %778 = vector.extract_strided_slice %763 {offsets = [154, 0], sizes = [10, 16], strides = [1, 1]} : vector<196x16xf32> to vector<10x16xf32>
    %779 = arith.addf %757, %778 : vector<10x16xf32>
    %780 = vector.extract_strided_slice %763 {offsets = [168, 0], sizes = [10, 16], strides = [1, 1]} : vector<196x16xf32> to vector<10x16xf32>
    %781 = arith.addf %759, %780 : vector<10x16xf32>
    %782 = vector.extract_strided_slice %763 {offsets = [182, 0], sizes = [10, 16], strides = [1, 1]} : vector<196x16xf32> to vector<10x16xf32>
    %783 = arith.addf %761, %782 : vector<10x16xf32>
    %c126_300 = arith.constant 126 : index
    %c0_301 = arith.constant 0 : index
    %784 = vector.load %arg4[%c126_300, %c0_301] : memref<150x16xbf16, #tpu.memory_space<vmem>>, vector<6x16xbf16>
    %cst_302 = arith.constant dense<0.000000e+00> : vector<196x16xf32>
    %785 = tpu.matmul %311, %784, %cst_302 {dimension_numbers = #tpu.dot_dimension_numbers<[1], [0], [0], [1], [0, 0, 1, 1], [], []>} : vector<196x6xbf16>, vector<6x16xbf16>, vector<196x16xf32> -> vector<196x16xf32>
    %786 = vector.extract_strided_slice %785 {offsets = [57, 0], sizes = [10, 16], strides = [1, 1]} : vector<196x16xf32> to vector<10x16xf32>
    %787 = arith.addf %765, %786 : vector<10x16xf32>
    %788 = vector.extract_strided_slice %785 {offsets = [71, 0], sizes = [10, 16], strides = [1, 1]} : vector<196x16xf32> to vector<10x16xf32>
    %789 = arith.addf %767, %788 : vector<10x16xf32>
    %790 = vector.extract_strided_slice %785 {offsets = [85, 0], sizes = [10, 16], strides = [1, 1]} : vector<196x16xf32> to vector<10x16xf32>
    %791 = arith.addf %769, %790 : vector<10x16xf32>
    %792 = vector.extract_strided_slice %785 {offsets = [99, 0], sizes = [10, 16], strides = [1, 1]} : vector<196x16xf32> to vector<10x16xf32>
    %793 = arith.addf %771, %792 : vector<10x16xf32>
    %794 = vector.extract_strided_slice %785 {offsets = [113, 0], sizes = [10, 16], strides = [1, 1]} : vector<196x16xf32> to vector<10x16xf32>
    %795 = arith.addf %773, %794 : vector<10x16xf32>
    %796 = vector.extract_strided_slice %785 {offsets = [127, 0], sizes = [10, 16], strides = [1, 1]} : vector<196x16xf32> to vector<10x16xf32>
    %797 = arith.addf %775, %796 : vector<10x16xf32>
    %798 = vector.extract_strided_slice %785 {offsets = [141, 0], sizes = [10, 16], strides = [1, 1]} : vector<196x16xf32> to vector<10x16xf32>
    %799 = arith.addf %777, %798 : vector<10x16xf32>
    %800 = vector.extract_strided_slice %785 {offsets = [155, 0], sizes = [10, 16], strides = [1, 1]} : vector<196x16xf32> to vector<10x16xf32>
    %801 = arith.addf %779, %800 : vector<10x16xf32>
    %802 = vector.extract_strided_slice %785 {offsets = [169, 0], sizes = [10, 16], strides = [1, 1]} : vector<196x16xf32> to vector<10x16xf32>
    %803 = arith.addf %781, %802 : vector<10x16xf32>
    %804 = vector.extract_strided_slice %785 {offsets = [183, 0], sizes = [10, 16], strides = [1, 1]} : vector<196x16xf32> to vector<10x16xf32>
    %805 = arith.addf %783, %804 : vector<10x16xf32>
    %c132 = arith.constant 132 : index
    %c0_303 = arith.constant 0 : index
    %806 = vector.load %arg4[%c132, %c0_303] : memref<150x16xbf16, #tpu.memory_space<vmem>>, vector<6x16xbf16>
    %cst_304 = arith.constant dense<0.000000e+00> : vector<196x16xf32>
    %807 = tpu.matmul %311, %806, %cst_304 {dimension_numbers = #tpu.dot_dimension_numbers<[1], [0], [0], [1], [0, 0, 1, 1], [], []>} : vector<196x6xbf16>, vector<6x16xbf16>, vector<196x16xf32> -> vector<196x16xf32>
    %808 = vector.extract_strided_slice %807 {offsets = [58, 0], sizes = [10, 16], strides = [1, 1]} : vector<196x16xf32> to vector<10x16xf32>
    %809 = arith.addf %787, %808 : vector<10x16xf32>
    %810 = vector.extract_strided_slice %807 {offsets = [72, 0], sizes = [10, 16], strides = [1, 1]} : vector<196x16xf32> to vector<10x16xf32>
    %811 = arith.addf %789, %810 : vector<10x16xf32>
    %812 = vector.extract_strided_slice %807 {offsets = [86, 0], sizes = [10, 16], strides = [1, 1]} : vector<196x16xf32> to vector<10x16xf32>
    %813 = arith.addf %791, %812 : vector<10x16xf32>
    %814 = vector.extract_strided_slice %807 {offsets = [100, 0], sizes = [10, 16], strides = [1, 1]} : vector<196x16xf32> to vector<10x16xf32>
    %815 = arith.addf %793, %814 : vector<10x16xf32>
    %816 = vector.extract_strided_slice %807 {offsets = [114, 0], sizes = [10, 16], strides = [1, 1]} : vector<196x16xf32> to vector<10x16xf32>
    %817 = arith.addf %795, %816 : vector<10x16xf32>
    %818 = vector.extract_strided_slice %807 {offsets = [128, 0], sizes = [10, 16], strides = [1, 1]} : vector<196x16xf32> to vector<10x16xf32>
    %819 = arith.addf %797, %818 : vector<10x16xf32>
    %820 = vector.extract_strided_slice %807 {offsets = [142, 0], sizes = [10, 16], strides = [1, 1]} : vector<196x16xf32> to vector<10x16xf32>
    %821 = arith.addf %799, %820 : vector<10x16xf32>
    %822 = vector.extract_strided_slice %807 {offsets = [156, 0], sizes = [10, 16], strides = [1, 1]} : vector<196x16xf32> to vector<10x16xf32>
    %823 = arith.addf %801, %822 : vector<10x16xf32>
    %824 = vector.extract_strided_slice %807 {offsets = [170, 0], sizes = [10, 16], strides = [1, 1]} : vector<196x16xf32> to vector<10x16xf32>
    %825 = arith.addf %803, %824 : vector<10x16xf32>
    %826 = vector.extract_strided_slice %807 {offsets = [184, 0], sizes = [10, 16], strides = [1, 1]} : vector<196x16xf32> to vector<10x16xf32>
    %827 = arith.addf %805, %826 : vector<10x16xf32>
    %c138 = arith.constant 138 : index
    %c0_305 = arith.constant 0 : index
    %828 = vector.load %arg4[%c138, %c0_305] : memref<150x16xbf16, #tpu.memory_space<vmem>>, vector<6x16xbf16>
    %cst_306 = arith.constant dense<0.000000e+00> : vector<196x16xf32>
    %829 = tpu.matmul %311, %828, %cst_306 {dimension_numbers = #tpu.dot_dimension_numbers<[1], [0], [0], [1], [0, 0, 1, 1], [], []>} : vector<196x6xbf16>, vector<6x16xbf16>, vector<196x16xf32> -> vector<196x16xf32>
    %830 = vector.extract_strided_slice %829 {offsets = [59, 0], sizes = [10, 16], strides = [1, 1]} : vector<196x16xf32> to vector<10x16xf32>
    %831 = arith.addf %809, %830 : vector<10x16xf32>
    %832 = vector.extract_strided_slice %829 {offsets = [73, 0], sizes = [10, 16], strides = [1, 1]} : vector<196x16xf32> to vector<10x16xf32>
    %833 = arith.addf %811, %832 : vector<10x16xf32>
    %834 = vector.extract_strided_slice %829 {offsets = [87, 0], sizes = [10, 16], strides = [1, 1]} : vector<196x16xf32> to vector<10x16xf32>
    %835 = arith.addf %813, %834 : vector<10x16xf32>
    %836 = vector.extract_strided_slice %829 {offsets = [101, 0], sizes = [10, 16], strides = [1, 1]} : vector<196x16xf32> to vector<10x16xf32>
    %837 = arith.addf %815, %836 : vector<10x16xf32>
    %838 = vector.extract_strided_slice %829 {offsets = [115, 0], sizes = [10, 16], strides = [1, 1]} : vector<196x16xf32> to vector<10x16xf32>
    %839 = arith.addf %817, %838 : vector<10x16xf32>
    %840 = vector.extract_strided_slice %829 {offsets = [129, 0], sizes = [10, 16], strides = [1, 1]} : vector<196x16xf32> to vector<10x16xf32>
    %841 = arith.addf %819, %840 : vector<10x16xf32>
    %842 = vector.extract_strided_slice %829 {offsets = [143, 0], sizes = [10, 16], strides = [1, 1]} : vector<196x16xf32> to vector<10x16xf32>
    %843 = arith.addf %821, %842 : vector<10x16xf32>
    %844 = vector.extract_strided_slice %829 {offsets = [157, 0], sizes = [10, 16], strides = [1, 1]} : vector<196x16xf32> to vector<10x16xf32>
    %845 = arith.addf %823, %844 : vector<10x16xf32>
    %846 = vector.extract_strided_slice %829 {offsets = [171, 0], sizes = [10, 16], strides = [1, 1]} : vector<196x16xf32> to vector<10x16xf32>
    %847 = arith.addf %825, %846 : vector<10x16xf32>
    %848 = vector.extract_strided_slice %829 {offsets = [185, 0], sizes = [10, 16], strides = [1, 1]} : vector<196x16xf32> to vector<10x16xf32>
    %849 = arith.addf %827, %848 : vector<10x16xf32>
    %c144 = arith.constant 144 : index
    %c0_307 = arith.constant 0 : index
    %850 = vector.load %arg4[%c144, %c0_307] : memref<150x16xbf16, #tpu.memory_space<vmem>>, vector<6x16xbf16>
    %cst_308 = arith.constant dense<0.000000e+00> : vector<196x16xf32>
    %851 = tpu.matmul %311, %850, %cst_308 {dimension_numbers = #tpu.dot_dimension_numbers<[1], [0], [0], [1], [0, 0, 1, 1], [], []>} : vector<196x6xbf16>, vector<6x16xbf16>, vector<196x16xf32> -> vector<196x16xf32>
    %852 = vector.extract_strided_slice %851 {offsets = [60, 0], sizes = [10, 16], strides = [1, 1]} : vector<196x16xf32> to vector<10x16xf32>
    %853 = arith.addf %831, %852 : vector<10x16xf32>
    %854 = vector.extract_strided_slice %851 {offsets = [74, 0], sizes = [10, 16], strides = [1, 1]} : vector<196x16xf32> to vector<10x16xf32>
    %855 = arith.addf %833, %854 : vector<10x16xf32>
    %856 = vector.extract_strided_slice %851 {offsets = [88, 0], sizes = [10, 16], strides = [1, 1]} : vector<196x16xf32> to vector<10x16xf32>
    %857 = arith.addf %835, %856 : vector<10x16xf32>
    %858 = vector.extract_strided_slice %851 {offsets = [102, 0], sizes = [10, 16], strides = [1, 1]} : vector<196x16xf32> to vector<10x16xf32>
    %859 = arith.addf %837, %858 : vector<10x16xf32>
    %860 = vector.extract_strided_slice %851 {offsets = [116, 0], sizes = [10, 16], strides = [1, 1]} : vector<196x16xf32> to vector<10x16xf32>
    %861 = arith.addf %839, %860 : vector<10x16xf32>
    %862 = vector.extract_strided_slice %851 {offsets = [130, 0], sizes = [10, 16], strides = [1, 1]} : vector<196x16xf32> to vector<10x16xf32>
    %863 = arith.addf %841, %862 : vector<10x16xf32>
    %864 = vector.extract_strided_slice %851 {offsets = [144, 0], sizes = [10, 16], strides = [1, 1]} : vector<196x16xf32> to vector<10x16xf32>
    %865 = arith.addf %843, %864 : vector<10x16xf32>
    %866 = vector.extract_strided_slice %851 {offsets = [158, 0], sizes = [10, 16], strides = [1, 1]} : vector<196x16xf32> to vector<10x16xf32>
    %867 = arith.addf %845, %866 : vector<10x16xf32>
    %868 = vector.extract_strided_slice %851 {offsets = [172, 0], sizes = [10, 16], strides = [1, 1]} : vector<196x16xf32> to vector<10x16xf32>
    %869 = arith.addf %847, %868 : vector<10x16xf32>
    %870 = vector.extract_strided_slice %851 {offsets = [186, 0], sizes = [10, 16], strides = [1, 1]} : vector<196x16xf32> to vector<10x16xf32>
    %871 = arith.addf %849, %870 : vector<10x16xf32>
    %c0_309 = arith.constant 0 : index
    %c0_310 = arith.constant 0 : index
    %872 = vector.load %arg5[%c0_309, %c0_310] : memref<1x16xf32, #tpu.memory_space<vmem>>, vector<1x16xf32>
    %873 = vector.broadcast %872 : vector<1x16xf32> to vector<10x16xf32>
    %874 = arith.addf %853, %873 : vector<10x16xf32>
    %cst_311 = arith.constant 0.000000e+00 : f32
    %875 = vector.broadcast %cst_311 : f32 to vector<10x16xf32>
    %876 = arith.subf %875, %874 : vector<10x16xf32>
    %877 = math.exp %876 : vector<10x16xf32>
    %cst_312 = arith.constant 1.000000e+00 : f32
    %878 = vector.broadcast %cst_312 : f32 to vector<10x16xf32>
    %879 = arith.addf %878, %877 : vector<10x16xf32>
    %880 = tpu.reciprocal %879 {approx = true} : vector<10x16xf32> -> vector<10x16xf32>
    %c0_313 = arith.constant 0 : index
    %c0_314 = arith.constant 0 : index
    %881 = vector.load %arg15[%c0_313, %c0_314] : memref<100x16xf32, #tpu.memory_space<vmem>>, vector<10x16xf32>
    tpu.vector_store %arg15[%c0_313, %c0_314], %880 {strides = array<i32>} : memref<100x16xf32, #tpu.memory_space<vmem>>, vector<10x16xf32>,
    %882 = vector.broadcast %872 : vector<1x16xf32> to vector<10x16xf32>
    %883 = arith.addf %855, %882 : vector<10x16xf32>
    %cst_315 = arith.constant 0.000000e+00 : f32
    %884 = vector.broadcast %cst_315 : f32 to vector<10x16xf32>
    %885 = arith.subf %884, %883 : vector<10x16xf32>
    %886 = math.exp %885 : vector<10x16xf32>
    %cst_316 = arith.constant 1.000000e+00 : f32
    %887 = vector.broadcast %cst_316 : f32 to vector<10x16xf32>
    %888 = arith.addf %887, %886 : vector<10x16xf32>
    %889 = tpu.reciprocal %888 {approx = true} : vector<10x16xf32> -> vector<10x16xf32>
    %c10 = arith.constant 10 : index
    %c0_317 = arith.constant 0 : index
    %890 = vector.load %arg15[%c10, %c0_317] : memref<100x16xf32, #tpu.memory_space<vmem>>, vector<10x16xf32>
    tpu.vector_store %arg15[%c10, %c0_317], %889 {strides = array<i32>} : memref<100x16xf32, #tpu.memory_space<vmem>>, vector<10x16xf32>,
    %891 = vector.broadcast %872 : vector<1x16xf32> to vector<10x16xf32>
    %892 = arith.addf %857, %891 : vector<10x16xf32>
    %cst_318 = arith.constant 0.000000e+00 : f32
    %893 = vector.broadcast %cst_318 : f32 to vector<10x16xf32>
    %894 = arith.subf %893, %892 : vector<10x16xf32>
    %895 = math.exp %894 : vector<10x16xf32>
    %cst_319 = arith.constant 1.000000e+00 : f32
    %896 = vector.broadcast %cst_319 : f32 to vector<10x16xf32>
    %897 = arith.addf %896, %895 : vector<10x16xf32>
    %898 = tpu.reciprocal %897 {approx = true} : vector<10x16xf32> -> vector<10x16xf32>
    %c20 = arith.constant 20 : index
    %c0_320 = arith.constant 0 : index
    %899 = vector.load %arg15[%c20, %c0_320] : memref<100x16xf32, #tpu.memory_space<vmem>>, vector<10x16xf32>
    tpu.vector_store %arg15[%c20, %c0_320], %898 {strides = array<i32>} : memref<100x16xf32, #tpu.memory_space<vmem>>, vector<10x16xf32>,
    %900 = vector.broadcast %872 : vector<1x16xf32> to vector<10x16xf32>
    %901 = arith.addf %859, %900 : vector<10x16xf32>
    %cst_321 = arith.constant 0.000000e+00 : f32
    %902 = vector.broadcast %cst_321 : f32 to vector<10x16xf32>
    %903 = arith.subf %902, %901 : vector<10x16xf32>
    %904 = math.exp %903 : vector<10x16xf32>
    %cst_322 = arith.constant 1.000000e+00 : f32
    %905 = vector.broadcast %cst_322 : f32 to vector<10x16xf32>
    %906 = arith.addf %905, %904 : vector<10x16xf32>
    %907 = tpu.reciprocal %906 {approx = true} : vector<10x16xf32> -> vector<10x16xf32>
    %c30_323 = arith.constant 30 : index
    %c0_324 = arith.constant 0 : index
    %908 = vector.load %arg15[%c30_323, %c0_324] : memref<100x16xf32, #tpu.memory_space<vmem>>, vector<10x16xf32>
    tpu.vector_store %arg15[%c30_323, %c0_324], %907 {strides = array<i32>} : memref<100x16xf32, #tpu.memory_space<vmem>>, vector<10x16xf32>,
    %909 = vector.broadcast %872 : vector<1x16xf32> to vector<10x16xf32>
    %910 = arith.addf %861, %909 : vector<10x16xf32>
    %cst_325 = arith.constant 0.000000e+00 : f32
    %911 = vector.broadcast %cst_325 : f32 to vector<10x16xf32>
    %912 = arith.subf %911, %910 : vector<10x16xf32>
    %913 = math.exp %912 : vector<10x16xf32>
    %cst_326 = arith.constant 1.000000e+00 : f32
    %914 = vector.broadcast %cst_326 : f32 to vector<10x16xf32>
    %915 = arith.addf %914, %913 : vector<10x16xf32>
    %916 = tpu.reciprocal %915 {approx = true} : vector<10x16xf32> -> vector<10x16xf32>
    %c40 = arith.constant 40 : index
    %c0_327 = arith.constant 0 : index
    %917 = vector.load %arg15[%c40, %c0_327] : memref<100x16xf32, #tpu.memory_space<vmem>>, vector<10x16xf32>
    tpu.vector_store %arg15[%c40, %c0_327], %916 {strides = array<i32>} : memref<100x16xf32, #tpu.memory_space<vmem>>, vector<10x16xf32>,
    %918 = vector.broadcast %872 : vector<1x16xf32> to vector<10x16xf32>
    %919 = arith.addf %863, %918 : vector<10x16xf32>
    %cst_328 = arith.constant 0.000000e+00 : f32
    %920 = vector.broadcast %cst_328 : f32 to vector<10x16xf32>
    %921 = arith.subf %920, %919 : vector<10x16xf32>
    %922 = math.exp %921 : vector<10x16xf32>
    %cst_329 = arith.constant 1.000000e+00 : f32
    %923 = vector.broadcast %cst_329 : f32 to vector<10x16xf32>
    %924 = arith.addf %923, %922 : vector<10x16xf32>
    %925 = tpu.reciprocal %924 {approx = true} : vector<10x16xf32> -> vector<10x16xf32>
    %c50 = arith.constant 50 : index
    %c0_330 = arith.constant 0 : index
    %926 = vector.load %arg15[%c50, %c0_330] : memref<100x16xf32, #tpu.memory_space<vmem>>, vector<10x16xf32>
    tpu.vector_store %arg15[%c50, %c0_330], %925 {strides = array<i32>} : memref<100x16xf32, #tpu.memory_space<vmem>>, vector<10x16xf32>,
    %927 = vector.broadcast %872 : vector<1x16xf32> to vector<10x16xf32>
    %928 = arith.addf %865, %927 : vector<10x16xf32>
    %cst_331 = arith.constant 0.000000e+00 : f32
    %929 = vector.broadcast %cst_331 : f32 to vector<10x16xf32>
    %930 = arith.subf %929, %928 : vector<10x16xf32>
    %931 = math.exp %930 : vector<10x16xf32>
    %cst_332 = arith.constant 1.000000e+00 : f32
    %932 = vector.broadcast %cst_332 : f32 to vector<10x16xf32>
    %933 = arith.addf %932, %931 : vector<10x16xf32>
    %934 = tpu.reciprocal %933 {approx = true} : vector<10x16xf32> -> vector<10x16xf32>
    %c60_333 = arith.constant 60 : index
    %c0_334 = arith.constant 0 : index
    %935 = vector.load %arg15[%c60_333, %c0_334] : memref<100x16xf32, #tpu.memory_space<vmem>>, vector<10x16xf32>
    tpu.vector_store %arg15[%c60_333, %c0_334], %934 {strides = array<i32>} : memref<100x16xf32, #tpu.memory_space<vmem>>, vector<10x16xf32>,
    %936 = vector.broadcast %872 : vector<1x16xf32> to vector<10x16xf32>
    %937 = arith.addf %867, %936 : vector<10x16xf32>
    %cst_335 = arith.constant 0.000000e+00 : f32
    %938 = vector.broadcast %cst_335 : f32 to vector<10x16xf32>
    %939 = arith.subf %938, %937 : vector<10x16xf32>
    %940 = math.exp %939 : vector<10x16xf32>
    %cst_336 = arith.constant 1.000000e+00 : f32
    %941 = vector.broadcast %cst_336 : f32 to vector<10x16xf32>
    %942 = arith.addf %941, %940 : vector<10x16xf32>
    %943 = tpu.reciprocal %942 {approx = true} : vector<10x16xf32> -> vector<10x16xf32>
    %c70_337 = arith.constant 70 : index
    %c0_338 = arith.constant 0 : index
    %944 = vector.load %arg15[%c70_337, %c0_338] : memref<100x16xf32, #tpu.memory_space<vmem>>, vector<10x16xf32>
    tpu.vector_store %arg15[%c70_337, %c0_338], %943 {strides = array<i32>} : memref<100x16xf32, #tpu.memory_space<vmem>>, vector<10x16xf32>,
    %945 = vector.broadcast %872 : vector<1x16xf32> to vector<10x16xf32>
    %946 = arith.addf %869, %945 : vector<10x16xf32>
    %cst_339 = arith.constant 0.000000e+00 : f32
    %947 = vector.broadcast %cst_339 : f32 to vector<10x16xf32>
    %948 = arith.subf %947, %946 : vector<10x16xf32>
    %949 = math.exp %948 : vector<10x16xf32>
    %cst_340 = arith.constant 1.000000e+00 : f32
    %950 = vector.broadcast %cst_340 : f32 to vector<10x16xf32>
    %951 = arith.addf %950, %949 : vector<10x16xf32>
    %952 = tpu.reciprocal %951 {approx = true} : vector<10x16xf32> -> vector<10x16xf32>
    %c80 = arith.constant 80 : index
    %c0_341 = arith.constant 0 : index
    %953 = vector.load %arg15[%c80, %c0_341] : memref<100x16xf32, #tpu.memory_space<vmem>>, vector<10x16xf32>
    tpu.vector_store %arg15[%c80, %c0_341], %952 {strides = array<i32>} : memref<100x16xf32, #tpu.memory_space<vmem>>, vector<10x16xf32>,
    %954 = vector.broadcast %872 : vector<1x16xf32> to vector<10x16xf32>
    %955 = arith.addf %871, %954 : vector<10x16xf32>
    %cst_342 = arith.constant 0.000000e+00 : f32
    %956 = vector.broadcast %cst_342 : f32 to vector<10x16xf32>
    %957 = arith.subf %956, %955 : vector<10x16xf32>
    %958 = math.exp %957 : vector<10x16xf32>
    %cst_343 = arith.constant 1.000000e+00 : f32
    %959 = vector.broadcast %cst_343 : f32 to vector<10x16xf32>
    %960 = arith.addf %959, %958 : vector<10x16xf32>
    %961 = tpu.reciprocal %960 {approx = true} : vector<10x16xf32> -> vector<10x16xf32>
    %c90_344 = arith.constant 90 : index
    %c0_345 = arith.constant 0 : index
    %962 = vector.load %arg15[%c90_344, %c0_345] : memref<100x16xf32, #tpu.memory_space<vmem>>, vector<10x16xf32>
    tpu.vector_store %arg15[%c90_344, %c0_345], %961 {strides = array<i32>} : memref<100x16xf32, #tpu.memory_space<vmem>>, vector<10x16xf32>,
    %c0_346 = arith.constant 0 : index
    %c0_347 = arith.constant 0 : index
    %963 = vector.load %arg7[%c0_346, %c0_347] : memref<1x120xf32, #tpu.memory_space<vmem>>, vector<1x120xf32>
    %c0_348 = arith.constant 0 : index
    %c0_349 = arith.constant 0 : index
    %964 = tpu.strided_load %arg15[%c0_348, %c0_349] {strides = array<i32: 2, 1>} : memref<100x16xf32, #tpu.memory_space<vmem>>, vector<5x16xf32>
    %c1_350 = arith.constant 1 : index
    %c0_351 = arith.constant 0 : index
    %965 = tpu.strided_load %arg15[%c1_350, %c0_351] {strides = array<i32: 2, 1>} : memref<100x16xf32, #tpu.memory_space<vmem>>, vector<5x16xf32>
    %966 = arith.addf %964, %965 : vector<5x16xf32>
    %c10_352 = arith.constant 10 : index
    %c0_353 = arith.constant 0 : index
    %967 = tpu.strided_load %arg15[%c10_352, %c0_353] {strides = array<i32: 2, 1>} : memref<100x16xf32, #tpu.memory_space<vmem>>, vector<5x16xf32>
    %968 = arith.addf %966, %967 : vector<5x16xf32>
    %c11 = arith.constant 11 : index
    %c0_354 = arith.constant 0 : index
    %969 = tpu.strided_load %arg15[%c11, %c0_354] {strides = array<i32: 2, 1>} : memref<100x16xf32, #tpu.memory_space<vmem>>, vector<5x16xf32>
    %970 = arith.addf %968, %969 : vector<5x16xf32>
    %cst_355 = arith.constant 2.500000e-01 : f32
    %971 = vector.broadcast %cst_355 : f32 to vector<5x16xf32>
    %972 = arith.mulf %970, %971 : vector<5x16xf32>
    %c0_356 = arith.constant 0 : index
    %c0_357 = arith.constant 0 : index
    %973 = vector.load %arg16[%c0_356, %c0_357] : memref<5x16xf32, #tpu.memory_space<vmem>>, vector<5x16xf32>
    tpu.vector_store %arg16[%c0_356, %c0_357], %972 {strides = array<i32>} : memref<5x16xf32, #tpu.memory_space<vmem>>, vector<5x16xf32>,
    %c0_358 = arith.constant 0 : index
    %c0_359 = arith.constant 0 : index
    %974 = vector.load %arg16[%c0_358, %c0_359] : memref<5x16xf32, #tpu.memory_space<vmem>>, vector<1x16xf32>
    %975 = arith.truncf %974 : vector<1x16xf32> to vector<1x16xbf16>
    %c0_360 = arith.constant 0 : index
    %c0_361 = arith.constant 0 : index
    %976 = vector.load %arg6[%c0_360, %c0_361] : memref<400x120xbf16, #tpu.memory_space<vmem>>, vector<16x120xbf16>
    %cst_362 = arith.constant dense<0.000000e+00> : vector<1x120xf32>
    %977 = tpu.matmul %975, %976, %cst_362 {dimension_numbers = #tpu.dot_dimension_numbers<[1], [0], [0], [1], [0, 0, 1, 1], [], []>} : vector<1x16xbf16>, vector<16x120xbf16>, vector<1x120xf32> -> vector<1x120xf32>
    %978 = arith.addf %963, %977 : vector<1x120xf32>
    %c1_363 = arith.constant 1 : index
    %c0_364 = arith.constant 0 : index
    %979 = vector.load %arg16[%c1_363, %c0_364] : memref<5x16xf32, #tpu.memory_space<vmem>>, vector<1x16xf32>
    %980 = arith.truncf %979 : vector<1x16xf32> to vector<1x16xbf16>
    %c16 = arith.constant 16 : index
    %c0_365 = arith.constant 0 : index
    %981 = vector.load %arg6[%c16, %c0_365] : memref<400x120xbf16, #tpu.memory_space<vmem>>, vector<16x120xbf16>
    %cst_366 = arith.constant dense<0.000000e+00> : vector<1x120xf32>
    %982 = tpu.matmul %980, %981, %cst_366 {dimension_numbers = #tpu.dot_dimension_numbers<[1], [0], [0], [1], [0, 0, 1, 1], [], []>} : vector<1x16xbf16>, vector<16x120xbf16>, vector<1x120xf32> -> vector<1x120xf32>
    %983 = arith.addf %978, %982 : vector<1x120xf32>
    %c2 = arith.constant 2 : index
    %c0_367 = arith.constant 0 : index
    %984 = vector.load %arg16[%c2, %c0_367] : memref<5x16xf32, #tpu.memory_space<vmem>>, vector<1x16xf32>
    %985 = arith.truncf %984 : vector<1x16xf32> to vector<1x16xbf16>
    %c32 = arith.constant 32 : index
    %c0_368 = arith.constant 0 : index
    %986 = vector.load %arg6[%c32, %c0_368] : memref<400x120xbf16, #tpu.memory_space<vmem>>, vector<16x120xbf16>
    %cst_369 = arith.constant dense<0.000000e+00> : vector<1x120xf32>
    %987 = tpu.matmul %985, %986, %cst_369 {dimension_numbers = #tpu.dot_dimension_numbers<[1], [0], [0], [1], [0, 0, 1, 1], [], []>} : vector<1x16xbf16>, vector<16x120xbf16>, vector<1x120xf32> -> vector<1x120xf32>
    %988 = arith.addf %983, %987 : vector<1x120xf32>
    %c3 = arith.constant 3 : index
    %c0_370 = arith.constant 0 : index
    %989 = vector.load %arg16[%c3, %c0_370] : memref<5x16xf32, #tpu.memory_space<vmem>>, vector<1x16xf32>
    %990 = arith.truncf %989 : vector<1x16xf32> to vector<1x16xbf16>
    %c48_371 = arith.constant 48 : index
    %c0_372 = arith.constant 0 : index
    %991 = vector.load %arg6[%c48_371, %c0_372] : memref<400x120xbf16, #tpu.memory_space<vmem>>, vector<16x120xbf16>
    %cst_373 = arith.constant dense<0.000000e+00> : vector<1x120xf32>
    %992 = tpu.matmul %990, %991, %cst_373 {dimension_numbers = #tpu.dot_dimension_numbers<[1], [0], [0], [1], [0, 0, 1, 1], [], []>} : vector<1x16xbf16>, vector<16x120xbf16>, vector<1x120xf32> -> vector<1x120xf32>
    %993 = arith.addf %988, %992 : vector<1x120xf32>
    %c4 = arith.constant 4 : index
    %c0_374 = arith.constant 0 : index
    %994 = vector.load %arg16[%c4, %c0_374] : memref<5x16xf32, #tpu.memory_space<vmem>>, vector<1x16xf32>
    %995 = arith.truncf %994 : vector<1x16xf32> to vector<1x16xbf16>
    %c64 = arith.constant 64 : index
    %c0_375 = arith.constant 0 : index
    %996 = vector.load %arg6[%c64, %c0_375] : memref<400x120xbf16, #tpu.memory_space<vmem>>, vector<16x120xbf16>
    %cst_376 = arith.constant dense<0.000000e+00> : vector<1x120xf32>
    %997 = tpu.matmul %995, %996, %cst_376 {dimension_numbers = #tpu.dot_dimension_numbers<[1], [0], [0], [1], [0, 0, 1, 1], [], []>} : vector<1x16xbf16>, vector<16x120xbf16>, vector<1x120xf32> -> vector<1x120xf32>
    %998 = arith.addf %993, %997 : vector<1x120xf32>
    %c20_377 = arith.constant 20 : index
    %c0_378 = arith.constant 0 : index
    %999 = tpu.strided_load %arg15[%c20_377, %c0_378] {strides = array<i32: 2, 1>} : memref<100x16xf32, #tpu.memory_space<vmem>>, vector<5x16xf32>
    %c21 = arith.constant 21 : index
    %c0_379 = arith.constant 0 : index
    %1000 = tpu.strided_load %arg15[%c21, %c0_379] {strides = array<i32: 2, 1>} : memref<100x16xf32, #tpu.memory_space<vmem>>, vector<5x16xf32>
    %1001 = arith.addf %999, %1000 : vector<5x16xf32>
    %c30_380 = arith.constant 30 : index
    %c0_381 = arith.constant 0 : index
    %1002 = tpu.strided_load %arg15[%c30_380, %c0_381] {strides = array<i32: 2, 1>} : memref<100x16xf32, #tpu.memory_space<vmem>>, vector<5x16xf32>
    %1003 = arith.addf %1001, %1002 : vector<5x16xf32>
    %c31 = arith.constant 31 : index
    %c0_382 = arith.constant 0 : index
    %1004 = tpu.strided_load %arg15[%c31, %c0_382] {strides = array<i32: 2, 1>} : memref<100x16xf32, #tpu.memory_space<vmem>>, vector<5x16xf32>
    %1005 = arith.addf %1003, %1004 : vector<5x16xf32>
    %cst_383 = arith.constant 2.500000e-01 : f32
    %1006 = vector.broadcast %cst_383 : f32 to vector<5x16xf32>
    %1007 = arith.mulf %1005, %1006 : vector<5x16xf32>
    %c0_384 = arith.constant 0 : index
    %c0_385 = arith.constant 0 : index
    %1008 = vector.load %arg16[%c0_384, %c0_385] : memref<5x16xf32, #tpu.memory_space<vmem>>, vector<5x16xf32>
    tpu.vector_store %arg16[%c0_384, %c0_385], %1007 {strides = array<i32>} : memref<5x16xf32, #tpu.memory_space<vmem>>, vector<5x16xf32>,
    %c0_386 = arith.constant 0 : index
    %c0_387 = arith.constant 0 : index
    %1009 = vector.load %arg16[%c0_386, %c0_387] : memref<5x16xf32, #tpu.memory_space<vmem>>, vector<1x16xf32>
    %1010 = arith.truncf %1009 : vector<1x16xf32> to vector<1x16xbf16>
    %c80_388 = arith.constant 80 : index
    %c0_389 = arith.constant 0 : index
    %1011 = vector.load %arg6[%c80_388, %c0_389] : memref<400x120xbf16, #tpu.memory_space<vmem>>, vector<16x120xbf16>
    %cst_390 = arith.constant dense<0.000000e+00> : vector<1x120xf32>
    %1012 = tpu.matmul %1010, %1011, %cst_390 {dimension_numbers = #tpu.dot_dimension_numbers<[1], [0], [0], [1], [0, 0, 1, 1], [], []>} : vector<1x16xbf16>, vector<16x120xbf16>, vector<1x120xf32> -> vector<1x120xf32>
    %1013 = arith.addf %998, %1012 : vector<1x120xf32>
    %c1_391 = arith.constant 1 : index
    %c0_392 = arith.constant 0 : index
    %1014 = vector.load %arg16[%c1_391, %c0_392] : memref<5x16xf32, #tpu.memory_space<vmem>>, vector<1x16xf32>
    %1015 = arith.truncf %1014 : vector<1x16xf32> to vector<1x16xbf16>
    %c96_393 = arith.constant 96 : index
    %c0_394 = arith.constant 0 : index
    %1016 = vector.load %arg6[%c96_393, %c0_394] : memref<400x120xbf16, #tpu.memory_space<vmem>>, vector<16x120xbf16>
    %cst_395 = arith.constant dense<0.000000e+00> : vector<1x120xf32>
    %1017 = tpu.matmul %1015, %1016, %cst_395 {dimension_numbers = #tpu.dot_dimension_numbers<[1], [0], [0], [1], [0, 0, 1, 1], [], []>} : vector<1x16xbf16>, vector<16x120xbf16>, vector<1x120xf32> -> vector<1x120xf32>
    %1018 = arith.addf %1013, %1017 : vector<1x120xf32>
    %c2_396 = arith.constant 2 : index
    %c0_397 = arith.constant 0 : index
    %1019 = vector.load %arg16[%c2_396, %c0_397] : memref<5x16xf32, #tpu.memory_space<vmem>>, vector<1x16xf32>
    %1020 = arith.truncf %1019 : vector<1x16xf32> to vector<1x16xbf16>
    %c112_398 = arith.constant 112 : index
    %c0_399 = arith.constant 0 : index
    %1021 = vector.load %arg6[%c112_398, %c0_399] : memref<400x120xbf16, #tpu.memory_space<vmem>>, vector<16x120xbf16>
    %cst_400 = arith.constant dense<0.000000e+00> : vector<1x120xf32>
    %1022 = tpu.matmul %1020, %1021, %cst_400 {dimension_numbers = #tpu.dot_dimension_numbers<[1], [0], [0], [1], [0, 0, 1, 1], [], []>} : vector<1x16xbf16>, vector<16x120xbf16>, vector<1x120xf32> -> vector<1x120xf32>
    %1023 = arith.addf %1018, %1022 : vector<1x120xf32>
    %c3_401 = arith.constant 3 : index
    %c0_402 = arith.constant 0 : index
    %1024 = vector.load %arg16[%c3_401, %c0_402] : memref<5x16xf32, #tpu.memory_space<vmem>>, vector<1x16xf32>
    %1025 = arith.truncf %1024 : vector<1x16xf32> to vector<1x16xbf16>
    %c128 = arith.constant 128 : index
    %c0_403 = arith.constant 0 : index
    %1026 = vector.load %arg6[%c128, %c0_403] : memref<400x120xbf16, #tpu.memory_space<vmem>>, vector<16x120xbf16>
    %cst_404 = arith.constant dense<0.000000e+00> : vector<1x120xf32>
    %1027 = tpu.matmul %1025, %1026, %cst_404 {dimension_numbers = #tpu.dot_dimension_numbers<[1], [0], [0], [1], [0, 0, 1, 1], [], []>} : vector<1x16xbf16>, vector<16x120xbf16>, vector<1x120xf32> -> vector<1x120xf32>
    %1028 = arith.addf %1023, %1027 : vector<1x120xf32>
    %c4_405 = arith.constant 4 : index
    %c0_406 = arith.constant 0 : index
    %1029 = vector.load %arg16[%c4_405, %c0_406] : memref<5x16xf32, #tpu.memory_space<vmem>>, vector<1x16xf32>
    %1030 = arith.truncf %1029 : vector<1x16xf32> to vector<1x16xbf16>
    %c144_407 = arith.constant 144 : index
    %c0_408 = arith.constant 0 : index
    %1031 = vector.load %arg6[%c144_407, %c0_408] : memref<400x120xbf16, #tpu.memory_space<vmem>>, vector<16x120xbf16>
    %cst_409 = arith.constant dense<0.000000e+00> : vector<1x120xf32>
    %1032 = tpu.matmul %1030, %1031, %cst_409 {dimension_numbers = #tpu.dot_dimension_numbers<[1], [0], [0], [1], [0, 0, 1, 1], [], []>} : vector<1x16xbf16>, vector<16x120xbf16>, vector<1x120xf32> -> vector<1x120xf32>
    %1033 = arith.addf %1028, %1032 : vector<1x120xf32>
    %c40_410 = arith.constant 40 : index
    %c0_411 = arith.constant 0 : index
    %1034 = tpu.strided_load %arg15[%c40_410, %c0_411] {strides = array<i32: 2, 1>} : memref<100x16xf32, #tpu.memory_space<vmem>>, vector<5x16xf32>
    %c41 = arith.constant 41 : index
    %c0_412 = arith.constant 0 : index
    %1035 = tpu.strided_load %arg15[%c41, %c0_412] {strides = array<i32: 2, 1>} : memref<100x16xf32, #tpu.memory_space<vmem>>, vector<5x16xf32>
    %1036 = arith.addf %1034, %1035 : vector<5x16xf32>
    %c50_413 = arith.constant 50 : index
    %c0_414 = arith.constant 0 : index
    %1037 = tpu.strided_load %arg15[%c50_413, %c0_414] {strides = array<i32: 2, 1>} : memref<100x16xf32, #tpu.memory_space<vmem>>, vector<5x16xf32>
    %1038 = arith.addf %1036, %1037 : vector<5x16xf32>
    %c51 = arith.constant 51 : index
    %c0_415 = arith.constant 0 : index
    %1039 = tpu.strided_load %arg15[%c51, %c0_415] {strides = array<i32: 2, 1>} : memref<100x16xf32, #tpu.memory_space<vmem>>, vector<5x16xf32>
    %1040 = arith.addf %1038, %1039 : vector<5x16xf32>
    %cst_416 = arith.constant 2.500000e-01 : f32
    %1041 = vector.broadcast %cst_416 : f32 to vector<5x16xf32>
    %1042 = arith.mulf %1040, %1041 : vector<5x16xf32>
    %c0_417 = arith.constant 0 : index
    %c0_418 = arith.constant 0 : index
    %1043 = vector.load %arg16[%c0_417, %c0_418] : memref<5x16xf32, #tpu.memory_space<vmem>>, vector<5x16xf32>
    tpu.vector_store %arg16[%c0_417, %c0_418], %1042 {strides = array<i32>} : memref<5x16xf32, #tpu.memory_space<vmem>>, vector<5x16xf32>,
    %c0_419 = arith.constant 0 : index
    %c0_420 = arith.constant 0 : index
    %1044 = vector.load %arg16[%c0_419, %c0_420] : memref<5x16xf32, #tpu.memory_space<vmem>>, vector<1x16xf32>
    %1045 = arith.truncf %1044 : vector<1x16xf32> to vector<1x16xbf16>
    %c160 = arith.constant 160 : index
    %c0_421 = arith.constant 0 : index
    %1046 = vector.load %arg6[%c160, %c0_421] : memref<400x120xbf16, #tpu.memory_space<vmem>>, vector<16x120xbf16>
    %cst_422 = arith.constant dense<0.000000e+00> : vector<1x120xf32>
    %1047 = tpu.matmul %1045, %1046, %cst_422 {dimension_numbers = #tpu.dot_dimension_numbers<[1], [0], [0], [1], [0, 0, 1, 1], [], []>} : vector<1x16xbf16>, vector<16x120xbf16>, vector<1x120xf32> -> vector<1x120xf32>
    %1048 = arith.addf %1033, %1047 : vector<1x120xf32>
    %c1_423 = arith.constant 1 : index
    %c0_424 = arith.constant 0 : index
    %1049 = vector.load %arg16[%c1_423, %c0_424] : memref<5x16xf32, #tpu.memory_space<vmem>>, vector<1x16xf32>
    %1050 = arith.truncf %1049 : vector<1x16xf32> to vector<1x16xbf16>
    %c176 = arith.constant 176 : index
    %c0_425 = arith.constant 0 : index
    %1051 = vector.load %arg6[%c176, %c0_425] : memref<400x120xbf16, #tpu.memory_space<vmem>>, vector<16x120xbf16>
    %cst_426 = arith.constant dense<0.000000e+00> : vector<1x120xf32>
    %1052 = tpu.matmul %1050, %1051, %cst_426 {dimension_numbers = #tpu.dot_dimension_numbers<[1], [0], [0], [1], [0, 0, 1, 1], [], []>} : vector<1x16xbf16>, vector<16x120xbf16>, vector<1x120xf32> -> vector<1x120xf32>
    %1053 = arith.addf %1048, %1052 : vector<1x120xf32>
    %c2_427 = arith.constant 2 : index
    %c0_428 = arith.constant 0 : index
    %1054 = vector.load %arg16[%c2_427, %c0_428] : memref<5x16xf32, #tpu.memory_space<vmem>>, vector<1x16xf32>
    %1055 = arith.truncf %1054 : vector<1x16xf32> to vector<1x16xbf16>
    %c192 = arith.constant 192 : index
    %c0_429 = arith.constant 0 : index
    %1056 = vector.load %arg6[%c192, %c0_429] : memref<400x120xbf16, #tpu.memory_space<vmem>>, vector<16x120xbf16>
    %cst_430 = arith.constant dense<0.000000e+00> : vector<1x120xf32>
    %1057 = tpu.matmul %1055, %1056, %cst_430 {dimension_numbers = #tpu.dot_dimension_numbers<[1], [0], [0], [1], [0, 0, 1, 1], [], []>} : vector<1x16xbf16>, vector<16x120xbf16>, vector<1x120xf32> -> vector<1x120xf32>
    %1058 = arith.addf %1053, %1057 : vector<1x120xf32>
    %c3_431 = arith.constant 3 : index
    %c0_432 = arith.constant 0 : index
    %1059 = vector.load %arg16[%c3_431, %c0_432] : memref<5x16xf32, #tpu.memory_space<vmem>>, vector<1x16xf32>
    %1060 = arith.truncf %1059 : vector<1x16xf32> to vector<1x16xbf16>
    %c208 = arith.constant 208 : index
    %c0_433 = arith.constant 0 : index
    %1061 = vector.load %arg6[%c208, %c0_433] : memref<400x120xbf16, #tpu.memory_space<vmem>>, vector<16x120xbf16>
    %cst_434 = arith.constant dense<0.000000e+00> : vector<1x120xf32>
    %1062 = tpu.matmul %1060, %1061, %cst_434 {dimension_numbers = #tpu.dot_dimension_numbers<[1], [0], [0], [1], [0, 0, 1, 1], [], []>} : vector<1x16xbf16>, vector<16x120xbf16>, vector<1x120xf32> -> vector<1x120xf32>
    %1063 = arith.addf %1058, %1062 : vector<1x120xf32>
    %c4_435 = arith.constant 4 : index
    %c0_436 = arith.constant 0 : index
    %1064 = vector.load %arg16[%c4_435, %c0_436] : memref<5x16xf32, #tpu.memory_space<vmem>>, vector<1x16xf32>
    %1065 = arith.truncf %1064 : vector<1x16xf32> to vector<1x16xbf16>
    %c224_437 = arith.constant 224 : index
    %c0_438 = arith.constant 0 : index
    %1066 = vector.load %arg6[%c224_437, %c0_438] : memref<400x120xbf16, #tpu.memory_space<vmem>>, vector<16x120xbf16>
    %cst_439 = arith.constant dense<0.000000e+00> : vector<1x120xf32>
    %1067 = tpu.matmul %1065, %1066, %cst_439 {dimension_numbers = #tpu.dot_dimension_numbers<[1], [0], [0], [1], [0, 0, 1, 1], [], []>} : vector<1x16xbf16>, vector<16x120xbf16>, vector<1x120xf32> -> vector<1x120xf32>
    %1068 = arith.addf %1063, %1067 : vector<1x120xf32>
    %c60_440 = arith.constant 60 : index
    %c0_441 = arith.constant 0 : index
    %1069 = tpu.strided_load %arg15[%c60_440, %c0_441] {strides = array<i32: 2, 1>} : memref<100x16xf32, #tpu.memory_space<vmem>>, vector<5x16xf32>
    %c61 = arith.constant 61 : index
    %c0_442 = arith.constant 0 : index
    %1070 = tpu.strided_load %arg15[%c61, %c0_442] {strides = array<i32: 2, 1>} : memref<100x16xf32, #tpu.memory_space<vmem>>, vector<5x16xf32>
    %1071 = arith.addf %1069, %1070 : vector<5x16xf32>
    %c70_443 = arith.constant 70 : index
    %c0_444 = arith.constant 0 : index
    %1072 = tpu.strided_load %arg15[%c70_443, %c0_444] {strides = array<i32: 2, 1>} : memref<100x16xf32, #tpu.memory_space<vmem>>, vector<5x16xf32>
    %1073 = arith.addf %1071, %1072 : vector<5x16xf32>
    %c71 = arith.constant 71 : index
    %c0_445 = arith.constant 0 : index
    %1074 = tpu.strided_load %arg15[%c71, %c0_445] {strides = array<i32: 2, 1>} : memref<100x16xf32, #tpu.memory_space<vmem>>, vector<5x16xf32>
    %1075 = arith.addf %1073, %1074 : vector<5x16xf32>
    %cst_446 = arith.constant 2.500000e-01 : f32
    %1076 = vector.broadcast %cst_446 : f32 to vector<5x16xf32>
    %1077 = arith.mulf %1075, %1076 : vector<5x16xf32>
    %c0_447 = arith.constant 0 : index
    %c0_448 = arith.constant 0 : index
    %1078 = vector.load %arg16[%c0_447, %c0_448] : memref<5x16xf32, #tpu.memory_space<vmem>>, vector<5x16xf32>
    tpu.vector_store %arg16[%c0_447, %c0_448], %1077 {strides = array<i32>} : memref<5x16xf32, #tpu.memory_space<vmem>>, vector<5x16xf32>,
    %c0_449 = arith.constant 0 : index
    %c0_450 = arith.constant 0 : index
    %1079 = vector.load %arg16[%c0_449, %c0_450] : memref<5x16xf32, #tpu.memory_space<vmem>>, vector<1x16xf32>
    %1080 = arith.truncf %1079 : vector<1x16xf32> to vector<1x16xbf16>
    %c240 = arith.constant 240 : index
    %c0_451 = arith.constant 0 : index
    %1081 = vector.load %arg6[%c240, %c0_451] : memref<400x120xbf16, #tpu.memory_space<vmem>>, vector<16x120xbf16>
    %cst_452 = arith.constant dense<0.000000e+00> : vector<1x120xf32>
    %1082 = tpu.matmul %1080, %1081, %cst_452 {dimension_numbers = #tpu.dot_dimension_numbers<[1], [0], [0], [1], [0, 0, 1, 1], [], []>} : vector<1x16xbf16>, vector<16x120xbf16>, vector<1x120xf32> -> vector<1x120xf32>
    %1083 = arith.addf %1068, %1082 : vector<1x120xf32>
    %c1_453 = arith.constant 1 : index
    %c0_454 = arith.constant 0 : index
    %1084 = vector.load %arg16[%c1_453, %c0_454] : memref<5x16xf32, #tpu.memory_space<vmem>>, vector<1x16xf32>
    %1085 = arith.truncf %1084 : vector<1x16xf32> to vector<1x16xbf16>
    %c256 = arith.constant 256 : index
    %c0_455 = arith.constant 0 : index
    %1086 = vector.load %arg6[%c256, %c0_455] : memref<400x120xbf16, #tpu.memory_space<vmem>>, vector<16x120xbf16>
    %cst_456 = arith.constant dense<0.000000e+00> : vector<1x120xf32>
    %1087 = tpu.matmul %1085, %1086, %cst_456 {dimension_numbers = #tpu.dot_dimension_numbers<[1], [0], [0], [1], [0, 0, 1, 1], [], []>} : vector<1x16xbf16>, vector<16x120xbf16>, vector<1x120xf32> -> vector<1x120xf32>
    %1088 = arith.addf %1083, %1087 : vector<1x120xf32>
    %c2_457 = arith.constant 2 : index
    %c0_458 = arith.constant 0 : index
    %1089 = vector.load %arg16[%c2_457, %c0_458] : memref<5x16xf32, #tpu.memory_space<vmem>>, vector<1x16xf32>
    %1090 = arith.truncf %1089 : vector<1x16xf32> to vector<1x16xbf16>
    %c272 = arith.constant 272 : index
    %c0_459 = arith.constant 0 : index
    %1091 = vector.load %arg6[%c272, %c0_459] : memref<400x120xbf16, #tpu.memory_space<vmem>>, vector<16x120xbf16>
    %cst_460 = arith.constant dense<0.000000e+00> : vector<1x120xf32>
    %1092 = tpu.matmul %1090, %1091, %cst_460 {dimension_numbers = #tpu.dot_dimension_numbers<[1], [0], [0], [1], [0, 0, 1, 1], [], []>} : vector<1x16xbf16>, vector<16x120xbf16>, vector<1x120xf32> -> vector<1x120xf32>
    %1093 = arith.addf %1088, %1092 : vector<1x120xf32>
    %c3_461 = arith.constant 3 : index
    %c0_462 = arith.constant 0 : index
    %1094 = vector.load %arg16[%c3_461, %c0_462] : memref<5x16xf32, #tpu.memory_space<vmem>>, vector<1x16xf32>
    %1095 = arith.truncf %1094 : vector<1x16xf32> to vector<1x16xbf16>
    %c288 = arith.constant 288 : index
    %c0_463 = arith.constant 0 : index
    %1096 = vector.load %arg6[%c288, %c0_463] : memref<400x120xbf16, #tpu.memory_space<vmem>>, vector<16x120xbf16>
    %cst_464 = arith.constant dense<0.000000e+00> : vector<1x120xf32>
    %1097 = tpu.matmul %1095, %1096, %cst_464 {dimension_numbers = #tpu.dot_dimension_numbers<[1], [0], [0], [1], [0, 0, 1, 1], [], []>} : vector<1x16xbf16>, vector<16x120xbf16>, vector<1x120xf32> -> vector<1x120xf32>
    %1098 = arith.addf %1093, %1097 : vector<1x120xf32>
    %c4_465 = arith.constant 4 : index
    %c0_466 = arith.constant 0 : index
    %1099 = vector.load %arg16[%c4_465, %c0_466] : memref<5x16xf32, #tpu.memory_space<vmem>>, vector<1x16xf32>
    %1100 = arith.truncf %1099 : vector<1x16xf32> to vector<1x16xbf16>
    %c304 = arith.constant 304 : index
    %c0_467 = arith.constant 0 : index
    %1101 = vector.load %arg6[%c304, %c0_467] : memref<400x120xbf16, #tpu.memory_space<vmem>>, vector<16x120xbf16>
    %cst_468 = arith.constant dense<0.000000e+00> : vector<1x120xf32>
    %1102 = tpu.matmul %1100, %1101, %cst_468 {dimension_numbers = #tpu.dot_dimension_numbers<[1], [0], [0], [1], [0, 0, 1, 1], [], []>} : vector<1x16xbf16>, vector<16x120xbf16>, vector<1x120xf32> -> vector<1x120xf32>
    %1103 = arith.addf %1098, %1102 : vector<1x120xf32>
    %c80_469 = arith.constant 80 : index
    %c0_470 = arith.constant 0 : index
    %1104 = tpu.strided_load %arg15[%c80_469, %c0_470] {strides = array<i32: 2, 1>} : memref<100x16xf32, #tpu.memory_space<vmem>>, vector<5x16xf32>
    %c81 = arith.constant 81 : index
    %c0_471 = arith.constant 0 : index
    %1105 = tpu.strided_load %arg15[%c81, %c0_471] {strides = array<i32: 2, 1>} : memref<100x16xf32, #tpu.memory_space<vmem>>, vector<5x16xf32>
    %1106 = arith.addf %1104, %1105 : vector<5x16xf32>
    %c90_472 = arith.constant 90 : index
    %c0_473 = arith.constant 0 : index
    %1107 = tpu.strided_load %arg15[%c90_472, %c0_473] {strides = array<i32: 2, 1>} : memref<100x16xf32, #tpu.memory_space<vmem>>, vector<5x16xf32>
    %1108 = arith.addf %1106, %1107 : vector<5x16xf32>
    %c91 = arith.constant 91 : index
    %c0_474 = arith.constant 0 : index
    %1109 = tpu.strided_load %arg15[%c91, %c0_474] {strides = array<i32: 2, 1>} : memref<100x16xf32, #tpu.memory_space<vmem>>, vector<5x16xf32>
    %1110 = arith.addf %1108, %1109 : vector<5x16xf32>
    %cst_475 = arith.constant 2.500000e-01 : f32
    %1111 = vector.broadcast %cst_475 : f32 to vector<5x16xf32>
    %1112 = arith.mulf %1110, %1111 : vector<5x16xf32>
    %c0_476 = arith.constant 0 : index
    %c0_477 = arith.constant 0 : index
    %1113 = vector.load %arg16[%c0_476, %c0_477] : memref<5x16xf32, #tpu.memory_space<vmem>>, vector<5x16xf32>
    tpu.vector_store %arg16[%c0_476, %c0_477], %1112 {strides = array<i32>} : memref<5x16xf32, #tpu.memory_space<vmem>>, vector<5x16xf32>,
    %c0_478 = arith.constant 0 : index
    %c0_479 = arith.constant 0 : index
    %1114 = vector.load %arg16[%c0_478, %c0_479] : memref<5x16xf32, #tpu.memory_space<vmem>>, vector<1x16xf32>
    %1115 = arith.truncf %1114 : vector<1x16xf32> to vector<1x16xbf16>
    %c320 = arith.constant 320 : index
    %c0_480 = arith.constant 0 : index
    %1116 = vector.load %arg6[%c320, %c0_480] : memref<400x120xbf16, #tpu.memory_space<vmem>>, vector<16x120xbf16>
    %cst_481 = arith.constant dense<0.000000e+00> : vector<1x120xf32>
    %1117 = tpu.matmul %1115, %1116, %cst_481 {dimension_numbers = #tpu.dot_dimension_numbers<[1], [0], [0], [1], [0, 0, 1, 1], [], []>} : vector<1x16xbf16>, vector<16x120xbf16>, vector<1x120xf32> -> vector<1x120xf32>
    %1118 = arith.addf %1103, %1117 : vector<1x120xf32>
    %c1_482 = arith.constant 1 : index
    %c0_483 = arith.constant 0 : index
    %1119 = vector.load %arg16[%c1_482, %c0_483] : memref<5x16xf32, #tpu.memory_space<vmem>>, vector<1x16xf32>
    %1120 = arith.truncf %1119 : vector<1x16xf32> to vector<1x16xbf16>
    %c336_484 = arith.constant 336 : index
    %c0_485 = arith.constant 0 : index
    %1121 = vector.load %arg6[%c336_484, %c0_485] : memref<400x120xbf16, #tpu.memory_space<vmem>>, vector<16x120xbf16>
    %cst_486 = arith.constant dense<0.000000e+00> : vector<1x120xf32>
    %1122 = tpu.matmul %1120, %1121, %cst_486 {dimension_numbers = #tpu.dot_dimension_numbers<[1], [0], [0], [1], [0, 0, 1, 1], [], []>} : vector<1x16xbf16>, vector<16x120xbf16>, vector<1x120xf32> -> vector<1x120xf32>
    %1123 = arith.addf %1118, %1122 : vector<1x120xf32>
    %c2_487 = arith.constant 2 : index
    %c0_488 = arith.constant 0 : index
    %1124 = vector.load %arg16[%c2_487, %c0_488] : memref<5x16xf32, #tpu.memory_space<vmem>>, vector<1x16xf32>
    %1125 = arith.truncf %1124 : vector<1x16xf32> to vector<1x16xbf16>
    %c352 = arith.constant 352 : index
    %c0_489 = arith.constant 0 : index
    %1126 = vector.load %arg6[%c352, %c0_489] : memref<400x120xbf16, #tpu.memory_space<vmem>>, vector<16x120xbf16>
    %cst_490 = arith.constant dense<0.000000e+00> : vector<1x120xf32>
    %1127 = tpu.matmul %1125, %1126, %cst_490 {dimension_numbers = #tpu.dot_dimension_numbers<[1], [0], [0], [1], [0, 0, 1, 1], [], []>} : vector<1x16xbf16>, vector<16x120xbf16>, vector<1x120xf32> -> vector<1x120xf32>
    %1128 = arith.addf %1123, %1127 : vector<1x120xf32>
    %c3_491 = arith.constant 3 : index
    %c0_492 = arith.constant 0 : index
    %1129 = vector.load %arg16[%c3_491, %c0_492] : memref<5x16xf32, #tpu.memory_space<vmem>>, vector<1x16xf32>
    %1130 = arith.truncf %1129 : vector<1x16xf32> to vector<1x16xbf16>
    %c368 = arith.constant 368 : index
    %c0_493 = arith.constant 0 : index
    %1131 = vector.load %arg6[%c368, %c0_493] : memref<400x120xbf16, #tpu.memory_space<vmem>>, vector<16x120xbf16>
    %cst_494 = arith.constant dense<0.000000e+00> : vector<1x120xf32>
    %1132 = tpu.matmul %1130, %1131, %cst_494 {dimension_numbers = #tpu.dot_dimension_numbers<[1], [0], [0], [1], [0, 0, 1, 1], [], []>} : vector<1x16xbf16>, vector<16x120xbf16>, vector<1x120xf32> -> vector<1x120xf32>
    %1133 = arith.addf %1128, %1132 : vector<1x120xf32>
    %c4_495 = arith.constant 4 : index
    %c0_496 = arith.constant 0 : index
    %1134 = vector.load %arg16[%c4_495, %c0_496] : memref<5x16xf32, #tpu.memory_space<vmem>>, vector<1x16xf32>
    %1135 = arith.truncf %1134 : vector<1x16xf32> to vector<1x16xbf16>
    %c384 = arith.constant 384 : index
    %c0_497 = arith.constant 0 : index
    %1136 = vector.load %arg6[%c384, %c0_497] : memref<400x120xbf16, #tpu.memory_space<vmem>>, vector<16x120xbf16>
    %cst_498 = arith.constant dense<0.000000e+00> : vector<1x120xf32>
    %1137 = tpu.matmul %1135, %1136, %cst_498 {dimension_numbers = #tpu.dot_dimension_numbers<[1], [0], [0], [1], [0, 0, 1, 1], [], []>} : vector<1x16xbf16>, vector<16x120xbf16>, vector<1x120xf32> -> vector<1x120xf32>
    %1138 = arith.addf %1133, %1137 : vector<1x120xf32>
    %1139 = arith.truncf %1138 : vector<1x120xf32> to vector<1x120xbf16>
    %c0_499 = arith.constant 0 : index
    %c0_500 = arith.constant 0 : index
    %1140 = vector.load %arg8[%c0_499, %c0_500] : memref<120x84xbf16, #tpu.memory_space<vmem>>, vector<120x84xbf16>
    %cst_501 = arith.constant dense<0.000000e+00> : vector<1x84xf32>
    %1141 = tpu.matmul %1139, %1140, %cst_501 {dimension_numbers = #tpu.dot_dimension_numbers<[1], [0], [0], [1], [0, 0, 1, 1], [], []>} : vector<1x120xbf16>, vector<120x84xbf16>, vector<1x84xf32> -> vector<1x84xf32>
    %c0_502 = arith.constant 0 : index
    %c0_503 = arith.constant 0 : index
    %1142 = vector.load %arg9[%c0_502, %c0_503] : memref<1x84xf32, #tpu.memory_space<vmem>>, vector<1x84xf32>
    %1143 = arith.addf %1141, %1142 : vector<1x84xf32>
    %1144 = arith.truncf %1143 : vector<1x84xf32> to vector<1x84xbf16>
    %c0_504 = arith.constant 0 : index
    %c0_505 = arith.constant 0 : index
    %1145 = vector.load %arg10[%c0_504, %c0_505] : memref<84x10xbf16, #tpu.memory_space<vmem>>, vector<84x10xbf16>
    %cst_506 = arith.constant dense<0.000000e+00> : vector<1x10xf32>
    %1146 = tpu.matmul %1144, %1145, %cst_506 {dimension_numbers = #tpu.dot_dimension_numbers<[1], [0], [0], [1], [0, 0, 1, 1], [], []>} : vector<1x84xbf16>, vector<84x10xbf16>, vector<1x10xf32> -> vector<1x10xf32>
    %c0_507 = arith.constant 0 : index
    %c0_508 = arith.constant 0 : index
    %1147 = vector.load %arg11[%c0_507, %c0_508] : memref<1x10xf32, #tpu.memory_space<vmem>>, vector<1x10xf32>
    %1148 = arith.addf %1146, %1147 : vector<1x10xf32>
    %c0_509 = arith.constant 0 : index
    %c0_510 = arith.constant 0 : index
    %c0_511 = arith.constant 0 : index
    %1149 = vector.load %arg12[%c0_509, %c0_510, %c0_511] : memref<1x1x10xf32, #tpu.memory_space<vmem>>, vector<1x1x10xf32>
    %1150 = vector.shape_cast %1149 : vector<1x1x10xf32> to vector<1x10xf32>
    %1151 = vector.shape_cast %1148 : vector<1x10xf32> to vector<1x1x10xf32>
    tpu.vector_store %arg12[%c0_509, %c0_510, %c0_511], %1151 {strides = array<i32>} : memref<1x1x10xf32, #tpu.memory_space<vmem>>, vector<1x1x10xf32>,
    return
  }
  func.func @transform_0(%arg0: i32) -> (i32, i32, i32) {
    %c0_i32 = arith.constant 0 : i32
    %c0_i32_0 = arith.constant 0 : i32
    %c0_i32_1 = arith.constant 0 : i32
    return %arg0, %c0_i32, %c0_i32_0 : i32, i32, i32
  }
  func.func @transform_1(%arg0: i32) -> (i32, i32) {
    %c0_i32 = arith.constant 0 : i32
    %c0_i32_0 = arith.constant 0 : i32
    %c0_i32_1 = arith.constant 0 : i32
    return %c0_i32, %c0_i32_0 : i32, i32
  }
  func.func @transform_2(%arg0: i32) -> (i32, i32) {
    %c0_i32 = arith.constant 0 : i32
    %c0_i32_0 = arith.constant 0 : i32
    %c0_i32_1 = arith.constant 0 : i32
    return %c0_i32, %c0_i32_0 : i32, i32
  }
  func.func @transform_3(%arg0: i32) -> (i32, i32) {
    %c0_i32 = arith.constant 0 : i32
    %c0_i32_0 = arith.constant 0 : i32
    %c0_i32_1 = arith.constant 0 : i32
    return %c0_i32, %c0_i32_0 : i32, i32
  }
  func.func @transform_4(%arg0: i32) -> (i32, i32) {
    %c0_i32 = arith.constant 0 : i32
    %c0_i32_0 = arith.constant 0 : i32
    %c0_i32_1 = arith.constant 0 : i32
    return %c0_i32, %c0_i32_0 : i32, i32
  }
  func.func @transform_5(%arg0: i32) -> (i32, i32) {
    %c0_i32 = arith.constant 0 : i32
    %c0_i32_0 = arith.constant 0 : i32
    %c0_i32_1 = arith.constant 0 : i32
    return %c0_i32, %c0_i32_0 : i32, i32
  }
  func.func @transform_6(%arg0: i32) -> (i32, i32) {
    %c0_i32 = arith.constant 0 : i32
    %c0_i32_0 = arith.constant 0 : i32
    %c0_i32_1 = arith.constant 0 : i32
    return %c0_i32, %c0_i32_0 : i32, i32
  }
  func.func @transform_7(%arg0: i32) -> (i32, i32) {
    %c0_i32 = arith.constant 0 : i32
    %c0_i32_0 = arith.constant 0 : i32
    %c0_i32_1 = arith.constant 0 : i32
    return %c0_i32, %c0_i32_0 : i32, i32
  }
  func.func @transform_8(%arg0: i32) -> (i32, i32) {
    %c0_i32 = arith.constant 0 : i32
    %c0_i32_0 = arith.constant 0 : i32
    %c0_i32_1 = arith.constant 0 : i32
    return %c0_i32, %c0_i32_0 : i32, i32
  }
  func.func @transform_9(%arg0: i32) -> (i32, i32) {
    %c0_i32 = arith.constant 0 : i32
    %c0_i32_0 = arith.constant 0 : i32
    %c0_i32_1 = arith.constant 0 : i32
    return %c0_i32, %c0_i32_0 : i32, i32
  }
  func.func @transform_10(%arg0: i32) -> (i32, i32) {
    %c0_i32 = arith.constant 0 : i32
    %c0_i32_0 = arith.constant 0 : i32
    %c0_i32_1 = arith.constant 0 : i32
    return %c0_i32, %c0_i32_0 : i32, i32
  }
  func.func @transform_11(%arg0: i32) -> (i32, i32, i32) {
    %c0_i32 = arith.constant 0 : i32
    %c0_i32_0 = arith.constant 0 : i32
    %c0_i32_1 = arith.constant 0 : i32
    return %arg0, %c0_i32, %c0_i32_0 : i32, i32, i32
  }
}

</mosaic_0001>

<bundles_post_ra>
// kernel: lenet_forward.1
= control target key start
LH: loop header
LB: loop body
LE: loop exit
PB: predicated region body
PF: predicated region fallthrough
CT: control target
= control target key end

     0   :  { %s11045_s0 = inlined_call_operand.vmem [shape: bf16[2,784,25], index: 0, kind: input, shape index: {}]   ;;  %s11046_s1 = inlined_call_operand.vmem [shape: bf16[25,6], index: 1, kind: input, shape index: {}]   ;;  %s11047_s2 = inlined_call_operand.vmem [shape: f32[1,6], index: 2, kind: input, shape index: {}]   ;;  %s11048_s3 = inlined_call_operand.vmem [shape: bf16[150,16], index: 3, kind: input, shape index: {}]   ;;  %s11049_s4 = inlined_call_operand.vmem [shape: f32[1,16], index: 4, kind: input, shape index: {}]   ;;  %s11050_s5 = inlined_call_operand.vmem [shape: bf16[400,120], index: 5, kind: input, shape index: {}]   ;;  %s11051_s6 = inlined_call_operand.vmem [shape: f32[1,120], index: 6, kind: input, shape index: {}]   ;;  %s11052_s7 = inlined_call_operand.vmem [shape: bf16[120,84], index: 7, kind: input, shape index: {}]   ;;  %s11053_s8 = inlined_call_operand.vmem [shape: f32[1,84], index: 8, kind: input, shape index: {}]   ;;  %s11054_s9 = inlined_call_operand.vmem [shape: bf16[84,10], index: 9, kind: input, shape index: {}]   ;;  %s11055_s10 = inlined_call_operand.vmem [shape: f32[1,10], index: 10, kind: input, shape index: {}]   ;;  %s11056_s11 = inlined_call_operand.hbm [shape: f32[2,1,10], index: 11, kind: output, shape index: {}]  }
   0x1   :  { %11058 = sst [smem:[#allocation9_spill]] %s11045_s0 }
   0x2   :  { %11059 = sst [smem:[#allocation10_spill]] %s11046_s1 }
   0x3   :  { %16 = vsyncpa [#allocation7], 0 }
   0x4   :  { %18 = vsyncpa [#allocation7 + $0x1], 0  ;;  %s8647_s17 = smov 0   ;;  %s8649_s18 = smov 0  }
   0x5   :  { %s8651_s19 = smov 0   ;;  %s8653_s20 = smov 0  }
   0x6 LB: > { %s8668_s21 = sadd.s32 4294967295, %s8584_s20   ;;  %s7125_s22 = sadd.s32 4294967294, %s8584_s20   ;;  %s8584_s20 = sphi %s8653_s20, %s11068_s20   ;;  %s8580_s19 = sphi %s8651_s19, %s11067_s19   ;;  %s8576_s18 = sphi %s8649_s18, %s11066_s18   ;;  %s8572_s17 = sphi %s8647_s17, %s11065_s17  }
   0x7   : > { %s8672_s23 = sadd.s32 1, %s8584_s20   ;;  %s267_s24 = sadd.s32 1, %s8580_s19 }
   0x8   : > { %s264_s25 = ssub.s32 %s8584_s20, %s8672_s23  ;;  %p277_p0 = scmp.ne.s32.totalorder %s8580_s19, %s8576_s18 }
   0x9   : > { %p265_p1 = scmp.eq.s32.totalorder %s264_s25, 0  ;;  %p278_p2 = scmp.eq.s32.totalorder %s8668_s21, 1 }
   0xa   : > { %p283_p3 = scmp.ne.s32.totalorder %s8576_s18, %s8572_s17  ;;  %p284_p4 = scmp.eq.s32.totalorder %s7125_s22, 1 }
   0xb   : > { %s8683_s26 = scalar_select %p265_p1, %s8580_s19, %s267_s24  }
   0xc   : > { %p8685_p5 = por %p278_p2, %p277_p0  ;;  %p8689_p6 = por %p284_p4, %p283_p3 }
   0xd   : > { %p7128_p7 = scmp.ge.s32.totalorder %s8584_s20, 1  ;;  %p340_p8 = scmp.lt.s32.totalorder %s8584_s20, 3 }
   0xf   : > { %p341_p9 = pnand %p7128_p7, %p340_p8 }
  0x10   : > { %s11062_s1 = sld [smem:[#allocation10_spill]] (!%p341_p9)  ;;  %p379_p10 = scmp.lt.s32.totalorder (!%p341_p9), %s8668_s21, 1 }
  0x11   : > { %344 = sbr.rel (%p341_p9) target bundleno = 2369 (0x941), region = 64  ;;  %s11063_s0 = sld [smem:[#allocation9_spill]] (!%p341_p9) }
  0x12   : > { %s7066_s24 = scalar_lea.hbm (!%p341_p9), %s11056_s11, %s8668_s21  ;;  %s8542_s22 = scalar_lea.hbm (!%p341_p9), %s11056_s11, 2 }
  0x13   : > { %s7070_s13 = sshll.u32 (!%p341_p9), %s7066_s24, 4  ;;  %s7071_s13 = int_to_ptr.hbm [resolvable:$true] %s7070_s13 }
  0x16   : > { %v7148_v0 = vld [vmem:[%s11062_s1 + $0x8] sm:$0xf]  ;;  %v7913_v1 = vld [vmem:[%s11062_s1 + $0x8] sm:$0x10]  ;;  %vm442_vm0 = vcmask 1043456   ;;  %vm443_vm1 = vcmask 1044480  }
  0x17   : > { %v7149_v2 = vor.u32 %v7913_v1, %v7148_v0  ;;  %v8586_v3 = vmov 65535   ;;  %s380_s14 = scalar_select %p379_p10, %s8668_s21, 1  ;;  %v8712_v7 = vld [vmem:[%s11062_s1] sm:$0xff]  ;;  %vm429_vm2 = vcmask 203776   ;;  %vm512_vm3 = vcmask 48128  }
  0x18   : > { %v444_v4 = vsel %vm442_vm0, 4294967295, %v8586_v3  ;;  %v8812_v56 = vld [vmem:[%s11047_s2] ss:$0 sm:$0xff]  ;;  %vm2249_vm4 = vcmask 1042432   ;;  %vm544_vm5 = vcmask 46080   ;;  %vm2414_vm6 = vcmask 1046528  }
  0x19   : > { %v445_v5 = vsel %vm443_vm1, %v444_v4, 0  ;;  %s8005_s15 = smul.u32 392, %s380_s14  ;;  %vm2581_vm7 = vcmask 1045504   ;;  %vm3063_vm8 = vcmask 1041408   ;;  %vm3228_vm9 = vcmask 1040384  }
  0x1a   : > { %v8705_v6 = vand.u32 %v7149_v2, %v445_v5  ;;  %vm6033_vm10 = vcmask 123904   ;;  %vm6031_vm11 = vcmask 130048   ;;  %vm6047_vm12 = vcmask 130054  }
  0x1b   : > { %s8717_s29 = scalar_lea.vmem %s11063_s0, %s8005_s15  ;;  %vm6062_vm13 = vcmask 130052   ;;  %vm6178_vm14 = vcmask 126976   ;;  %vm6064_vm15 = vcmask 128000   ;;  %s377_s15 = sand.u32 1, %s8576_s18  }
  0x1c   : > { %455 = vmatpush.bf16.msra.mxu0 %v8705_v6  ;;  %589 = vmatpush.bf16.msra.mxu1 %v8705_v6  ;;  %v7914_v8 = vld [vmem:[%s8717_s29] sm:$0xff]  ;;  %v7920_v10 = vld [vmem:[%s8717_s29 + $0x38] sm:$0xff]  ;;  %v7915_v12 = vld [vmem:[%s8717_s29 + $0x8] sm:$0xff]  ;;  %s378_s30 = scalar_lea.vmem [#allocation6], %s377_s15  ;;  %s7058_s14 = scalar_lea.sflag [#allocation7], %s377_s15 }
  0x1d   : > { %714 = vmatpush.bf16.msra.mxu2 %v8705_v6  ;;  %839 = vmatpush.bf16.msra.mxu3 %v8705_v6  ;;  %v7917_v9 = vld [vmem:[%s8717_s29 + $0x1c] sm:$0xff]  ;;  %v7923_v11 = vld [vmem:[%s8717_s29 + $0x54] sm:$0xff]  ;;  %v7918_v13 = vld [vmem:[%s8717_s29 + $0x24] sm:$0xff]  ;;  %s7068_s12 = sshll.u32 %s378_s30, 4  ;;  %s8536_s0 = sshra.s32 %s7071_s13, 4  ;;  %s7069_s12 = int_to_ptr.vmem [resolvable:$true] %s7068_s12  ;;  %s8537_s0 = int_to_ptr.hbm [resolvable:$true] %s8536_s0 }
  0x1e   : > { %v7921_v14 = vld [vmem:[%s8717_s29 + $0x40] sm:$0xff]  ;;  %v7916_v16 = vld [vmem:[%s8717_s29 + $0x10] sm:$0xff]  ;;  %v7922_v18 = vld [vmem:[%s8717_s29 + $0x48] sm:$0xff]  ;;  %s8538_s1 = scalar_lea.hbm %s8537_s0, 1  ;;  %p8543_p0 = scmp.lt.s32.totalorder %s8537_s0, %s11056_s11 }
  0x1f   : > { %v7924_v15 = vld [vmem:[%s8717_s29 + $0x5c] sm:$0xff]  ;;  %v7919_v17 = vld [vmem:[%s8717_s29 + $0x2c] sm:$0xff]  ;;  %v7925_v19 = vld [vmem:[%s8717_s29 + $0x64] sm:$0xff]  ;;  %p8539_p11 = scmp.ne.s32.totalorder %s8537_s0, %s8538_s1  ;;  %p8544_p1 = scmp.lt.s32.totalorder %s8542_s22, %s8538_s1 }
  0x20   : > { %456 = vmatpush.bf16.msra.mxu0 %v8712_v7  ;;  %590 = vmatpush.bf16.msra.mxu1 %v8712_v7  ;;  %v396_v20 = vld [vmem:[%s8717_s29 + $0x18] sm:$0xf]  ;;  %v552_v21 = vld [vmem:[%s8717_s29 + $0x34] sm:$0xf]  ;;  %v677_v22 = vld [vmem:[%s8717_s29 + $0x50] sm:$0xf] }
  0x21   : > { %715 = vmatpush.bf16.msra.mxu2 %v8712_v7  ;;  %840 = vmatpush.bf16.msra.mxu3 %v8712_v7  ;;  %v802_v23 = vld [vmem:[%s8717_s29 + $0x6c] sm:$0xf]  ;;  %v413_v24 = vunpack.c.l.b16 %v396_v20  ;;  %v566_v25 = vunpack.c.l.b16 %v552_v21  ;;  %v691_v26 = vunpack.c.l.b16 %v677_v22  ;;  %v7926_v32 = vld [vmem:[%s8717_s29 + $0x70] sm:$0xff]  ;;  %v7935_v35 = vld [vmem:[%s8717_s29 + $0xc4] sm:$0xff]  ;;  %p8540_p12 = pnand %p8539_p11, %p8685_p5  ;;  %p8545_p2 = por %p8544_p1, %p8543_p0 }
  0x22   : > { %v816_v27 = vunpack.c.l.b16 %v802_v23  ;;  %v7929_v33 = vld [vmem:[%s8717_s29 + $0x8c] sm:$0xff]  ;;  %v7927_v36 = vld [vmem:[%s8717_s29 + $0x78] sm:$0xff]  ;;  %v7928_v40 = vld [vmem:[%s8717_s29 + $0x80] sm:$0xff] }
  0x23   : > { %7150 = vmatmul.msk.bf16.vlgmr.msra.gmra.mxu0 %vm429_vm2, %v7914_v8  ;;  %7166 = vmatmul.msk.bf16.vlgmr.msra.gmra.mxu1 %vm429_vm2, %v7917_v9  ;;  %v417_v28 = vpack.c.b16 %v413_v24, %v413_v24  ;;  %v570_v29 = vpack.c.b16 %v566_v25, %v566_v25  ;;  %v695_v30 = vpack.c.b16 %v691_v26, %v691_v26  ;;  %v7932_v34 = vld [vmem:[%s8717_s29 + $0xa8] sm:$0xff]  ;;  %v7930_v37 = vld [vmem:[%s8717_s29 + $0x94] sm:$0xff]  ;;  %v7931_v41 = vld [vmem:[%s8717_s29 + $0x9c] sm:$0xff]  ;;  %p8541_p13 = pneg %p8540_p12 }
  0x24   : > { %964 = vmatpush.bf16.msrb.mxu0 %v8705_v6  ;;  %1089 = vmatpush.bf16.msrb.mxu1 %v8705_v6  ;;  %v820_v31 = vpack.c.b16 %v816_v27, %v816_v27  ;;  %v7933_v38 = vld [vmem:[%s8717_s29 + $0xb0] sm:$0xff]  ;;  %v7934_v42 = vld [vmem:[%s8717_s29 + $0xb8] sm:$0xff]  ;;  %v927_v44 = vld [vmem:[%s8717_s29 + $0x88] sm:$0xf] }
  0x25   : > { %7182 = vmatmul.msk.bf16.vlgmr.msra.gmra.mxu2 %vm429_vm2, %v7920_v10  ;;  %1339 = vmatpush.bf16.msrb.mxu3 %v8705_v6  ;;  %v7936_v39 = vld [vmem:[%s8717_s29 + $0xcc] sm:$0xff]  ;;  %v7937_v43 = vld [vmem:[%s8717_s29 + $0xd4] sm:$0xff]  ;;  %v1052_v45 = vld [vmem:[%s8717_s29 + $0xa4] sm:$0xf]  ;;  %v941_v48 = vunpack.c.l.b16 %v927_v44  ;;  %p8546_p3 = pnand %p8545_p2, %p8541_p13 }
  0x26   : > { %7198 = vmatmul.msk.bf16.vlgmr.msra.gmra.mxu3 %vm429_vm2, %v7923_v11  ;;  %1214 = vmatpush.bf16.msrb.mxu2 %v8705_v6  ;;  %v1177_v46 = vld [vmem:[%s8717_s29 + $0xc0] sm:$0xf]  ;;  %v1302_v47 = vld [vmem:[%s8717_s29 + $0xdc] sm:$0xf]  ;;  %v1066_v49 = vunpack.c.l.b16 %v1052_v45  ;;  %v7947_v63 = vld [vmem:[%s8717_s29 + $0x134] sm:$0xff] }
  0x27   : > { %v1191_v50 = vunpack.c.l.b16 %v1177_v46  ;;  %v1316_v51 = vunpack.c.l.b16 %v1302_v47  ;;  %v945_v52 = vpack.c.b16 %v941_v48, %v941_v48  ;;  %v7938_v57 = vld [vmem:[%s8717_s29 + $0xe0] sm:$0xff]  ;;  %v7944_v61 = vld [vmem:[%s8717_s29 + $0x118] sm:$0xff] }
  0x28   : > { %965 = vmatpush.bf16.msrb.mxu0 %v8712_v7  ;;  %1090 = vmatpush.bf16.msrb.mxu1 %v8712_v7  ;;  %v1070_v53 = vpack.c.b16 %v1066_v49, %v1066_v49  ;;  %v7941_v58 = vld [vmem:[%s8717_s29 + $0xfc] sm:$0xff]  ;;  %v7942_v20 = vld [vmem:[%s8717_s29 + $0x104] sm:$0xff] }
  0x29   : > { %1340 = vmatpush.bf16.msrb.mxu3 %v8712_v7  ;;  %v1195_v54 = vpack.c.b16 %v1191_v50, %v1191_v50  ;;  %v1320_v55 = vpack.c.b16 %v1316_v51, %v1316_v51  ;;  %v7945_v25 = vld [vmem:[%s8717_s29 + $0x120] sm:$0xff] }
  0x2a   : > { %1215 = vmatpush.bf16.msrb.mxu2 %v8712_v7 }
  0x2c   : > { %1464 = vmatpush.bf16.msra.mxu0 %v8705_v6  ;;  %1589 = vmatpush.bf16.msra.mxu1 %v8705_v6 }
  0x2d   : > { %1839 = vmatpush.bf16.msra.mxu3 %v8705_v6 }
  0x2e   : > { %1714 = vmatpush.bf16.msra.mxu2 %v8705_v6 }
  0x30   : > { %1465 = vmatpush.bf16.msra.mxu0 %v8712_v7  ;;  %1590 = vmatpush.bf16.msra.mxu1 %v8712_v7 }
  0x31   : > { %1840 = vmatpush.bf16.msra.mxu3 %v8712_v7 }
  0x32   : > { %1715 = vmatpush.bf16.msra.mxu2 %v8712_v7 }
  0x33   : > { %7151 = vmatmul.msk.bf16.gmra.mxu0 %vm429_vm2, %v7915_v12  ;;  %7167 = vmatmul.msk.bf16.gmra.mxu1 %vm429_vm2, %v7918_v13 }
  0x35   : > { %7183 = vmatmul.msk.bf16.gmra.mxu2 %vm429_vm2, %v7921_v14 }
  0x36   : > { %7199 = vmatmul.msk.bf16.gmra.mxu3 %vm429_vm2, %v7924_v15 }
  0x43   : > { %7152 = vmatmul.msk.bf16.gmra.mxu0 %vm429_vm2, %v7916_v16  ;;  %7168 = vmatmul.msk.bf16.gmra.mxu1 %vm429_vm2, %v7919_v17 }
  0x45   : > { %7184 = vmatmul.msk.bf16.gmra.mxu2 %vm429_vm2, %v7922_v18 }
  0x46   : > { %7200 = vmatmul.msk.bf16.gmra.mxu3 %vm429_vm2, %v7925_v19  ;;  %v7939_v19 = vld [vmem:[%s8717_s29 + $0xe8] sm:$0xff] }
  0x53   : > { %7153 = vmatmul.msk.bf16.gmra.mxu0 %vm429_vm2, %v417_v28  ;;  %7169 = vmatmul.msk.bf16.gmra.mxu1 %vm429_vm2, %v570_v29  ;;  %v7948_v29 = vld [vmem:[%s8717_s29 + $0x13c] sm:$0xff] }
  0x55   : > { %7185 = vmatmul.msk.bf16.gmra.mxu2 %vm429_vm2, %v695_v30 }
  0x56   : > { %7201 = vmatmul.msk.bf16.gmra.mxu3 %vm429_vm2, %v820_v31 }
  0x63   : > { %7214 = vmatmul.msk.bf16.vlgmr.msrb.gmra.mxu0 %vm429_vm2, %v7926_v32  ;;  %7230 = vmatmul.msk.bf16.vlgmr.msrb.gmra.mxu1 %vm429_vm2, %v7929_v33 }
  0x64   : > { %1964 = vmatpush.bf16.msrb.mxu0 %v8705_v6  ;;  %2089 = vmatpush.bf16.msrb.mxu1 %v8705_v6 }
  0x65   : > { %7246 = vmatmul.msk.bf16.vlgmr.msrb.gmra.mxu2 %vm429_vm2, %v7932_v34 }
  0x66   : > { %7262 = vmatmul.msk.bf16.vlgmr.msrb.gmra.mxu3 %vm429_vm2, %v7935_v35 }
  0x68   : > { %1965 = vmatpush.bf16.msrb.mxu0 %v8712_v7  ;;  %2090 = vmatpush.bf16.msrb.mxu1 %v8712_v7 }
  0x73   : > { %7215 = vmatmul.msk.bf16.gmra.mxu0 %vm429_vm2, %v7927_v36  ;;  %7231 = vmatmul.msk.bf16.gmra.mxu1 %vm429_vm2, %v7930_v37 }
  0x75   : > { %7247 = vmatmul.msk.bf16.gmra.mxu2 %vm429_vm2, %v7933_v38 }
  0x76   : > { %7263 = vmatmul.msk.bf16.gmra.mxu3 %vm429_vm2, %v7936_v39 }
  0x83   : > { %7216 = vmatmul.msk.bf16.gmra.mxu0 %vm429_vm2, %v7928_v40  ;;  %7232 = vmatmul.msk.bf16.gmra.mxu1 %vm429_vm2, %v7931_v41 }
  0x85   : > { %7248 = vmatmul.msk.bf16.gmra.mxu2 %vm429_vm2, %v7934_v42 }
  0x86   : > { %7264 = vmatmul.msk.bf16.gmra.mxu3 %vm429_vm2, %v7937_v43 }
  0x93   : > { %7217 = vmatmul.msk.bf16.gmra.mxu0 %vm429_vm2, %v945_v52  ;;  %7233 = vmatmul.msk.bf16.gmra.mxu1 %vm429_vm2, %v1070_v53 }
  0x95   : > { %7249 = vmatmul.msk.bf16.gmra.mxu2 %vm429_vm2, %v1195_v54 }
  0x96   : > { %7265 = vmatmul.msk.bf16.gmra.mxu3 %vm429_vm2, %v1320_v55 }
  0xa0   : > { %v458_v59 = vpop.f32.mrf.mxu0  ;;  %v592_v60 = vpop.f32.mrf.mxu1 }
  0xa1   : > { %v459_v62 = vadd.f32 %v8812_v56, %v458_v59  ;;  %v593_v0 = vadd.f32 %v8812_v56, %v592_v60 }
  0xa3   : > { %v477_v1 = vsub.f32 0.0, %v459_v62  ;;  %7278 = vmatmul.msk.bf16.vlgmr.msra.gmra.mxu0 %vm429_vm2, %v7938_v57  ;;  %7294 = vmatmul.msk.bf16.vlgmr.msra.gmra.mxu1 %vm429_vm2, %v7941_v58  ;;  %v611_v3 = vsub.f32 0.0, %v593_v0  ;;  %v7940_v0 = vld [vmem:[%s8717_s29 + $0xf0] sm:$0xff] }
  0xa5   : > { %7310 = vmatmul.msk.bf16.vlgmr.msra.gmra.mxu2 %vm429_vm2, %v7944_v61  ;;  %v484_v2 = vmul.f32 1.442695, %v477_v1  ;;  %v618_v10 = vmul.f32 1.442695, %v611_v3  ;;  %v7943_v1 = vld [vmem:[%s8717_s29 + $0x10c] sm:$0xff] }
  0xa6   : > { %7326 = vmatmul.msk.bf16.vlgmr.msra.gmra.mxu3 %vm429_vm2, %v7947_v63 }
  0xa7   : > { %8048 = vpow2.f32 %v484_v2 }
  0xa8   : > { %v717_v4 = vpop.f32.mrf.mxu2  ;;  %v460_v5 = vpop.f32.mrf.mxu0  ;;  %8050 = vpow2.f32 %v618_v10  ;;  %v7949_v10 = vld [vmem:[%s8717_s29 + $0x144] sm:$0xff] }
  0xa9   : > { %v594_v6 = vpop.f32.mrf.mxu1  ;;  %v461_v7 = vadd.f32 %v8812_v56, %v460_v5  ;;  %v842_v9 = vpop.f32.mrf.mxu3  ;;  %v718_v11 = vadd.f32 %v8812_v56, %v717_v4  ;;  %v7946_v5 = vld [vmem:[%s8717_s29 + $0x128] sm:$0xff] }
  0xaa   : > { %v595_v8 = vadd.f32 %v8812_v56, %v594_v6  ;;  %v843_v35 = vadd.f32 %v8812_v56, %v842_v9 }
  0xab   : > { %v478_v12 = vsub.f32 0.0, %v461_v7  ;;  %v736_v18 = vsub.f32 0.0, %v718_v11 }
  0xac   : > { %v612_v13 = vsub.f32 0.0, %v595_v8  ;;  %v861_v42 = vsub.f32 0.0, %v843_v35 }
  0xad   : > { %v8049_v14 = vpop.eup %8048  ;;  %v486_v15 = vmul.f32 1.442695, %v478_v12  ;;  %v743_v30 = vmul.f32 1.442695, %v736_v18 }
  0xae   : > { %v498_v16 = vadd.f32 1.0, %v8049_v14  ;;  %v620_v17 = vmul.f32 1.442695, %v612_v13  ;;  %v8051_v33 = vpop.eup %8050  ;;  %v868_v53 = vmul.f32 1.442695, %v861_v42 }
  0xaf   : > { %8052 = vpow2.f32 %v486_v15  ;;  %v632_v43 = vadd.f32 1.0, %v8051_v33  ;;  %v1677_v33 = vld [vmem:[%s8717_s29 + $0x130] sm:$0xf] }
  0xb0   : > { %v719_v21 = vpop.f32.mrf.mxu2  ;;  %8054 = vrcp.f32 %v498_v16  ;;  %v463_v22 = vpop.f32.mrf.mxu0 }
  0xb1   : > { %v597_v23 = vpop.f32.mrf.mxu1  ;;  %v720_v24 = vadd.f32 %v8812_v56, %v719_v21  ;;  %v464_v26 = vadd.f32 %v8812_v56, %v463_v22  ;;  %v844_v28 = vpop.f32.mrf.mxu3  ;;  %8056 = vpow2.f32 %v620_v17 }
  0xb2   : > { %v598_v27 = vadd.f32 %v8812_v56, %v597_v23  ;;  %v845_v39 = vadd.f32 %v8812_v56, %v844_v28  ;;  %8058 = vpow2.f32 %v743_v30  ;;  %v1552_v28 = vld [vmem:[%s8717_s29 + $0x114] sm:$0xf] }
  0xb3   : > { %v737_v31 = vsub.f32 0.0, %v720_v24  ;;  %v479_v32 = vsub.f32 0.0, %v464_v26  ;;  %7279 = vmatmul.msk.bf16.gmra.mxu0 %vm429_vm2, %v7939_v19  ;;  %7295 = vmatmul.msk.bf16.gmra.mxu1 %vm429_vm2, %v7942_v20  ;;  %v1427_v19 = vld [vmem:[%s8717_s29 + $0xf8] sm:$0xf] }
  0xb4   : > { %v613_v34 = vsub.f32 0.0, %v598_v27  ;;  %v862_v51 = vsub.f32 0.0, %v845_v39  ;;  %v1441_v39 = vunpack.c.l.b16 %v1427_v19 }
  0xb5   : > { %7311 = vmatmul.msk.bf16.gmra.mxu2 %vm429_vm2, %v7945_v25  ;;  %v8053_v36 = vpop.eup %8052  ;;  %v488_v37 = vmul.f32 1.442695, %v479_v32  ;;  %v745_v38 = vmul.f32 1.442695, %v737_v31 }
  0xb6   : > { %7327 = vmatmul.msk.bf16.gmra.mxu3 %vm429_vm2, %v7948_v29  ;;  %v8055_v40 = vpop.eup %8054  ;;  %v499_v41 = vadd.f32 1.0, %v8053_v36  ;;  %v622_v46 = vmul.f32 1.442695, %v613_v34  ;;  %v870_v59 = vmul.f32 1.442695, %v862_v51 }
  0xb7   : > { %513 = vst.msk [vmem:[#allocation2] sm:$0xff] %vm512_vm3, %v8055_v40  ;;  %8060 = vpow2.f32 %v488_v37  ;;  %v8057_v45 = vpop.eup %8056  ;;  %v1566_v40 = vunpack.c.l.b16 %v1552_v28 }
  0xb8   : > { %v722_v44 = vpop.f32.mrf.mxu2  ;;  %8062 = vrcp.f32 %v499_v41  ;;  %v465_v47 = vpop.f32.mrf.mxu0  ;;  %v633_v49 = vadd.f32 1.0, %v8057_v45  ;;  %v1802_v41 = vld [vmem:[%s8717_s29 + $0x14c] sm:$0xf]  ;;  %v1691_v45 = vunpack.c.l.b16 %v1677_v33 }
  0xb9   : > { %v599_v48 = vpop.f32.mrf.mxu1  ;;  %v466_v50 = vadd.f32 %v8812_v56, %v465_v47  ;;  %8064 = vpow2.f32 %v745_v38  ;;  %v8842_v52 = vpop.f32.mrf.mxu3  ;;  %v723_v24 = vadd.f32 %v8812_v56, %v722_v44 }
  0xba   : > { %8066 = vrcp.f32 %v632_v43  ;;  %v8059_v55 = vpop.eup %8058  ;;  %v600_v63 = vadd.f32 %v8812_v56, %v599_v48  ;;  %v848_v48 = vadd.f32 %v8812_v56, %v8842_v52  ;;  %v1570_v52 = vpack.c.b16 %v1566_v40, %v1566_v40 }
  0xbb   : > { %v480_v54 = vsub.f32 0.0, %v466_v50  ;;  %8068 = vpow2.f32 %v622_v46  ;;  %v757_v7 = vadd.f32 1.0, %v8059_v55  ;;  %v738_v37 = vsub.f32 0.0, %v723_v24 }
  0xbc   : > { %8070 = vrcp.f32 %v633_v49  ;;  %v614_v14 = vsub.f32 0.0, %v600_v63  ;;  %v1695_v63 = vpack.c.b16 %v1691_v45, %v1691_v45 }
  0xbd   : > { %v8061_v57 = vpop.eup %8060  ;;  %v490_v58 = vmul.f32 1.442695, %v480_v54  ;;  %8072 = vpow2.f32 %v868_v53  ;;  %v1816_v53 = vunpack.c.l.b16 %v1802_v41 }
  0xbe   : > { %v8063_v60 = vpop.eup %8062  ;;  %v500_v61 = vadd.f32 1.0, %v8061_v57  ;;  %v624_v26 = vmul.f32 1.442695, %v614_v14  ;;  %v747_v57 = vmul.f32 1.442695, %v738_v37 }
  0xbf   : > { %v8065_v62 = vpop.eup %8064  ;;  %514 = vst.msk [vmem:[#allocation2 + $0x8] sm:$0xff] %vm512_vm3, %v8063_v60  ;;  %8074 = vpow2.f32 %v490_v58  ;;  %v1445_v58 = vpack.c.b16 %v1441_v39, %v1441_v39 }
  0xc0   : > { %v724_v2 = vpop.f32.mrf.mxu2  ;;  %8076 = vrcp.f32 %v500_v61  ;;  %v468_v3 = vpop.f32.mrf.mxu0  ;;  %v758_v12 = vadd.f32 1.0, %v8065_v62 }
  0xc1   : > { %v602_v4 = vpop.f32.mrf.mxu1  ;;  %v8067_v6 = vpop.eup %8066  ;;  %v469_v8 = vadd.f32 %v8812_v56, %v468_v3  ;;  %8078 = vpow2.f32 %v870_v59  ;;  %v725_v44 = vadd.f32 %v8812_v56, %v724_v2  ;;  %v863_v2 = vsub.f32 0.0, %v848_v48 }
  0xc2   : > { %v8850_v9 = vpop.f32.mrf.mxu3  ;;  %v8069_v11 = vpop.eup %8068  ;;  %8080 = vrcp.f32 %v757_v7  ;;  %v603_v30 = vadd.f32 %v8812_v56, %v602_v4 }
  0xc3   : > { %v8071_v13 = vpop.eup %8070  ;;  %v481_v15 = vsub.f32 0.0, %v469_v8  ;;  %7280 = vmatmul.msk.bf16.gmra.mxu0 %vm429_vm2, %v7940_v0  ;;  %7296 = vmatmul.msk.bf16.gmra.mxu1 %vm429_vm2, %v7943_v1  ;;  %8082 = vrcp.f32 %v758_v12  ;;  %v634_v29 = vadd.f32 1.0, %v8069_v11  ;;  %v739_v61 = vsub.f32 0.0, %v725_v44 }
  0xc4   : > { %v8073_v16 = vpop.eup %8072  ;;  %v615_v47 = vsub.f32 0.0, %v603_v30  ;;  %v1820_v11 = vpack.c.b16 %v1816_v53, %v1816_v53 }
  0xc5   : > { %7312 = vmatmul.msk.bf16.gmra.mxu2 %vm429_vm2, %v7946_v5  ;;  %v8075_v17 = vpop.eup %8074  ;;  %v492_v18 = vmul.f32 1.442695, %v481_v15  ;;  %v882_v34 = vadd.f32 1.0, %v8073_v16 }
  0xc6   : > { %7328 = vmatmul.msk.bf16.gmra.mxu3 %vm429_vm2, %v7949_v10  ;;  %v8077_v20 = vpop.eup %8076  ;;  %v8858_v21 = vld [vmem:[#allocation2] ss:$2 sm:$0xff]  ;;  %v8860_v22 = vld [vmem:[#allocation2 + $0x1] ss:$2 sm:$0xff]  ;;  %v501_v23 = vadd.f32 1.0, %v8075_v17 }
  0xc7   : > { %v8079_v25 = vpop.eup %8078  ;;  %646 = vst.msk [vmem:[#allocation2] sm:$0xff] %vm512_vm3, %v8067_v6  ;;  %8084 = vpow2.f32 %v492_v18  ;;  %v626_v0 = vmul.f32 1.442695, %v615_v47  ;;  %v749_v17 = vmul.f32 1.442695, %v739_v61 }
  0xc8   : > { %v727_v27 = vpop.f32.mrf.mxu2  ;;  %647 = vst.msk [vmem:[#allocation2 + $0x8] sm:$0xff] %vm512_vm3, %v8071_v13  ;;  %8086 = vrcp.f32 %v501_v23  ;;  %v470_v31 = vpop.f32.mrf.mxu0  ;;  %v883_v38 = vadd.f32 1.0, %v8079_v25  ;;  %v872_v18 = vmul.f32 1.442695, %v863_v2 }
  0xc9   : > { %v604_v32 = vpop.f32.mrf.mxu1  ;;  %515 = vst.msk [vmem:[#allocation2 + $0x10] sm:$0xff] %vm512_vm3, %v8077_v20  ;;  %v471_v35 = vadd.f32 %v8812_v56, %v470_v31  ;;  %v8081_v42 = vpop.eup %8080  ;;  %8088 = vpow2.f32 %v624_v26  ;;  %v728_v51 = vadd.f32 %v8812_v56, %v727_v27 }
  0xca   : > { %v8870_v36 = vpop.f32.mrf.mxu3  ;;  %v8083_v46 = vpop.eup %8082  ;;  %8090 = vrcp.f32 %v634_v29  ;;  %v605_v1 = vadd.f32 %v8812_v56, %v604_v32 }
  0xcb   : > { %v482_v43 = vsub.f32 0.0, %v471_v35  ;;  %8092 = vrcp.f32 %v882_v34  ;;  %v740_v8 = vsub.f32 0.0, %v728_v51  ;;  %v853_v31 = vadd.f32 %v8812_v56, %v8870_v36 }
  0xcc   : > { %8094 = vrcp.f32 %v883_v38  ;;  %v616_v20 = vsub.f32 0.0, %v605_v1  ;;  %v850_v36 = vadd.f32 %v8812_v56, %v8850_v9 }
  0xcd   : > { %v8085_v49 = vpop.eup %8084  ;;  %v494_v50 = vmul.f32 1.442695, %v482_v43  ;;  %v751_v24 = vmul.f32 1.442695, %v740_v8 }
  0xce   : > { %v8087_v54 = vpop.eup %8086  ;;  %v502_v55 = vadd.f32 1.0, %v8085_v49  ;;  %v628_v40 = vmul.f32 1.442695, %v616_v20 }
  0xcf   : > { %v8877_v59 = vld [vmem:[#allocation2] ss:$2 sm:$0xff]  ;;  %v8879_v60 = vld [vmem:[#allocation2 + $0x1] ss:$2 sm:$0xff]  ;;  %516 = vst.msk [vmem:[#allocation2 + $0x18] sm:$0xff] %vm512_vm3, %v8087_v54  ;;  %8096 = vpow2.f32 %v494_v50  ;;  %v8089_v5 = vpop.eup %8088  ;;  %v864_v50 = vsub.f32 0.0, %v850_v36 }
  0xd0   : > { %v729_v62 = vpop.f32.mrf.mxu2  ;;  %771 = vst.msk [vmem:[#allocation2] sm:$0xff] %vm512_vm3, %v8081_v42  ;;  %8098 = vrcp.f32 %v502_v55  ;;  %v473_v3 = vpop.f32.mrf.mxu0  ;;  %v635_v43 = vadd.f32 1.0, %v8089_v5 }
  0xd1   : > { %v607_v4 = vpop.f32.mrf.mxu1  ;;  %772 = vst.msk [vmem:[#allocation2 + $0x8] sm:$0xff] %vm512_vm3, %v8083_v46  ;;  %v474_v6 = vadd.f32 %v8812_v56, %v473_v3  ;;  %v8091_v12 = vpop.eup %8090  ;;  %8100 = vpow2.f32 %v747_v57  ;;  %v730_v28 = vadd.f32 %v8812_v56, %v729_v62  ;;  %v865_v46 = vsub.f32 0.0, %v853_v31  ;;  %v7950_v57 = vld [vmem:[%s8717_s29 + $0x150] sm:$0xff] }
  0xd2   : > { %v608_v7 = vadd.f32 %v8812_v56, %v607_v4  ;;  %v8887_v10 = vpop.f32.mrf.mxu3  ;;  %v8093_v13 = vpop.eup %8092  ;;  %8102 = vpow2.f32 %v626_v0  ;;  %v874_v2 = vmul.f32 1.442695, %v864_v50 }
  0xd3   : > { %v483_v14 = vsub.f32 0.0, %v474_v6  ;;  %7281 = vmatmul.msk.bf16.gmra.mxu0 %vm429_vm2, %v1445_v58  ;;  %7297 = vmatmul.msk.bf16.gmra.mxu1 %vm429_vm2, %v1570_v52  ;;  %v8095_v16 = vpop.eup %8094  ;;  %v741_v44 = vsub.f32 0.0, %v730_v28  ;;  %v876_v55 = vmul.f32 1.442695, %v865_v46  ;;  %v7953_v58 = vld [vmem:[%s8717_s29 + $0x16c] sm:$0xff]  ;;  %v855_v6 = vadd.f32 %v8812_v56, %v8887_v10 }
  0xd4   : > { %v617_v15 = vsub.f32 0.0, %v608_v7 }
  0xd5   : > { %7313 = vmatmul.msk.bf16.gmra.mxu2 %vm429_vm2, %v1695_v63  ;;  %v8097_v19 = vpop.eup %8096  ;;  %v496_v23 = vmul.f32 1.442695, %v483_v14  ;;  %v753_v53 = vmul.f32 1.442695, %v741_v44 }
  0xd6   : > { %7329 = vmatmul.msk.bf16.gmra.mxu3 %vm429_vm2, %v1820_v11  ;;  %v8099_v25 = vpop.eup %8098  ;;  %v8893_v26 = vld [vmem:[#allocation2 + $0x10] ss:$2 sm:$0x3f]  ;;  %v8895_v27 = vld [vmem:[#allocation2 + $0x11] ss:$2 sm:$0x3f] }
  0xd7   : > { %648 = vst.msk [vmem:[#allocation2 + $0x10] sm:$0xff] %vm512_vm3, %v8091_v12  ;;  %v503_v29 = vadd.f32 1.0, %v8097_v19  ;;  %8104 = vpow2.f32 %v496_v23  ;;  %v630_v30 = vmul.f32 1.442695, %v617_v15  ;;  %v8101_v33 = vpop.eup %8100  ;;  %v2209_v23 = vld [vmem:[%s11048_s3] sm:$0x7] }
  0xd8   : > { %v732_v32 = vpop.f32.mrf.mxu2  ;;  %v8901_v34 = vld [vmem:[#allocation2] ss:$2 sm:$0xff]  ;;  %v8903_v35 = vld [vmem:[#allocation2 + $0x1] ss:$2 sm:$0xff]  ;;  %517 = vst.msk [vmem:[#allocation2 + $0x20] sm:$0xff] %vm512_vm3, %v8099_v25  ;;  %8106 = vpow2.f32 %v749_v17  ;;  %v475_v37 = vpop.f32.mrf.mxu0  ;;  %v759_v45 = vadd.f32 1.0, %v8101_v33 }
  0xd9   : > { %v609_v38 = vpop.f32.mrf.mxu1  ;;  %v733_v39 = vadd.f32 %v8812_v56, %v732_v32  ;;  %896 = vst.msk [vmem:[#allocation2] sm:$0xff] %vm512_vm3, %v8093_v13  ;;  %8108 = vrcp.f32 %v503_v29  ;;  %v8103_v42 = vpop.eup %8102 }
  0xda   : > { %v857_v41 = vpop.f32.mrf.mxu3  ;;  %897 = vst.msk [vmem:[#allocation2 + $0x8] sm:$0xff] %vm512_vm3, %v8095_v16  ;;  %8110 = vpow2.f32 %v872_v18  ;;  %v636_v49 = vadd.f32 1.0, %v8103_v42  ;;  %v527_v16 = vadd.f32 %v8860_v22, %v8858_v21  ;;  %v2251_v21 = vsel %vm2249_vm4, %v2209_v23, 0  ;;  %v7377_v38 = vld [vmem:[%s11048_s3] sm:$0x8] }
  0xdb   : > { %8112 = vpow2.f32 %v630_v30  ;;  %v742_v47 = vsub.f32 0.0, %v733_v39  ;;  %v858_v14 = vadd.f32 %v8812_v56, %v857_v41  ;;  %2260 = vmatpush.bf16.msrb.mxu2 %v2251_v21  ;;  %v7956_v39 = vld [vmem:[%s11048_s3] sm:$0x30] }
  0xdc   : > { %8114 = vpow2.f32 %v751_v24  ;;  %v866_v24 = vsub.f32 0.0, %v855_v6  ;;  %v7378_v50 = vor.u32 %v7956_v39, %v7377_v38  ;;  %v657_v38 = vadd.f32 %v8879_v60, %v8877_v59 }
  0xdd   : > { %v8105_v48 = vpop.eup %8104  ;;  %8116 = vpow2.f32 %v628_v40  ;;  %v755_v62 = vmul.f32 1.442695, %v742_v47  ;;  %v867_v37 = vsub.f32 0.0, %v858_v14 }
  0xde   : > { %v8107_v51 = vpop.eup %8106  ;;  %8118 = vrcp.f32 %v635_v43  ;;  %v504_v9 = vadd.f32 1.0, %v8105_v48  ;;  %v528_v48 = vadd.f32 %v8895_v27, %v8893_v26 }
  0xdf   : > { %v8109_v54 = vpop.eup %8108  ;;  %8120 = vrcp.f32 %v759_v45  ;;  %v760_v8 = vadd.f32 1.0, %v8107_v51  ;;  %v878_v45 = vmul.f32 1.442695, %v866_v24 }
  0xe0   : > { %v734_v61 = vpop.f32.mrf.mxu2  ;;  %v8111_v52 = vpop.eup %8110  ;;  %518 = vst.msk [vmem:[#allocation2 + $0x28] sm:$0xff] %vm512_vm3, %v8109_v54  ;;  %8122 = vrcp.f32 %v504_v9 }
  0xe1   : > { %v967_v63 = vpop.f32.mrf.mxu0  ;;  %v1092_v0 = vpop.f32.mrf.mxu1  ;;  %8124 = vrcp.f32 %v636_v49  ;;  %v884_v17 = vadd.f32 1.0, %v8111_v52  ;;  %v7951_v52 = vld [vmem:[%s8717_s29 + $0x158] sm:$0xff] }
  0xe2   : > { %v8113_v1 = vpop.eup %8112  ;;  %v968_v3 = vadd.f32 %v8812_v56, %v967_v63  ;;  %v859_v4 = vpop.f32.mrf.mxu3  ;;  %8126 = vpow2.f32 %v753_v53  ;;  %v1093_v36 = vadd.f32 %v8812_v56, %v1092_v0  ;;  %v880_v53 = vmul.f32 1.442695, %v867_v37 }
  0xe3   : > { %v8115_v5 = vpop.eup %8114  ;;  %8128 = vpow2.f32 %v876_v55  ;;  %7342 = vmatmul.msk.bf16.vlgmr.msrb.gmra.mxu0 %vm429_vm2, %v7950_v57  ;;  %7358 = vmatmul.msk.bf16.vlgmr.msrb.gmra.mxu1 %vm429_vm2, %v7953_v58  ;;  %v638_v13 = vadd.f32 1.0, %v8113_v1  ;;  %v2342_v1 = vrot.slane %v7378_v50, 3 }
  0xe4   : > { %v8117_v7 = vpop.eup %8116  ;;  %v986_v11 = vsub.f32 0.0, %v968_v3  ;;  %8130 = vpow2.f32 %v755_v62  ;;  %v761_v20 = vadd.f32 1.0, %v8115_v5  ;;  %v1111_v58 = vsub.f32 0.0, %v1093_v36  ;;  %v7954_v62 = vld [vmem:[%s8717_s29 + $0x174] sm:$0xff] }
  0xe5   : > { %v8119_v12 = vpop.eup %8118  ;;  %8132 = vpow2.f32 %v874_v2  ;;  %v637_v19 = vadd.f32 1.0, %v8117_v7  ;;  %v2344_v23 = vsel %vm2249_vm4, %v2342_v1, 0 }
  0xe6   : > { %v8920_v15 = vpop.eup %8120  ;;  %v993_v10 = vmul.f32 1.442695, %v986_v11  ;;  %8134 = vrcp.f32 %v760_v8  ;;  %2353 = vmatpush.bf16.msrb.mxu3 %v2344_v23 }
  0xe7   : > { %v8123_v18 = vpop.eup %8122  ;;  %v530_v28 = vld [vmem:[#allocation2 + $0x1c] ss:$2 sm:$0xff]  ;;  %v536_v29 = vld [vmem:[#allocation2 + $0x1d] ss:$2 sm:$0xff]  ;;  %8136 = vrcp.f32 %v638_v13 }
  0xe8   : > { %v8125_v25 = vpop.eup %8124  ;;  %519 = vst.msk [vmem:[#allocation2 + $0x30] sm:$0xff] %vm512_vm3, %v8123_v18  ;;  %v1217_v22 = vpop.f32.mrf.mxu2  ;;  %v533_v31 = vadd.f32 %v530_v28, %v527_v16  ;;  %8138 = vpow2.f32 %v993_v10 }
  0xe9   : > { %v8127_v30 = vpop.eup %8126  ;;  %649 = vst.msk [vmem:[#allocation2 + $0x18] sm:$0xff] %vm512_vm3, %v8119_v12  ;;  %v969_v32 = vpop.f32.mrf.mxu0  ;;  %8140 = vrcp.f32 %v637_v19  ;;  %v1218_v27 = vadd.f32 %v8812_v56, %v1217_v22 }
  0xea   : > { %v1094_v33 = vpop.f32.mrf.mxu1  ;;  %v8129_v40 = vpop.eup %8128  ;;  %650 = vst.msk [vmem:[#allocation2 + $0x20] sm:$0xff] %vm512_vm3, %v8125_v25  ;;  %v970_v41 = vadd.f32 %v8812_v56, %v969_v32  ;;  %v539_v44 = vadd.f32 %v536_v29, %v533_v31  ;;  %8142 = vrcp.f32 %v884_v17  ;;  %v762_v9 = vadd.f32 1.0, %v8127_v30 }
  0xeb   : > { %v8939_v42 = vpop.f32.mrf.mxu3  ;;  %v8131_v43 = vpop.eup %8130  ;;  %v1095_v46 = vadd.f32 %v8812_v56, %v1094_v33  ;;  %8144 = vrcp.f32 %v761_v20  ;;  %v886_v55 = vadd.f32 1.0, %v8129_v40  ;;  %v1118_v17 = vmul.f32 1.442695, %v1111_v58 }
  0xec   : > { %v8942_v47 = vpop.eup %8132  ;;  %v987_v49 = vsub.f32 0.0, %v970_v41  ;;  %v541_v51 = vmul.f32 0.25, %v539_v44  ;;  %v763_v57 = vadd.f32 1.0, %v8131_v43  ;;  %8146 = vpow2.f32 %v878_v45 }
  0xed   : > { %v8946_v54 = vpop.eup %8134  ;;  %v1112_v26 = vsub.f32 0.0, %v1095_v46  ;;  %v1236_v20 = vsub.f32 0.0, %v1218_v27  ;;  %v885_v39 = vadd.f32 1.0, %v8942_v47 }
  0xee   : > { %v995_v61 = vmul.f32 1.442695, %v987_v49  ;;  %v8137_v63 = vpop.eup %8136  ;;  %543 = vst.msk [vmem:[#allocation3] sm:$0xff] %vm512_vm3, %v541_v51 }
  0xef   : > { %v532_v0 = vld [vmem:[#allocation2 + $0x2c] ss:$2 sm:$0x3f]  ;;  %v8139_v2 = vpop.eup %8138  ;;  %v538_v8 = vld [vmem:[#allocation2 + $0x2d] ss:$2 sm:$0x3f] }
  0xf0   : > { %v654_v3 = vld [vmem:[#allocation2 + $0x10] ss:$2 sm:$0x3f]  ;;  %v656_v4 = vld [vmem:[#allocation2 + $0x11] ss:$2 sm:$0x3f]  ;;  %v534_v5 = vadd.f32 %v532_v0, %v528_v48  ;;  %8148 = vpow2.f32 %v995_v61  ;;  %v1219_v6 = vpop.f32.mrf.mxu2  ;;  %v8141_v7 = vpop.eup %8140 }
  0xf1   : > { %773 = vst.msk [vmem:[#allocation2 + $0x10] sm:$0xff] %vm512_vm3, %v8920_v15  ;;  %v1007_v11 = vadd.f32 1.0, %v8139_v2  ;;  %8150 = vpow2.f32 %v880_v53  ;;  %v972_v12 = vpop.f32.mrf.mxu0  ;;  %v8954_v14 = vpop.eup %8142  ;;  %v1120_v15 = vmul.f32 1.442695, %v1112_v26  ;;  %v1220_v29 = vadd.f32 %v8812_v56, %v1219_v6  ;;  %v8985_v26 = vld [vmem:[#allocation2 + $0x1] ss:$2 sm:$0xff] }
  0xf2   : > { %v1097_v13 = vpop.f32.mrf.mxu1  ;;  %v540_v16 = vadd.f32 %v538_v8, %v534_v5  ;;  %651 = vst.msk [vmem:[#allocation2 + $0x28] sm:$0xff] %vm512_vm3, %v8141_v7  ;;  %8152 = vrcp.f32 %v762_v9  ;;  %v973_v10 = vadd.f32 %v8812_v56, %v972_v12  ;;  %v8145_v19 = vpop.eup %8144  ;;  %v1243_v33 = vmul.f32 1.442695, %v1236_v20 }
  0xf3   : > { %v8958_v18 = vpop.f32.mrf.mxu3  ;;  %652 = vst.msk [vmem:[#allocation2 + $0x30] sm:$0xff] %vm512_vm3, %v8137_v63  ;;  %8154 = vrcp.f32 %v886_v55  ;;  %7343 = vmatmul.msk.bf16.gmra.mxu0 %vm429_vm2, %v7951_v52  ;;  %7359 = vmatmul.msk.bf16.gmra.mxu1 %vm429_vm2, %v7954_v62  ;;  %v8147_v28 = vpop.eup %8146  ;;  %v1098_v30 = vadd.f32 %v8812_v56, %v1097_v13  ;;  %v658_v44 = vadd.f32 %v656_v4, %v654_v3  ;;  %v1237_v49 = vsub.f32 0.0, %v1220_v29  ;;  %v8980_v52 = vld [vmem:[#allocation2] ss:$2 sm:$0xff] }
  0xf4   : > { %v542_v24 = vmul.f32 0.25, %v540_v16  ;;  %8156 = vrcp.f32 %v763_v57  ;;  %v988_v25 = vsub.f32 0.0, %v973_v10  ;;  %v887_v45 = vadd.f32 1.0, %v8147_v28  ;;  %v7952_v13 = vld [vmem:[%s8717_s29 + $0x160] sm:$0xff] }
  0xf5   : > { %8158 = vrcp.f32 %v1007_v11  ;;  %v1113_v47 = vsub.f32 0.0, %v1098_v30  ;;  %v1343_v63 = vadd.f32 %v8812_v56, %v8939_v42  ;;  %v1245_v1 = vmul.f32 1.442695, %v1237_v49  ;;  %v7955_v16 = vld [vmem:[%s8717_s29 + $0x17c] sm:$0xff] }
  0xf6   : > { %v8149_v21 = vpop.eup %8148  ;;  %545 = vst.msk [vmem:[#allocation3 + $0x8] sm:$0x3f] %vm544_vm5, %v542_v24  ;;  %8160 = vpow2.f32 %v1118_v17  ;;  %v997_v22 = vmul.f32 1.442695, %v988_v25  ;;  %v1345_v8 = vadd.f32 %v8812_v56, %v8958_v18 }
  0xf7   : > { %v8151_v31 = vpop.eup %8150  ;;  %v1008_v32 = vadd.f32 1.0, %v8149_v21  ;;  %8162 = vpow2.f32 %v1120_v15  ;;  %v1122_v4 = vmul.f32 1.442695, %v1113_v47  ;;  %v1361_v12 = vsub.f32 0.0, %v1343_v63  ;;  %v2052_v63 = vld [vmem:[%s8717_s29 + $0x184] sm:$0xf] }
  0xf8   : > { %v8153_v37 = vpop.eup %8152  ;;  %8164 = vpow2.f32 %v997_v22  ;;  %v8970_v40 = vpop.f32.mrf.mxu2  ;;  %v888_v60 = vadd.f32 1.0, %v8151_v31 }
  0xf9   : > { %v8972_v36 = vpop.eup %8154  ;;  %v659_v41 = vld [vmem:[#allocation2 + $0x1c] ss:$2 sm:$0xff]  ;;  %v663_v43 = vld [vmem:[#allocation2 + $0x1d] ss:$2 sm:$0xff]  ;;  %8166 = vrcp.f32 %v1008_v32  ;;  %v974_v46 = vpop.f32.mrf.mxu0  ;;  %v9002_v21 = vadd.f32 %v8812_v56, %v8970_v40  ;;  %v1362_v32 = vsub.f32 0.0, %v1345_v8 }
  0xfa   : > { %v1099_v48 = vpop.f32.mrf.mxu1  ;;  %v8157_v50 = vpop.eup %8156  ;;  %v661_v51 = vadd.f32 %v659_v41, %v657_v38  ;;  %774 = vst.msk [vmem:[#allocation2 + $0x18] sm:$0xff] %vm512_vm3, %v8946_v54  ;;  %v660_v59 = vld [vmem:[#allocation2 + $0x2c] ss:$2 sm:$0x3f]  ;;  %v975_v9 = vadd.f32 %v8812_v56, %v974_v46  ;;  %8168 = vpow2.f32 %v1243_v33  ;;  %v9013_v41 = vld [vmem:[%s8717_s29 + $0x168] sm:$0xf] }
  0xfb   : > { %v8977_v53 = vpop.f32.mrf.mxu3  ;;  %v8159_v55 = vpop.eup %8158  ;;  %v662_v57 = vadd.f32 %v660_v59, %v658_v44  ;;  %v664_v58 = vld [vmem:[#allocation2 + $0x2d] ss:$2 sm:$0x3f]  ;;  %775 = vst.msk [vmem:[#allocation2 + $0x20] sm:$0xff] %vm512_vm3, %v8145_v19  ;;  %8170 = vrcp.f32 %v885_v39  ;;  %v782_v19 = vadd.f32 %v8903_v35, %v8901_v34  ;;  %v1100_v28 = vadd.f32 %v8812_v56, %v1099_v48 }
  0xfc   : > { %v8161_v61 = vpop.eup %8160  ;;  %v665_v62 = vadd.f32 %v663_v43, %v661_v51  ;;  %776 = vst.msk [vmem:[#allocation2 + $0x28] sm:$0xff] %vm512_vm3, %v8153_v37  ;;  %v989_v54 = vsub.f32 0.0, %v975_v9  ;;  %8172 = vrcp.f32 %v887_v45  ;;  %v1368_v44 = vmul.f32 1.442695, %v1361_v12  ;;  %v2171_v51 = vld [vmem:[#allocation3] sm:$0xff] }
  0xfd   : > { %v8163_v0 = vpop.eup %8162  ;;  %v666_v27 = vadd.f32 %v664_v58, %v662_v57  ;;  %777 = vst.msk [vmem:[#allocation2 + $0x30] sm:$0xff] %vm512_vm3, %v8157_v50  ;;  %8174 = vrcp.f32 %v888_v60  ;;  %v1132_v42 = vadd.f32 1.0, %v8161_v61  ;;  %v1238_v49 = vsub.f32 0.0, %v9002_v21  ;;  %v2666_v12 = vld [vmem:[%s11048_s3 + $0x8] sm:$0xe] }
  0xfe   : > { %v8165_v2 = vpop.eup %8164  ;;  %v667_v3 = vmul.f32 0.25, %v665_v62  ;;  %1021 = vst.msk [vmem:[#allocation2] sm:$0xff] %vm512_vm3, %v8159_v55  ;;  %v999_v5 = vmul.f32 1.442695, %v989_v54  ;;  %v1133_v11 = vadd.f32 1.0, %v8163_v0 }
  0xff   : > { %v8167_v6 = vpop.eup %8166  ;;  %v668_v7 = vmul.f32 0.25, %v666_v27  ;;  %v1009_v20 = vadd.f32 1.0, %v8165_v2  ;;  %v1370_v9 = vmul.f32 1.442695, %v1362_v32  ;;  %v907_v32 = vadd.f32 %v8985_v26, %v8980_v52 }
 0x100   : > { %669 = vst.msk [vmem:[#allocation3 + $0xe] sm:$0xff] %vm512_vm3, %v667_v3  ;;  %8176 = vpow2.f32 %v999_v5  ;;  %v1224_v17 = vpop.f32.mrf.mxu2  ;;  %v8169_v10 = vpop.eup %8168  ;;  %v1941_v5 = vunpack.c.l.b16 %v9013_v41 }
 0x101   : > { %670 = vst.msk [vmem:[#allocation3 + $0x16] sm:$0x3f] %vm544_vm5, %v668_v7  ;;  %v779_v15 = vld [vmem:[#allocation2 + $0x10] ss:$2 sm:$0x3f]  ;;  %8178 = vpow2.f32 %v1245_v1  ;;  %v977_v23 = vpop.f32.mrf.mxu0  ;;  %v8171_v18 = vpop.eup %8170  ;;  %v1257_v39 = vadd.f32 1.0, %v8169_v10  ;;  %v9020_v55 = vadd.f32 %v8812_v56, %v1224_v17 }
 0x102   : > { %v1102_v24 = vpop.f32.mrf.mxu1  ;;  %v781_v25 = vld [vmem:[#allocation2 + $0x11] ss:$2 sm:$0x3f]  ;;  %1022 = vst.msk [vmem:[#allocation2 + $0x8] sm:$0xff] %vm512_vm3, %v8167_v6  ;;  %8180 = vpow2.f32 %v1122_v4  ;;  %v978_v29 = vadd.f32 %v8812_v56, %v977_v23  ;;  %v8173_v35 = vpop.eup %8172  ;;  %v1247_v17 = vmul.f32 1.442695, %v1238_v49  ;;  %v2066_v23 = vunpack.c.l.b16 %v2052_v63 }
 0x103   : > { %v9004_v34 = vpop.f32.mrf.mxu3  ;;  %898 = vst.msk [vmem:[#allocation2 + $0x10] sm:$0xff] %vm512_vm3, %v8954_v14  ;;  %v784_v22 = vld [vmem:[#allocation2 + $0x1c] ss:$2 sm:$0xff]  ;;  %v788_v30 = vld [vmem:[#allocation2 + $0x1d] ss:$2 sm:$0xff]  ;;  %v783_v31 = vadd.f32 %v781_v25, %v779_v15  ;;  %8182 = vrcp.f32 %v1132_v42  ;;  %v8175_v33 = vpop.eup %8174  ;;  %7344 = vmatmul.msk.bf16.gmra.mxu0 %vm429_vm2, %v7952_v13  ;;  %7360 = vmatmul.msk.bf16.gmra.mxu1 %vm429_vm2, %v7955_v16  ;;  %v1103_v62 = vadd.f32 %v8812_v56, %v1102_v24  ;;  %v1239_v10 = vsub.f32 0.0, %v9020_v55 }
 0x104   : > { %v786_v37 = vadd.f32 %v784_v22, %v782_v19  ;;  %900 = vst.msk [vmem:[#allocation2 + $0x20] sm:$0xff] %vm512_vm3, %v8972_v36  ;;  %v785_v38 = vld [vmem:[#allocation2 + $0x2c] ss:$2 sm:$0x3f]  ;;  %8184 = vrcp.f32 %v1133_v11  ;;  %v990_v40 = vsub.f32 0.0, %v978_v29  ;;  %v1114_v36 = vsub.f32 0.0, %v1100_v28 }
 0x105   : > { %899 = vst.msk [vmem:[#allocation2 + $0x18] sm:$0xff] %vm512_vm3, %v8171_v18  ;;  %v787_v14 = vadd.f32 %v785_v38, %v783_v31  ;;  %v789_v43 = vld [vmem:[#allocation2 + $0x2d] ss:$2 sm:$0x3f]  ;;  %8186 = vrcp.f32 %v1009_v20  ;;  %v9041_v56 = vld [vmem:[%s11047_s2] ss:$0 sm:$0xff]  ;;  %v2668_v28 = vunpack.c.l.b16 %v2666_v12 }
 0x106   : > { %v8177_v45 = vpop.eup %8176  ;;  %v790_v46 = vadd.f32 %v788_v30, %v786_v37  ;;  %901 = vst.msk [vmem:[#allocation2 + $0x28] sm:$0xff] %vm512_vm3, %v8173_v35  ;;  %v1001_v48 = vmul.f32 1.442695, %v990_v40  ;;  %v1124_v7 = vmul.f32 1.442695, %v1114_v36  ;;  %v1115_v15 = vsub.f32 0.0, %v1103_v62 }
 0x107   : > { %v8179_v50 = vpop.eup %8178  ;;  %v2172_v59 = vld [vmem:[#allocation3 + $0x8] sm:$0xff]  ;;  %v791_v60 = vadd.f32 %v789_v43, %v787_v14  ;;  %902 = vst.msk [vmem:[#allocation2 + $0x30] sm:$0xff] %vm512_vm3, %v8175_v33  ;;  %v1010_v47 = vadd.f32 1.0, %v8177_v45  ;;  %v7957_v25 = vld [vmem:[%s11048_s3 + $0x4] sm:$0x10]  ;;  %v2070_v43 = vpack.c.b16 %v2066_v23, %v2066_v23  ;;  %v1348_v52 = vadd.f32 %v9041_v56, %v8977_v53 }
 0x108   : > { %v8181_v57 = vpop.eup %8180  ;;  %v9022_v58 = vpack.c.bf16 %v2172_v59, %v2171_v51  ;;  %v792_v61 = vmul.f32 0.25, %v790_v46  ;;  %8188 = vpow2.f32 %v1001_v48  ;;  %v9025_v54 = vpop.f32.mrf.mxu2  ;;  %v1258_v42 = vadd.f32 1.0, %v8179_v50  ;;  %v7394_v18 = vld [vmem:[%s11048_s3 + $0x4] sm:$0xc] }
 0x109   : > { %v8183_v0 = vpop.eup %8182  ;;  %v793_v27 = vmul.f32 0.25, %v791_v60  ;;  %v9028_v1 = vld [vmem:[#allocation2] ss:$2 sm:$0xff]  ;;  %v9030_v2 = vld [vmem:[#allocation2 + $0x1] ss:$2 sm:$0xff]  ;;  %8190 = vrcp.f32 %v1010_v47  ;;  %v979_v3 = vpop.f32.mrf.mxu0  ;;  %v1134_v16 = vadd.f32 1.0, %v8181_v57  ;;  %v2669_v48 = vpack.c.b16 %v2668_v28, %v2668_v28 }
 0x10a   : > { %v1104_v4 = vpop.f32.mrf.mxu1  ;;  %v8185_v6 = vpop.eup %8184  ;;  %794 = vst.msk [vmem:[#allocation3 + $0x1c] sm:$0xff] %vm512_vm3, %v792_v61  ;;  %8192 = vpow2.f32 %v1368_v44  ;;  %7362 = vmatmul.msk.bf16.vlgmr.msrb.gmra.mxu2 %vm512_vm3, %v9022_v58  ;;  %7379 = vmatmul.msk.bf16.vlgmr.msrb.gmra.mxu3 %vm512_vm3, %v9022_v58  ;;  %v980_v8 = vadd.f32 %v9041_v56, %v979_v3  ;;  %v1126_v46 = vmul.f32 1.442695, %v1115_v15  ;;  %v7395_v60 = vor.u32 %v7957_v25, %v7394_v18 }
 0x10b   : > { %v9044_v11 = vpop.f32.mrf.mxu3  ;;  %v8187_v13 = vpop.eup %8186  ;;  %795 = vst.msk [vmem:[#allocation3 + $0x24] sm:$0x3f] %vm544_vm5, %v793_v27  ;;  %8194 = vpow2.f32 %v1370_v9  ;;  %v1105_v30 = vadd.f32 %v9041_v56, %v1104_v4  ;;  %v1249_v55 = vmul.f32 1.442695, %v1239_v10  ;;  %v2173_v4 = vld [vmem:[#allocation3 + $0x10] sm:$0xff]  ;;  %v1228_v15 = vadd.f32 %v9041_v56, %v9025_v54 }
 0x10c   : > { %1146 = vst.msk [vmem:[#allocation2] sm:$0xff] %vm512_vm3, %v8183_v0  ;;  %v904_v19 = vld [vmem:[#allocation2 + $0x10] ss:$2 sm:$0x3f]  ;;  %8196 = vrcp.f32 %v1257_v39  ;;  %v991_v20 = vsub.f32 0.0, %v980_v8  ;;  %v1945_v39 = vpack.c.b16 %v1941_v5, %v1941_v5 }
 0x10d   : > { %1147 = vst.msk [vmem:[#allocation2 + $0x8] sm:$0xff] %vm512_vm3, %v8185_v6  ;;  %v906_v24 = vld [vmem:[#allocation2 + $0x11] ss:$2 sm:$0x3f]  ;;  %v909_v35 = vld [vmem:[#allocation2 + $0x1c] ss:$2 sm:$0xff]  ;;  %8198 = vrcp.f32 %v1258_v42 }
 0x10e   : > { %v8189_v29 = vpop.eup %8188  ;;  %v908_v21 = vadd.f32 %v906_v24, %v904_v19  ;;  %v910_v22 = vld [vmem:[#allocation2 + $0x2c] ss:$2 sm:$0x3f]  ;;  %1023 = vst.msk [vmem:[#allocation2 + $0x10] sm:$0xff] %vm512_vm3, %v8187_v13  ;;  %v9063_v33 = vld [vmem:[#allocation2 + $0x1d] ss:$2 sm:$0xff]  ;;  %8200 = vpow2.f32 %v1124_v7  ;;  %v911_v27 = vadd.f32 %v909_v35, %v907_v32 }
 0x10f   : > { %v8191_v31 = vpop.eup %8190  ;;  %v914_v37 = vld [vmem:[#allocation2 + $0x2d] ss:$2 sm:$0x3f]  ;;  %v1011_v38 = vadd.f32 1.0, %v8189_v29  ;;  %8202 = vrcp.f32 %v1134_v16  ;;  %v1003_v14 = vmul.f32 1.442695, %v991_v20 }
 0x110   : > { %v8193_v40 = vpop.eup %8192  ;;  %v912_v41 = vadd.f32 %v910_v22, %v908_v21  ;;  %1024 = vst.msk [vmem:[#allocation2 + $0x18] sm:$0xff] %vm512_vm3, %v8191_v31  ;;  %v1229_v44 = vpop.f32.mrf.mxu2  ;;  %v1116_v51 = vsub.f32 0.0, %v1105_v30  ;;  %v1363_v6 = vsub.f32 0.0, %v1348_v52  ;;  %v2509_v13 = vrot.slane %v7395_v60, 2  ;;  %v2828_v30 = vld [vmem:[%s11048_s3 + $0xc] sm:$0x7] }
 0x111   : > { %v8195_v45 = vpop.eup %8194  ;;  %8204 = vrcp.f32 %v1011_v38  ;;  %v982_v26 = vpop.f32.mrf.mxu0  ;;  %v1382_v9 = vadd.f32 1.0, %v8193_v40  ;;  %v2174_v5 = vld [vmem:[#allocation3 + $0x18] sm:$0xff]  ;;  %v2670_v16 = vrot.slane %v2669_v48, 1  ;;  %v915_v25 = vadd.f32 %v9063_v33, %v911_v27 }
 0x112   : > { %v1107_v36 = vpop.f32.mrf.mxu1  ;;  %v8197_v49 = vpop.eup %8196  ;;  %v916_v50 = vadd.f32 %v914_v37, %v912_v41  ;;  %v983_v59 = vadd.f32 %v9041_v56, %v982_v26  ;;  %8206 = vpow2.f32 %v1247_v17  ;;  %v1383_v0 = vadd.f32 1.0, %v8195_v45 }
 0x113   : > { %v9069_v47 = vpop.f32.mrf.mxu3  ;;  %v1108_v57 = vadd.f32 %v9041_v56, %v1107_v36  ;;  %v8199_v61 = vpop.eup %8198  ;;  %8208 = vpow2.f32 %v1003_v14  ;;  %7345 = vmatmul.msk.bf16.gmra.mxu0 %vm429_vm2, %v1945_v39  ;;  %7361 = vmatmul.msk.bf16.gmra.mxu1 %vm429_vm2, %v2070_v43  ;;  %v1128_v12 = vmul.f32 1.442695, %v1116_v51  ;;  %v9085_v20 = vpack.c.bf16 %v2174_v5, %v2173_v4 }
 0x114   : > { %v9072_v62 = vld [vmem:[#allocation2] ss:$2 sm:$0xff]  ;;  %v9074_v53 = vld [vmem:[#allocation2 + $0x1] ss:$2 sm:$0xff]  ;;  %v918_v63 = vmul.f32 0.25, %v916_v50  ;;  %v8201_v3 = vpop.eup %8200  ;;  %v992_v7 = vsub.f32 0.0, %v983_v59  ;;  %8210 = vpow2.f32 %v1126_v46  ;;  %v1230_v54 = vadd.f32 %v9041_v56, %v1229_v44 }
 0x115   : > { %1271 = vst.msk [vmem:[#allocation2] sm:$0xff] %vm512_vm3, %v8197_v49  ;;  %v1117_v42 = vsub.f32 0.0, %v1108_v57  ;;  %v8203_v8 = vpop.eup %8202  ;;  %8212 = vrcp.f32 %v1382_v9  ;;  %v1372_v29 = vmul.f32 1.442695, %v1363_v6  ;;  %v2511_v32 = vsel %vm2249_vm4, %v2509_v13, 0 }
 0x116   : > { %920 = vst.msk [vmem:[#allocation3 + $0x32] sm:$0x3f] %vm544_vm5, %v918_v63  ;;  %v1005_v10 = vmul.f32 1.442695, %v992_v7  ;;  %8214 = vrcp.f32 %v1383_v0  ;;  %v2672_v33 = vsel %vm2249_vm4, %v2670_v16, 0  ;;  %v2830_v38 = vsel %vm2249_vm4, %v2828_v30, 0  ;;  %2520 = vmatpush.bf16.msra.mxu0 %v2511_v32 }
 0x117   : > { %v8205_v17 = vpop.eup %8204  ;;  %1272 = vst.msk [vmem:[#allocation2 + $0x8] sm:$0xff] %vm512_vm3, %v8199_v61  ;;  %v9081_v19 = vld [vmem:[#allocation2 + $0x10] ss:$2 sm:$0x3f]  ;;  %v1130_v24 = vmul.f32 1.442695, %v1117_v42  ;;  %2681 = vmatpush.bf16.msra.mxu1 %v2672_v33  ;;  %2839 = vmatpush.bf16.msra.mxu2 %v2830_v38  ;;  %v1350_v9 = vadd.f32 %v9041_v56, %v9004_v34  ;;  %v1353_v63 = vadd.f32 %v9041_v56, %v9044_v11 }
 0x118   : > { %1025 = vst.msk [vmem:[#allocation2 + $0x20] sm:$0xff] %vm512_vm3, %v8205_v17  ;;  %v9088_v23 = vld [vmem:[#allocation2 + $0x11] ss:$2 sm:$0x3f]  ;;  %v1232_v18 = vpop.f32.mrf.mxu2  ;;  %v8207_v28 = vpop.eup %8206  ;;  %8216 = vpow2.f32 %v1005_v10  ;;  %v1135_v40 = vadd.f32 1.0, %v8201_v3  ;;  %v1240_v41 = vsub.f32 0.0, %v1228_v15 }
 0x119   : > { %1148 = vst.msk [vmem:[#allocation2 + $0x10] sm:$0xff] %vm512_vm3, %v8203_v8  ;;  %v984_v21 = vpop.f32.mrf.mxu0  ;;  %v8209_v22 = vpop.eup %8208  ;;  %8218 = vpow2.f32 %v1249_v55  ;;  %v1233_v31 = vadd.f32 %v9041_v56, %v1232_v18  ;;  %v917_v14 = vmul.f32 0.25, %v915_v25  ;;  %v1259_v45 = vadd.f32 1.0, %v8207_v28  ;;  %v2175_v18 = vld [vmem:[#allocation3 + $0x20] sm:$0xff] }
 0x11a   : > { %v1109_v35 = vpop.f32.mrf.mxu1  ;;  %7363 = vmatmul.msk.bf16.gmra.mxu2 %vm512_vm3, %v9085_v20  ;;  %7380 = vmatmul.msk.bf16.gmra.mxu3 %vm512_vm3, %v9085_v20  ;;  %v1012_v37 = vadd.f32 1.0, %v8209_v22  ;;  %8220 = vpow2.f32 %v1128_v12  ;;  %v8211_v39 = vpop.eup %8210  ;;  %v1241_v46 = vsub.f32 0.0, %v1230_v54  ;;  %v1251_v60 = vmul.f32 1.442695, %v1240_v41 }
 0x11b   : > { %8222 = vpow2.f32 %v1130_v24  ;;  %v9104_v43 = vpop.f32.mrf.mxu3  ;;  %v8213_v44 = vpop.eup %8212  ;;  %v1242_v26 = vsub.f32 0.0, %v1233_v31  ;;  %919 = vst.msk [vmem:[#allocation3 + $0x2a] sm:$0xff] %vm512_vm3, %v917_v14  ;;  %v1136_v48 = vadd.f32 1.0, %v8211_v39  ;;  %v1364_v8 = vsub.f32 0.0, %v1350_v9 }
 0x11c   : > { %8224 = vrcp.f32 %v1012_v37  ;;  %v8215_v52 = vpop.eup %8214  ;;  %v1253_v61 = vmul.f32 1.442695, %v1241_v46  ;;  %v1365_v16 = vsub.f32 0.0, %v1353_v63  ;;  %v1355_v28 = vadd.f32 %v9041_v56, %v9069_v47 }
 0x11d   : > { %8226 = vpow2.f32 %v1372_v29  ;;  %v1255_v4 = vmul.f32 1.442695, %v1242_v26  ;;  %v1374_v21 = vmul.f32 1.442695, %v1364_v8  ;;  %v1032_v37 = vadd.f32 %v9030_v2, %v9028_v1 }
 0x11e   : > { %v8217_v36 = vpop.eup %8216  ;;  %v9107_v49 = vld [vmem:[#allocation2] ss:$2 sm:$0xff]  ;;  %v9109_v50 = vld [vmem:[#allocation2 + $0x1] ss:$2 sm:$0xff]  ;;  %8228 = vrcp.f32 %v1135_v40  ;;  %v1376_v30 = vmul.f32 1.442695, %v1365_v16  ;;  %v1358_v38 = vadd.f32 %v9041_v56, %v9104_v43  ;;  %v1033_v43 = vadd.f32 %v9088_v23, %v9081_v19 }
 0x11f   : > { %v8219_v51 = vpop.eup %8218  ;;  %v1013_v59 = vadd.f32 1.0, %v8217_v36  ;;  %1396 = vst.msk [vmem:[#allocation2] sm:$0xff] %vm512_vm3, %v8213_v44  ;;  %8230 = vrcp.f32 %v1259_v45  ;;  %v1366_v44 = vsub.f32 0.0, %v1355_v28  ;;  %vm6078_vm2 = vcmask 130050  }
 0x120   : > { %v1234_v55 = vpop.f32.mrf.mxu2  ;;  %v8221_v57 = vpop.eup %8220  ;;  %1397 = vst.msk [vmem:[#allocation2 + $0x8] sm:$0xff] %vm512_vm3, %v8215_v52  ;;  %v1260_v34 = vadd.f32 1.0, %v8219_v51 }
 0x121   : > { %v1467_v0 = vpop.f32.mrf.mxu0  ;;  %v8223_v3 = vpop.eup %8222  ;;  %8232 = vrcp.f32 %v1013_v59  ;;  %v1137_v42 = vadd.f32 1.0, %v8221_v57  ;;  %v1378_v63 = vmul.f32 1.442695, %v1366_v44 }
 0x122   : > { %v1592_v27 = vpop.f32.mrf.mxu1  ;;  %v1468_v5 = vadd.f32 %v9041_v56, %v1467_v0  ;;  %v8225_v6 = vpop.eup %8224  ;;  %8234 = vrcp.f32 %v1136_v48  ;;  %v1138_v13 = vadd.f32 1.0, %v8223_v3  ;;  %v2176_v17 = vld [vmem:[#allocation3 + $0x28] sm:$0xff] }
 0x123   : > { %v8227_v7 = vpop.eup %8226  ;;  %1026 = vst.msk [vmem:[#allocation2 + $0x28] sm:$0xff] %vm512_vm3, %v8225_v6  ;;  %8236 = vpow2.f32 %v1251_v60  ;;  %7396 = vmatmul.msk.bf16.vlgmr.msra.gmra.mxu0 %vm512_vm3, %v9022_v58  ;;  %7409 = vmatmul.msk.bf16.vlgmr.msra.gmra.mxu1 %vm512_vm3, %v9022_v58  ;;  %v1359_v11 = vpop.f32.mrf.mxu3  ;;  %v9127_v35 = vpack.c.bf16 %v2176_v17, %v2175_v18  ;;  %v1593_v14 = vadd.f32 %v9041_v56, %v1592_v27  ;;  %v1367_v60 = vsub.f32 0.0, %v1358_v38 }
 0x124   : > { %v1486_v12 = vsub.f32 0.0, %v1468_v5  ;;  %8238 = vpow2.f32 %v1253_v61  ;;  %v8229_v10 = vpop.eup %8228  ;;  %v1384_v25 = vadd.f32 1.0, %v8227_v7 }
 0x125   : > { %8240 = vpow2.f32 %v1255_v4  ;;  %v9123_v24 = vpop.eup %8230  ;;  %v1611_v61 = vsub.f32 0.0, %v1593_v14 }
 0x126   : > { %v1493_v15 = vmul.f32 1.442695, %v1486_v12  ;;  %8242 = vrcp.f32 %v1260_v34  ;;  %v1380_v12 = vmul.f32 1.442695, %v1367_v60 }
 0x127   : > { %v8233_v29 = vpop.eup %8232  ;;  %8244 = vrcp.f32 %v1137_v42  ;;  %v1618_v17 = vmul.f32 1.442695, %v1611_v61 }
 0x128   : > { %v9129_v54 = vpop.f32.mrf.mxu2  ;;  %v8235_v22 = vpop.eup %8234  ;;  %1027 = vst.msk [vmem:[#allocation2 + $0x30] sm:$0xff] %vm512_vm3, %v8233_v29  ;;  %8246 = vrcp.f32 %v1138_v13 }
 0x129   : > { %v1469_v31 = vpop.f32.mrf.mxu0  ;;  %v8237_v33 = vpop.eup %8236  ;;  %8248 = vpow2.f32 %v1493_v15 }
 0x12a   : > { %v1594_v32 = vpop.f32.mrf.mxu1  ;;  %7364 = vmatmul.msk.bf16.gmra.mxu2 %vm512_vm3, %v9127_v35  ;;  %7381 = vmatmul.msk.bf16.gmra.mxu3 %vm512_vm3, %v9127_v35  ;;  %v1470_v47 = vadd.f32 %v9041_v56, %v1469_v31  ;;  %v8239_v39 = vpop.eup %8238  ;;  %8250 = vrcp.f32 %v1384_v25  ;;  %v1034_v40 = vld [vmem:[#allocation2 + $0x1c] ss:$2 sm:$0xff]  ;;  %v1038_v41 = vld [vmem:[#allocation2 + $0x1d] ss:$2 sm:$0xff]  ;;  %v1261_v36 = vadd.f32 1.0, %v8237_v33  ;;  %v1157_v31 = vadd.f32 %v9074_v53, %v9072_v62 }
 0x12b   : > { %v1595_v1 = vadd.f32 %v9041_v56, %v1594_v32  ;;  %v8241_v2 = vpop.eup %8240  ;;  %1149 = vst.msk [vmem:[#allocation2 + $0x18] sm:$0xff] %vm512_vm3, %v8229_v10  ;;  %8252 = vpow2.f32 %v1374_v21  ;;  %v1036_v46 = vadd.f32 %v1034_v40, %v1032_v37  ;;  %v9144_v52 = vpop.f32.mrf.mxu3  ;;  %v1262_v51 = vadd.f32 1.0, %v8239_v39 }
 0x12c   : > { %v1487_v45 = vsub.f32 0.0, %v1470_v47  ;;  %v9146_v26 = vpop.eup %8242  ;;  %1150 = vst.msk [vmem:[#allocation2 + $0x20] sm:$0xff] %vm512_vm3, %v8235_v22  ;;  %8254 = vpow2.f32 %v1376_v30  ;;  %v1263_v57 = vadd.f32 1.0, %v8241_v2  ;;  %v1718_v10 = vadd.f32 %v9041_v56, %v9129_v54 }
 0x12d   : > { %v8245_v48 = vpop.eup %8244  ;;  %v1040_v9 = vadd.f32 %v1038_v41, %v1036_v46  ;;  %v1612_v0 = vsub.f32 0.0, %v1595_v1  ;;  %v1843_v53 = vadd.f32 %v9041_v56, %v9144_v52 }
 0x12e   : > { %v1495_v59 = vmul.f32 1.442695, %v1487_v45  ;;  %v8247_v55 = vpop.eup %8246  ;;  %v1736_v47 = vsub.f32 0.0, %v1718_v10 }
 0x12f   : > { %v8249_v27 = vpop.eup %8248  ;;  %v1035_v3 = vld [vmem:[#allocation2 + $0x2c] ss:$2 sm:$0x3f]  ;;  %v1039_v4 = vld [vmem:[#allocation2 + $0x2d] ss:$2 sm:$0x3f] }
 0x130   : > { %8256 = vpow2.f32 %v1495_v59  ;;  %v1719_v5 = vpop.f32.mrf.mxu2  ;;  %v9151_v19 = vpop.eup %8250  ;;  %v1037_v23 = vadd.f32 %v1035_v3, %v1033_v43  ;;  %1151 = vst.msk [vmem:[#allocation2 + $0x28] sm:$0xff] %vm512_vm3, %v8245_v48  ;;  %v1507_v6 = vadd.f32 1.0, %v8249_v27  ;;  %v1042_v42 = vmul.f32 0.25, %v1040_v9  ;;  %v9182_v27 = vld [vmem:[#allocation2] ss:$2 sm:$0xff] }
 0x131   : > { %8258 = vrcp.f32 %v1261_v36  ;;  %v1472_v34 = vpop.f32.mrf.mxu0  ;;  %v8253_v8 = vpop.eup %8252  ;;  %1152 = vst.msk [vmem:[#allocation2 + $0x30] sm:$0xff] %vm512_vm3, %v8247_v55  ;;  %v1620_v18 = vmul.f32 1.442695, %v1612_v0  ;;  %v1720_v30 = vadd.f32 %v9041_v56, %v1719_v5  ;;  %v2177_v36 = vld [vmem:[#allocation3 + $0x30] sm:$0xff]  ;;  %v1743_v55 = vmul.f32 1.442695, %v1736_v47 }
 0x132   : > { %v1597_v7 = vpop.f32.mrf.mxu1  ;;  %8260 = vrcp.f32 %v1262_v51  ;;  %v1473_v11 = vadd.f32 %v9041_v56, %v1472_v34  ;;  %v8255_v13 = vpop.eup %8254  ;;  %v1041_v16 = vadd.f32 %v1039_v4, %v1037_v23  ;;  %1044 = vst.msk [vmem:[#allocation3 + $0x38] sm:$0xff] %vm512_vm3, %v1042_v42  ;;  %v1154_v15 = vld [vmem:[#allocation2 + $0x10] ss:$2 sm:$0x3f]  ;;  %v1385_v22 = vadd.f32 1.0, %v8253_v8 }
 0x133   : > { %8262 = vrcp.f32 %v1263_v57  ;;  %7397 = vmatmul.msk.bf16.gmra.mxu0 %vm512_vm3, %v9085_v20  ;;  %7410 = vmatmul.msk.bf16.gmra.mxu1 %vm512_vm3, %v9085_v20  ;;  %v1844_v28 = vpop.f32.mrf.mxu3  ;;  %v1156_v29 = vld [vmem:[#allocation2 + $0x11] ss:$2 sm:$0x3f]  ;;  %v1386_v33 = vadd.f32 1.0, %v8255_v13  ;;  %v1737_v59 = vsub.f32 0.0, %v1720_v30  ;;  %v1598_v9 = vadd.f32 %v9041_v56, %v1597_v7 }
 0x134   : > { %8264 = vpow2.f32 %v1378_v63  ;;  %v1488_v25 = vsub.f32 0.0, %v1473_v11  ;;  %v1043_v21 = vmul.f32 0.25, %v1041_v16  ;;  %1273 = vst.msk [vmem:[#allocation2 + $0x10] sm:$0xff] %vm512_vm3, %v9123_v24  ;;  %v1158_v45 = vadd.f32 %v1156_v29, %v1154_v15 }
 0x135   : > { %8266 = vrcp.f32 %v1507_v6  ;;  %v1861_v5 = vsub.f32 0.0, %v1843_v53  ;;  %v9190_v6 = vld [vmem:[#allocation2 + $0x1] ss:$2 sm:$0xff]  ;;  %v1745_v42 = vmul.f32 1.442695, %v1737_v59  ;;  %v1845_v8 = vadd.f32 %v9041_v56, %v1844_v28 }
 0x136   : > { %v8257_v54 = vpop.eup %8256  ;;  %8268 = vpow2.f32 %v1380_v12  ;;  %1045 = vst.msk [vmem:[#allocation3 + $0x40] sm:$0x3f] %vm544_vm5, %v1043_v21  ;;  %v1497_v24 = vmul.f32 1.442695, %v1488_v25  ;;  %v1613_v16 = vsub.f32 0.0, %v1598_v9 }
 0x137   : > { %v8259_v32 = vpop.eup %8258  ;;  %8270 = vpow2.f32 %v1618_v17  ;;  %v1508_v37 = vadd.f32 1.0, %v8257_v54  ;;  %v1159_v39 = vld [vmem:[#allocation2 + $0x1c] ss:$2 sm:$0xff]  ;;  %v1163_v40 = vld [vmem:[#allocation2 + $0x1d] ss:$2 sm:$0xff] }
 0x138   : > { %v8261_v38 = vpop.eup %8260  ;;  %8272 = vpow2.f32 %v1620_v18  ;;  %v9169_v41 = vpop.f32.mrf.mxu2  ;;  %v1160_v44 = vld [vmem:[#allocation2 + $0x2c] ss:$2 sm:$0x3f]  ;;  %v1164_v1 = vld [vmem:[#allocation2 + $0x2d] ss:$2 sm:$0x3f]  ;;  %v1161_v46 = vadd.f32 %v1159_v39, %v1157_v31 }
 0x139   : > { %v8263_v14 = vpop.eup %8262  ;;  %8274 = vrcp.f32 %v1508_v37  ;;  %v1474_v2 = vpop.f32.mrf.mxu0  ;;  %1275 = vst.msk [vmem:[#allocation2 + $0x20] sm:$0xff] %vm512_vm3, %v8259_v32  ;;  %v2178_v48 = vld [vmem:[#allocation3 + $0x38] sm:$0xff]  ;;  %v1162_v52 = vadd.f32 %v1160_v44, %v1158_v45  ;;  %v1868_v28 = vmul.f32 1.442695, %v1861_v5  ;;  %v1862_v31 = vsub.f32 0.0, %v1845_v8 }
 0x13a   : > { %v1599_v62 = vpop.f32.mrf.mxu1  ;;  %v8265_v43 = vpop.eup %8264  ;;  %8276 = vrcp.f32 %v1385_v22  ;;  %v1475_v51 = vadd.f32 %v9041_v56, %v1474_v2  ;;  %1276 = vst.msk [vmem:[#allocation2 + $0x28] sm:$0xff] %vm512_vm3, %v8261_v38  ;;  %v9177_v57 = vpack.c.bf16 %v2178_v48, %v2177_v36  ;;  %v1165_v23 = vadd.f32 %v1163_v40, %v1161_v46 }
 0x13b   : > { %v8267_v60 = vpop.eup %8266  ;;  %1277 = vst.msk [vmem:[#allocation2 + $0x30] sm:$0xff] %vm512_vm3, %v8263_v14  ;;  %8278 = vpow2.f32 %v1497_v24  ;;  %v9180_v0 = vpop.f32.mrf.mxu3  ;;  %v1387_v4 = vadd.f32 1.0, %v8265_v43  ;;  %v1166_v12 = vadd.f32 %v1164_v1, %v1162_v52  ;;  %v1600_v25 = vadd.f32 %v9041_v56, %v1599_v62 }
 0x13c   : > { %v8269_v61 = vpop.eup %8268  ;;  %v1489_v63 = vsub.f32 0.0, %v1475_v51  ;;  %8280 = vrcp.f32 %v1386_v33  ;;  %7365 = vmatmul.msk.bf16.gmra.mxu2 %vm512_vm3, %v9177_v57  ;;  %7382 = vmatmul.msk.bf16.gmra.mxu3 %vm512_vm3, %v9177_v57  ;;  %1274 = vst.msk [vmem:[#allocation2 + $0x18] sm:$0xff] %vm512_vm3, %v9146_v26  ;;  %v1167_v17 = vmul.f32 0.25, %v1165_v23  ;;  %v1622_v33 = vmul.f32 1.442695, %v1613_v16 }
 0x13d   : > { %v8271_v3 = vpop.eup %8270  ;;  %1521 = vst.msk [vmem:[#allocation2] sm:$0xff] %vm512_vm3, %v8267_v60  ;;  %v1388_v13 = vadd.f32 1.0, %v8269_v61  ;;  %8282 = vpow2.f32 %v1743_v55  ;;  %v1168_v18 = vmul.f32 0.25, %v1166_v12  ;;  %v1614_v24 = vsub.f32 0.0, %v1600_v25 }
 0x13e   : > { %v8273_v34 = vpop.eup %8272  ;;  %v1499_v7 = vmul.f32 1.442695, %v1489_v63  ;;  %v1632_v15 = vadd.f32 1.0, %v8271_v3  ;;  %1169 = vst.msk [vmem:[#allocation3 + $0x46] sm:$0xff] %vm512_vm3, %v1167_v17  ;;  %v1282_v44 = vadd.f32 %v9109_v50, %v9107_v49  ;;  %v1870_v62 = vmul.f32 1.442695, %v1862_v31 }
 0x13f   : > { %v8275_v11 = vpop.eup %8274  ;;  %v1633_v22 = vadd.f32 1.0, %v8273_v34  ;;  %1170 = vst.msk [vmem:[#allocation3 + $0x4e] sm:$0x3f] %vm544_vm5, %v1168_v18  ;;  %v1723_v36 = vadd.f32 %v9041_v56, %v9169_v41  ;;  %v1624_v63 = vmul.f32 1.442695, %v1614_v24 }
 0x140   : > { %v8277_v10 = vpop.eup %8276  ;;  %8284 = vpow2.f32 %v1499_v7  ;;  %v9194_v26 = vpop.f32.mrf.mxu2  ;;  %1522 = vst.msk [vmem:[#allocation2 + $0x8] sm:$0xff] %vm512_vm3, %v8275_v11 }
 0x141   : > { %8286 = vrcp.f32 %v1387_v4  ;;  %v1477_v29 = vpop.f32.mrf.mxu0  ;;  %v8279_v54 = vpop.eup %8278  ;;  %v1738_v11 = vsub.f32 0.0, %v1723_v36 }
 0x142   : > { %v1602_v21 = vpop.f32.mrf.mxu1  ;;  %8288 = vpow2.f32 %v1745_v42  ;;  %v1478_v30 = vadd.f32 %v9041_v56, %v1477_v29  ;;  %v8281_v32 = vpop.eup %8280  ;;  %v1509_v40 = vadd.f32 1.0, %v8279_v54  ;;  %v1285_v48 = vld [vmem:[#allocation2 + $0x2c] ss:$2 sm:$0x3f] }
 0x143   : > { %8290 = vrcp.f32 %v1388_v13  ;;  %7398 = vmatmul.msk.bf16.gmra.mxu0 %vm512_vm3, %v9127_v35  ;;  %7411 = vmatmul.msk.bf16.gmra.mxu1 %vm512_vm3, %v9127_v35  ;;  %v9205_v47 = vpop.f32.mrf.mxu3  ;;  %v1279_v38 = vld [vmem:[#allocation2 + $0x10] ss:$2 sm:$0x3f]  ;;  %v8283_v39 = vpop.eup %8282  ;;  %v1281_v14 = vld [vmem:[#allocation2 + $0x11] ss:$2 sm:$0x3f]  ;;  %v1603_v3 = vadd.f32 %v9041_v56, %v1602_v21 }
 0x144   : > { %8292 = vrcp.f32 %v1632_v15  ;;  %v1490_v37 = vsub.f32 0.0, %v1478_v30  ;;  %v1283_v53 = vadd.f32 %v1281_v14, %v1279_v38  ;;  %v1284_v45 = vld [vmem:[#allocation2 + $0x1c] ss:$2 sm:$0xff]  ;;  %1398 = vst.msk [vmem:[#allocation2 + $0x10] sm:$0xff] %vm512_vm3, %v9151_v19  ;;  %v1288_v9 = vld [vmem:[#allocation2 + $0x1d] ss:$2 sm:$0xff] }
 0x145   : > { %8294 = vpow2.f32 %v1868_v28  ;;  %v1286_v51 = vadd.f32 %v1284_v45, %v1282_v44  ;;  %v2179_v49 = vld [vmem:[#allocation3 + $0x40] sm:$0xff]  ;;  %v1289_v55 = vld [vmem:[#allocation2 + $0x2d] ss:$2 sm:$0x3f]  ;;  %v1757_v61 = vadd.f32 1.0, %v8283_v39  ;;  %1399 = vst.msk [vmem:[#allocation2 + $0x18] sm:$0xff] %vm512_vm3, %v8277_v10  ;;  %v1725_v44 = vadd.f32 %v9041_v56, %v9194_v26 }
 0x146   : > { %v8285_v1 = vpop.eup %8284  ;;  %8296 = vrcp.f32 %v1633_v22  ;;  %v1501_v2 = vmul.f32 1.442695, %v1490_v37  ;;  %v1287_v60 = vadd.f32 %v1285_v48, %v1283_v53  ;;  %v2180_v41 = vld [vmem:[#allocation3 + $0x48] sm:$0xff]  ;;  %1400 = vst.msk [vmem:[#allocation2 + $0x20] sm:$0xff] %vm512_vm3, %v8281_v32  ;;  %v1615_v25 = vsub.f32 0.0, %v1603_v3 }
 0x147   : > { %v8287_v46 = vpop.eup %8286  ;;  %8298 = vpow2.f32 %v1622_v33  ;;  %v1510_v43 = vadd.f32 1.0, %v8285_v1  ;;  %v9217_v23 = vpack.c.bf16 %v2180_v41, %v2179_v49  ;;  %v9221_v7 = vld [vmem:[#allocation2] ss:$2 sm:$0xff]  ;;  %v9223_v42 = vld [vmem:[#allocation2 + $0x1] ss:$2 sm:$0xff]  ;;  %v1290_v13 = vadd.f32 %v1288_v9, %v1286_v51 }
 0x148   : > { %v8289_v59 = vpop.eup %8288  ;;  %8300 = vpow2.f32 %v1501_v2  ;;  %v9213_v50 = vpop.f32.mrf.mxu2  ;;  %1401 = vst.msk [vmem:[#allocation2 + $0x28] sm:$0xff] %vm512_vm3, %v8287_v46  ;;  %v1291_v10 = vadd.f32 %v1289_v55, %v1287_v60  ;;  %v1747_v33 = vmul.f32 1.442695, %v1738_v11  ;;  %v1626_v14 = vmul.f32 1.442695, %v1615_v25 }
 0x149   : > { %v8291_v52 = vpop.eup %8290  ;;  %8302 = vrcp.f32 %v1509_v40  ;;  %v1479_v4 = vpop.f32.mrf.mxu0  ;;  %v1758_v12 = vadd.f32 1.0, %v8289_v59  ;;  %v1292_v28 = vmul.f32 0.25, %v1290_v13  ;;  %v1407_v40 = vadd.f32 %v9190_v6, %v9182_v27 }
 0x14a   : > { %v1604_v5 = vpop.f32.mrf.mxu1  ;;  %v8293_v19 = vpop.eup %8292  ;;  %8304 = vpow2.f32 %v1870_v62  ;;  %v1480_v34 = vadd.f32 %v9041_v56, %v1479_v4  ;;  %1402 = vst.msk [vmem:[#allocation2 + $0x30] sm:$0xff] %vm512_vm3, %v8291_v52  ;;  %v1293_v22 = vmul.f32 0.25, %v1291_v10  ;;  %v1728_v36 = vadd.f32 %v9041_v56, %v9213_v50 }
 0x14b   : > { %v8295_v8 = vpop.eup %8294  ;;  %8306 = vrcp.f32 %v1510_v43  ;;  %v9227_v15 = vpop.f32.mrf.mxu3  ;;  %1646 = vst.msk [vmem:[#allocation2] sm:$0xff] %vm512_vm3, %v8293_v19  ;;  %v1605_v54 = vadd.f32 %v9041_v56, %v1604_v5 }
 0x14c   : > { %v8297_v16 = vpop.eup %8296  ;;  %v1491_v17 = vsub.f32 0.0, %v1480_v34  ;;  %8308 = vrcp.f32 %v1757_v61  ;;  %7366 = vmatmul.msk.bf16.gmra.mxu2 %vm512_vm3, %v9217_v23  ;;  %7383 = vmatmul.msk.bf16.gmra.mxu3 %vm512_vm3, %v9217_v23  ;;  %v1882_v31 = vadd.f32 1.0, %v8295_v8  ;;  %1294 = vst.msk [vmem:[#allocation3 + $0x54] sm:$0xff] %vm512_vm3, %v1292_v28  ;;  %v1404_v39 = vld [vmem:[#allocation2 + $0x10] ss:$2 sm:$0x3f]  ;;  %v1848_v28 = vadd.f32 %v9041_v56, %v9180_v0 }
 0x14d   : > { %v8299_v18 = vpop.eup %8298  ;;  %8310 = vpow2.f32 %v1624_v63  ;;  %1647 = vst.msk [vmem:[#allocation2 + $0x8] sm:$0xff] %vm512_vm3, %v8297_v16  ;;  %v1406_v62 = vld [vmem:[#allocation2 + $0x11] ss:$2 sm:$0x3f]  ;;  %v1616_v45 = vsub.f32 0.0, %v1605_v54  ;;  %v1739_v61 = vsub.f32 0.0, %v1725_v44 }
 0x14e   : > { %v8301_v29 = vpop.eup %8300  ;;  %v1503_v21 = vmul.f32 1.442695, %v1491_v17  ;;  %8312 = vrcp.f32 %v1758_v12  ;;  %1295 = vst.msk [vmem:[#allocation3 + $0x5c] sm:$0x3f] %vm544_vm5, %v1293_v22  ;;  %v1634_v24 = vadd.f32 1.0, %v8299_v18  ;;  %v1408_v51 = vadd.f32 %v1406_v62, %v1404_v39 }
 0x14f   : > { %v8303_v30 = vpop.eup %8302  ;;  %v1511_v32 = vadd.f32 1.0, %v8301_v29  ;;  %v1409_v48 = vld [vmem:[#allocation2 + $0x1c] ss:$2 sm:$0xff]  ;;  %v1413_v26 = vld [vmem:[#allocation2 + $0x1d] ss:$2 sm:$0xff]  ;;  %v1740_v4 = vsub.f32 0.0, %v1728_v36  ;;  %v1850_v62 = vadd.f32 %v9041_v56, %v9205_v47 }
 0x150   : > { %v8305_v37 = vpop.eup %8304  ;;  %8314 = vpow2.f32 %v1503_v21  ;;  %v1729_v38 = vpop.f32.mrf.mxu2  ;;  %1523 = vst.msk [vmem:[#allocation2 + $0x10] sm:$0xff] %vm512_vm3, %v8303_v30  ;;  %v1411_v55 = vadd.f32 %v1409_v48, %v1407_v40  ;;  %v1628_v3 = vmul.f32 1.442695, %v1616_v45  ;;  %v1749_v30 = vmul.f32 1.442695, %v1739_v61 }
 0x151   : > { %8316 = vrcp.f32 %v1511_v32  ;;  %v1482_v1 = vpop.f32.mrf.mxu0  ;;  %v8307_v53 = vpop.eup %8306  ;;  %v1883_v6 = vadd.f32 1.0, %v8305_v37  ;;  %v1410_v50 = vld [vmem:[#allocation2 + $0x2c] ss:$2 sm:$0x3f]  ;;  %v1730_v13 = vadd.f32 %v9041_v56, %v1729_v38  ;;  %v1751_v39 = vmul.f32 1.442695, %v1740_v4 }
 0x152   : > { %v1607_v2 = vpop.f32.mrf.mxu1  ;;  %v1483_v46 = vadd.f32 %v9041_v56, %v1482_v1  ;;  %v8309_v27 = vpop.eup %8308  ;;  %8318 = vrcp.f32 %v1882_v31  ;;  %1524 = vst.msk [vmem:[#allocation2 + $0x18] sm:$0xff] %vm512_vm3, %v8307_v53  ;;  %v1412_v8 = vadd.f32 %v1410_v50, %v1408_v51  ;;  %v1414_v12 = vld [vmem:[#allocation2 + $0x2d] ss:$2 sm:$0x3f]  ;;  %v1415_v17 = vadd.f32 %v1413_v26, %v1411_v55  ;;  %v9285_v51 = vld [vmem:[%s11047_s2] ss:$0 sm:$0xff] }
 0x153   : > { %v1608_v43 = vadd.f32 %v9041_v56, %v1607_v2  ;;  %v8311_v59 = vpop.eup %8310  ;;  %8320 = vpow2.f32 %v1747_v33  ;;  %7399 = vmatmul.msk.bf16.gmra.mxu0 %vm512_vm3, %v9177_v57  ;;  %7412 = vmatmul.msk.bf16.gmra.mxu1 %vm512_vm3, %v9177_v57  ;;  %v9251_v9 = vpop.f32.mrf.mxu3  ;;  %v2181_v31 = vld [vmem:[#allocation3 + $0x50] sm:$0xff]  ;;  %v1863_v36 = vsub.f32 0.0, %v1848_v28  ;;  %v1853_v26 = vadd.f32 %v9285_v51, %v9227_v15 }
 0x154   : > { %v1492_v49 = vsub.f32 0.0, %v1483_v46  ;;  %v8313_v52 = vpop.eup %8312  ;;  %8322 = vrcp.f32 %v1634_v24  ;;  %v9256_v10 = vld [vmem:[#allocation2] ss:$2 sm:$0xff]  ;;  %v9258_v18 = vld [vmem:[#allocation2 + $0x1] ss:$2 sm:$0xff]  ;;  %v1416_v32 = vadd.f32 %v1414_v12, %v1412_v8  ;;  %v1417_v33 = vmul.f32 0.25, %v1415_v17 }
 0x155   : > { %v1617_v60 = vsub.f32 0.0, %v1608_v43  ;;  %8324 = vpow2.f32 %v1626_v14  ;;  %v2182_v11 = vld [vmem:[#allocation3 + $0x58] sm:$0xff]  ;;  %1771 = vst.msk [vmem:[#allocation2] sm:$0xff] %vm512_vm3, %v8309_v27  ;;  %v1635_v38 = vadd.f32 1.0, %v8311_v59  ;;  %v1741_v24 = vsub.f32 0.0, %v1730_v13 }
 0x156   : > { %v8315_v63 = vpop.eup %8314  ;;  %v1505_v41 = vmul.f32 1.442695, %v1492_v49  ;;  %8326 = vrcp.f32 %v1883_v6  ;;  %1772 = vst.msk [vmem:[#allocation2 + $0x8] sm:$0xff] %vm512_vm3, %v8313_v52  ;;  %v9267_v40 = vpack.c.bf16 %v2182_v11, %v2181_v31  ;;  %v1418_v14 = vmul.f32 0.25, %v1416_v32 }
 0x157   : > { %v8317_v5 = vpop.eup %8316  ;;  %v1512_v19 = vadd.f32 1.0, %v8315_v63  ;;  %v1630_v34 = vmul.f32 1.442695, %v1617_v60  ;;  %1419 = vst.msk [vmem:[#allocation3 + $0x62] sm:$0xff] %vm512_vm3, %v1417_v33  ;;  %v1753_v47 = vmul.f32 1.442695, %v1741_v24  ;;  %v1532_v28 = vadd.f32 %v9223_v42, %v9221_v7 }
 0x158   : > { %8328 = vpow2.f32 %v1505_v41  ;;  %v1732_v16 = vpop.f32.mrf.mxu2  ;;  %1525 = vst.msk [vmem:[#allocation2 + $0x20] sm:$0xff] %vm512_vm3, %v8317_v5  ;;  %v9260_v25 = vpop.eup %8318  ;;  %v1864_v60 = vsub.f32 0.0, %v1850_v62  ;;  %v1872_v61 = vmul.f32 1.442695, %v1863_v36  ;;  %v1865_v8 = vsub.f32 0.0, %v1853_v26 }
 0x159   : > { %8330 = vrcp.f32 %v1512_v19  ;;  %v1484_v29 = vpop.f32.mrf.mxu0  ;;  %v1733_v54 = vadd.f32 %v9041_v56, %v1732_v16  ;;  %v8321_v22 = vpop.eup %8320  ;;  %v9270_v1 = vld [vmem:[#allocation2 + $0x10] ss:$2 sm:$0x3f]  ;;  %v9278_v45 = vld [vmem:[#allocation2 + $0x11] ss:$2 sm:$0x3f] }
 0x15a   : > { %v1609_v21 = vpop.f32.mrf.mxu1  ;;  %8332 = vpow2.f32 %v1628_v3  ;;  %v8323_v37 = vpop.eup %8322  ;;  %v1759_v43 = vadd.f32 1.0, %v8321_v22  ;;  %1420 = vst.msk [vmem:[#allocation3 + $0x6a] sm:$0x3f] %vm544_vm5, %v1418_v14  ;;  %v1855_v3 = vadd.f32 %v9285_v51, %v9251_v9  ;;  %v1874_v13 = vmul.f32 1.442695, %v1864_v60 }
 0x15b   : > { %8334 = vpow2.f32 %v1630_v34  ;;  %v8325_v0 = vpop.eup %8324  ;;  %v1857_v44 = vpop.f32.mrf.mxu3  ;;  %v1742_v53 = vsub.f32 0.0, %v1733_v54  ;;  %1648 = vst.msk [vmem:[#allocation2 + $0x10] sm:$0xff] %vm512_vm3, %v8323_v37  ;;  %v1876_v32 = vmul.f32 1.442695, %v1865_v8 }
 0x15c   : > { %v8327_v2 = vpop.eup %8326  ;;  %7367 = vmatmul.msk.bf16.gmra.mxu2 %vm512_vm3, %v9267_v40  ;;  %7384 = vmatmul.msk.bf16.gmra.mxu3 %vm512_vm3, %v9267_v40  ;;  %8336 = vpow2.f32 %v1749_v30  ;;  %v1636_v27 = vadd.f32 1.0, %v8325_v0  ;;  %v1858_v5 = vadd.f32 %v9285_v51, %v1857_v44 }
 0x15d   : > { %8338 = vrcp.f32 %v1635_v38  ;;  %v1755_v50 = vmul.f32 1.442695, %v1742_v53  ;;  %v9295_v41 = vld [vmem:[#allocation2] ss:$2 sm:$0xff]  ;;  %v9297_v15 = vld [vmem:[#allocation2 + $0x1] ss:$2 sm:$0xff] }
 0x15e   : > { %v8329_v46 = vpop.eup %8328  ;;  %8340 = vpow2.f32 %v1751_v39  ;;  %1896 = vst.msk [vmem:[#allocation2] sm:$0xff] %vm512_vm3, %v9260_v25  ;;  %v1866_v25 = vsub.f32 0.0, %v1855_v3  ;;  %v1867_v54 = vsub.f32 0.0, %v1858_v5  ;;  %v2183_v14 = vld [vmem:[#allocation3 + $0x60] sm:$0xff] }
 0x15f   : > { %v8331_v48 = vpop.eup %8330  ;;  %v1513_v6 = vadd.f32 1.0, %v8329_v46  ;;  %1897 = vst.msk [vmem:[#allocation2 + $0x8] sm:$0xff] %vm512_vm3, %v8327_v2 }
 0x160   : > { %v8333_v56 = vpop.eup %8332  ;;  %1526 = vst.msk [vmem:[#allocation2 + $0x28] sm:$0xff] %vm512_vm3, %v8331_v48  ;;  %v1734_v59 = vpop.f32.mrf.mxu2  ;;  %v1878_v42 = vmul.f32 1.442695, %v1866_v25  ;;  %v1880_v46 = vmul.f32 1.442695, %v1867_v54 }
 0x161   : > { %v8335_v49 = vpop.eup %8334  ;;  %8342 = vrcp.f32 %v1513_v6  ;;  %v1967_v55 = vpop.f32.mrf.mxu0  ;;  %v1637_v4 = vadd.f32 1.0, %v8333_v56  ;;  %v2184_v33 = vld [vmem:[#allocation3 + $0x68] sm:$0xff] }
 0x162   : > { %v9290_v52 = vpop.f32.mrf.mxu1  ;;  %8344 = vrcp.f32 %v1759_v43  ;;  %v1968_v63 = vadd.f32 %v9285_v51, %v1967_v55  ;;  %v8337_v19 = vpop.eup %8336  ;;  %v1638_v34 = vadd.f32 1.0, %v8335_v49  ;;  %v9313_v53 = vpack.c.bf16 %v2184_v33, %v2183_v14 }
 0x163   : > { %8346 = vrcp.f32 %v1636_v27  ;;  %7400 = vmatmul.msk.bf16.gmra.mxu0 %vm512_vm3, %v9217_v23  ;;  %7413 = vmatmul.msk.bf16.gmra.mxu1 %vm512_vm3, %v9217_v23  ;;  %v1859_v9 = vpop.f32.mrf.mxu3  ;;  %v8339_v11 = vpop.eup %8338  ;;  %v1760_v21 = vadd.f32 1.0, %v8337_v19  ;;  %v2093_v56 = vadd.f32 %v9285_v51, %v9290_v52  ;;  %v1533_v49 = vadd.f32 %v9278_v45, %v9270_v1 }
 0x164   : > { %8348 = vpow2.f32 %v1753_v47  ;;  %v1986_v12 = vsub.f32 0.0, %v1968_v63  ;;  %v8341_v16 = vpop.eup %8340 }
 0x165   : > { %8350 = vpow2.f32 %v1755_v50  ;;  %v1761_v39 = vadd.f32 1.0, %v8341_v16  ;;  %v2111_v19 = vsub.f32 0.0, %v2093_v56 }
 0x166   : > { %8352 = vpow2.f32 %v1872_v61  ;;  %v1993_v17 = vmul.f32 1.442695, %v1986_v12 }
 0x167   : > { %v8343_v29 = vpop.eup %8342  ;;  %8354 = vrcp.f32 %v1637_v4  ;;  %v1534_v22 = vld [vmem:[#allocation2 + $0x1c] ss:$2 sm:$0xff]  ;;  %v1538_v30 = vld [vmem:[#allocation2 + $0x1d] ss:$2 sm:$0xff]  ;;  %v2118_v54 = vmul.f32 1.442695, %v2111_v19 }
 0x168   : > { %v8345_v31 = vpop.eup %8344  ;;  %8356 = vrcp.f32 %v1638_v34  ;;  %1527 = vst.msk [vmem:[#allocation2 + $0x30] sm:$0xff] %vm512_vm3, %v8343_v29  ;;  %v1536_v37 = vadd.f32 %v1534_v22, %v1532_v28 }
 0x169   : > { %v8347_v38 = vpop.eup %8346  ;;  %8358 = vpow2.f32 %v1993_v17  ;;  %v1969_v0 = vpop.f32.mrf.mxu0  ;;  %1649 = vst.msk [vmem:[#allocation2 + $0x18] sm:$0xff] %vm512_vm3, %v8339_v11 }
 0x16a   : > { %v2094_v24 = vpop.f32.mrf.mxu1  ;;  %v8349_v7 = vpop.eup %8348  ;;  %8360 = vpow2.f32 %v1874_v13  ;;  %v1970_v44 = vadd.f32 %v9285_v51, %v1969_v0  ;;  %v1540_v2 = vadd.f32 %v1538_v30, %v1536_v37  ;;  %1650 = vst.msk [vmem:[#allocation2 + $0x20] sm:$0xff] %vm512_vm3, %v8347_v38 }
 0x16b   : > { %v8351_v62 = vpop.eup %8350  ;;  %8362 = vrcp.f32 %v1760_v21  ;;  %v1762_v6 = vadd.f32 1.0, %v8349_v7  ;;  %v2095_v12 = vadd.f32 %v9285_v51, %v2094_v24 }
 0x16c   : > { %v8353_v43 = vpop.eup %8352  ;;  %8364 = vpow2.f32 %v1876_v32  ;;  %v1987_v36 = vsub.f32 0.0, %v1970_v44  ;;  %v1542_v48 = vmul.f32 0.25, %v1540_v2  ;;  %7368 = vmatmul.msk.bf16.gmra.mxu2 %vm512_vm3, %v9313_v53  ;;  %7385 = vmatmul.msk.bf16.gmra.mxu3 %vm512_vm3, %v9313_v53  ;;  %v1763_v26 = vadd.f32 1.0, %v8351_v62 }
 0x16d   : > { %v8355_v27 = vpop.eup %8354  ;;  %8366 = vrcp.f32 %v1761_v39  ;;  %v1884_v5 = vadd.f32 1.0, %v8353_v43  ;;  %v2112_v30 = vsub.f32 0.0, %v2095_v12  ;;  %v1782_v12 = vadd.f32 %v9297_v15, %v9295_v41 }
 0x16e   : > { %v8357_v47 = vpop.eup %8356  ;;  %8368 = vpow2.f32 %v1878_v42  ;;  %v1995_v59 = vmul.f32 1.442695, %v1987_v36  ;;  %1544 = vst.msk [vmem:[#allocation3 + $0x70] sm:$0xff] %vm512_vm3, %v1542_v48 }
 0x16f   : > { %v8359_v60 = vpop.eup %8358  ;;  %8370 = vpow2.f32 %v1880_v46  ;;  %v1535_v50 = vld [vmem:[#allocation2 + $0x2c] ss:$2 sm:$0x3f]  ;;  %v1539_v55 = vld [vmem:[#allocation2 + $0x2d] ss:$2 sm:$0x3f] }
 0x170   : > { %v8361_v52 = vpop.eup %8360  ;;  %v2007_v61 = vadd.f32 1.0, %v8359_v60  ;;  %8372 = vpow2.f32 %v1995_v59  ;;  %v1537_v63 = vadd.f32 %v1535_v50, %v1533_v49  ;;  %1651 = vst.msk [vmem:[#allocation2 + $0x28] sm:$0xff] %vm512_vm3, %v8355_v27  ;;  %v1654_v3 = vld [vmem:[#allocation2 + $0x10] ss:$2 sm:$0x3f] }
 0x171   : > { %v8363_v4 = vpop.eup %8362  ;;  %8374 = vrcp.f32 %v1762_v6  ;;  %v1972_v34 = vpop.f32.mrf.mxu0  ;;  %1652 = vst.msk [vmem:[#allocation2 + $0x30] sm:$0xff] %vm512_vm3, %v8357_v47  ;;  %v1656_v1 = vld [vmem:[#allocation2 + $0x11] ss:$2 sm:$0x3f]  ;;  %v1885_v16 = vadd.f32 1.0, %v8361_v52 }
 0x172   : > { %v2097_v8 = vpop.f32.mrf.mxu1  ;;  %v8365_v45 = vpop.eup %8364  ;;  %8376 = vrcp.f32 %v1763_v26  ;;  %v1973_v9 = vadd.f32 %v9285_v51, %v1972_v34  ;;  %v1541_v11 = vadd.f32 %v1539_v55, %v1537_v63  ;;  %1773 = vst.msk [vmem:[#allocation2 + $0x10] sm:$0xff] %vm512_vm3, %v8345_v31  ;;  %v1657_v31 = vadd.f32 %v9258_v18, %v9256_v10  ;;  %v9344_v47 = vld [vmem:[#allocation2] ss:$2 sm:$0xff]  ;;  %v9346_v26 = vld [vmem:[#allocation2 + $0x1] ss:$2 sm:$0xff] }
 0x173   : > { %v8367_v13 = vpop.eup %8366  ;;  %8378 = vrcp.f32 %v2007_v61  ;;  %7401 = vmatmul.msk.bf16.gmra.mxu0 %vm512_vm3, %v9267_v40  ;;  %7414 = vmatmul.msk.bf16.gmra.mxu1 %vm512_vm3, %v9267_v40  ;;  %v1886_v21 = vadd.f32 1.0, %v8365_v45  ;;  %v2098_v38 = vadd.f32 %v9285_v51, %v2097_v8  ;;  %v1658_v24 = vadd.f32 %v1656_v1, %v1654_v3 }
 0x174   : > { %v8369_v17 = vpop.eup %8368  ;;  %v1988_v25 = vsub.f32 0.0, %v1973_v9  ;;  %v1543_v28 = vmul.f32 0.25, %v1541_v11  ;;  %8380 = vrcp.f32 %v1884_v5  ;;  %v2120_v36 = vmul.f32 1.442695, %v2112_v30 }
 0x175   : > { %v8371_v29 = vpop.eup %8370  ;;  %8382 = vrcp.f32 %v1885_v16  ;;  %v1887_v37 = vadd.f32 1.0, %v8369_v17  ;;  %v2113_v6 = vsub.f32 0.0, %v2098_v38  ;;  %v2185_v15 = vld [vmem:[#allocation3 + $0x70] sm:$0xff] }
 0x176   : > { %v8373_v22 = vpop.eup %8372  ;;  %v1997_v32 = vmul.f32 1.442695, %v1988_v25  ;;  %1545 = vst.msk [vmem:[#allocation3 + $0x78] sm:$0x3f] %vm544_vm5, %v1543_v28  ;;  %v1888_v42 = vadd.f32 1.0, %v8371_v29 }
 0x177   : > { %v8375_v33 = vpop.eup %8374  ;;  %v1659_v39 = vld [vmem:[#allocation2 + $0x1c] ss:$2 sm:$0xff]  ;;  %v1663_v0 = vld [vmem:[#allocation2 + $0x1d] ss:$2 sm:$0xff]  ;;  %v2008_v62 = vadd.f32 1.0, %v8373_v22 }
 0x178   : > { %v8377_v7 = vpop.eup %8376  ;;  %8384 = vpow2.f32 %v1997_v32  ;;  %v1661_v14 = vadd.f32 %v1659_v39, %v1657_v31  ;;  %1775 = vst.msk [vmem:[#allocation2 + $0x20] sm:$0xff] %vm512_vm3, %v8367_v13  ;;  %v1660_v44 = vld [vmem:[#allocation2 + $0x2c] ss:$2 sm:$0x3f]  ;;  %v2122_v3 = vmul.f32 1.442695, %v2113_v6 }
 0x179   : > { %v8379_v2 = vpop.eup %8378  ;;  %8386 = vrcp.f32 %v1886_v21  ;;  %v1974_v46 = vpop.f32.mrf.mxu0  ;;  %v1662_v18 = vadd.f32 %v1660_v44, %v1658_v24  ;;  %v1664_v43 = vld [vmem:[#allocation2 + $0x2d] ss:$2 sm:$0x3f]  ;;  %1774 = vst.msk [vmem:[#allocation2 + $0x18] sm:$0xff] %vm512_vm3, %v8363_v4 }
 0x17a   : > { %v9338_v10 = vpop.f32.mrf.mxu1  ;;  %8388 = vpow2.f32 %v2118_v54  ;;  %v1975_v48 = vadd.f32 %v9285_v51, %v1974_v46  ;;  %v1665_v27 = vadd.f32 %v1663_v0, %v1661_v14  ;;  %1776 = vst.msk [vmem:[#allocation2 + $0x28] sm:$0xff] %vm512_vm3, %v8375_v33  ;;  %v8381_v59 = vpop.eup %8380 }
 0x17b   : > { %8390 = vrcp.f32 %v1887_v37  ;;  %v1666_v56 = vadd.f32 %v1664_v43, %v1662_v18  ;;  %1777 = vst.msk [vmem:[#allocation2 + $0x30] sm:$0xff] %vm512_vm3, %v8377_v7  ;;  %v8383_v50 = vpop.eup %8382  ;;  %v2100_v14 = vadd.f32 %v9285_v51, %v9338_v10  ;;  %v1907_v10 = vadd.f32 %v9346_v26, %v9344_v47 }
 0x17c   : > { %8392 = vrcp.f32 %v1888_v42  ;;  %v1989_v49 = vsub.f32 0.0, %v1975_v48  ;;  %v1667_v60 = vmul.f32 0.25, %v1665_v27  ;;  %2021 = vst.msk [vmem:[#allocation2] sm:$0xff] %vm512_vm3, %v8379_v2 }
 0x17d   : > { %8394 = vrcp.f32 %v2008_v62  ;;  %v1668_v55 = vmul.f32 0.25, %v1666_v56  ;;  %v2114_v6 = vsub.f32 0.0, %v2100_v14 }
 0x17e   : > { %v8385_v52 = vpop.eup %8384  ;;  %8396 = vpow2.f32 %v2120_v36  ;;  %v1999_v61 = vmul.f32 1.442695, %v1989_v49  ;;  %1669 = vst.msk [vmem:[#allocation3 + $0x7e] sm:$0xff] %vm512_vm3, %v1667_v60 }
 0x17f   : > { %v8387_v63 = vpop.eup %8386  ;;  %1670 = vst.msk [vmem:[#allocation3 + $0x86] sm:$0x3f] %vm544_vm5, %v1668_v55  ;;  %v2009_v8 = vadd.f32 1.0, %v8385_v52 }
 0x180   : > { %v8389_v4 = vpop.eup %8388  ;;  %8398 = vpow2.f32 %v1999_v61  ;;  %v1779_v5 = vld [vmem:[#allocation2 + $0x10] ss:$2 sm:$0x3f]  ;;  %v1781_v19 = vld [vmem:[#allocation2 + $0x11] ss:$2 sm:$0x3f] }
 0x181   : > { %v8391_v34 = vpop.eup %8390  ;;  %v1977_v1 = vpop.f32.mrf.mxu0  ;;  %v1784_v9 = vld [vmem:[#allocation2 + $0x1c] ss:$2 sm:$0xff]  ;;  %v1788_v11 = vld [vmem:[#allocation2 + $0x1d] ss:$2 sm:$0xff]  ;;  %v1783_v13 = vadd.f32 %v1781_v19, %v1779_v5  ;;  %1898 = vst.msk [vmem:[#allocation2 + $0x10] sm:$0xff] %vm512_vm3, %v8381_v59  ;;  %8400 = vpow2.f32 %v2122_v3  ;;  %v2132_v37 = vadd.f32 1.0, %v8389_v4 }
 0x182   : > { %v2102_v45 = vpop.f32.mrf.mxu1  ;;  %v8393_v16 = vpop.eup %8392  ;;  %v1978_v17 = vadd.f32 %v9285_v51, %v1977_v1  ;;  %1900 = vst.msk [vmem:[#allocation2 + $0x20] sm:$0xff] %vm512_vm3, %v8387_v63  ;;  %v1785_v25 = vld [vmem:[#allocation2 + $0x2c] ss:$2 sm:$0x3f]  ;;  %v1786_v29 = vadd.f32 %v1784_v9, %v1782_v12  ;;  %8402 = vrcp.f32 %v2009_v8  ;;  %v2124_v12 = vmul.f32 1.442695, %v2114_v6 }
 0x183   : > { %v8395_v28 = vpop.eup %8394  ;;  %v1787_v21 = vadd.f32 %v1785_v25, %v1783_v13  ;;  %v1789_v54 = vld [vmem:[#allocation2 + $0x2d] ss:$2 sm:$0x3f]  ;;  %1899 = vst.msk [vmem:[#allocation2 + $0x18] sm:$0xff] %vm512_vm3, %v8383_v50  ;;  %7402 = vmatmul.msk.bf16.gmra.mxu0 %vm512_vm3, %v9313_v53  ;;  %7415 = vmatmul.msk.bf16.gmra.mxu1 %vm512_vm3, %v9313_v53  ;;  %v2103_v2 = vadd.f32 %v9285_v51, %v2102_v45 }
 0x184   : > { %v8397_v22 = vpop.eup %8396  ;;  %v1990_v41 = vsub.f32 0.0, %v1978_v17  ;;  %1901 = vst.msk [vmem:[#allocation2 + $0x28] sm:$0xff] %vm512_vm3, %v8391_v34  ;;  %v1790_v32 = vadd.f32 %v1788_v11, %v1786_v29 }
 0x185   : > { %v2186_v30 = vld [vmem:[#allocation3 + $0x78] sm:$0xff]  ;;  %v1791_v31 = vadd.f32 %v1789_v54, %v1787_v21  ;;  %1902 = vst.msk [vmem:[#allocation2 + $0x30] sm:$0xff] %vm512_vm3, %v8393_v16  ;;  %v2133_v0 = vadd.f32 1.0, %v8397_v22  ;;  %v2115_v60 = vsub.f32 0.0, %v2103_v2 }
 0x186   : > { %v8399_v33 = vpop.eup %8398  ;;  %v2001_v38 = vmul.f32 1.442695, %v1990_v41  ;;  %v9363_v39 = vpack.c.bf16 %v2186_v30, %v2185_v15  ;;  %2022 = vst.msk [vmem:[#allocation2 + $0x8] sm:$0xff] %vm512_vm3, %v8395_v28  ;;  %v1792_v7 = vmul.f32 0.25, %v1790_v32 }
 0x187   : > { %v2010_v24 = vadd.f32 1.0, %v8399_v33  ;;  %v1793_v42 = vmul.f32 0.25, %v1791_v31  ;;  %v8401_v44 = vpop.eup %8400  ;;  %v2126_v16 = vmul.f32 1.442695, %v2115_v60  ;;  %v2187_v31 = vld [vmem:[#allocation3 + $0x80] sm:$0xff] }
 0x188   : > { %8404 = vpow2.f32 %v2001_v38  ;;  %7369 = vmatmul.msk.bf16.gmra.mxu2 %vm512_vm3, %v9363_v39  ;;  %7386 = vmatmul.msk.bf16.gmra.mxu3 %vm512_vm3, %v9363_v39  ;;  %1794 = vst.msk [vmem:[#allocation3 + $0x8c] sm:$0xff] %vm512_vm3, %v1792_v7  ;;  %v8403_v36 = vpop.eup %8402  ;;  %v2134_v27 = vadd.f32 1.0, %v8401_v44 }
 0x189   : > { %8406 = vrcp.f32 %v2010_v24  ;;  %v1979_v62 = vpop.f32.mrf.mxu0  ;;  %1795 = vst.msk [vmem:[#allocation3 + $0x94] sm:$0x3f] %vm544_vm5, %v1793_v42 }
 0x18a   : > { %v2104_v46 = vpop.f32.mrf.mxu1  ;;  %8408 = vrcp.f32 %v2132_v37  ;;  %v1980_v18 = vadd.f32 %v9285_v51, %v1979_v62  ;;  %v1904_v43 = vld [vmem:[#allocation2 + $0x10] ss:$2 sm:$0x3f]  ;;  %v1906_v49 = vld [vmem:[#allocation2 + $0x11] ss:$2 sm:$0x3f] }
 0x18b   : > { %8410 = vrcp.f32 %v2133_v0  ;;  %v1909_v48 = vld [vmem:[#allocation2 + $0x1c] ss:$2 sm:$0xff]  ;;  %v1913_v52 = vld [vmem:[#allocation2 + $0x1d] ss:$2 sm:$0xff]  ;;  %v1908_v61 = vadd.f32 %v1906_v49, %v1904_v43  ;;  %2023 = vst.msk [vmem:[#allocation2 + $0x10] sm:$0xff] %vm512_vm3, %v8403_v36  ;;  %v2105_v9 = vadd.f32 %v9285_v51, %v2104_v46 }
 0x18c   : > { %v1991_v56 = vsub.f32 0.0, %v1980_v18  ;;  %v1911_v59 = vadd.f32 %v1909_v48, %v1907_v10  ;;  %v1910_v63 = vld [vmem:[#allocation2 + $0x2c] ss:$2 sm:$0x3f] }
 0x18d   : > { %v9378_v50 = vpop.f32.mrf.mxu2  ;;  %v2355_v55 = vpop.f32.mrf.mxu3  ;;  %v1914_v47 = vld [vmem:[#allocation2 + $0x2d] ss:$2 sm:$0x3f]  ;;  %v1912_v34 = vadd.f32 %v1910_v63, %v1908_v61  ;;  %v9381_v8 = vld [vmem:[#allocation2] ss:$2 sm:$0xff]  ;;  %v2116_v41 = vsub.f32 0.0, %v2105_v9 }
 0x18e   : > { %v8405_v3 = vpop.eup %8404  ;;  %v2003_v4 = vmul.f32 1.442695, %v1991_v56  ;;  %v1915_v5 = vadd.f32 %v1913_v52, %v1911_v59  ;;  %v9383_v1 = vld [vmem:[#allocation2 + $0x1] ss:$2 sm:$0xff]  ;;  %v2415_v37 = vrot.slane %v2355_v55, 1 }
 0x18f   : > { %v8407_v26 = vpop.eup %8406  ;;  %v2011_v19 = vadd.f32 1.0, %v8405_v3  ;;  %v1916_v28 = vadd.f32 %v1914_v47, %v1912_v34  ;;  %v2188_v54 = vld [vmem:[#allocation3 + $0x88] sm:$0xff]  ;;  %v2128_v62 = vmul.f32 1.442695, %v2116_v41 }
 0x190   : > { %v8409_v45 = vpop.eup %8408  ;;  %8412 = vpow2.f32 %v2003_v4  ;;  %v1917_v11 = vmul.f32 0.25, %v1915_v5  ;;  %2024 = vst.msk [vmem:[#allocation2 + $0x18] sm:$0xff] %vm512_vm3, %v8407_v26  ;;  %v9401_v24 = vpack.c.bf16 %v2188_v54, %v2187_v31  ;;  %v2189_v34 = vld [vmem:[#allocation3 + $0x90] sm:$0xff] }
 0x191   : > { %v8411_v13 = vpop.eup %8410  ;;  %8414 = vrcp.f32 %v2011_v19  ;;  %v1982_v17 = vpop.f32.mrf.mxu0  ;;  %2146 = vst.msk [vmem:[#allocation2] sm:$0xff] %vm512_vm3, %v8409_v45  ;;  %v1918_v22 = vmul.f32 0.25, %v1916_v28 }
 0x192   : > { %v2107_v25 = vpop.f32.mrf.mxu1  ;;  %8416 = vrcp.f32 %v2134_v27  ;;  %v1983_v29 = vadd.f32 %v9285_v51, %v1982_v17  ;;  %1919 = vst.msk [vmem:[#allocation3 + $0x9a] sm:$0xff] %vm512_vm3, %v1917_v11  ;;  %v2032_v11 = vadd.f32 %v9383_v1, %v9381_v8 }
 0x193   : > { %v2108_v21 = vadd.f32 %v9285_v51, %v2107_v25  ;;  %2147 = vst.msk [vmem:[#allocation2 + $0x8] sm:$0xff] %vm512_vm3, %v8411_v13  ;;  %8418 = vpow2.f32 %v2124_v12  ;;  %7403 = vmatmul.msk.bf16.gmra.mxu0 %vm512_vm3, %v9363_v39  ;;  %7416 = vmatmul.msk.bf16.gmra.mxu1 %vm512_vm3, %v9363_v39 }
 0x194   : > { %v1992_v15 = vsub.f32 0.0, %v1983_v29  ;;  %8420 = vpow2.f32 %v2126_v16  ;;  %1920 = vst.msk [vmem:[#allocation3 + $0xa2] sm:$0x3f] %vm544_vm5, %v1918_v22 }
 0x195   : > { %v2117_v30 = vsub.f32 0.0, %v2108_v21  ;;  %v9396_v32 = vpop.f32.mrf.mxu2  ;;  %v2357_v51 = vpop.f32.mrf.mxu3 }
 0x196   : > { %v8413_v33 = vpop.eup %8412  ;;  %v2005_v38 = vmul.f32 1.442695, %v1992_v15  ;;  %v9399_v0 = vrot.slane %v2357_v51, 1 }
 0x197   : > { %v8415_v7 = vpop.eup %8414  ;;  %v2012_v42 = vadd.f32 1.0, %v8413_v33  ;;  %v2130_v14 = vmul.f32 1.442695, %v2117_v30  ;;  %v9403_v44 = vld [vmem:[#allocation2 + $0x10] ss:$2 sm:$0x3f] }
 0x198   : > { %v8417_v2 = vpop.eup %8416  ;;  %8422 = vpow2.f32 %v2005_v38  ;;  %v2417_v46 = vsel %vm2414_vm6, %v2415_v37, %v9399_v0  ;;  %7370 = vmatmul.msk.bf16.gmra.mxu2 %vm512_vm3, %v9401_v24  ;;  %7387 = vmatmul.msk.bf16.gmra.mxu3 %vm512_vm3, %v9401_v24  ;;  %2025 = vst.msk [vmem:[#allocation2 + $0x20] sm:$0xff] %vm512_vm3, %v8415_v7  ;;  %v9412_v18 = vld [vmem:[#allocation2 + $0x11] ss:$2 sm:$0x3f]  ;;  %v2421_v54 = vadd.f32 %v9399_v0, %v9396_v32 }
 0x199   : > { %8424 = vrcp.f32 %v2012_v42  ;;  %v9415_v10 = vadd.f32 %v2417_v46, %v9378_v50  ;;  %v1984_v43 = vpop.f32.mrf.mxu0  ;;  %2148 = vst.msk [vmem:[#allocation2 + $0x10] sm:$0xff] %vm512_vm3, %v8417_v2  ;;  %v8419_v48 = vpop.eup %8418  ;;  %v2190_v4 = vld [vmem:[#allocation3 + $0x98] sm:$0xff] }
 0x19a   : > { %v2109_v36 = vpop.f32.mrf.mxu1  ;;  %v8421_v27 = vpop.eup %8420  ;;  %8426 = vpow2.f32 %v2130_v14  ;;  %v2135_v55 = vadd.f32 1.0, %v8419_v48  ;;  %v9426_v9 = vpack.c.bf16 %v2190_v4, %v2189_v34 }
 0x19b   : > { %8428 = vpow2.f32 %v2128_v62  ;;  %v2136_v49 = vadd.f32 1.0, %v8421_v27  ;;  %v2033_v36 = vadd.f32 %v9412_v18, %v9403_v44 }
 0x19d   : > { %v2267_v6 = vpop.f32.mrf.mxu2  ;;  %v9418_v56 = vpop.f32.mrf.mxu3 }
 0x19e   : > { %v8423_v59 = vpop.eup %8422  ;;  %v2424_v45 = vrot.slane %v9418_v56, 1 }
 0x19f   : > { %v8425_v60 = vpop.eup %8424  ;;  %v2013_v52 = vadd.f32 1.0, %v8423_v59 }
 0x1a0   : > { %2026 = vst.msk [vmem:[#allocation2 + $0x28] sm:$0xff] %vm512_vm3, %v8425_v60  ;;  %v8427_v50 = vpop.eup %8426  ;;  %v2425_v27 = vsel %vm2414_vm6, %v9399_v0, %v2424_v45 }
 0x1a1   : > { %8430 = vrcp.f32 %v2013_v52  ;;  %v2522_v61 = vpop.f32.mrf.mxu0  ;;  %v8429_v3 = vpop.eup %8428  ;;  %v2138_v5 = vadd.f32 1.0, %v8427_v50  ;;  %v2430_v44 = vadd.f32 %v2425_v27, %v9396_v32 }
 0x1a2   : > { %v2683_v63 = vpop.f32.mrf.mxu1  ;;  %8432 = vrcp.f32 %v2136_v49  ;;  %v2137_v47 = vadd.f32 1.0, %v8429_v3  ;;  %v2582_v8 = vrot.slane %v2522_v61, 2  ;;  %v2153_v61 = vld [vmem:[#allocation2] ss:$2 sm:$0xff]  ;;  %v2155_v3 = vld [vmem:[#allocation2 + $0x1] ss:$2 sm:$0xff] }
 0x1a3   : > { %8434 = vrcp.f32 %v2135_v55  ;;  %7404 = vmatmul.msk.bf16.gmra.mxu0 %vm512_vm3, %v9401_v24  ;;  %7417 = vmatmul.msk.bf16.gmra.mxu1 %vm512_vm3, %v9401_v24  ;;  %v2742_v15 = vrot.slane %v2683_v63, 3 }
 0x1a4   : > { %8436 = vrcp.f32 %v2138_v5 }
 0x1a5   : > { %v2269_v26 = vpop.f32.mrf.mxu2  ;;  %v2362_v19 = vpop.f32.mrf.mxu3  ;;  %8438 = vrcp.f32 %v2137_v47 }
 0x1a6   : > { %v2426_v12 = vrot.slane %v2362_v19, 1  ;;  %v2191_v19 = vld [vmem:[#allocation3 + $0xa0] sm:$0xff] }
 0x1a7   : > { %v8431_v13 = vpop.eup %8430  ;;  %v2034_v16 = vld [vmem:[#allocation2 + $0x1c] ss:$2 sm:$0xff]  ;;  %v2038_v17 = vld [vmem:[#allocation2 + $0x1d] ss:$2 sm:$0xff] }
 0x1a8   : > { %v8433_v25 = vpop.eup %8432  ;;  %v2427_v28 = vsel %vm2414_vm6, %v2424_v45, %v2426_v12  ;;  %7371 = vmatmul.msk.bf16.gmra.mxu2 %vm512_vm3, %v9426_v9  ;;  %7388 = vmatmul.msk.bf16.gmra.mxu3 %vm512_vm3, %v9426_v9  ;;  %v2036_v29 = vadd.f32 %v2034_v16, %v2032_v11  ;;  %2027 = vst.msk [vmem:[#allocation2 + $0x30] sm:$0xff] %vm512_vm3, %v8431_v13 }
 0x1a9   : > { %v8435_v21 = vpop.eup %8434  ;;  %v9436_v1 = vadd.f32 %v2427_v28, %v2267_v6  ;;  %v2524_v22 = vpop.f32.mrf.mxu0  ;;  %2150 = vst.msk [vmem:[#allocation2 + $0x20] sm:$0xff] %vm512_vm3, %v8433_v25  ;;  %v2157_v13 = vadd.f32 %v2155_v3, %v2153_v61 }
 0x1aa   : > { %v2685_v41 = vpop.f32.mrf.mxu1  ;;  %v2583_v30 = vrot.slane %v2524_v22, 2  ;;  %v2040_v31 = vadd.f32 %v2038_v17, %v2036_v29  ;;  %2149 = vst.msk [vmem:[#allocation2 + $0x18] sm:$0xff] %vm512_vm3, %v8435_v21  ;;  %v8437_v62 = vpop.eup %8436 }
 0x1ab   : > { %v2743_v51 = vrot.slane %v2685_v41, 3  ;;  %v8439_v48 = vpop.eup %8438 }
 0x1ac   : > { %v2584_v33 = vsel %vm2581_vm7, %v2582_v8, %v2583_v30  ;;  %v2588_v37 = vadd.f32 %v2583_v30, %v2421_v54  ;;  %v2042_v7 = vmul.f32 0.25, %v2040_v31 }
 0x1ad   : > { %v2744_v38 = vsel %vm443_vm1, %v2742_v15, %v2743_v51  ;;  %v2587_v42 = vadd.f32 %v2584_v33, %v9415_v10  ;;  %v2272_v14 = vpop.f32.mrf.mxu2  ;;  %v2365_v2 = vpop.f32.mrf.mxu3 }
 0x1ae   : > { %v9445_v46 = vadd.f32 %v2743_v51, %v2588_v37  ;;  %v2433_v43 = vrot.slane %v2365_v2, 1  ;;  %2044 = vst.msk [vmem:[#allocation3 + $0xa8] sm:$0xff] %vm512_vm3, %v2042_v7 }
 0x1af   : > { %v9452_v6 = vadd.f32 %v2744_v38, %v2587_v42  ;;  %v2035_v56 = vld [vmem:[#allocation2 + $0x2c] ss:$2 sm:$0x3f]  ;;  %v2039_v59 = vld [vmem:[#allocation2 + $0x2d] ss:$2 sm:$0x3f] }
 0x1b0   : > { %v2434_v10 = vsel %vm2414_vm6, %v2426_v12, %v2433_v43  ;;  %v9455_v49 = vadd.f32 %v2433_v43, %v2272_v14  ;;  %v2037_v60 = vadd.f32 %v2035_v56, %v2033_v36  ;;  %2151 = vst.msk [vmem:[#allocation2 + $0x28] sm:$0xff] %vm512_vm3, %v8439_v48 }
 0x1b1   : > { %v2437_v55 = vadd.f32 %v2434_v10, %v2269_v26  ;;  %v2527_v52 = vpop.f32.mrf.mxu0  ;;  %2152 = vst.msk [vmem:[#allocation2 + $0x30] sm:$0xff] %vm512_vm3, %v8437_v62  ;;  %v2154_v63 = vld [vmem:[#allocation2 + $0x10] ss:$2 sm:$0x3f] }
 0x1b2   : > { %v2688_v50 = vpop.f32.mrf.mxu1  ;;  %v2591_v18 = vrot.slane %v2527_v52, 2  ;;  %v2041_v0 = vadd.f32 %v2039_v59, %v2037_v60  ;;  %v2156_v26 = vld [vmem:[#allocation2 + $0x11] ss:$2 sm:$0x3f] }
 0x1b3   : > { %v2751_v5 = vrot.slane %v2688_v50, 3  ;;  %7405 = vmatmul.msk.bf16.gmra.mxu0 %vm512_vm3, %v9426_v9  ;;  %7418 = vmatmul.msk.bf16.gmra.mxu1 %vm512_vm3, %v9426_v9  ;;  %v2158_v16 = vadd.f32 %v2156_v26, %v2154_v63  ;;  %v7437_v63 = vld [vmem:[%s11048_s3 + $0xc] sm:$0x8] }
 0x1b4   : > { %v2596_v4 = vadd.f32 %v2591_v18, %v2430_v44  ;;  %v2043_v47 = vmul.f32 0.25, %v2041_v0 }
 0x1b5   : > { %v2192_v34 = vld [vmem:[#allocation3 + $0xa8] sm:$0xff]  ;;  %v2274_v32 = vpop.f32.mrf.mxu2  ;;  %v2367_v12 = vpop.f32.mrf.mxu3 }
 0x1b6   : > { %v9464_v45 = vadd.f32 %v2751_v5, %v2596_v4  ;;  %v9466_v11 = vpack.c.bf16 %v2192_v34, %v2191_v19  ;;  %2045 = vst.msk [vmem:[#allocation3 + $0xb0] sm:$0x3f] %vm544_vm5, %v2043_v47  ;;  %v2441_v62 = vrot.slane %v2367_v12, 1 }
 0x1b7   : > { %v2159_v17 = vld [vmem:[#allocation2 + $0x1c] ss:$2 sm:$0xff]  ;;  %v2163_v54 = vld [vmem:[#allocation2 + $0x1d] ss:$2 sm:$0xff] }
 0x1b8   : > { %7372 = vmatmul.msk.bf16.gmra.mxu2 %vm512_vm3, %v9466_v11  ;;  %7389 = vmatmul.msk.bf16.gmra.mxu3 %vm512_vm3, %v9466_v11  ;;  %v2160_v25 = vld [vmem:[#allocation2 + $0x2c] ss:$2 sm:$0x3f]  ;;  %v2161_v28 = vadd.f32 %v2159_v17, %v2157_v13  ;;  %v2164_v15 = vld [vmem:[#allocation2 + $0x2d] ss:$2 sm:$0x3f] }
 0x1b9   : > { %v2529_v29 = vpop.f32.mrf.mxu0  ;;  %v2162_v8 = vadd.f32 %v2160_v25, %v2158_v16  ;;  %v3408_v13 = vld [vmem:[%s11048_s3 + $0x18] sm:$0x7]  ;;  %v7454_v25 = vld [vmem:[%s11048_s3 + $0x10] sm:$0xc] }
 0x1ba   : > { %v2690_v21 = vpop.f32.mrf.mxu1  ;;  %v2592_v22 = vrot.slane %v2529_v29, 2  ;;  %v2165_v30 = vadd.f32 %v2163_v54, %v2161_v28  ;;  %v3410_v17 = vsel %vm2249_vm4, %v3408_v13, 0  ;;  %v7959_v28 = vld [vmem:[%s11048_s3 + $0x10] sm:$0x10] }
 0x1bb   : > { %v2752_v41 = vrot.slane %v2690_v21, 3  ;;  %v2166_v51 = vadd.f32 %v2164_v15, %v2162_v8  ;;  %3419 = vmatpush.bf16.msrb.mxu2 %v3410_v17  ;;  %v7455_v29 = vor.u32 %v7959_v28, %v7454_v25 }
 0x1bc   : > { %v2593_v31 = vsel %vm2581_vm7, %v2591_v18, %v2592_v22  ;;  %v2167_v37 = vmul.f32 0.25, %v2165_v30 }
 0x1bd   : > { %v2753_v33 = vsel %vm443_vm1, %v2751_v5, %v2752_v41  ;;  %v2597_v38 = vadd.f32 %v2593_v31, %v9436_v1  ;;  %v2168_v7 = vmul.f32 0.25, %v2166_v51  ;;  %v3155_v30 = vrot.slane %v7455_v29, 2  ;;  %v3315_v51 = vld [vmem:[%s11048_s3 + $0x14] sm:$0xe] }
 0x1be   : > { %2169 = vst.msk [vmem:[#allocation3 + $0xb6] sm:$0xff] %vm512_vm3, %v2167_v37 }
 0x1bf   : > { %v9477_v42 = vadd.f32 %v2753_v33, %v2597_v38  ;;  %2170 = vst.msk [vmem:[#allocation3 + $0xbe] sm:$0x3f] %vm544_vm5, %v2168_v7  ;;  %v2277_v14 = vpop.f32.mrf.mxu2  ;;  %v2370_v2 = vpop.f32.mrf.mxu3  ;;  %v3317_v38 = vunpack.c.l.b16 %v3315_v51 }
 0x1c0   : > { %v2442_v43 = vrot.slane %v2370_v2, 1  ;;  %v3157_v2 = vsel %vm2249_vm4, %v3155_v30, 0 }
 0x1c1   : > { %v2532_v36 = vpop.f32.mrf.mxu0  ;;  %3166 = vmatpush.bf16.msrb.mxu0 %v3157_v2 }
 0x1c2   : > { %v2693_v48 = vpop.f32.mrf.mxu1  ;;  %v2599_v27 = vrot.slane %v2532_v36, 2  ;;  %v2443_v59 = vsel %vm2414_vm6, %v2441_v62, %v2442_v43  ;;  %v2447_v10 = vadd.f32 %v2442_v43, %v2277_v14 }
 0x1c3   : > { %v2760_v56 = vrot.slane %v2693_v48, 3  ;;  %v2446_v60 = vadd.f32 %v2443_v59, %v2274_v32  ;;  %7406 = vmatmul.msk.bf16.gmra.mxu0 %vm512_vm3, %v9466_v11  ;;  %7419 = vmatmul.msk.bf16.gmra.mxu1 %vm512_vm3, %v9466_v11  ;;  %v3318_v59 = vpack.c.b16 %v3317_v38, %v3317_v38 }
 0x1c4   : > { %v2600_v1 = vsel %vm2581_vm7, %v2592_v22, %v2599_v27  ;;  %v2604_v52 = vadd.f32 %v2599_v27, %v9455_v49  ;;  %v7958_v49 = vld [vmem:[%s11048_s3 + $0xc] sm:$0x30] }
 0x1c5   : > { %v2761_v50 = vsel %vm443_vm1, %v2752_v41, %v2760_v56  ;;  %v2603_v44 = vadd.f32 %v2600_v1, %v2437_v55  ;;  %v2193_v18 = vld [vmem:[#allocation3 + $0xb0] sm:$0xff]  ;;  %v7438_v55 = vor.u32 %v7958_v49, %v7437_v63 }
 0x1c6   : > { %v2194_v0 = vld [vmem:[#allocation3 + $0xb8] sm:$0xff]  ;;  %v2195_v27 = vld [vmem:[#allocation3 + $0xc0] sm:$0xf] }
 0x1c7   : > { %v9488_v61 = vpack.c.bf16 %v2194_v0, %v2193_v18  ;;  %v9496_v3 = vadd.f32 %v2761_v50, %v2603_v44  ;;  %v2279_v4 = vpop.f32.mrf.mxu2  ;;  %v2372_v5 = vpop.f32.mrf.mxu3  ;;  %v2991_v34 = vrot.slane %v7438_v55, 3  ;;  %v9531_v50 = vpack.c.bf16 %v2195_v27, %v2195_v27 }
 0x1c8   : > { %v2450_v54 = vrot.slane %v2372_v5, 1  ;;  %v3319_v44 = vrot.slane %v3318_v59, 1 }
 0x1c9   : > { %7373 = vmatmul.msk.bf16.gmra.mxu2 %vm512_vm3, %v9488_v61  ;;  %7390 = vmatmul.msk.bf16.gmra.mxu3 %vm512_vm3, %v9488_v61  ;;  %v2534_v47 = vpop.f32.mrf.mxu0  ;;  %v2993_v12 = vsel %vm2249_vm4, %v2991_v34, 0 }
 0x1ca   : > { %v2695_v26 = vpop.f32.mrf.mxu1  ;;  %3002 = vmatpush.bf16.msra.mxu3 %v2993_v12  ;;  %v2607_v31 = vrot.slane %v2534_v47, 2  ;;  %v3321_v49 = vsel %vm2249_vm4, %v3319_v44, 0 }
 0x1cb   : > { %v2762_v19 = vrot.slane %v2695_v26, 3  ;;  %3330 = vmatpush.bf16.msrb.mxu1 %v3321_v49 }
 0x1cd   : > { %v2763_v32 = vsel %vm443_vm1, %v2760_v56, %v2762_v19 }
 0x1ce   : > { %v9507_v16 = vadd.f32 %v2763_v32, %v2604_v52 }
 0x1cf   : > { %v2282_v21 = vpop.f32.mrf.mxu2  ;;  %v2375_v8 = vpop.f32.mrf.mxu3 }
 0x1d0   : > { %v2451_v22 = vrot.slane %v2375_v8, 1 }
 0x1d1   : > { %v2537_v41 = vpop.f32.mrf.mxu0 }
 0x1d2   : > { %v2698_v15 = vpop.f32.mrf.mxu1  ;;  %v2608_v33 = vrot.slane %v2537_v41, 2  ;;  %v2452_v7 = vsel %vm2414_vm6, %v2450_v54, %v2451_v22  ;;  %v2456_v14 = vadd.f32 %v2451_v22, %v2282_v21 }
 0x1d3   : > { %v2769_v37 = vrot.slane %v2698_v15, 3  ;;  %v2455_v62 = vadd.f32 %v2452_v7, %v2279_v4  ;;  %7407 = vmatmul.msk.bf16.gmra.mxu0 %vm512_vm3, %v9488_v61  ;;  %7420 = vmatmul.msk.bf16.gmra.mxu1 %vm512_vm3, %v9488_v61 }
 0x1d4   : > { %v2609_v43 = vsel %vm2581_vm7, %v2607_v31, %v2608_v33  ;;  %v2613_v36 = vadd.f32 %v2608_v33, %v2447_v10 }
 0x1d5   : > { %v2770_v48 = vsel %vm443_vm1, %v2762_v19, %v2769_v37  ;;  %v2612_v56 = vadd.f32 %v2609_v43, %v2446_v60 }
 0x1d6   : > { %v9527_v1 = vadd.f32 %v2769_v37, %v2613_v36 }
 0x1d7   : > { %v9529_v52 = vadd.f32 %v2770_v48, %v2612_v56  ;;  %v2284_v10 = vpop.f32.mrf.mxu2  ;;  %v2377_v18 = vpop.f32.mrf.mxu3 }
 0x1d8   : > { %v2459_v0 = vrot.slane %v2377_v18, 1 }
 0x1d9   : > { %7374 = vmatmul.msk.bf16.gmra.mxu2 %vm512_vm3, %v9531_v50  ;;  %7391 = vmatmul.msk.bf16.gmra.mxu3 %vm512_vm3, %v9531_v50  ;;  %v2539_v60 = vpop.f32.mrf.mxu0 }
 0x1da   : > { %v2700_v63 = vpop.f32.mrf.mxu1  ;;  %v2460_v4 = vsel %vm2414_vm6, %v2451_v22, %v2459_v0  ;;  %v2616_v32 = vrot.slane %v2539_v60, 2 }
 0x1db   : > { %v2465_v5 = vadd.f32 %v2460_v4, %v2282_v21  ;;  %v2777_v12 = vrot.slane %v2700_v63, 3 }
 0x1df   : > { %v2287_v55 = vpop.f32.mrf.mxu2  ;;  %v2380_v47 = vpop.f32.mrf.mxu3 }
 0x1e0   : > { %v2461_v26 = vrot.slane %v2380_v47, 1 }
 0x1e1   : > { %v2542_v19 = vpop.f32.mrf.mxu0 }
 0x1e2   : > { %v2703_v34 = vpop.f32.mrf.mxu1  ;;  %v2617_v13 = vrot.slane %v2542_v19, 2  ;;  %v2462_v25 = vsel %vm2414_vm6, %v2459_v0, %v2461_v26 }
 0x1e3   : > { %v2778_v17 = vrot.slane %v2703_v34, 3  ;;  %v2466_v28 = vadd.f32 %v2462_v25, %v2284_v10  ;;  %7408 = vmatmul.msk.bf16.gmra.mxu0 %vm512_vm3, %v9531_v50  ;;  %7421 = vmatmul.msk.bf16.gmra.mxu1 %vm512_vm3, %v9531_v50 }
 0x1e4   : > { %v2618_v29 = vsel %vm2581_vm7, %v2616_v32, %v2617_v13  ;;  %v2622_v8 = vadd.f32 %v2617_v13, %v2456_v14 }
 0x1e5   : > { %v2779_v54 = vsel %vm443_vm1, %v2777_v12, %v2778_v17  ;;  %v2621_v21 = vadd.f32 %v2618_v29, %v2455_v62 }
 0x1e6   : > { %v9546_v22 = vadd.f32 %v2778_v17, %v2622_v8 }
 0x1e7   : > { %v9548_v41 = vadd.f32 %v2779_v54, %v2621_v21  ;;  %v2289_v15 = vpop.f32.mrf.mxu2  ;;  %v2382_v30 = vpop.f32.mrf.mxu3 }
 0x1e8   : > { %v2468_v51 = vrot.slane %v2382_v30, 1 }
 0x1e9   : > { %7422 = vmatmul.msk.bf16.vlgmr.msra.gmra.mxu2 %vm512_vm3, %v9022_v58  ;;  %7439 = vmatmul.msk.bf16.vlgmr.msra.gmra.mxu3 %vm512_vm3, %v9022_v58  ;;  %v2544_v31 = vpop.f32.mrf.mxu0 }
 0x1ea   : > { %v2705_v33 = vpop.f32.mrf.mxu1  ;;  %v2625_v37 = vrot.slane %v2544_v31, 2  ;;  %v2469_v38 = vsel %vm2414_vm6, %v2461_v26, %v2468_v51  ;;  %v2473_v7 = vadd.f32 %v2468_v51, %v2289_v15 }
 0x1eb   : > { %v2472_v14 = vadd.f32 %v2469_v38, %v2287_v55  ;;  %v2786_v62 = vrot.slane %v2705_v33, 3 }
 0x1ec   : > { %v2630_v2 = vadd.f32 %v2625_v37, %v2465_v5 }
 0x1ee   : > { %v9555_v43 = vadd.f32 %v2786_v62, %v2630_v2 }
 0x1ef   : > { %v2292_v36 = vpop.f32.mrf.mxu2  ;;  %v2385_v48 = vpop.f32.mrf.mxu3 }
 0x1f0   : > { %v2476_v49 = vrot.slane %v2385_v48, 1 }
 0x1f1   : > { %v2547_v27 = vpop.f32.mrf.mxu0 }
 0x1f2   : > { %v2708_v56 = vpop.f32.mrf.mxu1  ;;  %v2626_v59 = vrot.slane %v2547_v27, 2 }
 0x1f3   : > { %v2787_v44 = vrot.slane %v2708_v56, 3  ;;  %7456 = vmatmul.msk.bf16.vlgmr.msrb.gmra.mxu0 %vm512_vm3, %v9022_v58  ;;  %7469 = vmatmul.msk.bf16.vlgmr.msrb.gmra.mxu1 %vm512_vm3, %v9022_v58 }
 0x1f4   : > { %v2627_v10 = vsel %vm2581_vm7, %v2625_v37, %v2626_v59 }
 0x1f5   : > { %v2788_v18 = vsel %vm443_vm1, %v2786_v62, %v2787_v44  ;;  %v2631_v0 = vadd.f32 %v2627_v10, %v2466_v28 }
 0x1f7   : > { %v9563_v60 = vadd.f32 %v2788_v18, %v2631_v0  ;;  %v2387_v63 = vpop.f32.mrf.mxu3  ;;  %v2294_v47 = vpop.f32.mrf.mxu2 }
 0x1f8   : > { %v2477_v4 = vrot.slane %v2387_v63, 1 }
 0x1f9   : > { %7423 = vmatmul.msk.bf16.gmra.mxu2 %vm512_vm3, %v9085_v20  ;;  %7440 = vmatmul.msk.bf16.gmra.mxu3 %vm512_vm3, %v9085_v20  ;;  %v2549_v5 = vpop.f32.mrf.mxu0 }
 0x1fa   : > { %v2710_v55 = vpop.f32.mrf.mxu1  ;;  %v2633_v26 = vrot.slane %v2549_v5, 2  ;;  %v2478_v34 = vsel %vm2414_vm6, %v2476_v49, %v2477_v4  ;;  %v2482_v32 = vadd.f32 %v2477_v4, %v2294_v47 }
 0x1fb   : > { %v2795_v19 = vrot.slane %v2710_v55, 3  ;;  %v2481_v12 = vadd.f32 %v2478_v34, %v2292_v36 }
 0x1fc   : > { %v2634_v13 = vsel %vm2581_vm7, %v2626_v59, %v2633_v26  ;;  %v2638_v17 = vadd.f32 %v2633_v26, %v2473_v7 }
 0x1fd   : > { %v2796_v25 = vsel %vm443_vm1, %v2787_v44, %v2795_v19  ;;  %v2637_v28 = vadd.f32 %v2634_v13, %v2472_v14 }
 0x1ff   : > { %v9572_v29 = vadd.f32 %v2796_v25, %v2637_v28 }
 0x201   : > { %v2552_v8 = vpop.f32.mrf.mxu0 }
 0x202   : > { %v2713_v54 = vpop.f32.mrf.mxu1  ;;  %v2641_v33 = vrot.slane %v2552_v8, 2 }
 0x203   : > { %v2797_v21 = vrot.slane %v2713_v54, 3  ;;  %7457 = vmatmul.msk.bf16.gmra.mxu0 %vm512_vm3, %v9085_v20  ;;  %7470 = vmatmul.msk.bf16.gmra.mxu1 %vm512_vm3, %v9085_v20 }
 0x205   : > { %v2798_v15 = vsel %vm443_vm1, %v2795_v19, %v2797_v21 }
 0x206   : > { %v9577_v30 = vadd.f32 %v2798_v15, %v2638_v17 }
 0x209   : > { %7424 = vmatmul.msk.bf16.gmra.mxu2 %vm512_vm3, %v9127_v35  ;;  %7441 = vmatmul.msk.bf16.gmra.mxu3 %vm512_vm3, %v9127_v35  ;;  %v2554_v51 = vpop.f32.mrf.mxu0 }
 0x20a   : > { %v2715_v31 = vpop.f32.mrf.mxu1  ;;  %v2642_v37 = vrot.slane %v2554_v51, 2 }
 0x20b   : > { %v2804_v38 = vrot.slane %v2715_v31, 3  ;;  %v2297_v7 = vpop.f32.mrf.mxu2  ;;  %v2390_v14 = vpop.f32.mrf.mxu3 }
 0x20c   : > { %v2643_v2 = vsel %vm2581_vm7, %v2641_v33, %v2642_v37  ;;  %v2647_v62 = vadd.f32 %v2642_v37, %v2482_v32  ;;  %v2485_v0 = vrot.slane %v2390_v14, 1 }
 0x20d   : > { %v2805_v36 = vsel %vm443_vm1, %v2797_v21, %v2804_v38  ;;  %v2646_v48 = vadd.f32 %v2643_v2, %v2481_v12 }
 0x20e   : > { %v9587_v27 = vadd.f32 %v2804_v38, %v2647_v62 }
 0x20f   : > { %v9589_v56 = vadd.f32 %v2805_v36, %v2646_v48 }
 0x211   : > { %v2557_v59 = vpop.f32.mrf.mxu0 }
 0x212   : > { %v2718_v44 = vpop.f32.mrf.mxu1  ;;  %v2650_v26 = vrot.slane %v2557_v59, 2 }
 0x213   : > { %v2299_v10 = vpop.f32.mrf.mxu2  ;;  %v2392_v18 = vpop.f32.mrf.mxu3  ;;  %7458 = vmatmul.msk.bf16.gmra.mxu0 %vm512_vm3, %v9127_v35  ;;  %7471 = vmatmul.msk.bf16.gmra.mxu1 %vm512_vm3, %v9127_v35  ;;  %v2812_v19 = vrot.slane %v2718_v44, 3 }
 0x214   : > { %v2486_v63 = vrot.slane %v2392_v18, 1 }
 0x216   : > { %v2487_v49 = vsel %vm2414_vm6, %v2485_v0, %v2486_v63  ;;  %v2491_v4 = vadd.f32 %v2486_v63, %v2299_v10 }
 0x217   : > { %v2490_v5 = vadd.f32 %v2487_v49, %v2297_v7 }
 0x219   : > { %7425 = vmatmul.msk.bf16.gmra.mxu2 %vm512_vm3, %v9177_v57  ;;  %7442 = vmatmul.msk.bf16.gmra.mxu3 %vm512_vm3, %v9177_v57  ;;  %v2559_v55 = vpop.f32.mrf.mxu0 }
 0x21a   : > { %v2720_v47 = vpop.f32.mrf.mxu1  ;;  %v2651_v34 = vrot.slane %v2559_v55, 2 }
 0x21b   : > { %v2813_v32 = vrot.slane %v2720_v47, 3  ;;  %v2302_v12 = vpop.f32.mrf.mxu2  ;;  %v2395_v13 = vpop.f32.mrf.mxu3 }
 0x21c   : > { %v2652_v17 = vsel %vm2581_vm7, %v2650_v26, %v2651_v34  ;;  %v2656_v25 = vadd.f32 %v2651_v34, %v2491_v4  ;;  %v2494_v8 = vrot.slane %v2395_v13, 1 }
 0x21d   : > { %v2814_v28 = vsel %vm443_vm1, %v2812_v19, %v2813_v32  ;;  %v2655_v54 = vadd.f32 %v2652_v17, %v2490_v5 }
 0x21e   : > { %v9602_v21 = vadd.f32 %v2813_v32, %v2656_v25  ;;  %v2495_v15 = vsel %vm2414_vm6, %v2486_v63, %v2494_v8 }
 0x21f   : > { %v9605_v51 = vadd.f32 %v2814_v28, %v2655_v54  ;;  %v2500_v31 = vadd.f32 %v2495_v15, %v2299_v10 }
 0x221   : > { %v2562_v33 = vpop.f32.mrf.mxu0 }
 0x222   : > { %v2723_v37 = vpop.f32.mrf.mxu1  ;;  %v2659_v38 = vrot.slane %v2562_v33, 2 }
 0x223   : > { %v2304_v7 = vpop.f32.mrf.mxu2  ;;  %v2397_v14 = vpop.f32.mrf.mxu3  ;;  %v2821_v62 = vrot.slane %v2723_v37, 3  ;;  %7459 = vmatmul.msk.bf16.gmra.mxu0 %vm512_vm3, %v9177_v57  ;;  %7472 = vmatmul.msk.bf16.gmra.mxu1 %vm512_vm3, %v9177_v57 }
 0x224   : > { %v2664_v2 = vadd.f32 %v2659_v38, %v2500_v31  ;;  %v2496_v36 = vrot.slane %v2397_v14, 1 }
 0x226   : > { %v9611_v48 = vadd.f32 %v2821_v62, %v2664_v2  ;;  %v2497_v59 = vsel %vm2414_vm6, %v2494_v8, %v2496_v36 }
 0x227   : > { %v2501_v44 = vadd.f32 %v2497_v59, %v2302_v12 }
 0x229   : > { %7426 = vmatmul.msk.bf16.gmra.mxu2 %vm512_vm3, %v9217_v23  ;;  %7443 = vmatmul.msk.bf16.gmra.mxu3 %vm512_vm3, %v9217_v23  ;;  %v2564_v10 = vpop.f32.mrf.mxu0 }
 0x22a   : > { %v2725_v18 = vpop.f32.mrf.mxu1  ;;  %v2660_v0 = vrot.slane %v2564_v10, 2 }
 0x22b   : > { %v2822_v63 = vrot.slane %v2725_v18, 3  ;;  %v2306_v49 = vpop.f32.mrf.mxu2  ;;  %v2400_v4 = vpop.f32.mrf.mxu3 }
 0x22c   : > { %v2661_v5 = vsel %vm2581_vm7, %v2659_v38, %v2660_v0 }
 0x22d   : > { %v2823_v55 = vsel %vm443_vm1, %v2821_v62, %v2822_v63  ;;  %v2665_v47 = vadd.f32 %v2661_v5, %v2501_v44 }
 0x22f   : > { %v9620_v26 = vadd.f32 %v2823_v55, %v2665_v47 }
 0x231   : > { %v2567_v19 = vpop.f32.mrf.mxu0 }
 0x232   : > { %v2728_v34 = vpop.f32.mrf.mxu1 }
 0x233   : > { %v2307_v32 = vpop.f32.mrf.mxu2  ;;  %v2401_v12 = vpop.f32.mrf.mxu3  ;;  %7460 = vmatmul.msk.bf16.gmra.mxu0 %vm512_vm3, %v9217_v23  ;;  %7473 = vmatmul.msk.bf16.gmra.mxu1 %vm512_vm3, %v9217_v23 }
 0x239   : > { %7427 = vmatmul.msk.bf16.gmra.mxu2 %vm512_vm3, %v9267_v40  ;;  %7444 = vmatmul.msk.bf16.gmra.mxu3 %vm512_vm3, %v9267_v40  ;;  %v2568_v13 = vpop.f32.mrf.mxu0 }
 0x23a   : > { %v2729_v17 = vpop.f32.mrf.mxu1 }
 0x23b   : > { %v2309_v25 = vpop.f32.mrf.mxu2  ;;  %v2403_v28 = vpop.f32.mrf.mxu3 }
 0x241   : > { %v2570_v8 = vpop.f32.mrf.mxu0 }
 0x242   : > { %v2731_v54 = vpop.f32.mrf.mxu1 }
 0x243   : > { %v2310_v15 = vpop.f32.mrf.mxu2  ;;  %v2404_v31 = vpop.f32.mrf.mxu3  ;;  %7461 = vmatmul.msk.bf16.gmra.mxu0 %vm512_vm3, %v9267_v40  ;;  %7474 = vmatmul.msk.bf16.gmra.mxu1 %vm512_vm3, %v9267_v40 }
 0x249   : > { %7428 = vmatmul.msk.bf16.gmra.mxu2 %vm512_vm3, %v9313_v53  ;;  %7445 = vmatmul.msk.bf16.gmra.mxu3 %vm512_vm3, %v9313_v53  ;;  %v2571_v33 = vpop.f32.mrf.mxu0 }
 0x24a   : > { %v2732_v37 = vpop.f32.mrf.mxu1 }
 0x24c   : > { %v2312_v38 = vpop.f32.mrf.mxu2  ;;  %v2406_v7 = vpop.f32.mrf.mxu3 }
 0x251   : > { %v2573_v14 = vpop.f32.mrf.mxu0 }
 0x252   : > { %v2734_v2 = vpop.f32.mrf.mxu1 }
 0x253   : > { %7462 = vmatmul.msk.bf16.gmra.mxu0 %vm512_vm3, %v9313_v53  ;;  %7475 = vmatmul.msk.bf16.gmra.mxu1 %vm512_vm3, %v9313_v53 }
 0x254   : > { %v2313_v62 = vpop.f32.mrf.mxu2  ;;  %v2407_v36 = vpop.f32.mrf.mxu3 }
 0x259   : > { %7429 = vmatmul.msk.bf16.gmra.mxu2 %vm512_vm3, %v9363_v39  ;;  %7446 = vmatmul.msk.bf16.gmra.mxu3 %vm512_vm3, %v9363_v39  ;;  %v2574_v59 = vpop.f32.mrf.mxu0 }
 0x25a   : > { %v2735_v44 = vpop.f32.mrf.mxu1 }
 0x25c   : > { %v2315_v10 = vpop.f32.mrf.mxu2  ;;  %v2409_v18 = vpop.f32.mrf.mxu3 }
 0x261   : > { %v2576_v0 = vpop.f32.mrf.mxu0 }
 0x262   : > { %v2737_v63 = vpop.f32.mrf.mxu1 }
 0x263   : > { %7463 = vmatmul.msk.bf16.gmra.mxu0 %vm512_vm3, %v9363_v39  ;;  %7476 = vmatmul.msk.bf16.gmra.mxu1 %vm512_vm3, %v9363_v39 }
 0x264   : > { %v2316_v49 = vpop.f32.mrf.mxu2  ;;  %v2410_v4 = vpop.f32.mrf.mxu3 }
 0x269   : > { %7430 = vmatmul.msk.bf16.gmra.mxu2 %vm512_vm3, %v9401_v24  ;;  %7447 = vmatmul.msk.bf16.gmra.mxu3 %vm512_vm3, %v9401_v24  ;;  %v2577_v5 = vpop.f32.mrf.mxu0 }
 0x26a   : > { %v2738_v55 = vpop.f32.mrf.mxu1 }
 0x26c   : > { %v2841_v47 = vpop.f32.mrf.mxu2  ;;  %v3004_v19 = vpop.f32.mrf.mxu3 }
 0x26d   : > { %v2900_v17 = vrot.slane %v2841_v47, 4 }
 0x271   : > { %v3168_v34 = vpop.f32.mrf.mxu0 }
 0x272   : > { %v3332_v32 = vpop.f32.mrf.mxu1 }
 0x273   : > { %7464 = vmatmul.msk.bf16.gmra.mxu0 %vm512_vm3, %v9401_v24  ;;  %7477 = vmatmul.msk.bf16.gmra.mxu1 %vm512_vm3, %v9401_v24 }
 0x274   : > { %v2843_v12 = vpop.f32.mrf.mxu2  ;;  %v3005_v13 = vpop.f32.mrf.mxu3 }
 0x275   : > { %v2901_v25 = vrot.slane %v2843_v12, 4  ;;  %v3064_v38 = vrot.slane %v3005_v13, 6 }
 0x277   : > { %v2902_v28 = vsel %vm442_vm0, %v2900_v17, %v2901_v25  ;;  %v2906_v8 = vadd.f32 %v2901_v25, %v9445_v46 }
 0x278   : > { %v2905_v54 = vadd.f32 %v2902_v28, %v9452_v6 }
 0x279   : > { %7431 = vmatmul.msk.bf16.gmra.mxu2 %vm512_vm3, %v9426_v9  ;;  %7448 = vmatmul.msk.bf16.gmra.mxu3 %vm512_vm3, %v9426_v9  ;;  %v3169_v15 = vpop.f32.mrf.mxu0 }
 0x27a   : > { %v3333_v31 = vpop.f32.mrf.mxu1  ;;  %v3229_v59 = vrot.slane %v3169_v15, 7 }
 0x27c   : > { %v2846_v33 = vpop.f32.mrf.mxu2  ;;  %v3008_v37 = vpop.f32.mrf.mxu3 }
 0x27d   : > { %v2909_v7 = vrot.slane %v2846_v33, 4  ;;  %v3065_v14 = vrot.slane %v3008_v37, 6 }
 0x27f   : > { %v2914_v2 = vadd.f32 %v2909_v7, %v9464_v45  ;;  %v3066_v46 = vsel %vm3063_vm8, %v3064_v38, %v3065_v14  ;;  %v3070_v62 = vadd.f32 %v3065_v14, %v2906_v8 }
 0x280   : > { %v3069_v6 = vadd.f32 %v3066_v46, %v2905_v54 }
 0x281   : > { %v3172_v36 = vpop.f32.mrf.mxu0 }
 0x282   : > { %v3230_v44 = vrot.slane %v3172_v36, 7  ;;  %v3335_v10 = vpop.f32.mrf.mxu1 }
 0x283   : > { %7465 = vmatmul.msk.bf16.gmra.mxu0 %vm512_vm3, %v9426_v9  ;;  %7478 = vmatmul.msk.bf16.gmra.mxu1 %vm512_vm3, %v9426_v9 }
 0x284   : > { %v3231_v18 = vsel %vm3228_vm9, %v3229_v59, %v3230_v44  ;;  %v2848_v0 = vpop.f32.mrf.mxu2  ;;  %v3010_v63 = vpop.f32.mrf.mxu3 }
 0x285   : > { %v3236_v49 = vadd.f32 %v3231_v18, %v3069_v6  ;;  %v2910_v4 = vrot.slane %v2848_v0, 4  ;;  %v3073_v5 = vrot.slane %v3010_v63, 6  ;;  %v7497_v0 = vld [vmem:[%s11048_s3 + $0x18] sm:$0x8]  ;;  %v7960_v63 = vld [vmem:[%s11048_s3 + $0x18] sm:$0x30] }
 0x287   : > { %v9672_v45 = vadd.f32 %v3335_v10, %v3236_v49  ;;  %v2911_v55 = vsel %vm442_vm0, %v2909_v7, %v2910_v4  ;;  %v3078_v47 = vadd.f32 %v3073_v5, %v2914_v2  ;;  %v7498_v4 = vor.u32 %v7960_v63, %v7497_v0 }
 0x288   : > { %v2915_v19 = vadd.f32 %v2911_v55, %v9477_v42  ;;  %v4055_v55 = vld [vmem:[%s11048_s3 + $0x24] sm:$0x7] }
 0x289   : > { %7432 = vmatmul.msk.bf16.gmra.mxu2 %vm512_vm3, %v9466_v11  ;;  %7449 = vmatmul.msk.bf16.gmra.mxu3 %vm512_vm3, %v9466_v11  ;;  %v3174_v34 = vpop.f32.mrf.mxu0 }
 0x28a   : > { %v3232_v32 = vrot.slane %v3174_v34, 7  ;;  %v3337_v12 = vpop.f32.mrf.mxu1  ;;  %v3574_v34 = vrot.slane %v7498_v4, 3 }
 0x28c   : > { %v3233_v13 = vsel %vm3228_vm9, %v3230_v44, %v3232_v32  ;;  %v3243_v17 = vadd.f32 %v3232_v32, %v3078_v47  ;;  %v2851_v25 = vpop.f32.mrf.mxu2  ;;  %v3013_v28 = vpop.f32.mrf.mxu3 }
 0x28d   : > { %v3237_v8 = vadd.f32 %v3233_v13, %v3070_v62  ;;  %v2918_v54 = vrot.slane %v2851_v25, 4  ;;  %v3074_v15 = vrot.slane %v3013_v28, 6 }
 0x28e   : > { %v9681_v31 = vadd.f32 %v3337_v12, %v3243_v17  ;;  %v3576_v17 = vsel %vm2249_vm4, %v3574_v34, 0 }
 0x28f   : > { %v9683_v42 = vadd.f32 %v3337_v12, %v3237_v8  ;;  %v2923_v33 = vadd.f32 %v2918_v54, %v9496_v3  ;;  %v3075_v37 = vsel %vm3063_vm8, %v3073_v5, %v3074_v15  ;;  %3585 = vmatpush.bf16.msrb.mxu3 %v3576_v17 }
 0x290   : > { %v3079_v38 = vadd.f32 %v3075_v37, %v2915_v19  ;;  %v7514_v37 = vld [vmem:[%s11048_s3 + $0x1c] sm:$0xc] }
 0x291   : > { %v3177_v7 = vpop.f32.mrf.mxu0 }
 0x292   : > { %v3239_v14 = vrot.slane %v3177_v7, 7  ;;  %v3340_v2 = vpop.f32.mrf.mxu1 }
 0x293   : > { %7466 = vmatmul.msk.bf16.gmra.mxu0 %vm512_vm3, %v9466_v11  ;;  %7479 = vmatmul.msk.bf16.gmra.mxu1 %vm512_vm3, %v9466_v11 }
 0x294   : > { %v3240_v46 = vsel %vm3228_vm9, %v3232_v32, %v3239_v14  ;;  %v2853_v6 = vpop.f32.mrf.mxu2  ;;  %v3015_v36 = vpop.f32.mrf.mxu3  ;;  %v4057_v32 = vsel %vm2249_vm4, %v4055_v55, 0 }
 0x295   : > { %v3244_v62 = vadd.f32 %v3240_v46, %v3079_v38  ;;  %v2919_v59 = vrot.slane %v2853_v6, 4  ;;  %v3082_v44 = vrot.slane %v3015_v36, 6  ;;  %4066 = vmatpush.bf16.msra.mxu2 %v4057_v32  ;;  %v7961_v38 = vld [vmem:[%s11048_s3 + $0x1c] sm:$0x10]  ;;  %v3893_v46 = vld [vmem:[%s11048_s3 + $0x20] sm:$0xe] }
 0x297   : > { %v9692_v3 = vadd.f32 %v3340_v2, %v3244_v62  ;;  %v2920_v10 = vsel %vm442_vm0, %v2918_v54, %v2919_v59  ;;  %v3087_v18 = vadd.f32 %v3082_v44, %v2923_v33  ;;  %v7515_v2 = vor.u32 %v7961_v38, %v7514_v37 }
 0x298   : > { %v2924_v49 = vadd.f32 %v2920_v10, %v9507_v16 }
 0x299   : > { %7433 = vmatmul.msk.bf16.gmra.mxu2 %vm512_vm3, %v9488_v61  ;;  %7450 = vmatmul.msk.bf16.gmra.mxu3 %vm512_vm3, %v9488_v61  ;;  %v3179_v5 = vpop.f32.mrf.mxu0 }
 0x29a   : > { %v3247_v47 = vrot.slane %v3179_v5, 7  ;;  %v3342_v19 = vpop.f32.mrf.mxu1 }
 0x29c   : > { %v3252_v12 = vadd.f32 %v3247_v47, %v3087_v18  ;;  %v2856_v16 = vpop.f32.mrf.mxu2  ;;  %v3018_v13 = vpop.f32.mrf.mxu3 }
 0x29d   : > { %v2926_v25 = vrot.slane %v2856_v16, 4  ;;  %v3083_v28 = vrot.slane %v3018_v13, 6 }
 0x29e   : > { %v9711_v8 = vadd.f32 %v3342_v19, %v3252_v12 }
 0x29f   : > { %v2927_v54 = vsel %vm442_vm0, %v2919_v59, %v2926_v25  ;;  %v2931_v15 = vadd.f32 %v2926_v25, %v9527_v1  ;;  %v3084_v33 = vsel %vm3063_vm8, %v3082_v44, %v3083_v28  ;;  %v3895_v1 = vunpack.c.l.b16 %v3893_v46 }
 0x2a0   : > { %v3088_v7 = vadd.f32 %v3084_v33, %v2924_v49  ;;  %v2930_v14 = vadd.f32 %v2927_v54, %v9529_v52  ;;  %v3737_v59 = vrot.slane %v7515_v2, 2 }
 0x2a1   : > { %v3182_v6 = vpop.f32.mrf.mxu0  ;;  %v3896_v44 = vpack.c.b16 %v3895_v1, %v3895_v1 }
 0x2a2   : > { %v3248_v36 = vrot.slane %v3182_v6, 7  ;;  %v3345_v62 = vpop.f32.mrf.mxu1  ;;  %v3739_v52 = vsel %vm2249_vm4, %v3737_v59, 0 }
 0x2a3   : > { %7467 = vmatmul.msk.bf16.gmra.mxu0 %vm512_vm3, %v9488_v61  ;;  %7480 = vmatmul.msk.bf16.gmra.mxu1 %vm512_vm3, %v9488_v61  ;;  %v3897_v4 = vrot.slane %v3896_v44, 1 }
 0x2a4   : > { %v3249_v10 = vsel %vm3228_vm9, %v3247_v47, %v3248_v36  ;;  %v2858_v18 = vpop.f32.mrf.mxu2  ;;  %v3020_v0 = vpop.f32.mrf.mxu3  ;;  %3748 = vmatpush.bf16.msra.mxu0 %v3739_v52 }
 0x2a5   : > { %v3253_v63 = vadd.f32 %v3249_v10, %v3088_v7  ;;  %v3091_v49 = vrot.slane %v3020_v0, 6  ;;  %v3899_v19 = vsel %vm2249_vm4, %v3897_v4, 0  ;;  %v2934_v17 = vrot.slane %v2858_v18, 4 }
 0x2a6   : > { %3908 = vmatpush.bf16.msra.mxu1 %v3899_v19 }
 0x2a7   : > { %v9732_v5 = vadd.f32 %v3345_v62, %v3253_v63  ;;  %v3096_v55 = vadd.f32 %v3091_v49, %v2930_v14 }
 0x2a9   : > { %7434 = vmatmul.msk.bf16.gmra.mxu2 %vm512_vm3, %v9531_v50  ;;  %7451 = vmatmul.msk.bf16.gmra.mxu3 %vm512_vm3, %v9531_v50  ;;  %v3184_v47 = vpop.f32.mrf.mxu0 }
 0x2aa   : > { %v3256_v34 = vrot.slane %v3184_v47, 7  ;;  %v3347_v32 = vpop.f32.mrf.mxu1 }
 0x2ac   : > { %v3261_v12 = vadd.f32 %v3256_v34, %v3096_v55  ;;  %v2861_v16 = vpop.f32.mrf.mxu2  ;;  %v3023_v13 = vpop.f32.mrf.mxu3 }
 0x2ad   : > { %v2935_v25 = vrot.slane %v2861_v16, 4  ;;  %v3092_v28 = vrot.slane %v3023_v13, 6 }
 0x2ae   : > { %v9739_v54 = vadd.f32 %v3347_v32, %v3261_v12 }
 0x2af   : > { %v2936_v33 = vsel %vm442_vm0, %v2934_v17, %v2935_v25  ;;  %v2940_v37 = vadd.f32 %v2935_v25, %v9546_v22  ;;  %v3093_v38 = vsel %vm3063_vm8, %v3091_v49, %v3092_v28 }
 0x2b0   : > { %v2939_v7 = vadd.f32 %v2936_v33, %v9548_v41  ;;  %v3097_v14 = vadd.f32 %v3093_v38, %v2931_v15 }
 0x2b1   : > { %v3187_v2 = vpop.f32.mrf.mxu0 }
 0x2b2   : > { %v3257_v46 = vrot.slane %v3187_v2, 7  ;;  %v3350_v6 = vpop.f32.mrf.mxu1 }
 0x2b3   : > { %7468 = vmatmul.msk.bf16.gmra.mxu0 %vm512_vm3, %v9531_v50  ;;  %7481 = vmatmul.msk.bf16.gmra.mxu1 %vm512_vm3, %v9531_v50 }
 0x2b4   : > { %v3258_v1 = vsel %vm3228_vm9, %v3256_v34, %v3257_v46  ;;  %v2863_v36 = vpop.f32.mrf.mxu2  ;;  %v3025_v62 = vpop.f32.mrf.mxu3 }
 0x2b5   : > { %v3262_v59 = vadd.f32 %v3258_v1, %v3097_v14  ;;  %v2943_v44 = vrot.slane %v2863_v36, 4  ;;  %v3099_v10 = vrot.slane %v3025_v62, 6 }
 0x2b7   : > { %v9750_v22 = vadd.f32 %v3350_v6, %v3262_v59  ;;  %v2948_v41 = vadd.f32 %v2943_v44, %v9555_v43  ;;  %v3100_v15 = vsel %vm3063_vm8, %v3092_v28, %v3099_v10  ;;  %v3104_v18 = vadd.f32 %v3099_v10, %v2940_v37 }
 0x2b8   : > { %v3103_v0 = vadd.f32 %v3100_v15, %v2939_v7 }
 0x2b9   : > { %7482 = vmatmul.msk.bf16.vlgmr.msrb.gmra.mxu2 %vm512_vm3, %v9022_v58  ;;  %7499 = vmatmul.msk.bf16.vlgmr.msrb.gmra.mxu3 %vm512_vm3, %v9022_v58  ;;  %v3189_v52 = vpop.f32.mrf.mxu0 }
 0x2ba   : > { %v3265_v63 = vrot.slane %v3189_v52, 7  ;;  %v3352_v49 = vpop.f32.mrf.mxu1 }
 0x2bc   : > { %v3266_v4 = vsel %vm3228_vm9, %v3257_v46, %v3265_v63  ;;  %v2866_v55 = vpop.f32.mrf.mxu2  ;;  %v3028_v19 = vpop.f32.mrf.mxu3 }
 0x2bd   : > { %v3271_v47 = vadd.f32 %v3266_v4, %v3103_v0  ;;  %v2944_v34 = vrot.slane %v2866_v55, 4  ;;  %v3107_v43 = vrot.slane %v3028_v19, 6 }
 0x2bf   : > { %v9759_v32 = vadd.f32 %v3352_v49, %v3271_v47  ;;  %v2945_v12 = vsel %vm442_vm0, %v2943_v44, %v2944_v34  ;;  %v3112_v16 = vadd.f32 %v3107_v43, %v2948_v41 }
 0x2c0   : > { %v2949_v13 = vadd.f32 %v2945_v12, %v9563_v60 }
 0x2c1   : > { %v3192_v17 = vpop.f32.mrf.mxu0 }
 0x2c2   : > { %v3267_v25 = vrot.slane %v3192_v17, 7  ;;  %v3355_v28 = vpop.f32.mrf.mxu1 }
 0x2c3   : > { %7516 = vmatmul.msk.bf16.vlgmr.msra.gmra.mxu0 %vm512_vm3, %v9022_v58  ;;  %7529 = vmatmul.msk.bf16.vlgmr.msra.gmra.mxu1 %vm512_vm3, %v9022_v58 }
 0x2c4   : > { %v3268_v33 = vsel %vm3228_vm9, %v3265_v63, %v3267_v25  ;;  %v3278_v37 = vadd.f32 %v3267_v25, %v3112_v16  ;;  %v2868_v38 = vpop.f32.mrf.mxu2  ;;  %v3030_v7 = vpop.f32.mrf.mxu3 }
 0x2c5   : > { %v3272_v14 = vadd.f32 %v3268_v33, %v3104_v18  ;;  %v2952_v2 = vrot.slane %v2868_v38, 4  ;;  %v3108_v46 = vrot.slane %v3030_v7, 6 }
 0x2c6   : > { %v9768_v6 = vadd.f32 %v3355_v28, %v3278_v37 }
 0x2c7   : > { %v9770_v60 = vadd.f32 %v3355_v28, %v3272_v14  ;;  %v2957_v1 = vadd.f32 %v2952_v2, %v9572_v29  ;;  %v3109_v36 = vsel %vm3063_vm8, %v3107_v43, %v3108_v46 }
 0x2c8   : > { %v3113_v62 = vadd.f32 %v3109_v36, %v2949_v13 }
 0x2c9   : > { %7483 = vmatmul.msk.bf16.gmra.mxu2 %vm512_vm3, %v9085_v20  ;;  %7500 = vmatmul.msk.bf16.gmra.mxu3 %vm512_vm3, %v9085_v20  ;;  %v3194_v59 = vpop.f32.mrf.mxu0 }
 0x2ca   : > { %v3274_v44 = vrot.slane %v3194_v59, 7  ;;  %v3357_v10 = vpop.f32.mrf.mxu1 }
 0x2cc   : > { %v3275_v41 = vsel %vm3228_vm9, %v3267_v25, %v3274_v44  ;;  %v2871_v15 = vpop.f32.mrf.mxu2  ;;  %v3033_v18 = vpop.f32.mrf.mxu3 }
 0x2cd   : > { %v3279_v0 = vadd.f32 %v3275_v41, %v3113_v62  ;;  %v2953_v52 = vrot.slane %v2871_v15, 4  ;;  %v3116_v63 = vrot.slane %v3033_v18, 6 }
 0x2cf   : > { %v9779_v29 = vadd.f32 %v3357_v10, %v3279_v0  ;;  %v2954_v49 = vsel %vm442_vm0, %v2952_v2, %v2953_v52  ;;  %v3121_v4 = vadd.f32 %v3116_v63, %v2957_v1 }
 0x2d0   : > { %v2958_v55 = vadd.f32 %v2954_v49, %v9577_v30 }
 0x2d1   : > { %v3197_v19 = vpop.f32.mrf.mxu0 }
 0x2d2   : > { %v3282_v47 = vrot.slane %v3197_v19, 7  ;;  %v3360_v34 = vpop.f32.mrf.mxu1 }
 0x2d3   : > { %7517 = vmatmul.msk.bf16.gmra.mxu0 %vm512_vm3, %v9085_v20  ;;  %7530 = vmatmul.msk.bf16.gmra.mxu1 %vm512_vm3, %v9085_v20 }
 0x2d4   : > { %v3287_v43 = vadd.f32 %v3282_v47, %v3121_v4  ;;  %v2873_v12 = vpop.f32.mrf.mxu2  ;;  %v3035_v16 = vpop.f32.mrf.mxu3 }
 0x2d5   : > { %v2960_v13 = vrot.slane %v2873_v12, 4  ;;  %v3117_v17 = vrot.slane %v3035_v16, 6 }
 0x2d6   : > { %v9787_v25 = vadd.f32 %v3360_v34, %v3287_v43 }
 0x2d7   : > { %v2965_v28 = vadd.f32 %v2960_v13, %v9587_v27  ;;  %v3118_v30 = vsel %vm3063_vm8, %v3116_v63, %v3117_v17  ;;  %v2961_v33 = vsel %vm442_vm0, %v2953_v52, %v2960_v13 }
 0x2d8   : > { %v3122_v37 = vadd.f32 %v3118_v30, %v2958_v55  ;;  %v2964_v38 = vadd.f32 %v2961_v33, %v9589_v56 }
 0x2d9   : > { %7484 = vmatmul.msk.bf16.gmra.mxu2 %vm512_vm3, %v9127_v35  ;;  %7501 = vmatmul.msk.bf16.gmra.mxu3 %vm512_vm3, %v9127_v35  ;;  %v3199_v7 = vpop.f32.mrf.mxu0 }
 0x2da   : > { %v3283_v14 = vrot.slane %v3199_v7, 7  ;;  %v3362_v2 = vpop.f32.mrf.mxu1 }
 0x2dc   : > { %v3284_v46 = vsel %vm3228_vm9, %v3282_v47, %v3283_v14  ;;  %v2876_v1 = vpop.f32.mrf.mxu2  ;;  %v3038_v27 = vpop.f32.mrf.mxu3 }
 0x2dd   : > { %v3288_v36 = vadd.f32 %v3284_v46, %v3122_v37  ;;  %v3125_v62 = vrot.slane %v3038_v27, 6  ;;  %v2968_v52 = vrot.slane %v2876_v1, 4 }
 0x2df   : > { %v9798_v59 = vadd.f32 %v3362_v2, %v3288_v36  ;;  %v3130_v44 = vadd.f32 %v3125_v62, %v2964_v38 }
 0x2e1   : > { %v3202_v10 = vpop.f32.mrf.mxu0 }
 0x2e2   : > { %v3291_v56 = vrot.slane %v3202_v10, 7  ;;  %v3365_v41 = vpop.f32.mrf.mxu1 }
 0x2e3   : > { %7518 = vmatmul.msk.bf16.gmra.mxu0 %vm512_vm3, %v9127_v35  ;;  %7531 = vmatmul.msk.bf16.gmra.mxu1 %vm512_vm3, %v9127_v35 }
 0x2e4   : > { %v3296_v15 = vadd.f32 %v3291_v56, %v3130_v44  ;;  %v2878_v18 = vpop.f32.mrf.mxu2  ;;  %v3040_v0 = vpop.f32.mrf.mxu3 }
 0x2e5   : > { %v2969_v63 = vrot.slane %v2878_v18, 4  ;;  %v3126_v49 = vrot.slane %v3040_v0, 6 }
 0x2e6   : > { %v9804_v4 = vadd.f32 %v3365_v41, %v3296_v15 }
 0x2e7   : > { %v2970_v55 = vsel %vm442_vm0, %v2968_v52, %v2969_v63  ;;  %v2974_v19 = vadd.f32 %v2969_v63, %v9602_v21  ;;  %v3127_v47 = vsel %vm3063_vm8, %v3125_v62, %v3126_v49 }
 0x2e8   : > { %v3131_v34 = vadd.f32 %v3127_v47, %v2965_v28  ;;  %v2973_v43 = vadd.f32 %v2970_v55, %v9605_v51 }
 0x2e9   : > { %7485 = vmatmul.msk.bf16.gmra.mxu2 %vm512_vm3, %v9177_v57  ;;  %7502 = vmatmul.msk.bf16.gmra.mxu3 %vm512_vm3, %v9177_v57  ;;  %v3204_v12 = vpop.f32.mrf.mxu0 }
 0x2ea   : > { %v3292_v16 = vrot.slane %v3204_v12, 7  ;;  %v3367_v13 = vpop.f32.mrf.mxu1 }
 0x2ec   : > { %v3293_v17 = vsel %vm3228_vm9, %v3291_v56, %v3292_v16  ;;  %v2881_v30 = vpop.f32.mrf.mxu2  ;;  %v3043_v33 = vpop.f32.mrf.mxu3 }
 0x2ed   : > { %v3297_v37 = vadd.f32 %v3293_v17, %v3131_v34  ;;  %v2977_v21 = vrot.slane %v2881_v30, 4  ;;  %v3133_v38 = vrot.slane %v3043_v33, 6 }
 0x2ef   : > { %v9815_v7 = vadd.f32 %v3367_v13, %v3297_v37  ;;  %v2982_v51 = vadd.f32 %v2977_v21, %v9611_v48  ;;  %v3134_v28 = vsel %vm3063_vm8, %v3126_v49, %v3133_v38  ;;  %v3138_v14 = vadd.f32 %v3133_v38, %v2974_v19 }
 0x2f0   : > { %v3137_v2 = vadd.f32 %v3134_v28, %v2973_v43 }
 0x2f1   : > { %v3207_v46 = vpop.f32.mrf.mxu0 }
 0x2f2   : > { %v3300_v1 = vrot.slane %v3207_v46, 7  ;;  %v3370_v27 = vpop.f32.mrf.mxu1 }
 0x2f3   : > { %7519 = vmatmul.msk.bf16.gmra.mxu0 %vm512_vm3, %v9177_v57  ;;  %7532 = vmatmul.msk.bf16.gmra.mxu1 %vm512_vm3, %v9177_v57 }
 0x2f4   : > { %v3301_v36 = vsel %vm3228_vm9, %v3292_v16, %v3300_v1  ;;  %v2883_v62 = vpop.f32.mrf.mxu2  ;;  %v3045_v44 = vpop.f32.mrf.mxu3 }
 0x2f5   : > { %v3306_v10 = vadd.f32 %v3301_v36, %v3137_v2  ;;  %v2978_v56 = vrot.slane %v2883_v62, 4  ;;  %v3141_v41 = vrot.slane %v3045_v44, 6 }
 0x2f7   : > { %v9824_v48 = vadd.f32 %v3370_v27, %v3306_v10  ;;  %v2979_v15 = vsel %vm442_vm0, %v2977_v21, %v2978_v56  ;;  %v3146_v18 = vadd.f32 %v3141_v41, %v2982_v51 }
 0x2f8   : > { %v2983_v0 = vadd.f32 %v2979_v15, %v9620_v26 }
 0x2f9   : > { %7486 = vmatmul.msk.bf16.gmra.mxu2 %vm512_vm3, %v9217_v23  ;;  %7503 = vmatmul.msk.bf16.gmra.mxu3 %vm512_vm3, %v9217_v23  ;;  %v3209_v52 = vpop.f32.mrf.mxu0 }
 0x2fa   : > { %v3302_v63 = vrot.slane %v3209_v52, 7  ;;  %v3372_v49 = vpop.f32.mrf.mxu1 }
 0x2fc   : > { %v3303_v55 = vsel %vm3228_vm9, %v3300_v1, %v3302_v63  ;;  %v3313_v19 = vadd.f32 %v3302_v63, %v3146_v18  ;;  %v2886_v47 = vpop.f32.mrf.mxu2  ;;  %v3048_v34 = vpop.f32.mrf.mxu3 }
 0x2fd   : > { %v3307_v43 = vadd.f32 %v3303_v55, %v3138_v14  ;;  %v3142_v12 = vrot.slane %v3048_v34, 6 }
 0x2fe   : > { %v9833_v16 = vadd.f32 %v3372_v49, %v3313_v19 }
 0x2ff   : > { %v9835_v13 = vadd.f32 %v3372_v49, %v3307_v43  ;;  %v3143_v26 = vsel %vm3063_vm8, %v3141_v41, %v3142_v12 }
 0x300   : > { %v3147_v17 = vadd.f32 %v3143_v26, %v2983_v0 }
 0x301   : > { %v3212_v30 = vpop.f32.mrf.mxu0 }
 0x302   : > { %v3309_v33 = vrot.slane %v3212_v30, 7  ;;  %v3375_v37 = vpop.f32.mrf.mxu1 }
 0x303   : > { %7520 = vmatmul.msk.bf16.gmra.mxu0 %vm512_vm3, %v9217_v23  ;;  %7533 = vmatmul.msk.bf16.gmra.mxu1 %vm512_vm3, %v9217_v23 }
 0x304   : > { %v3310_v21 = vsel %vm3228_vm9, %v3302_v63, %v3309_v33  ;;  %v2887_v38 = vpop.f32.mrf.mxu2  ;;  %v3050_v51 = vpop.f32.mrf.mxu3 }
 0x305   : > { %v3314_v28 = vadd.f32 %v3310_v21, %v3147_v17 }
 0x307   : > { %v9843_v14 = vadd.f32 %v3375_v37, %v3314_v28 }
 0x309   : > { %7487 = vmatmul.msk.bf16.gmra.mxu2 %vm512_vm3, %v9267_v40  ;;  %7504 = vmatmul.msk.bf16.gmra.mxu3 %vm512_vm3, %v9267_v40  ;;  %v3214_v2 = vpop.f32.mrf.mxu0 }
 0x30a   : > { %v3377_v46 = vpop.f32.mrf.mxu1 }
 0x30c   : > { %v2889_v1 = vpop.f32.mrf.mxu2  ;;  %v3052_v27 = vpop.f32.mrf.mxu3 }
 0x311   : > { %v3216_v36 = vpop.f32.mrf.mxu0 }
 0x312   : > { %v3379_v62 = vpop.f32.mrf.mxu1 }
 0x313   : > { %7521 = vmatmul.msk.bf16.gmra.mxu0 %vm512_vm3, %v9267_v40  ;;  %7534 = vmatmul.msk.bf16.gmra.mxu1 %vm512_vm3, %v9267_v40 }
 0x314   : > { %v2890_v44 = vpop.f32.mrf.mxu2  ;;  %v3053_v10 = vpop.f32.mrf.mxu3 }
 0x319   : > { %7488 = vmatmul.msk.bf16.gmra.mxu2 %vm512_vm3, %v9313_v53  ;;  %7505 = vmatmul.msk.bf16.gmra.mxu3 %vm512_vm3, %v9313_v53  ;;  %v3217_v56 = vpop.f32.mrf.mxu0 }
 0x31a   : > { %v3380_v41 = vpop.f32.mrf.mxu1 }
 0x31c   : > { %v2892_v15 = vpop.f32.mrf.mxu2  ;;  %v3055_v18 = vpop.f32.mrf.mxu3 }
 0x321   : > { %v3219_v0 = vpop.f32.mrf.mxu0 }
 0x322   : > { %v3382_v52 = vpop.f32.mrf.mxu1 }
 0x323   : > { %7522 = vmatmul.msk.bf16.gmra.mxu0 %vm512_vm3, %v9313_v53  ;;  %7535 = vmatmul.msk.bf16.gmra.mxu1 %vm512_vm3, %v9313_v53 }
 0x324   : > { %v2893_v63 = vpop.f32.mrf.mxu2  ;;  %v3056_v49 = vpop.f32.mrf.mxu3 }
 0x329   : > { %7489 = vmatmul.msk.bf16.gmra.mxu2 %vm512_vm3, %v9363_v39  ;;  %7506 = vmatmul.msk.bf16.gmra.mxu3 %vm512_vm3, %v9363_v39  ;;  %v3220_v55 = vpop.f32.mrf.mxu0 }
 0x32a   : > { %v3383_v19 = vpop.f32.mrf.mxu1 }
 0x32c   : > { %v2895_v47 = vpop.f32.mrf.mxu2  ;;  %v3058_v34 = vpop.f32.mrf.mxu3 }
 0x331   : > { %v3222_v43 = vpop.f32.mrf.mxu0 }
 0x332   : > { %v3385_v12 = vpop.f32.mrf.mxu1 }
 0x333   : > { %7523 = vmatmul.msk.bf16.gmra.mxu0 %vm512_vm3, %v9363_v39  ;;  %7536 = vmatmul.msk.bf16.gmra.mxu1 %vm512_vm3, %v9363_v39 }
 0x334   : > { %v2896_v26 = vpop.f32.mrf.mxu2  ;;  %v3059_v17 = vpop.f32.mrf.mxu3 }
 0x339   : > { %7490 = vmatmul.msk.bf16.gmra.mxu2 %vm512_vm3, %v9401_v24  ;;  %7507 = vmatmul.msk.bf16.gmra.mxu3 %vm512_vm3, %v9401_v24  ;;  %v3223_v30 = vpop.f32.mrf.mxu0 }
 0x33a   : > { %v3386_v33 = vpop.f32.mrf.mxu1 }
 0x33c   : > { %v3421_v37 = vpop.f32.mrf.mxu2  ;;  %v3587_v21 = vpop.f32.mrf.mxu3 }
 0x341   : > { %v3750_v38 = vpop.f32.mrf.mxu0 }
 0x342   : > { %v3910_v51 = vpop.f32.mrf.mxu1 }
 0x343   : > { %7524 = vmatmul.msk.bf16.gmra.mxu0 %vm512_vm3, %v9401_v24  ;;  %7537 = vmatmul.msk.bf16.gmra.mxu1 %vm512_vm3, %v9401_v24 }
 0x344   : > { %v3422_v28 = vpop.f32.mrf.mxu2  ;;  %v3588_v2 = vpop.f32.mrf.mxu3 }
 0x349   : > { %7491 = vmatmul.msk.bf16.gmra.mxu2 %vm512_vm3, %v9426_v9  ;;  %7508 = vmatmul.msk.bf16.gmra.mxu3 %vm512_vm3, %v9426_v9  ;;  %v3751_v46 = vpop.f32.mrf.mxu0 }
 0x34a   : > { %v3911_v1 = vpop.f32.mrf.mxu1 }
 0x34c   : > { %v3424_v27 = vpop.f32.mrf.mxu2  ;;  %v3590_v36 = vpop.f32.mrf.mxu3 }
 0x34d   : > { %v3480_v41 = vrot.slane %v3424_v27, 1  ;;  %v3646_v15 = vrot.slane %v3590_v36, 2 }
 0x351   : > { %v3753_v62 = vpop.f32.mrf.mxu0 }
 0x352   : > { %v3913_v44 = vpop.f32.mrf.mxu1 }
 0x353   : > { %7525 = vmatmul.msk.bf16.gmra.mxu0 %vm512_vm3, %v9426_v9  ;;  %7538 = vmatmul.msk.bf16.gmra.mxu1 %vm512_vm3, %v9426_v9 }
 0x354   : > { %v3426_v10 = vpop.f32.mrf.mxu2  ;;  %v3592_v56 = vpop.f32.mrf.mxu3 }
 0x355   : > { %v3481_v18 = vrot.slane %v3426_v10, 1  ;;  %v3647_v0 = vrot.slane %v3592_v56, 2 }
 0x357   : > { %v3482_v52 = vsel %vm2414_vm6, %v3480_v41, %v3481_v18  ;;  %v3486_v63 = vadd.f32 %v3481_v18, %v9683_v42  ;;  %v3648_v49 = vsel %vm2581_vm7, %v3646_v15, %v3647_v0 }
 0x358   : > { %v3485_v55 = vadd.f32 %v3482_v52, %v9672_v45  ;;  %v7962_v52 = vld [vmem:[%s11048_s3 + $0x24] sm:$0x30] }
 0x359   : > { %v3652_v19 = vadd.f32 %v3647_v0, %v3486_v63  ;;  %7492 = vmatmul.msk.bf16.gmra.mxu2 %vm512_vm3, %v9466_v11  ;;  %7509 = vmatmul.msk.bf16.gmra.mxu3 %vm512_vm3, %v9466_v11  ;;  %v3754_v47 = vpop.f32.mrf.mxu0  ;;  %v7557_v0 = vld [vmem:[%s11048_s3 + $0x24] sm:$0x8] }
 0x35a   : > { %v3651_v34 = vadd.f32 %v3648_v49, %v3485_v55  ;;  %v3914_v43 = vpop.f32.mrf.mxu1  ;;  %v3809_v45 = vrot.slane %v3754_v47, 4  ;;  %v7558_v49 = vor.u32 %v7962_v52, %v7557_v0 }
 0x35b   : > { %v3969_v28 = vrot.slane %v3914_v43, 5 }
 0x35c   : > { %v3429_v12 = vpop.f32.mrf.mxu2  ;;  %v3595_v26 = vpop.f32.mrf.mxu3 }
 0x35d   : > { %v3489_v17 = vrot.slane %v3429_v12, 1  ;;  %v3655_v33 = vrot.slane %v3595_v26, 2  ;;  %v4218_v12 = vrot.slane %v7558_v49, 3 }
 0x35f   : > { %v3490_v30 = vsel %vm2414_vm6, %v3481_v18, %v3489_v17 }
 0x360   : > { %v3495_v42 = vadd.f32 %v3490_v30, %v9681_v31 }
 0x361   : > { %v3757_v37 = vpop.f32.mrf.mxu0 }
 0x362   : > { %v3660_v21 = vadd.f32 %v3655_v33, %v3495_v42  ;;  %v3810_v38 = vrot.slane %v3757_v37, 4  ;;  %v3917_v51 = vpop.f32.mrf.mxu1 }
 0x363   : > { %v3970_v2 = vrot.slane %v3917_v51, 5  ;;  %7526 = vmatmul.msk.bf16.gmra.mxu0 %vm512_vm3, %v9466_v11  ;;  %7539 = vmatmul.msk.bf16.gmra.mxu1 %vm512_vm3, %v9466_v11  ;;  %v7963_v51 = vld [vmem:[%s11048_s3 + $0x28] sm:$0x10] }
 0x364   : > { %v3811_v46 = vsel %vm442_vm0, %v3809_v45, %v3810_v38  ;;  %v3815_v1 = vadd.f32 %v3810_v38, %v3652_v19  ;;  %v3431_v27 = vpop.f32.mrf.mxu2  ;;  %v3597_v36 = vpop.f32.mrf.mxu3  ;;  %v4633_v19 = vld [vmem:[%s11048_s3 + $0x30] sm:$0x7]  ;;  %v7574_v38 = vld [vmem:[%s11048_s3 + $0x28] sm:$0xc] }
 0x365   : > { %v3814_v62 = vadd.f32 %v3811_v46, %v3651_v34  ;;  %v3971_v44 = vsel %vm2249_vm4, %v3969_v28, %v3970_v2  ;;  %v3491_v31 = vrot.slane %v3431_v27, 1  ;;  %v3656_v10 = vrot.slane %v3597_v36, 2 }
 0x366   : > { %v9901_v56 = vadd.f32 %v3970_v2, %v3815_v1  ;;  %v4635_v26 = vsel %vm2249_vm4, %v4633_v19, 0  ;;  %v7575_v2 = vor.u32 %v7963_v51, %v7574_v38 }
 0x367   : > { %v9903_v41 = vadd.f32 %v3971_v44, %v3814_v62  ;;  %v3492_v15 = vsel %vm2414_vm6, %v3489_v17, %v3491_v31  ;;  %v3657_v18 = vsel %vm2581_vm7, %v3655_v33, %v3656_v10  ;;  %4644 = vmatpush.bf16.msrb.mxu2 %v4635_v26  ;;  %v4220_v33 = vsel %vm2249_vm4, %v4218_v12, 0 }
 0x368   : > { %v3496_v63 = vadd.f32 %v3492_v15, %v9692_v3  ;;  %4229 = vmatpush.bf16.msra.mxu3 %v4220_v33  ;;  %v4384_v36 = vrot.slane %v7575_v2, 2 }
 0x369   : > { %7493 = vmatmul.msk.bf16.gmra.mxu2 %vm512_vm3, %v9488_v61  ;;  %7510 = vmatmul.msk.bf16.gmra.mxu3 %vm512_vm3, %v9488_v61  ;;  %v3759_v55 = vpop.f32.mrf.mxu0 }
 0x36a   : > { %v3661_v47 = vadd.f32 %v3657_v18, %v3496_v63  ;;  %v3818_v34 = vrot.slane %v3759_v55, 4  ;;  %v3919_v43 = vpop.f32.mrf.mxu1  ;;  %v4386_v52 = vsel %vm2249_vm4, %v4384_v36, 0  ;;  %v4473_v63 = vld [vmem:[%s11048_s3 + $0x2c] sm:$0xe] }
 0x36b   : > { %v3978_v17 = vrot.slane %v3919_v43, 5  ;;  %4395 = vmatpush.bf16.msrb.mxu0 %v4386_v52 }
 0x36c   : > { %v3823_v3 = vadd.f32 %v3818_v34, %v3660_v21  ;;  %v3434_v30 = vpop.f32.mrf.mxu2  ;;  %v3600_v42 = vpop.f32.mrf.mxu3 }
 0x36d   : > { %v3498_v37 = vrot.slane %v3434_v30, 1  ;;  %v3663_v45 = vrot.slane %v3600_v42, 2 }
 0x36e   : > { %v9929_v28 = vadd.f32 %v3978_v17, %v3823_v3 }
 0x36f   : > { %v3499_v21 = vsel %vm2414_vm6, %v3491_v31, %v3498_v37  ;;  %v3503_v46 = vadd.f32 %v3498_v37, %v9732_v5  ;;  %v3664_v1 = vsel %vm2581_vm7, %v3656_v10, %v3663_v45  ;;  %v4475_v31 = vunpack.c.l.b16 %v4473_v63 }
 0x370   : > { %v3502_v27 = vadd.f32 %v3499_v21, %v9711_v8 }
 0x371   : > { %v3668_v62 = vadd.f32 %v3663_v45, %v3503_v46  ;;  %v3762_v44 = vpop.f32.mrf.mxu0  ;;  %v4476_v43 = vpack.c.b16 %v4475_v31, %v4475_v31 }
 0x372   : > { %v3819_v15 = vrot.slane %v3762_v44, 4  ;;  %v3922_v18 = vpop.f32.mrf.mxu1  ;;  %v3667_v0 = vadd.f32 %v3664_v1, %v3502_v27 }
 0x373   : > { %v3979_v49 = vrot.slane %v3922_v18, 5  ;;  %7527 = vmatmul.msk.bf16.gmra.mxu0 %vm512_vm3, %v9488_v61  ;;  %7540 = vmatmul.msk.bf16.gmra.mxu1 %vm512_vm3, %v9488_v61  ;;  %v4477_v26 = vrot.slane %v4476_v43, 1 }
 0x374   : > { %v3820_v5 = vsel %vm442_vm0, %v3818_v34, %v3819_v15  ;;  %v3436_v10 = vpop.f32.mrf.mxu2  ;;  %v3602_v55 = vpop.f32.mrf.mxu3 }
 0x375   : > { %v3824_v8 = vadd.f32 %v3820_v5, %v3661_v47  ;;  %v3980_v19 = vsel %vm2249_vm4, %v3978_v17, %v3979_v49  ;;  %v4479_v47 = vsel %vm2249_vm4, %v4477_v26, 0  ;;  %v3506_v45 = vrot.slane %v3436_v10, 1 }
 0x376   : > { %4488 = vmatpush.bf16.msrb.mxu1 %v4479_v47  ;;  %v3671_v38 = vrot.slane %v3602_v55, 2 }
 0x377   : > { %v9945_v12 = vadd.f32 %v3980_v19, %v3824_v8 }
 0x379   : > { %7494 = vmatmul.msk.bf16.gmra.mxu2 %vm512_vm3, %v9531_v50  ;;  %7511 = vmatmul.msk.bf16.gmra.mxu3 %vm512_vm3, %v9531_v50  ;;  %v3764_v34 = vpop.f32.mrf.mxu0 }
 0x37a   : > { %v3827_v3 = vrot.slane %v3764_v34, 4  ;;  %v3924_v30 = vpop.f32.mrf.mxu1 }
 0x37b   : > { %v3987_v42 = vrot.slane %v3924_v30, 5 }
 0x37c   : > { %v3832_v17 = vadd.f32 %v3827_v3, %v3667_v0  ;;  %v3439_v33 = vpop.f32.mrf.mxu2  ;;  %v3605_v37 = vpop.f32.mrf.mxu3 }
 0x37d   : > { %v3507_v51 = vrot.slane %v3439_v33, 1  ;;  %v3672_v2 = vrot.slane %v3605_v37, 2 }
 0x37e   : > { %v9952_v21 = vadd.f32 %v3987_v42, %v3832_v17 }
 0x37f   : > { %v3508_v46 = vsel %vm2414_vm6, %v3506_v45, %v3507_v51  ;;  %v3512_v1 = vadd.f32 %v3507_v51, %v9750_v22  ;;  %v3673_v27 = vsel %vm2581_vm7, %v3671_v38, %v3672_v2 }
 0x380   : > { %v3511_v36 = vadd.f32 %v3508_v46, %v9739_v54 }
 0x381   : > { %v3677_v44 = vadd.f32 %v3672_v2, %v3512_v1  ;;  %v3767_v15 = vpop.f32.mrf.mxu0 }
 0x382   : > { %v3676_v18 = vadd.f32 %v3673_v27, %v3511_v36  ;;  %v3828_v0 = vrot.slane %v3767_v15, 4  ;;  %v3927_v52 = vpop.f32.mrf.mxu1 }
 0x383   : > { %v3988_v63 = vrot.slane %v3927_v52, 5  ;;  %7528 = vmatmul.msk.bf16.gmra.mxu0 %vm512_vm3, %v9531_v50  ;;  %7541 = vmatmul.msk.bf16.gmra.mxu1 %vm512_vm3, %v9531_v50 }
 0x384   : > { %v3829_v49 = vsel %vm442_vm0, %v3827_v3, %v3828_v0  ;;  %v3441_v31 = vpop.f32.mrf.mxu2  ;;  %v3607_v5 = vpop.f32.mrf.mxu3 }
 0x385   : > { %v3833_v10 = vadd.f32 %v3829_v49, %v3668_v62  ;;  %v3989_v22 = vsel %vm2249_vm4, %v3987_v42, %v3988_v63  ;;  %v3515_v26 = vrot.slane %v3441_v31, 1  ;;  %v3680_v34 = vrot.slane %v3607_v5, 2 }
 0x387   : > { %v9964_v54 = vadd.f32 %v3989_v22, %v3833_v10 }
 0x389   : > { %7542 = vmatmul.msk.bf16.vlgmr.msra.gmra.mxu2 %vm512_vm3, %v9022_v58  ;;  %7559 = vmatmul.msk.bf16.vlgmr.msra.gmra.mxu3 %vm512_vm3, %v9022_v58  ;;  %v3769_v55 = vpop.f32.mrf.mxu0 }
 0x38a   : > { %v3835_v8 = vrot.slane %v3769_v55, 4  ;;  %v3929_v19 = vpop.f32.mrf.mxu1 }
 0x38b   : > { %v3996_v43 = vrot.slane %v3929_v19, 5 }
 0x38c   : > { %v3836_v62 = vsel %vm442_vm0, %v3828_v0, %v3835_v8  ;;  %v3840_v3 = vadd.f32 %v3835_v8, %v3677_v44  ;;  %v3444_v30 = vpop.f32.mrf.mxu2  ;;  %v3610_v47 = vpop.f32.mrf.mxu3 }
 0x38d   : > { %v3839_v17 = vadd.f32 %v3836_v62, %v3676_v18  ;;  %v3997_v42 = vsel %vm2249_vm4, %v3988_v63, %v3996_v43  ;;  %v3516_v33 = vrot.slane %v3444_v30, 1  ;;  %v3681_v37 = vrot.slane %v3610_v47, 2 }
 0x38f   : > { %v3517_v45 = vsel %vm2414_vm6, %v3515_v26, %v3516_v33  ;;  %v3521_v38 = vadd.f32 %v3516_v33, %v9770_v60  ;;  %v3682_v51 = vsel %vm2581_vm7, %v3680_v34, %v3681_v37  ;;  %v9975_v2 = vadd.f32 %v3997_v42, %v3839_v17 }
 0x390   : > { %v3520_v46 = vadd.f32 %v3517_v45, %v9759_v32 }
 0x391   : > { %v3686_v1 = vadd.f32 %v3681_v37, %v3521_v38  ;;  %v3772_v27 = vpop.f32.mrf.mxu0 }
 0x392   : > { %v3685_v36 = vadd.f32 %v3682_v51, %v3520_v46  ;;  %v3932_v44 = vpop.f32.mrf.mxu1  ;;  %v3843_v10 = vrot.slane %v3772_v27, 4 }
 0x393   : > { %v3998_v15 = vrot.slane %v3932_v44, 5  ;;  %7576 = vmatmul.msk.bf16.vlgmr.msrb.gmra.mxu0 %vm512_vm3, %v9022_v58  ;;  %7589 = vmatmul.msk.bf16.vlgmr.msrb.gmra.mxu1 %vm512_vm3, %v9022_v58 }
 0x394   : > { %v3446_v18 = vpop.f32.mrf.mxu2  ;;  %v3612_v0 = vpop.f32.mrf.mxu3 }
 0x395   : > { %v3999_v52 = vsel %vm2249_vm4, %v3996_v43, %v3998_v15  ;;  %v3524_v63 = vrot.slane %v3446_v18, 1  ;;  %v3689_v31 = vrot.slane %v3612_v0, 2 }
 0x396   : > { %v9983_v60 = vadd.f32 %v3999_v52, %v3840_v3 }
 0x397   : > { %v3525_v32 = vsel %vm2414_vm6, %v3516_v33, %v3524_v63 }
 0x398   : > { %v3530_v49 = vadd.f32 %v3525_v32, %v9768_v6 }
 0x399   : > { %7543 = vmatmul.msk.bf16.gmra.mxu2 %vm512_vm3, %v9085_v20  ;;  %7560 = vmatmul.msk.bf16.gmra.mxu3 %vm512_vm3, %v9085_v20  ;;  %v3774_v5 = vpop.f32.mrf.mxu0 }
 0x39a   : > { %v3694_v22 = vadd.f32 %v3689_v31, %v3530_v49  ;;  %v3844_v55 = vrot.slane %v3774_v5, 4  ;;  %v3934_v8 = vpop.f32.mrf.mxu1 }
 0x39b   : > { %v4005_v19 = vrot.slane %v3934_v8, 5 }
 0x39c   : > { %v3845_v43 = vsel %vm442_vm0, %v3843_v10, %v3844_v55  ;;  %v3849_v26 = vadd.f32 %v3844_v55, %v3686_v1  ;;  %v3449_v34 = vpop.f32.mrf.mxu2  ;;  %v3615_v62 = vpop.f32.mrf.mxu3 }
 0x39d   : > { %v3848_v3 = vadd.f32 %v3845_v43, %v3685_v36  ;;  %v4006_v6 = vsel %vm2249_vm4, %v3998_v15, %v4005_v19  ;;  %v3526_v30 = vrot.slane %v3449_v34, 1  ;;  %v3690_v47 = vrot.slane %v3615_v62, 2 }
 0x39e   : > { %v9993_v17 = vadd.f32 %v4005_v19, %v3849_v26 }
 0x39f   : > { %v9995_v42 = vadd.f32 %v4006_v6, %v3848_v3  ;;  %v3527_v33 = vsel %vm2414_vm6, %v3524_v63, %v3526_v30  ;;  %v3691_v37 = vsel %vm2581_vm7, %v3689_v31, %v3690_v47 }
 0x3a0   : > { %v3531_v45 = vadd.f32 %v3527_v33, %v9779_v29 }
 0x3a1   : > { %v3777_v38 = vpop.f32.mrf.mxu0 }
 0x3a2   : > { %v3695_v51 = vadd.f32 %v3691_v37, %v3531_v45  ;;  %v3852_v46 = vrot.slane %v3777_v38, 4  ;;  %v3937_v1 = vpop.f32.mrf.mxu1 }
 0x3a3   : > { %v4013_v36 = vrot.slane %v3937_v1, 5  ;;  %7577 = vmatmul.msk.bf16.gmra.mxu0 %vm512_vm3, %v9085_v20  ;;  %7590 = vmatmul.msk.bf16.gmra.mxu1 %vm512_vm3, %v9085_v20 }
 0x3a4   : > { %v3857_v27 = vadd.f32 %v3852_v46, %v3694_v22  ;;  %v3451_v44 = vpop.f32.mrf.mxu2  ;;  %v3617_v15 = vpop.f32.mrf.mxu3 }
 0x3a5   : > { %v3533_v18 = vrot.slane %v3451_v44, 1  ;;  %v3697_v0 = vrot.slane %v3617_v15, 2 }
 0x3a6   : > { %v10004_v52 = vadd.f32 %v4013_v36, %v3857_v27 }
 0x3a7   : > { %v3534_v29 = vsel %vm2414_vm6, %v3526_v30, %v3533_v18  ;;  %v3538_v63 = vadd.f32 %v3533_v18, %v9798_v59  ;;  %v3698_v32 = vsel %vm2581_vm7, %v3690_v47, %v3697_v0 }
 0x3a8   : > { %v3537_v49 = vadd.f32 %v3534_v29, %v9787_v25 }
 0x3a9   : > { %v3702_v31 = vadd.f32 %v3697_v0, %v3538_v63  ;;  %7544 = vmatmul.msk.bf16.gmra.mxu2 %vm512_vm3, %v9127_v35  ;;  %7561 = vmatmul.msk.bf16.gmra.mxu3 %vm512_vm3, %v9127_v35  ;;  %v3779_v5 = vpop.f32.mrf.mxu0 }
 0x3aa   : > { %v3853_v10 = vrot.slane %v3779_v5, 4  ;;  %v3939_v22 = vpop.f32.mrf.mxu1  ;;  %v3701_v55 = vadd.f32 %v3698_v32, %v3537_v49 }
 0x3ab   : > { %v4014_v8 = vrot.slane %v3939_v22, 5 }
 0x3ac   : > { %v3854_v19 = vsel %vm442_vm0, %v3852_v46, %v3853_v10  ;;  %v3454_v43 = vpop.f32.mrf.mxu2  ;;  %v3620_v59 = vpop.f32.mrf.mxu3 }
 0x3ad   : > { %v3858_v26 = vadd.f32 %v3854_v19, %v3695_v51  ;;  %v4015_v34 = vsel %vm2249_vm4, %v4013_v36, %v4014_v8  ;;  %v3541_v45 = vrot.slane %v3454_v43, 1  ;;  %v3705_v38 = vrot.slane %v3620_v59, 2 }
 0x3af   : > { %v10016_v25 = vadd.f32 %v4015_v34, %v3858_v26 }
 0x3b1   : > { %v3782_v62 = vpop.f32.mrf.mxu0 }
 0x3b2   : > { %v3861_v3 = vrot.slane %v3782_v62, 4  ;;  %v3942_v6 = vpop.f32.mrf.mxu1 }
 0x3b3   : > { %v4022_v47 = vrot.slane %v3942_v6, 5  ;;  %7578 = vmatmul.msk.bf16.gmra.mxu0 %vm512_vm3, %v9127_v35  ;;  %7591 = vmatmul.msk.bf16.gmra.mxu1 %vm512_vm3, %v9127_v35 }
 0x3b4   : > { %v3866_v30 = vadd.f32 %v3861_v3, %v3701_v55  ;;  %v3456_v33 = vpop.f32.mrf.mxu2  ;;  %v3622_v37 = vpop.f32.mrf.mxu3 }
 0x3b5   : > { %v3542_v46 = vrot.slane %v3456_v33, 1  ;;  %v3706_v1 = vrot.slane %v3622_v37, 2 }
 0x3b6   : > { %v10022_v51 = vadd.f32 %v4022_v47, %v3866_v30 }
 0x3b7   : > { %v3543_v27 = vsel %vm2414_vm6, %v3541_v45, %v3542_v46  ;;  %v3547_v36 = vadd.f32 %v3542_v46, %v9815_v7  ;;  %v3707_v44 = vsel %vm2581_vm7, %v3705_v38, %v3706_v1 }
 0x3b8   : > { %v3546_v15 = vadd.f32 %v3543_v27, %v9804_v4 }
 0x3b9   : > { %v3711_v18 = vadd.f32 %v3706_v1, %v3547_v36  ;;  %7545 = vmatmul.msk.bf16.gmra.mxu2 %vm512_vm3, %v9177_v57  ;;  %7562 = vmatmul.msk.bf16.gmra.mxu3 %vm512_vm3, %v9177_v57  ;;  %v3784_v0 = vpop.f32.mrf.mxu0 }
 0x3ba   : > { %v3710_v29 = vadd.f32 %v3707_v44, %v3546_v15  ;;  %v3862_v63 = vrot.slane %v3784_v0, 4  ;;  %v3944_v32 = vpop.f32.mrf.mxu1 }
 0x3bb   : > { %v4023_v49 = vrot.slane %v3944_v32, 5 }
 0x3bc   : > { %v3863_v5 = vsel %vm442_vm0, %v3861_v3, %v3862_v63  ;;  %v3459_v10 = vpop.f32.mrf.mxu2  ;;  %v3625_v7 = vpop.f32.mrf.mxu3 }
 0x3bd   : > { %v3867_v22 = vadd.f32 %v3863_v5, %v3702_v31  ;;  %v4024_v55 = vsel %vm2249_vm4, %v4022_v47, %v4023_v49  ;;  %v3550_v26 = vrot.slane %v3459_v10, 1  ;;  %v3714_v34 = vrot.slane %v3625_v7, 2 }
 0x3bf   : > { %v10034_v4 = vadd.f32 %v4024_v55, %v3867_v22 }
 0x3c1   : > { %v3787_v8 = vpop.f32.mrf.mxu0 }
 0x3c2   : > { %v3869_v19 = vrot.slane %v3787_v8, 4  ;;  %v3947_v43 = vpop.f32.mrf.mxu1 }
 0x3c3   : > { %v4031_v59 = vrot.slane %v3947_v43, 5  ;;  %7579 = vmatmul.msk.bf16.gmra.mxu0 %vm512_vm3, %v9177_v57  ;;  %7592 = vmatmul.msk.bf16.gmra.mxu1 %vm512_vm3, %v9177_v57 }
 0x3c4   : > { %v3870_v62 = vsel %vm442_vm0, %v3862_v63, %v3869_v19  ;;  %v3874_v6 = vadd.f32 %v3869_v19, %v3711_v18  ;;  %v3461_v30 = vpop.f32.mrf.mxu2  ;;  %v3627_v33 = vpop.f32.mrf.mxu3 }
 0x3c5   : > { %v3873_v3 = vadd.f32 %v3870_v62, %v3710_v29  ;;  %v4032_v31 = vsel %vm2249_vm4, %v4023_v49, %v4031_v59  ;;  %v3551_v47 = vrot.slane %v3461_v30, 1  ;;  %v3715_v37 = vrot.slane %v3627_v33, 2 }
 0x3c7   : > { %v3552_v45 = vsel %vm2414_vm6, %v3550_v26, %v3551_v47  ;;  %v3556_v38 = vadd.f32 %v3551_v47, %v9835_v13  ;;  %v3716_v46 = vsel %vm2581_vm7, %v3714_v34, %v3715_v37  ;;  %v10045_v1 = vadd.f32 %v4032_v31, %v3873_v3 }
 0x3c8   : > { %v3555_v27 = vadd.f32 %v3552_v45, %v9824_v48 }
 0x3c9   : > { %v3720_v36 = vadd.f32 %v3715_v37, %v3556_v38  ;;  %7546 = vmatmul.msk.bf16.gmra.mxu2 %vm512_vm3, %v9217_v23  ;;  %7563 = vmatmul.msk.bf16.gmra.mxu3 %vm512_vm3, %v9217_v23  ;;  %v3789_v44 = vpop.f32.mrf.mxu0 }
 0x3ca   : > { %v3719_v15 = vadd.f32 %v3716_v46, %v3555_v27  ;;  %v3949_v18 = vpop.f32.mrf.mxu1  ;;  %v3877_v22 = vrot.slane %v3789_v44, 4 }
 0x3cb   : > { %v4033_v0 = vrot.slane %v3949_v18, 5 }
 0x3cc   : > { %v3464_v29 = vpop.f32.mrf.mxu2  ;;  %v3630_v63 = vpop.f32.mrf.mxu3 }
 0x3cd   : > { %v4034_v13 = vsel %vm2249_vm4, %v4031_v59, %v4033_v0  ;;  %v3559_v32 = vrot.slane %v3464_v29, 1  ;;  %v3723_v10 = vrot.slane %v3630_v63, 2 }
 0x3ce   : > { %v10053_v49 = vadd.f32 %v4034_v13, %v3874_v6 }
 0x3cf   : > { %v3560_v48 = vsel %vm2414_vm6, %v3551_v47, %v3559_v32 }
 0x3d0   : > { %v3565_v5 = vadd.f32 %v3560_v48, %v9833_v16 }
 0x3d1   : > { %v3792_v7 = vpop.f32.mrf.mxu0 }
 0x3d2   : > { %v3728_v55 = vadd.f32 %v3723_v10, %v3565_v5  ;;  %v3878_v8 = vrot.slane %v3792_v7, 4  ;;  %v3952_v19 = vpop.f32.mrf.mxu1 }
 0x3d3   : > { %v4040_v43 = vrot.slane %v3952_v19, 5  ;;  %7580 = vmatmul.msk.bf16.gmra.mxu0 %vm512_vm3, %v9217_v23  ;;  %7593 = vmatmul.msk.bf16.gmra.mxu1 %vm512_vm3, %v9217_v23 }
 0x3d4   : > { %v3879_v26 = vsel %vm442_vm0, %v3877_v22, %v3878_v8  ;;  %v3883_v34 = vadd.f32 %v3878_v8, %v3720_v36  ;;  %v3466_v62 = vpop.f32.mrf.mxu2  ;;  %v3632_v30 = vpop.f32.mrf.mxu3 }
 0x3d5   : > { %v3882_v59 = vadd.f32 %v3879_v26, %v3719_v15  ;;  %v4041_v6 = vsel %vm2249_vm4, %v4033_v0, %v4040_v43  ;;  %v3561_v33 = vrot.slane %v3466_v62, 1  ;;  %v3724_v16 = vrot.slane %v3632_v30, 2 }
 0x3d6   : > { %v10063_v3 = vadd.f32 %v4040_v43, %v3883_v34 }
 0x3d7   : > { %v10065_v31 = vadd.f32 %v4041_v6, %v3882_v59  ;;  %v3562_v47 = vsel %vm2414_vm6, %v3559_v32, %v3561_v33  ;;  %v3725_v37 = vsel %vm2581_vm7, %v3723_v10, %v3724_v16 }
 0x3d8   : > { %v3566_v45 = vadd.f32 %v3562_v47, %v9843_v14 }
 0x3d9   : > { %7547 = vmatmul.msk.bf16.gmra.mxu2 %vm512_vm3, %v9267_v40  ;;  %7564 = vmatmul.msk.bf16.gmra.mxu3 %vm512_vm3, %v9267_v40  ;;  %v3794_v38 = vpop.f32.mrf.mxu0 }
 0x3da   : > { %v3729_v46 = vadd.f32 %v3725_v37, %v3566_v45  ;;  %v3886_v27 = vrot.slane %v3794_v38, 4  ;;  %v3954_v36 = vpop.f32.mrf.mxu1 }
 0x3db   : > { %v4048_v15 = vrot.slane %v3954_v36, 5 }
 0x3dc   : > { %v3891_v44 = vadd.f32 %v3886_v27, %v3728_v55  ;;  %v3469_v18 = vpop.f32.mrf.mxu2  ;;  %v3635_v0 = vpop.f32.mrf.mxu3 }
 0x3de   : > { %v10074_v29 = vadd.f32 %v4048_v15, %v3891_v44 }
 0x3e1   : > { %v3797_v63 = vpop.f32.mrf.mxu0 }
 0x3e2   : > { %v3887_v13 = vrot.slane %v3797_v63, 4  ;;  %v3957_v32 = vpop.f32.mrf.mxu1 }
 0x3e3   : > { %v4049_v14 = vrot.slane %v3957_v32, 5  ;;  %7581 = vmatmul.msk.bf16.gmra.mxu0 %vm512_vm3, %v9267_v40  ;;  %7594 = vmatmul.msk.bf16.gmra.mxu1 %vm512_vm3, %v9267_v40 }
 0x3e4   : > { %v3888_v48 = vsel %vm442_vm0, %v3886_v27, %v3887_v13  ;;  %v3470_v5 = vpop.f32.mrf.mxu2  ;;  %v3636_v10 = vpop.f32.mrf.mxu3 }
 0x3e5   : > { %v3892_v7 = vadd.f32 %v3888_v48, %v3729_v46  ;;  %v4050_v22 = vsel %vm2249_vm4, %v4048_v15, %v4049_v14 }
 0x3e7   : > { %v10082_v55 = vadd.f32 %v4050_v22, %v3892_v7 }
 0x3e9   : > { %7548 = vmatmul.msk.bf16.gmra.mxu2 %vm512_vm3, %v9313_v53  ;;  %7565 = vmatmul.msk.bf16.gmra.mxu3 %vm512_vm3, %v9313_v53  ;;  %v3799_v8 = vpop.f32.mrf.mxu0 }
 0x3ea   : > { %v3959_v19 = vpop.f32.mrf.mxu1 }
 0x3ec   : > { %v3472_v43 = vpop.f32.mrf.mxu2  ;;  %v3638_v26 = vpop.f32.mrf.mxu3 }
 0x3f1   : > { %v3801_v34 = vpop.f32.mrf.mxu0 }
 0x3f2   : > { %v3961_v62 = vpop.f32.mrf.mxu1 }
 0x3f3   : > { %7582 = vmatmul.msk.bf16.gmra.mxu0 %vm512_vm3, %v9313_v53  ;;  %7595 = vmatmul.msk.bf16.gmra.mxu1 %vm512_vm3, %v9313_v53 }
 0x3f4   : > { %v3473_v30 = vpop.f32.mrf.mxu2  ;;  %v3639_v59 = vpop.f32.mrf.mxu3 }
 0x3f9   : > { %7549 = vmatmul.msk.bf16.gmra.mxu2 %vm512_vm3, %v9363_v39  ;;  %7566 = vmatmul.msk.bf16.gmra.mxu3 %vm512_vm3, %v9363_v39  ;;  %v3802_v6 = vpop.f32.mrf.mxu0 }
 0x3fa   : > { %v3962_v33 = vpop.f32.mrf.mxu1 }
 0x3fc   : > { %v3475_v16 = vpop.f32.mrf.mxu2  ;;  %v3641_v47 = vpop.f32.mrf.mxu3 }
 0x401   : > { %v3804_v37 = vpop.f32.mrf.mxu0 }
 0x402   : > { %v3964_v45 = vpop.f32.mrf.mxu1 }
 0x403   : > { %7583 = vmatmul.msk.bf16.gmra.mxu0 %vm512_vm3, %v9363_v39  ;;  %7596 = vmatmul.msk.bf16.gmra.mxu1 %vm512_vm3, %v9363_v39 }
 0x404   : > { %v3476_v38 = vpop.f32.mrf.mxu2  ;;  %v3642_v46 = vpop.f32.mrf.mxu3 }
 0x409   : > { %7550 = vmatmul.msk.bf16.gmra.mxu2 %vm512_vm3, %v9401_v24  ;;  %7567 = vmatmul.msk.bf16.gmra.mxu3 %vm512_vm3, %v9401_v24  ;;  %v3805_v27 = vpop.f32.mrf.mxu0 }
 0x40a   : > { %v3965_v36 = vpop.f32.mrf.mxu1 }
 0x40c   : > { %v4068_v44 = vpop.f32.mrf.mxu2  ;;  %v4231_v15 = vpop.f32.mrf.mxu3 }
 0x411   : > { %v4397_v18 = vpop.f32.mrf.mxu0 }
 0x412   : > { %v4490_v0 = vpop.f32.mrf.mxu1 }
 0x413   : > { %7584 = vmatmul.msk.bf16.gmra.mxu0 %vm512_vm3, %v9401_v24  ;;  %7597 = vmatmul.msk.bf16.gmra.mxu1 %vm512_vm3, %v9401_v24 }
 0x414   : > { %v4069_v63 = vpop.f32.mrf.mxu2  ;;  %v4232_v13 = vpop.f32.mrf.mxu3 }
 0x419   : > { %7551 = vmatmul.msk.bf16.gmra.mxu2 %vm512_vm3, %v9426_v9  ;;  %7568 = vmatmul.msk.bf16.gmra.mxu3 %vm512_vm3, %v9426_v9  ;;  %v4398_v32 = vpop.f32.mrf.mxu0 }
 0x41a   : > { %v4491_v14 = vpop.f32.mrf.mxu1 }
 0x41c   : > { %v4071_v48 = vpop.f32.mrf.mxu2  ;;  %v4234_v5 = vpop.f32.mrf.mxu3 }
 0x421   : > { %v4400_v10 = vpop.f32.mrf.mxu0 }
 0x422   : > { %v4493_v7 = vpop.f32.mrf.mxu1  ;;  %v5279_v10 = vld [vmem:[%s11048_s3 + $0x3c] sm:$0x7] }
 0x423   : > { %7585 = vmatmul.msk.bf16.gmra.mxu0 %vm512_vm3, %v9426_v9  ;;  %7598 = vmatmul.msk.bf16.gmra.mxu1 %vm512_vm3, %v9426_v9 }
 0x424   : > { %v4072_v22 = vpop.f32.mrf.mxu2  ;;  %v4235_v8 = vpop.f32.mrf.mxu3 }
 0x425   : > { %v4127_v62 = vrot.slane %v4072_v22, 6  ;;  %v4291_v30 = vrot.slane %v4235_v8, 7 }
 0x429   : > { %7552 = vmatmul.msk.bf16.gmra.mxu2 %vm512_vm3, %v9466_v11  ;;  %7569 = vmatmul.msk.bf16.gmra.mxu3 %vm512_vm3, %v9466_v11  ;;  %v4401_v19 = vpop.f32.mrf.mxu0 }
 0x42a   : > { %v4494_v43 = vpop.f32.mrf.mxu1 }
 0x42c   : > { %v4075_v26 = vpop.f32.mrf.mxu2  ;;  %v4238_v34 = vpop.f32.mrf.mxu3 }
 0x42d   : > { %v4128_v59 = vrot.slane %v4075_v26, 6  ;;  %v4292_v6 = vrot.slane %v4238_v34, 7 }
 0x42f   : > { %v4129_v33 = vsel %vm3063_vm8, %v4127_v62, %v4128_v59  ;;  %v4133_v16 = vadd.f32 %v4128_v59, %v9901_v56  ;;  %v4293_v47 = vsel %vm3228_vm9, %v4291_v30, %v4292_v6  ;;  %v7617_v56 = vld [vmem:[%s11048_s3 + $0x30] sm:$0x8]  ;;  %v7634_v30 = vld [vmem:[%s11048_s3 + $0x34] sm:$0xc]  ;;  %v7965_v59 = vld [vmem:[%s11048_s3 + $0x34] sm:$0x10] }
 0x430   : > { %v4132_v37 = vadd.f32 %v4129_v33, %v9903_v41  ;;  %v7964_v41 = vld [vmem:[%s11048_s3 + $0x30] sm:$0x30] }
 0x431   : > { %v4403_v45 = vpop.f32.mrf.mxu0  ;;  %v7618_v13 = vor.u32 %v7964_v41, %v7617_v56 }
 0x432   : > { %v4298_v38 = vadd.f32 %v4293_v47, %v4132_v37  ;;  %v4496_v46 = vpop.f32.mrf.mxu1  ;;  %v5119_v47 = vld [vmem:[%s11048_s3 + $0x38] sm:$0xe] }
 0x433   : > { %7586 = vmatmul.msk.bf16.gmra.mxu0 %vm512_vm3, %v9466_v11  ;;  %7599 = vmatmul.msk.bf16.gmra.mxu1 %vm512_vm3, %v9466_v11  ;;  %v4798_v5 = vrot.slane %v7618_v13, 3 }
 0x434   : > { %v4453_v27 = vadd.f32 %v4403_v45, %v4298_v38  ;;  %v4077_v36 = vpop.f32.mrf.mxu2  ;;  %v4240_v44 = vpop.f32.mrf.mxu3  ;;  %v5121_v45 = vunpack.c.l.b16 %v5119_v47 }
 0x435   : > { %v4136_v15 = vrot.slane %v4077_v36, 6  ;;  %v4294_v18 = vrot.slane %v4240_v44, 7  ;;  %v4800_v19 = vsel %vm2249_vm4, %v4798_v5, 0 }
 0x436   : > { %4809 = vmatpush.bf16.msrb.mxu3 %v4800_v19  ;;  %v5122_v56 = vpack.c.b16 %v5121_v45, %v5121_v45 }
 0x437   : > { %v4141_v0 = vadd.f32 %v4136_v15, %v9929_v28  ;;  %v4295_v63 = vsel %vm3228_vm9, %v4292_v6, %v4294_v18  ;;  %v5281_v28 = vsel %vm2249_vm4, %v5279_v10, 0 }
 0x438   : > { %v4299_v32 = vadd.f32 %v4295_v63, %v4133_v16  ;;  %5290 = vmatpush.bf16.msra.mxu2 %v5281_v28  ;;  %v7635_v16 = vor.u32 %v7965_v59, %v7634_v30 }
 0x439   : > { %7553 = vmatmul.msk.bf16.gmra.mxu2 %vm512_vm3, %v9488_v61  ;;  %7570 = vmatmul.msk.bf16.gmra.mxu3 %vm512_vm3, %v9488_v61  ;;  %v4305_v14 = vadd.f32 %v4294_v18, %v4141_v0  ;;  %v4405_v48 = vpop.f32.mrf.mxu0 }
 0x43a   : > { %v4454_v7 = vadd.f32 %v4405_v48, %v4299_v32  ;;  %v4497_v22 = vpop.f32.mrf.mxu1  ;;  %v4961_v46 = vrot.slane %v7635_v16, 2  ;;  %v5123_v32 = vrot.slane %v5122_v56, 1 }
 0x43b   : > { %v4455_v8 = vadd.f32 %v4405_v48, %v4305_v14  ;;  %v4549_v41 = vrot.slane %v4497_v22, 2 }
 0x43c   : > { %v4080_v43 = vpop.f32.mrf.mxu2  ;;  %v4243_v26 = vpop.f32.mrf.mxu3  ;;  %v4963_v63 = vsel %vm2249_vm4, %v4961_v46, 0  ;;  %v5125_v10 = vsel %vm2249_vm4, %v5123_v32, 0 }
 0x43d   : > { %v4137_v34 = vrot.slane %v4080_v43, 6  ;;  %v4301_v62 = vrot.slane %v4243_v26, 7  ;;  %4972 = vmatpush.bf16.msra.mxu0 %v4963_v63  ;;  %5134 = vmatpush.bf16.msra.mxu1 %v5125_v10 }
 0x43f   : > { %v4138_v6 = vsel %vm3063_vm8, %v4136_v15, %v4137_v34  ;;  %v4302_v33 = vsel %vm3228_vm9, %v4294_v18, %v4301_v62 }
 0x440   : > { %v4142_v37 = vadd.f32 %v4138_v6, %v9945_v12 }
 0x441   : > { %v4408_v38 = vpop.f32.mrf.mxu0 }
 0x442   : > { %v4306_v36 = vadd.f32 %v4302_v33, %v4142_v37  ;;  %v4500_v44 = vpop.f32.mrf.mxu1 }
 0x443   : > { %v4550_v0 = vrot.slane %v4500_v44, 2  ;;  %7587 = vmatmul.msk.bf16.gmra.mxu0 %vm512_vm3, %v9488_v61  ;;  %7600 = vmatmul.msk.bf16.gmra.mxu1 %vm512_vm3, %v9488_v61 }
 0x444   : > { %v4456_v15 = vadd.f32 %v4408_v38, %v4306_v36  ;;  %v4082_v13 = vpop.f32.mrf.mxu2  ;;  %v4245_v18 = vpop.f32.mrf.mxu3 }
 0x445   : > { %v4551_v14 = vsel %vm2581_vm7, %v4549_v41, %v4550_v0  ;;  %v10161_v12 = vadd.f32 %v4550_v0, %v4454_v7  ;;  %v4145_v48 = vrot.slane %v4082_v13, 6  ;;  %v4309_v28 = vrot.slane %v4245_v18, 7 }
 0x446   : > { %v10165_v5 = vadd.f32 %v4551_v14, %v4453_v27 }
 0x447   : > { %v4150_v22 = vadd.f32 %v4145_v48, %v9952_v21 }
 0x449   : > { %7554 = vmatmul.msk.bf16.gmra.mxu2 %vm512_vm3, %v9531_v50  ;;  %7571 = vmatmul.msk.bf16.gmra.mxu3 %vm512_vm3, %v9531_v50  ;;  %v4314_v7 = vadd.f32 %v4309_v28, %v4150_v22  ;;  %v4410_v19 = vpop.f32.mrf.mxu0 }
 0x44a   : > { %v4502_v43 = vpop.f32.mrf.mxu1 }
 0x44b   : > { %v4457_v26 = vadd.f32 %v4410_v19, %v4314_v7  ;;  %v4558_v34 = vrot.slane %v4502_v43, 2 }
 0x44c   : > { %v4085_v62 = vpop.f32.mrf.mxu2  ;;  %v4248_v27 = vpop.f32.mrf.mxu3 }
 0x44d   : > { %v10173_v30 = vadd.f32 %v4558_v34, %v4455_v8  ;;  %v4146_v59 = vrot.slane %v4085_v62, 6  ;;  %v4310_v6 = vrot.slane %v4248_v27, 7 }
 0x44f   : > { %v4147_v21 = vsel %vm3063_vm8, %v4145_v48, %v4146_v59  ;;  %v4311_v33 = vsel %vm3228_vm9, %v4309_v28, %v4310_v6 }
 0x450   : > { %v4151_v16 = vadd.f32 %v4147_v21, %v9964_v54 }
 0x451   : > { %v4413_v47 = vpop.f32.mrf.mxu0 }
 0x452   : > { %v4315_v37 = vadd.f32 %v4311_v33, %v4151_v16  ;;  %v4505_v45 = vpop.f32.mrf.mxu1 }
 0x453   : > { %v4559_v38 = vrot.slane %v4505_v45, 2  ;;  %7588 = vmatmul.msk.bf16.gmra.mxu0 %vm512_vm3, %v9531_v50  ;;  %7601 = vmatmul.msk.bf16.gmra.mxu1 %vm512_vm3, %v9531_v50 }
 0x454   : > { %v4458_v46 = vadd.f32 %v4413_v47, %v4315_v37  ;;  %v4087_v36 = vpop.f32.mrf.mxu2  ;;  %v4250_v44 = vpop.f32.mrf.mxu3 }
 0x455   : > { %v4560_v8 = vsel %vm2581_vm7, %v4558_v34, %v4559_v38  ;;  %v4154_v56 = vrot.slane %v4087_v36, 6  ;;  %v4318_v0 = vrot.slane %v4250_v44, 7 }
 0x456   : > { %v10183_v41 = vadd.f32 %v4560_v8, %v4456_v15 }
 0x457   : > { %v4159_v54 = vadd.f32 %v4154_v56, %v9975_v2 }
 0x459   : > { %7602 = vmatmul.msk.bf16.vlgmr.msrb.gmra.mxu2 %vm512_vm3, %v9022_v58  ;;  %7619 = vmatmul.msk.bf16.vlgmr.msrb.gmra.mxu3 %vm512_vm3, %v9022_v58  ;;  %v4323_v63 = vadd.f32 %v4318_v0, %v4159_v54  ;;  %v4415_v13 = vpop.f32.mrf.mxu0 }
 0x45a   : > { %v4507_v18 = vpop.f32.mrf.mxu1 }
 0x45b   : > { %v4459_v32 = vadd.f32 %v4415_v13, %v4323_v63  ;;  %v4566_v14 = vrot.slane %v4507_v18, 2 }
 0x45c   : > { %v4090_v48 = vpop.f32.mrf.mxu2  ;;  %v4253_v10 = vpop.f32.mrf.mxu3 }
 0x45d   : > { %v4567_v22 = vsel %vm2581_vm7, %v4559_v38, %v4566_v14  ;;  %v10191_v15 = vadd.f32 %v4566_v14, %v4458_v46  ;;  %v4155_v28 = vrot.slane %v4090_v48, 6  ;;  %v4319_v2 = vrot.slane %v4253_v10, 7 }
 0x45e   : > { %v10193_v7 = vadd.f32 %v4567_v22, %v4457_v26 }
 0x45f   : > { %v4156_v19 = vsel %vm3063_vm8, %v4154_v56, %v4155_v28  ;;  %v4320_v43 = vsel %vm3228_vm9, %v4318_v0, %v4319_v2 }
 0x460   : > { %v4160_v34 = vadd.f32 %v4156_v19, %v9983_v60 }
 0x461   : > { %v4418_v62 = vpop.f32.mrf.mxu0 }
 0x462   : > { %v4324_v27 = vadd.f32 %v4320_v43, %v4160_v34  ;;  %v4510_v59 = vpop.f32.mrf.mxu1 }
 0x463   : > { %7636 = vmatmul.msk.bf16.vlgmr.msra.gmra.mxu0 %vm512_vm3, %v9022_v58  ;;  %7649 = vmatmul.msk.bf16.vlgmr.msra.gmra.mxu1 %vm512_vm3, %v9022_v58  ;;  %v4574_v44 = vrot.slane %v4510_v59, 2 }
 0x464   : > { %v4460_v6 = vadd.f32 %v4418_v62, %v4324_v27  ;;  %v4092_v21 = vpop.f32.mrf.mxu2  ;;  %v4255_v33 = vpop.f32.mrf.mxu3 }
 0x465   : > { %v4162_v16 = vrot.slane %v4092_v21, 6  ;;  %v4327_v47 = vrot.slane %v4255_v33, 7 }
 0x467   : > { %v4163_v26 = vsel %vm3063_vm8, %v4155_v28, %v4162_v16  ;;  %v4167_v37 = vadd.f32 %v4162_v16, %v9993_v17  ;;  %v4328_v60 = vsel %vm3228_vm9, %v4319_v2, %v4327_v47 }
 0x468   : > { %v4166_v45 = vadd.f32 %v4163_v26, %v9995_v42 }
 0x469   : > { %7603 = vmatmul.msk.bf16.gmra.mxu2 %vm512_vm3, %v9085_v20  ;;  %7620 = vmatmul.msk.bf16.gmra.mxu3 %vm512_vm3, %v9085_v20  ;;  %v4420_v38 = vpop.f32.mrf.mxu0 }
 0x46a   : > { %v4333_v46 = vadd.f32 %v4328_v60, %v4166_v45  ;;  %v4512_v36 = vpop.f32.mrf.mxu1 }
 0x46b   : > { %v4575_v8 = vrot.slane %v4512_v36, 2 }
 0x46c   : > { %v4461_v56 = vadd.f32 %v4420_v38, %v4333_v46  ;;  %v4095_v54 = vpop.f32.mrf.mxu2  ;;  %v4258_v0 = vpop.f32.mrf.mxu3 }
 0x46d   : > { %v4576_v17 = vsel %vm2581_vm7, %v4574_v44, %v4575_v8  ;;  %v10211_v63 = vadd.f32 %v4575_v8, %v4460_v6  ;;  %v4170_v13 = vrot.slane %v4095_v54, 6  ;;  %v4329_v42 = vrot.slane %v4258_v0, 7 }
 0x46e   : > { %v10213_v18 = vadd.f32 %v4576_v17, %v4459_v32 }
 0x46f   : > { %v4175_v14 = vadd.f32 %v4170_v13, %v10004_v52  ;;  %v4330_v48 = vsel %vm3228_vm9, %v4327_v47, %v4329_v42 }
 0x470   : > { %v4334_v10 = vadd.f32 %v4330_v48, %v4167_v37 }
 0x471   : > { %v4340_v22 = vadd.f32 %v4329_v42, %v4175_v14  ;;  %v4423_v28 = vpop.f32.mrf.mxu0 }
 0x472   : > { %v4462_v2 = vadd.f32 %v4423_v28, %v4334_v10  ;;  %v4515_v19 = vpop.f32.mrf.mxu1 }
 0x473   : > { %v4463_v43 = vadd.f32 %v4423_v28, %v4340_v22  ;;  %7637 = vmatmul.msk.bf16.gmra.mxu0 %vm512_vm3, %v9085_v20  ;;  %7650 = vmatmul.msk.bf16.gmra.mxu1 %vm512_vm3, %v9085_v20  ;;  %v4583_v47 = vrot.slane %v4515_v19, 2 }
 0x474   : > { %v4097_v34 = vpop.f32.mrf.mxu2  ;;  %v4260_v62 = vpop.f32.mrf.mxu3 }
 0x475   : > { %v4171_v27 = vrot.slane %v4097_v34, 6  ;;  %v4336_v59 = vrot.slane %v4260_v62, 7 }
 0x477   : > { %v4172_v52 = vsel %vm3063_vm8, %v4170_v13, %v4171_v27  ;;  %v4337_v32 = vsel %vm3228_vm9, %v4329_v42, %v4336_v59 }
 0x478   : > { %v4176_v6 = vadd.f32 %v4172_v52, %v10016_v25 }
 0x479   : > { %7604 = vmatmul.msk.bf16.gmra.mxu2 %vm512_vm3, %v9127_v35  ;;  %7621 = vmatmul.msk.bf16.gmra.mxu3 %vm512_vm3, %v9127_v35  ;;  %v4425_v21 = vpop.f32.mrf.mxu0 }
 0x47a   : > { %v4341_v33 = vadd.f32 %v4337_v32, %v4176_v6  ;;  %v4517_v16 = vpop.f32.mrf.mxu1 }
 0x47b   : > { %v4584_v26 = vrot.slane %v4517_v16, 2 }
 0x47c   : > { %v4464_v37 = vadd.f32 %v4425_v21, %v4341_v33  ;;  %v4100_v60 = vpop.f32.mrf.mxu2  ;;  %v4263_v45 = vpop.f32.mrf.mxu3 }
 0x47d   : > { %v4585_v38 = vsel %vm2581_vm7, %v4583_v47, %v4584_v26  ;;  %v10229_v46 = vadd.f32 %v4584_v26, %v4462_v2  ;;  %v4179_v36 = vrot.slane %v4100_v60, 6  ;;  %v4344_v8 = vrot.slane %v4263_v45, 7 }
 0x47e   : > { %v10231_v25 = vadd.f32 %v4585_v38, %v4461_v56 }
 0x47f   : > { %v4184_v44 = vadd.f32 %v4179_v36, %v10022_v51 }
 0x481   : > { %v4349_v54 = vadd.f32 %v4344_v8, %v4184_v44  ;;  %v4428_v0 = vpop.f32.mrf.mxu0 }
 0x482   : > { %v4520_v17 = vpop.f32.mrf.mxu1 }
 0x483   : > { %v4465_v13 = vadd.f32 %v4428_v0, %v4349_v54  ;;  %v4592_v42 = vrot.slane %v4520_v17, 2  ;;  %7638 = vmatmul.msk.bf16.gmra.mxu0 %vm512_vm3, %v9127_v35  ;;  %7651 = vmatmul.msk.bf16.gmra.mxu1 %vm512_vm3, %v9127_v35 }
 0x484   : > { %v4102_v14 = vpop.f32.mrf.mxu2  ;;  %v4265_v48 = vpop.f32.mrf.mxu3 }
 0x485   : > { %v10236_v10 = vadd.f32 %v4592_v42, %v4463_v43  ;;  %v4180_v22 = vrot.slane %v4102_v14, 6  ;;  %v4345_v28 = vrot.slane %v4265_v48, 7 }
 0x487   : > { %v4181_v51 = vsel %vm3063_vm8, %v4179_v36, %v4180_v22  ;;  %v4346_v56 = vsel %vm3228_vm9, %v4344_v8, %v4345_v28 }
 0x488   : > { %v4185_v2 = vadd.f32 %v4181_v51, %v10034_v4 }
 0x489   : > { %7605 = vmatmul.msk.bf16.gmra.mxu2 %vm512_vm3, %v9177_v57  ;;  %7622 = vmatmul.msk.bf16.gmra.mxu3 %vm512_vm3, %v9177_v57  ;;  %v4430_v19 = vpop.f32.mrf.mxu0 }
 0x48a   : > { %v4350_v43 = vadd.f32 %v4346_v56, %v4185_v2  ;;  %v4522_v34 = vpop.f32.mrf.mxu1 }
 0x48b   : > { %v4593_v62 = vrot.slane %v4522_v34, 2 }
 0x48c   : > { %v4466_v27 = vadd.f32 %v4430_v19, %v4350_v43  ;;  %v4105_v59 = vpop.f32.mrf.mxu2  ;;  %v4268_v52 = vpop.f32.mrf.mxu3 }
 0x48d   : > { %v4594_v32 = vsel %vm2581_vm7, %v4592_v42, %v4593_v62  ;;  %v4188_v6 = vrot.slane %v4105_v59, 6  ;;  %v4353_v33 = vrot.slane %v4268_v52, 7 }
 0x48e   : > { %v10248_v21 = vadd.f32 %v4594_v32, %v4464_v37 }
 0x48f   : > { %v4193_v4 = vadd.f32 %v4188_v6, %v10045_v1 }
 0x491   : > { %v4358_v16 = vadd.f32 %v4353_v33, %v4193_v4  ;;  %v4433_v47 = vpop.f32.mrf.mxu0 }
 0x492   : > { %v4525_v26 = vpop.f32.mrf.mxu1 }
 0x493   : > { %v4467_v60 = vadd.f32 %v4433_v47, %v4358_v16  ;;  %v4600_v45 = vrot.slane %v4525_v26, 2  ;;  %7639 = vmatmul.msk.bf16.gmra.mxu0 %vm512_vm3, %v9177_v57  ;;  %7652 = vmatmul.msk.bf16.gmra.mxu1 %vm512_vm3, %v9177_v57 }
 0x494   : > { %v4107_v38 = vpop.f32.mrf.mxu2  ;;  %v4270_v36 = vpop.f32.mrf.mxu3 }
 0x495   : > { %v4601_v44 = vsel %vm2581_vm7, %v4593_v62, %v4600_v45  ;;  %v10254_v8 = vadd.f32 %v4600_v45, %v4466_v27  ;;  %v4189_v54 = vrot.slane %v4107_v38, 6  ;;  %v4354_v37 = vrot.slane %v4270_v36, 7 }
 0x496   : > { %v10258_v1 = vadd.f32 %v4601_v44, %v4465_v13 }
 0x497   : > { %v4190_v0 = vsel %vm3063_vm8, %v4188_v6, %v4189_v54  ;;  %v4355_v17 = vsel %vm3228_vm9, %v4353_v33, %v4354_v37 }
 0x498   : > { %v4194_v42 = vadd.f32 %v4190_v0, %v10053_v49 }
 0x499   : > { %7606 = vmatmul.msk.bf16.gmra.mxu2 %vm512_vm3, %v9217_v23  ;;  %7623 = vmatmul.msk.bf16.gmra.mxu3 %vm512_vm3, %v9217_v23  ;;  %v4435_v14 = vpop.f32.mrf.mxu0 }
 0x49a   : > { %v4359_v48 = vadd.f32 %v4355_v17, %v4194_v42  ;;  %v4527_v22 = vpop.f32.mrf.mxu1 }
 0x49b   : > { %v4608_v52 = vrot.slane %v4527_v22, 2 }
 0x49c   : > { %v4468_v28 = vadd.f32 %v4435_v14, %v4359_v48  ;;  %v4110_v51 = vpop.f32.mrf.mxu2  ;;  %v4273_v56 = vpop.f32.mrf.mxu3 }
 0x49d   : > { %v4196_v13 = vrot.slane %v4110_v51, 6  ;;  %v4362_v2 = vrot.slane %v4273_v56, 7 }
 0x49f   : > { %v4197_v19 = vsel %vm3063_vm8, %v4189_v54, %v4196_v13  ;;  %v4201_v43 = vadd.f32 %v4196_v13, %v10063_v3  ;;  %v4363_v49 = vsel %vm3228_vm9, %v4354_v37, %v4362_v2 }
 0x4a0   : > { %v4200_v34 = vadd.f32 %v4197_v19, %v10065_v31 }
 0x4a1   : > { %v4438_v62 = vpop.f32.mrf.mxu0 }
 0x4a2   : > { %v4368_v27 = vadd.f32 %v4363_v49, %v4200_v34  ;;  %v4530_v59 = vpop.f32.mrf.mxu1 }
 0x4a3   : > { %v4609_v32 = vrot.slane %v4530_v59, 2  ;;  %7640 = vmatmul.msk.bf16.gmra.mxu0 %vm512_vm3, %v9217_v23  ;;  %7653 = vmatmul.msk.bf16.gmra.mxu1 %vm512_vm3, %v9217_v23 }
 0x4a4   : > { %v4469_v6 = vadd.f32 %v4438_v62, %v4368_v27  ;;  %v4112_v4 = vpop.f32.mrf.mxu2  ;;  %v4275_v33 = vpop.f32.mrf.mxu3 }
 0x4a5   : > { %v4610_v16 = vsel %vm2581_vm7, %v4608_v52, %v4609_v32  ;;  %v10274_v47 = vadd.f32 %v4609_v32, %v4468_v28  ;;  %v4204_v3 = vrot.slane %v4112_v4, 6  ;;  %v4364_v26 = vrot.slane %v4275_v33, 7 }
 0x4a6   : > { %v10278_v31 = vadd.f32 %v4610_v16, %v4467_v60 }
 0x4a7   : > { %v4209_v45 = vadd.f32 %v4204_v3, %v10074_v29  ;;  %v4365_v38 = vsel %vm3228_vm9, %v4362_v2, %v4364_v26 }
 0x4a8   : > { %v4369_v36 = vadd.f32 %v4365_v38, %v4201_v43 }
 0x4a9   : > { %7607 = vmatmul.msk.bf16.gmra.mxu2 %vm512_vm3, %v9267_v40  ;;  %7624 = vmatmul.msk.bf16.gmra.mxu3 %vm512_vm3, %v9267_v40  ;;  %v4375_v44 = vadd.f32 %v4364_v26, %v4209_v45  ;;  %v4440_v54 = vpop.f32.mrf.mxu0 }
 0x4aa   : > { %v4470_v37 = vadd.f32 %v4440_v54, %v4369_v36  ;;  %v4532_v0 = vpop.f32.mrf.mxu1 }
 0x4ab   : > { %v4471_v17 = vadd.f32 %v4440_v54, %v4375_v44  ;;  %v4617_v2 = vrot.slane %v4532_v0, 2 }
 0x4ac   : > { %v4115_v42 = vpop.f32.mrf.mxu2  ;;  %v4278_v14 = vpop.f32.mrf.mxu3 }
 0x4ad   : > { %v4205_v60 = vrot.slane %v4115_v42, 6  ;;  %v4371_v48 = vrot.slane %v4278_v14, 7 }
 0x4af   : > { %v4206_v29 = vsel %vm3063_vm8, %v4204_v3, %v4205_v60  ;;  %v4372_v22 = vsel %vm3228_vm9, %v4364_v26, %v4371_v48 }
 0x4b0   : > { %v4210_v28 = vadd.f32 %v4206_v29, %v10082_v55 }
 0x4b1   : > { %v4443_v51 = vpop.f32.mrf.mxu0 }
 0x4b2   : > { %v4376_v56 = vadd.f32 %v4372_v22, %v4210_v28  ;;  %v4535_v13 = vpop.f32.mrf.mxu1 }
 0x4b3   : > { %v4618_v19 = vrot.slane %v4535_v13, 2  ;;  %7641 = vmatmul.msk.bf16.gmra.mxu0 %vm512_vm3, %v9267_v40  ;;  %7654 = vmatmul.msk.bf16.gmra.mxu1 %vm512_vm3, %v9267_v40 }
 0x4b4   : > { %v4472_v43 = vadd.f32 %v4443_v51, %v4376_v56  ;;  %v4117_v49 = vpop.f32.mrf.mxu2  ;;  %v4280_v34 = vpop.f32.mrf.mxu3 }
 0x4b5   : > { %v4619_v62 = vsel %vm2581_vm7, %v4617_v2, %v4618_v19  ;;  %v10292_v27 = vadd.f32 %v4618_v19, %v4470_v37 }
 0x4b6   : > { %v10296_v59 = vadd.f32 %v4619_v62, %v4469_v6 }
 0x4b9   : > { %7608 = vmatmul.msk.bf16.gmra.mxu2 %vm512_vm3, %v9313_v53  ;;  %7625 = vmatmul.msk.bf16.gmra.mxu3 %vm512_vm3, %v9313_v53  ;;  %v4445_v55 = vpop.f32.mrf.mxu0 }
 0x4ba   : > { %v4537_v52 = vpop.f32.mrf.mxu1 }
 0x4bb   : > { %v4626_v32 = vrot.slane %v4537_v52, 2 }
 0x4bc   : > { %v4119_v4 = vpop.f32.mrf.mxu2  ;;  %v4282_v33 = vpop.f32.mrf.mxu3 }
 0x4bd   : > { %v10302_v16 = vadd.f32 %v4626_v32, %v4471_v17 }
 0x4c1   : > { %v4447_v3 = vpop.f32.mrf.mxu0 }
 0x4c2   : > { %v4540_v26 = vpop.f32.mrf.mxu1 }
 0x4c3   : > { %v4627_v45 = vrot.slane %v4540_v26, 2  ;;  %7642 = vmatmul.msk.bf16.gmra.mxu0 %vm512_vm3, %v9313_v53  ;;  %7655 = vmatmul.msk.bf16.gmra.mxu1 %vm512_vm3, %v9313_v53 }
 0x4c4   : > { %v4120_v38 = vpop.f32.mrf.mxu2  ;;  %v4283_v36 = vpop.f32.mrf.mxu3 }
 0x4c5   : > { %v4628_v6 = vsel %vm2581_vm7, %v4626_v32, %v4627_v45 }
 0x4c6   : > { %v10309_v44 = vadd.f32 %v4628_v6, %v4472_v43 }
 0x4c9   : > { %7609 = vmatmul.msk.bf16.gmra.mxu2 %vm512_vm3, %v9363_v39  ;;  %7626 = vmatmul.msk.bf16.gmra.mxu3 %vm512_vm3, %v9363_v39  ;;  %v4448_v54 = vpop.f32.mrf.mxu0 }
 0x4ca   : > { %v4542_v37 = vpop.f32.mrf.mxu1 }
 0x4cb   : > { %v7677_v37 = vld [vmem:[%s11048_s3 + $0x3c] sm:$0x8] }
 0x4cc   : > { %v4122_v0 = vpop.f32.mrf.mxu2  ;;  %v4285_v17 = vpop.f32.mrf.mxu3 }
 0x4cd   : > { %v7966_v0 = vld [vmem:[%s11048_s3 + $0x3c] sm:$0x30] }
 0x4ce   : > { %v7678_v17 = vor.u32 %v7966_v0, %v7677_v37 }
 0x4d1   : > { %v4450_v42 = vpop.f32.mrf.mxu0 }
 0x4d2   : > { %v4544_v14 = vpop.f32.mrf.mxu1  ;;  %v5375_v42 = vrot.slane %v7678_v17, 3 }
 0x4d3   : > { %7643 = vmatmul.msk.bf16.gmra.mxu0 %vm512_vm3, %v9363_v39  ;;  %7656 = vmatmul.msk.bf16.gmra.mxu1 %vm512_vm3, %v9363_v39 }
 0x4d4   : > { %v4123_v60 = vpop.f32.mrf.mxu2  ;;  %v4286_v48 = vpop.f32.mrf.mxu3 }
 0x4d5   : > { %v5377_v60 = vsel %vm2249_vm4, %v5375_v42, 0 }
 0x4d6   : > { %5386 = vmatpush.bf16.msra.mxu3 %v5377_v60 }
 0x4d9   : > { %7610 = vmatmul.msk.bf16.gmra.mxu2 %vm512_vm3, %v9401_v24  ;;  %7627 = vmatmul.msk.bf16.gmra.mxu3 %vm512_vm3, %v9401_v24  ;;  %v4451_v29 = vpop.f32.mrf.mxu0 }
 0x4da   : > { %v4545_v22 = vpop.f32.mrf.mxu1  ;;  %v5859_v29 = vld [vmem:[%s11048_s3 + $0x48] sm:$0x7] }
 0x4db   : > { %v5861_v22 = vsel %vm2249_vm4, %v5859_v29, 0 }
 0x4dc   : > { %v4646_v28 = vpop.f32.mrf.mxu2  ;;  %v4811_v51 = vpop.f32.mrf.mxu3  ;;  %5870 = vmatpush.bf16.msrb.mxu2 %v5861_v22 }
 0x4e1   : > { %v4974_v56 = vpop.f32.mrf.mxu0 }
 0x4e2   : > { %v5136_v13 = vpop.f32.mrf.mxu1 }
 0x4e3   : > { %7644 = vmatmul.msk.bf16.gmra.mxu0 %vm512_vm3, %v9401_v24  ;;  %7657 = vmatmul.msk.bf16.gmra.mxu1 %vm512_vm3, %v9401_v24  ;;  %v7694_v13 = vld [vmem:[%s11048_s3 + $0x40] sm:$0xc] }
 0x4e4   : > { %v4647_v2 = vpop.f32.mrf.mxu2  ;;  %v4812_v19 = vpop.f32.mrf.mxu3 }
 0x4e5   : > { %v7967_v2 = vld [vmem:[%s11048_s3 + $0x40] sm:$0x10] }
 0x4e9   : > { %7611 = vmatmul.msk.bf16.gmra.mxu2 %vm512_vm3, %v9426_v9  ;;  %7628 = vmatmul.msk.bf16.gmra.mxu3 %vm512_vm3, %v9426_v9  ;;  %v4975_v43 = vpop.f32.mrf.mxu0 }
 0x4ea   : > { %v5137_v49 = vpop.f32.mrf.mxu1 }
 0x4ec   : > { %v4649_v34 = vpop.f32.mrf.mxu2  ;;  %v4814_v62 = vpop.f32.mrf.mxu3 }
 0x4ed   : > { %v7695_v34 = vor.u32 %v7967_v2, %v7694_v13 }
 0x4f1   : > { %v4977_v55 = vpop.f32.mrf.mxu0 }
 0x4f2   : > { %v5139_v52 = vpop.f32.mrf.mxu1 }
 0x4f3   : > { %7645 = vmatmul.msk.bf16.gmra.mxu0 %vm512_vm3, %v9426_v9  ;;  %7658 = vmatmul.msk.bf16.gmra.mxu1 %vm512_vm3, %v9426_v9 }
 0x4f4   : > { %v4650_v32 = vpop.f32.mrf.mxu2  ;;  %v4815_v4 = vpop.f32.mrf.mxu3 }
 0x4f5   : > { %v5541_v32 = vrot.slane %v7695_v34, 2 }
 0x4f9   : > { %7612 = vmatmul.msk.bf16.gmra.mxu2 %vm512_vm3, %v9466_v11  ;;  %7629 = vmatmul.msk.bf16.gmra.mxu3 %vm512_vm3, %v9466_v11  ;;  %v4978_v33 = vpop.f32.mrf.mxu0 }
 0x4fa   : > { %v5140_v3 = vpop.f32.mrf.mxu1 }
 0x4fc   : > { %v4652_v26 = vpop.f32.mrf.mxu2  ;;  %v4817_v45 = vpop.f32.mrf.mxu3 }
 0x4fd   : > { %v5543_v26 = vsel %vm2249_vm4, %v5541_v32, 0 }
 0x4fe   : > { %5552 = vmatpush.bf16.msrb.mxu0 %v5543_v26 }
 0x501   : > { %v4980_v38 = vpop.f32.mrf.mxu0 }
 0x502   : > { %v5142_v36 = vpop.f32.mrf.mxu1 }
 0x503   : > { %7646 = vmatmul.msk.bf16.gmra.mxu0 %vm512_vm3, %v9466_v11  ;;  %7659 = vmatmul.msk.bf16.gmra.mxu1 %vm512_vm3, %v9466_v11 }
 0x504   : > { %v4653_v6 = vpop.f32.mrf.mxu2  ;;  %v4818_v54 = vpop.f32.mrf.mxu3 }
 0x505   : > { %v4705_v28 = vrot.slane %v4653_v6, 3  ;;  %v4870_v19 = vrot.slane %v4818_v54, 4  ;;  %v5697_v54 = vld [vmem:[%s11048_s3 + $0x44] sm:$0xe] }
 0x509   : > { %7613 = vmatmul.msk.bf16.gmra.mxu2 %vm512_vm3, %v9488_v61  ;;  %7630 = vmatmul.msk.bf16.gmra.mxu3 %vm512_vm3, %v9488_v61  ;;  %v4981_v14 = vpop.f32.mrf.mxu0 }
 0x50a   : > { %v5143_v48 = vpop.f32.mrf.mxu1  ;;  %v5033_v45 = vrot.slane %v4981_v14, 5 }
 0x50b   : > { %v5195_v0 = vrot.slane %v5143_v48, 6 }
 0x50c   : > { %v4656_v51 = vpop.f32.mrf.mxu2  ;;  %v4821_v56 = vpop.f32.mrf.mxu3 }
 0x50d   : > { %v4706_v43 = vrot.slane %v4656_v51, 3  ;;  %v4871_v49 = vrot.slane %v4821_v56, 4 }
 0x50f   : > { %v4707_v62 = vsel %vm443_vm1, %v4705_v28, %v4706_v43  ;;  %v4711_v55 = vadd.f32 %v4706_v43, %v10161_v12  ;;  %v4872_v52 = vsel %vm442_vm0, %v4870_v19, %v4871_v49  ;;  %v5699_v12 = vunpack.c.l.b16 %v5697_v54 }
 0x510   : > { %v4710_v4 = vadd.f32 %v4707_v62, %v10165_v5 }
 0x511   : > { %v4876_v33 = vadd.f32 %v4871_v49, %v4711_v55  ;;  %v4984_v3 = vpop.f32.mrf.mxu0  ;;  %v5700_v29 = vpack.c.b16 %v5699_v12, %v5699_v12 }
 0x512   : > { %v4875_v38 = vadd.f32 %v4872_v52, %v4710_v4  ;;  %v5034_v36 = vrot.slane %v4984_v3, 5  ;;  %v5146_v6 = vpop.f32.mrf.mxu1 }
 0x513   : > { %v5196_v37 = vrot.slane %v5146_v6, 6  ;;  %7647 = vmatmul.msk.bf16.gmra.mxu0 %vm512_vm3, %v9488_v61  ;;  %7660 = vmatmul.msk.bf16.gmra.mxu1 %vm512_vm3, %v9488_v61  ;;  %v5701_v13 = vrot.slane %v5700_v29, 1 }
 0x514   : > { %v5035_v17 = vsel %vm2249_vm4, %v5033_v45, %v5034_v36  ;;  %v5039_v42 = vadd.f32 %v5034_v36, %v4876_v33  ;;  %v4658_v5 = vpop.f32.mrf.mxu2  ;;  %v4823_v60 = vpop.f32.mrf.mxu3 }
 0x515   : > { %v4714_v14 = vrot.slane %v4658_v5, 3  ;;  %v5038_v22 = vadd.f32 %v5035_v17, %v4875_v38  ;;  %v5197_v51 = vsel %vm3063_vm8, %v5195_v0, %v5196_v37  ;;  %v4879_v56 = vrot.slane %v4823_v60, 4 }
 0x516   : > { %v10377_v28 = vadd.f32 %v5196_v37, %v5039_v42  ;;  %v5703_v49 = vsel %vm2249_vm4, %v5701_v13, 0 }
 0x517   : > { %v4719_v48 = vadd.f32 %v4714_v14, %v10173_v30  ;;  %v10381_v2 = vadd.f32 %v5197_v51, %v5038_v22  ;;  %5712 = vmatpush.bf16.msrb.mxu1 %v5703_v49 }
 0x519   : > { %v4884_v19 = vadd.f32 %v4879_v56, %v4719_v48  ;;  %7614 = vmatmul.msk.bf16.gmra.mxu2 %vm512_vm3, %v9531_v50  ;;  %7631 = vmatmul.msk.bf16.gmra.mxu3 %vm512_vm3, %v9531_v50  ;;  %v4986_v43 = vpop.f32.mrf.mxu0 }
 0x51a   : > { %v5042_v34 = vrot.slane %v4986_v43, 5  ;;  %v5148_v62 = vpop.f32.mrf.mxu1 }
 0x51b   : > { %v5204_v52 = vrot.slane %v5148_v62, 6 }
 0x51c   : > { %v5047_v55 = vadd.f32 %v5042_v34, %v4884_v19  ;;  %v4661_v30 = vpop.f32.mrf.mxu2  ;;  %v4826_v32 = vpop.f32.mrf.mxu3 }
 0x51d   : > { %v4715_v4 = vrot.slane %v4661_v30, 3  ;;  %v4880_v33 = vrot.slane %v4826_v32, 4 }
 0x51e   : > { %v10388_v3 = vadd.f32 %v5204_v52, %v5047_v55 }
 0x51f   : > { %v4716_v26 = vsel %vm443_vm1, %v4714_v14, %v4715_v4  ;;  %v4881_v45 = vsel %vm442_vm0, %v4879_v56, %v4880_v33 }
 0x520   : > { %v4720_v38 = vadd.f32 %v4716_v26, %v10183_v41 }
 0x521   : > { %v4989_v36 = vpop.f32.mrf.mxu0 }
 0x522   : > { %v4885_v6 = vadd.f32 %v4881_v45, %v4720_v38  ;;  %v5043_v54 = vrot.slane %v4989_v36, 5  ;;  %v5151_v37 = vpop.f32.mrf.mxu1 }
 0x523   : > { %v5205_v12 = vrot.slane %v5151_v37, 6  ;;  %7648 = vmatmul.msk.bf16.gmra.mxu0 %vm512_vm3, %v9531_v50  ;;  %7661 = vmatmul.msk.bf16.gmra.mxu1 %vm512_vm3, %v9531_v50 }
 0x524   : > { %v5044_v0 = vsel %vm2249_vm4, %v5042_v34, %v5043_v54  ;;  %v4663_v17 = vpop.f32.mrf.mxu2  ;;  %v4828_v42 = vpop.f32.mrf.mxu3 }
 0x525   : > { %v4723_v5 = vrot.slane %v4663_v17, 3  ;;  %v5048_v60 = vadd.f32 %v5044_v0, %v4885_v6  ;;  %v5206_v14 = vsel %vm3063_vm8, %v5204_v52, %v5205_v12  ;;  %v4888_v51 = vrot.slane %v4828_v42, 4 }
 0x527   : > { %v4724_v41 = vsel %vm443_vm1, %v4715_v4, %v4723_v5  ;;  %v10400_v29 = vadd.f32 %v5206_v14, %v5048_v60 }
 0x528   : > { %v4729_v22 = vadd.f32 %v4724_v41, %v10193_v7 }
 0x529   : > { %7662 = vmatmul.msk.bf16.vlgmr.msra.gmra.mxu2 %vm512_vm3, %v9022_v58  ;;  %7679 = vmatmul.msk.bf16.vlgmr.msra.gmra.mxu3 %vm512_vm3, %v9022_v58  ;;  %v4991_v48 = vpop.f32.mrf.mxu0 }
 0x52a   : > { %v4893_v56 = vadd.f32 %v4888_v51, %v4729_v22  ;;  %v5051_v13 = vrot.slane %v4991_v48, 5  ;;  %v5153_v19 = vpop.f32.mrf.mxu1 }
 0x52b   : > { %v5213_v49 = vrot.slane %v5153_v19, 6 }
 0x52c   : > { %v5056_v43 = vadd.f32 %v5051_v13, %v4893_v56  ;;  %v4666_v34 = vpop.f32.mrf.mxu2  ;;  %v4831_v62 = vpop.f32.mrf.mxu3 }
 0x52d   : > { %v4725_v55 = vrot.slane %v4666_v34, 3  ;;  %v4889_v52 = vrot.slane %v4831_v62, 4 }
 0x52e   : > { %v10407_v30 = vadd.f32 %v5213_v49, %v5056_v43 }
 0x52f   : > { %v4726_v7 = vsel %vm443_vm1, %v4723_v5, %v4725_v55  ;;  %v4890_v32 = vsel %vm442_vm0, %v4888_v51, %v4889_v52 }
 0x530   : > { %v4730_v4 = vadd.f32 %v4726_v7, %v10191_v15 }
 0x531   : > { %v4994_v33 = vpop.f32.mrf.mxu0 }
 0x532   : > { %v4894_v26 = vadd.f32 %v4890_v32, %v4730_v4  ;;  %v5052_v45 = vrot.slane %v4994_v33, 5  ;;  %v5156_v38 = vpop.f32.mrf.mxu1 }
 0x533   : > { %v5214_v36 = vrot.slane %v5156_v38, 6  ;;  %7696 = vmatmul.msk.bf16.vlgmr.msrb.gmra.mxu0 %vm512_vm3, %v9022_v58  ;;  %7709 = vmatmul.msk.bf16.vlgmr.msrb.gmra.mxu1 %vm512_vm3, %v9022_v58 }
 0x534   : > { %v5053_v6 = vsel %vm2249_vm4, %v5051_v13, %v5052_v45  ;;  %v4668_v54 = vpop.f32.mrf.mxu2  ;;  %v4833_v37 = vpop.f32.mrf.mxu3 }
 0x535   : > { %v4732_v12 = vrot.slane %v4668_v54, 3  ;;  %v4896_v0 = vrot.slane %v4833_v37, 4  ;;  %v5057_v17 = vadd.f32 %v5053_v6, %v4894_v26  ;;  %v5215_v15 = vsel %vm3063_vm8, %v5213_v49, %v5214_v36 }
 0x537   : > { %v4733_v42 = vsel %vm443_vm1, %v4725_v55, %v4732_v12  ;;  %v4737_v5 = vadd.f32 %v4732_v12, %v10211_v63  ;;  %v4897_v60 = vsel %vm442_vm0, %v4889_v52, %v4896_v0  ;;  %v10421_v14 = vadd.f32 %v5215_v15, %v5057_v17 }
 0x538   : > { %v4736_v41 = vadd.f32 %v4733_v42, %v10213_v18 }
 0x539   : > { %v4901_v22 = vadd.f32 %v4896_v0, %v4737_v5  ;;  %7663 = vmatmul.msk.bf16.gmra.mxu2 %vm512_vm3, %v9085_v20  ;;  %7680 = vmatmul.msk.bf16.gmra.mxu3 %vm512_vm3, %v9085_v20  ;;  %v4996_v51 = vpop.f32.mrf.mxu0 }
 0x53a   : > { %v5060_v48 = vrot.slane %v4996_v51, 5  ;;  %v5158_v56 = vpop.f32.mrf.mxu1  ;;  %v4900_v13 = vadd.f32 %v4897_v60, %v4736_v41 }
 0x53b   : > { %v5222_v49 = vrot.slane %v5158_v56, 6 }
 0x53c   : > { %v4671_v19 = vpop.f32.mrf.mxu2  ;;  %v4836_v43 = vpop.f32.mrf.mxu3  ;;  %v5061_v63 = vsel %vm2249_vm4, %v5052_v45, %v5060_v48 }
 0x53d   : > { %v5066_v34 = vadd.f32 %v5061_v63, %v4900_v13  ;;  %v4740_v32 = vrot.slane %v4671_v19, 3  ;;  %v4904_v4 = vrot.slane %v4836_v43, 4 }
 0x53f   : > { %v10429_v62 = vadd.f32 %v5222_v49, %v5066_v34 }
 0x541   : > { %v4999_v18 = vpop.f32.mrf.mxu0 }
 0x542   : > { %v5062_v55 = vrot.slane %v4999_v18, 5  ;;  %v5161_v52 = vpop.f32.mrf.mxu1 }
 0x543   : > { %v5223_v7 = vrot.slane %v5161_v52, 6  ;;  %7697 = vmatmul.msk.bf16.gmra.mxu0 %vm512_vm3, %v9085_v20  ;;  %7710 = vmatmul.msk.bf16.gmra.mxu1 %vm512_vm3, %v9085_v20 }
 0x544   : > { %v5063_v33 = vsel %vm2249_vm4, %v5060_v48, %v5062_v55  ;;  %v4673_v26 = vpop.f32.mrf.mxu2  ;;  %v4838_v38 = vpop.f32.mrf.mxu3 }
 0x545   : > { %v4741_v36 = vrot.slane %v4673_v26, 3  ;;  %v4905_v6 = vrot.slane %v4838_v38, 4  ;;  %v5067_v45 = vadd.f32 %v5063_v33, %v4901_v22  ;;  %v5224_v54 = vsel %vm3063_vm8, %v5222_v49, %v5223_v7 }
 0x547   : > { %v4742_v37 = vsel %vm443_vm1, %v4740_v32, %v4741_v36  ;;  %v4746_v12 = vadd.f32 %v4741_v36, %v10229_v46  ;;  %v4906_v0 = vsel %vm442_vm0, %v4904_v4, %v4905_v6  ;;  %v10440_v17 = vadd.f32 %v5224_v54, %v5067_v45 }
 0x548   : > { %v4745_v15 = vadd.f32 %v4742_v37, %v10231_v25 }
 0x549   : > { %v4910_v42 = vadd.f32 %v4905_v6, %v4746_v12  ;;  %7664 = vmatmul.msk.bf16.gmra.mxu2 %vm512_vm3, %v9127_v35  ;;  %7681 = vmatmul.msk.bf16.gmra.mxu3 %vm512_vm3, %v9127_v35  ;;  %v5001_v5 = vpop.f32.mrf.mxu0 }
 0x54a   : > { %v5069_v60 = vrot.slane %v5001_v5, 5  ;;  %v5163_v41 = vpop.f32.mrf.mxu1  ;;  %v4909_v22 = vadd.f32 %v4906_v0, %v4745_v15 }
 0x54b   : > { %v5230_v51 = vrot.slane %v5163_v41, 6 }
 0x54c   : > { %v5074_v48 = vadd.f32 %v5069_v60, %v4910_v42  ;;  %v4676_v46 = vpop.f32.mrf.mxu2  ;;  %v4841_v56 = vpop.f32.mrf.mxu3  ;;  %v5070_v13 = vsel %vm2249_vm4, %v5062_v55, %v5069_v60 }
 0x54d   : > { %v4749_v19 = vrot.slane %v4676_v46, 3  ;;  %v5073_v43 = vadd.f32 %v5070_v13, %v4909_v22  ;;  %v5231_v25 = vsel %vm3063_vm8, %v5223_v7, %v5230_v51  ;;  %v4913_v34 = vrot.slane %v4841_v56, 4 }
 0x54e   : > { %v10449_v63 = vadd.f32 %v5230_v51, %v5074_v48 }
 0x54f   : > { %v4754_v49 = vadd.f32 %v4749_v19, %v10236_v10  ;;  %v10452_v18 = vadd.f32 %v5231_v25, %v5073_v43 }
 0x551   : > { %v4918_v52 = vadd.f32 %v4913_v34, %v4754_v49  ;;  %v5004_v32 = vpop.f32.mrf.mxu0 }
 0x552   : > { %v5077_v4 = vrot.slane %v5004_v32, 5  ;;  %v5166_v33 = vpop.f32.mrf.mxu1 }
 0x553   : > { %v5238_v38 = vrot.slane %v5166_v33, 6  ;;  %7698 = vmatmul.msk.bf16.gmra.mxu0 %vm512_vm3, %v9127_v35  ;;  %7711 = vmatmul.msk.bf16.gmra.mxu1 %vm512_vm3, %v9127_v35 }
 0x554   : > { %v5082_v26 = vadd.f32 %v5077_v4, %v4918_v52  ;;  %v4678_v36 = vpop.f32.mrf.mxu2  ;;  %v4843_v6 = vpop.f32.mrf.mxu3 }
 0x555   : > { %v4750_v55 = vrot.slane %v4678_v36, 3  ;;  %v4914_v7 = vrot.slane %v4843_v6, 4 }
 0x556   : > { %v10458_v10 = vadd.f32 %v5238_v38, %v5082_v26 }
 0x557   : > { %v4751_v45 = vsel %vm443_vm1, %v4749_v19, %v4750_v55  ;;  %v4915_v54 = vsel %vm442_vm0, %v4913_v34, %v4914_v7 }
 0x558   : > { %v4755_v37 = vadd.f32 %v4751_v45, %v10248_v21 }
 0x559   : > { %7665 = vmatmul.msk.bf16.gmra.mxu2 %vm512_vm3, %v9177_v57  ;;  %7682 = vmatmul.msk.bf16.gmra.mxu3 %vm512_vm3, %v9177_v57  ;;  %v5006_v12 = vpop.f32.mrf.mxu0 }
 0x55a   : > { %v5078_v0 = vrot.slane %v5006_v12, 5  ;;  %v5168_v15 = vpop.f32.mrf.mxu1  ;;  %v4919_v42 = vadd.f32 %v4915_v54, %v4755_v37 }
 0x55b   : > { %v5239_v5 = vrot.slane %v5168_v15, 6 }
 0x55c   : > { %v4681_v60 = vpop.f32.mrf.mxu2  ;;  %v4846_v41 = vpop.f32.mrf.mxu3  ;;  %v5079_v22 = vsel %vm2249_vm4, %v5077_v4, %v5078_v0 }
 0x55d   : > { %v4758_v51 = vrot.slane %v4681_v60, 3  ;;  %v5083_v48 = vadd.f32 %v5079_v22, %v4919_v42  ;;  %v5240_v46 = vsel %vm3063_vm8, %v5238_v38, %v5239_v5  ;;  %v4922_v19 = vrot.slane %v4846_v41, 4 }
 0x55f   : > { %v4759_v21 = vsel %vm443_vm1, %v4750_v55, %v4758_v51  ;;  %v10470_v56 = vadd.f32 %v5240_v46, %v5083_v48 }
 0x560   : > { %v4764_v13 = vadd.f32 %v4759_v21, %v10258_v1 }
 0x561   : > { %v5009_v43 = vpop.f32.mrf.mxu0 }
 0x562   : > { %v4927_v25 = vadd.f32 %v4922_v19, %v4764_v13  ;;  %v5086_v49 = vrot.slane %v5009_v43, 5  ;;  %v5171_v34 = vpop.f32.mrf.mxu1 }
 0x563   : > { %v5247_v32 = vrot.slane %v5171_v34, 6  ;;  %7699 = vmatmul.msk.bf16.gmra.mxu0 %vm512_vm3, %v9177_v57  ;;  %7712 = vmatmul.msk.bf16.gmra.mxu1 %vm512_vm3, %v9177_v57 }
 0x564   : > { %v5091_v52 = vadd.f32 %v5086_v49, %v4927_v25  ;;  %v4683_v33 = vpop.f32.mrf.mxu2  ;;  %v4848_v26 = vpop.f32.mrf.mxu3 }
 0x565   : > { %v4760_v4 = vrot.slane %v4683_v33, 3  ;;  %v4923_v38 = vrot.slane %v4848_v26, 4 }
 0x566   : > { %v10477_v36 = vadd.f32 %v5247_v32, %v5091_v52 }
 0x567   : > { %v4761_v1 = vsel %vm443_vm1, %v4758_v51, %v4760_v4  ;;  %v4924_v6 = vsel %vm442_vm0, %v4922_v19, %v4923_v38 }
 0x568   : > { %v4765_v55 = vadd.f32 %v4761_v1, %v10254_v8 }
 0x569   : > { %7666 = vmatmul.msk.bf16.gmra.mxu2 %vm512_vm3, %v9217_v23  ;;  %7683 = vmatmul.msk.bf16.gmra.mxu3 %vm512_vm3, %v9217_v23  ;;  %v5011_v7 = vpop.f32.mrf.mxu0 }
 0x56a   : > { %v5087_v45 = vrot.slane %v5011_v7, 5  ;;  %v5173_v54 = vpop.f32.mrf.mxu1  ;;  %v4928_v37 = vadd.f32 %v4924_v6, %v4765_v55 }
 0x56b   : > { %v5248_v12 = vrot.slane %v5173_v54, 6 }
 0x56c   : > { %v4686_v0 = vpop.f32.mrf.mxu2  ;;  %v4851_v15 = vpop.f32.mrf.mxu3  ;;  %v5088_v42 = vsel %vm2249_vm4, %v5086_v49, %v5087_v45 }
 0x56d   : > { %v4767_v5 = vrot.slane %v4686_v0, 3  ;;  %v4930_v60 = vrot.slane %v4851_v15, 4  ;;  %v5092_v41 = vadd.f32 %v5088_v42, %v4928_v37  ;;  %v5249_v8 = vsel %vm3063_vm8, %v5247_v32, %v5248_v12 }
 0x56f   : > { %v4768_v22 = vsel %vm443_vm1, %v4760_v4, %v4767_v5  ;;  %v4772_v51 = vadd.f32 %v4767_v5, %v10274_v47  ;;  %v4931_v48 = vsel %vm442_vm0, %v4923_v38, %v4930_v60  ;;  %v10491_v46 = vadd.f32 %v5249_v8, %v5092_v41 }
 0x570   : > { %v4771_v21 = vadd.f32 %v4768_v22, %v10278_v31 }
 0x571   : > { %v4935_v13 = vadd.f32 %v4930_v60, %v4772_v51  ;;  %v5014_v19 = vpop.f32.mrf.mxu0 }
 0x572   : > { %v4934_v43 = vadd.f32 %v4931_v48, %v4771_v21  ;;  %v5095_v25 = vrot.slane %v5014_v19, 5  ;;  %v5176_v49 = vpop.f32.mrf.mxu1 }
 0x573   : > { %7700 = vmatmul.msk.bf16.gmra.mxu0 %vm512_vm3, %v9217_v23  ;;  %v5256_v47 = vrot.slane %v5176_v49, 6  ;;  %7713 = vmatmul.msk.bf16.gmra.mxu1 %vm512_vm3, %v9217_v23 }
 0x574   : > { %v5096_v34 = vsel %vm2249_vm4, %v5087_v45, %v5095_v25  ;;  %v4688_v52 = vpop.f32.mrf.mxu2  ;;  %v4853_v33 = vpop.f32.mrf.mxu3 }
 0x575   : > { %v5101_v32 = vadd.f32 %v5096_v34, %v4934_v43  ;;  %v4775_v6 = vrot.slane %v4688_v52, 3  ;;  %v4938_v55 = vrot.slane %v4853_v33, 4 }
 0x577   : > { %v10499_v26 = vadd.f32 %v5256_v47, %v5101_v32 }
 0x579   : > { %7667 = vmatmul.msk.bf16.gmra.mxu2 %vm512_vm3, %v9267_v40  ;;  %7684 = vmatmul.msk.bf16.gmra.mxu3 %vm512_vm3, %v9267_v40  ;;  %v5016_v31 = vpop.f32.mrf.mxu0 }
 0x57a   : > { %v5097_v4 = vrot.slane %v5016_v31, 5  ;;  %v5178_v38 = vpop.f32.mrf.mxu1 }
 0x57b   : > { %v5257_v1 = vrot.slane %v5178_v38, 6 }
 0x57c   : > { %v4691_v7 = vpop.f32.mrf.mxu2  ;;  %v4856_v45 = vpop.f32.mrf.mxu3  ;;  %v5098_v54 = vsel %vm2249_vm4, %v5095_v25, %v5097_v4 }
 0x57d   : > { %v4776_v37 = vrot.slane %v4691_v7, 3  ;;  %v4939_v12 = vrot.slane %v4856_v45, 4  ;;  %v5102_v0 = vadd.f32 %v5098_v54, %v4935_v13  ;;  %v5258_v15 = vsel %vm3063_vm8, %v5256_v47, %v5257_v1 }
 0x57f   : > { %v4777_v42 = vsel %vm443_vm1, %v4775_v6, %v4776_v37  ;;  %v4781_v5 = vadd.f32 %v4776_v37, %v10292_v27  ;;  %v4940_v60 = vsel %vm442_vm0, %v4938_v55, %v4939_v12  ;;  %v10510_v41 = vadd.f32 %v5258_v15, %v5102_v0 }
 0x580   : > { %v4780_v8 = vadd.f32 %v4777_v42, %v10296_v59 }
 0x581   : > { %v4944_v22 = vadd.f32 %v4939_v12, %v4781_v5  ;;  %v5019_v51 = vpop.f32.mrf.mxu0 }
 0x582   : > { %v4943_v48 = vadd.f32 %v4940_v60, %v4780_v8  ;;  %v5104_v21 = vrot.slane %v5019_v51, 5  ;;  %v5181_v19 = vpop.f32.mrf.mxu1 }
 0x583   : > { %v5264_v43 = vrot.slane %v5181_v19, 6  ;;  %7701 = vmatmul.msk.bf16.gmra.mxu0 %vm512_vm3, %v9267_v40  ;;  %7714 = vmatmul.msk.bf16.gmra.mxu1 %vm512_vm3, %v9267_v40 }
 0x584   : > { %v5105_v13 = vsel %vm2249_vm4, %v5097_v4, %v5104_v21  ;;  %v5109_v25 = vadd.f32 %v5104_v21, %v4944_v22  ;;  %v4693_v49 = vpop.f32.mrf.mxu2  ;;  %v4858_v34 = vpop.f32.mrf.mxu3 }
 0x585   : > { %v4784_v27 = vrot.slane %v4693_v49, 3  ;;  %v5108_v52 = vadd.f32 %v5105_v13, %v4943_v48  ;;  %v5265_v59 = vsel %vm3063_vm8, %v5257_v1, %v5264_v43  ;;  %v4947_v47 = vrot.slane %v4858_v34, 4 }
 0x586   : > { %v10519_v33 = vadd.f32 %v5264_v43, %v5109_v25 }
 0x587   : > { %v4789_v32 = vadd.f32 %v4784_v27, %v10302_v16  ;;  %v10522_v31 = vadd.f32 %v5265_v59, %v5108_v52 }
 0x589   : > { %v4952_v4 = vadd.f32 %v4947_v47, %v4789_v32  ;;  %7668 = vmatmul.msk.bf16.gmra.mxu2 %vm512_vm3, %v9313_v53  ;;  %7685 = vmatmul.msk.bf16.gmra.mxu3 %vm512_vm3, %v9313_v53  ;;  %v5021_v38 = vpop.f32.mrf.mxu0 }
 0x58a   : > { %v5112_v6 = vrot.slane %v5021_v38, 5  ;;  %v5183_v55 = vpop.f32.mrf.mxu1 }
 0x58b   : > { %v5272_v45 = vrot.slane %v5183_v55, 6 }
 0x58c   : > { %v5117_v7 = vadd.f32 %v5112_v6, %v4952_v4  ;;  %v4696_v1 = vpop.f32.mrf.mxu2  ;;  %v4861_v54 = vpop.f32.mrf.mxu3 }
 0x58d   : > { %v4785_v37 = vrot.slane %v4696_v1, 3  ;;  %v4948_v12 = vrot.slane %v4861_v54, 4 }
 0x58e   : > { %v10528_v16 = vadd.f32 %v5272_v45, %v5117_v7 }
 0x58f   : > { %v4786_v0 = vsel %vm443_vm1, %v4784_v27, %v4785_v37  ;;  %v4949_v15 = vsel %vm442_vm0, %v4947_v47, %v4948_v12 }
 0x590   : > { %v4790_v42 = vadd.f32 %v4786_v0, %v10309_v44 }
 0x591   : > { %v5024_v5 = vpop.f32.mrf.mxu0 }
 0x592   : > { %v4953_v60 = vadd.f32 %v4949_v15, %v4790_v42  ;;  %v5113_v8 = vrot.slane %v5024_v5, 5  ;;  %v5186_v22 = vpop.f32.mrf.mxu1 }
 0x593   : > { %v5273_v51 = vrot.slane %v5186_v22, 6  ;;  %7702 = vmatmul.msk.bf16.gmra.mxu0 %vm512_vm3, %v9313_v53  ;;  %7715 = vmatmul.msk.bf16.gmra.mxu1 %vm512_vm3, %v9313_v53 }
 0x594   : > { %v5114_v48 = vsel %vm2249_vm4, %v5112_v6, %v5113_v8  ;;  %v4698_v21 = vpop.f32.mrf.mxu2  ;;  %v4863_v19 = vpop.f32.mrf.mxu3  ;;  %vm7055_vm4 = vcmask 73728  }
 0x595   : > { %v5118_v43 = vadd.f32 %v5114_v48, %v4953_v60  ;;  %v5274_v13 = vsel %vm3063_vm8, %v5272_v45, %v5273_v51 }
 0x597   : > { %v10539_v25 = vadd.f32 %v5274_v13, %v5118_v43 }
 0x599   : > { %7669 = vmatmul.msk.bf16.gmra.mxu2 %vm512_vm3, %v9363_v39  ;;  %7686 = vmatmul.msk.bf16.gmra.mxu3 %vm512_vm3, %v9363_v39  ;;  %v5026_v44 = vpop.f32.mrf.mxu0 }
 0x59a   : > { %v5188_v49 = vpop.f32.mrf.mxu1 }
 0x59c   : > { %v4700_v34 = vpop.f32.mrf.mxu2  ;;  %v4865_v27 = vpop.f32.mrf.mxu3 }
 0x5a1   : > { %v5028_v52 = vpop.f32.mrf.mxu0 }
 0x5a2   : > { %v5190_v59 = vpop.f32.mrf.mxu1 }
 0x5a3   : > { %7703 = vmatmul.msk.bf16.gmra.mxu0 %vm512_vm3, %v9363_v39  ;;  %7716 = vmatmul.msk.bf16.gmra.mxu1 %vm512_vm3, %v9363_v39 }
 0x5a4   : > { %v4701_v32 = vpop.f32.mrf.mxu2  ;;  %v4866_v47 = vpop.f32.mrf.mxu3 }
 0x5a9   : > { %7670 = vmatmul.msk.bf16.gmra.mxu2 %vm512_vm3, %v9401_v24  ;;  %7687 = vmatmul.msk.bf16.gmra.mxu3 %vm512_vm3, %v9401_v24  ;;  %v5029_v4 = vpop.f32.mrf.mxu0 }
 0x5aa   : > { %v5191_v38 = vpop.f32.mrf.mxu1 }
 0x5ac   : > { %v5292_v6 = vpop.f32.mrf.mxu2  ;;  %v5388_v55 = vpop.f32.mrf.mxu3 }
 0x5b1   : > { %v5554_v7 = vpop.f32.mrf.mxu0 }
 0x5b2   : > { %v5714_v45 = vpop.f32.mrf.mxu1 }
 0x5b3   : > { %7704 = vmatmul.msk.bf16.gmra.mxu0 %vm512_vm3, %v9401_v24  ;;  %7717 = vmatmul.msk.bf16.gmra.mxu1 %vm512_vm3, %v9401_v24 }
 0x5b4   : > { %v5293_v1 = vpop.f32.mrf.mxu2  ;;  %v5389_v54 = vpop.f32.mrf.mxu3 }
 0x5b9   : > { %7671 = vmatmul.msk.bf16.gmra.mxu2 %vm512_vm3, %v9426_v9  ;;  %7688 = vmatmul.msk.bf16.gmra.mxu3 %vm512_vm3, %v9426_v9  ;;  %v5555_v37 = vpop.f32.mrf.mxu0 }
 0x5ba   : > { %v5715_v12 = vpop.f32.mrf.mxu1 }
 0x5bc   : > { %v5295_v0 = vpop.f32.mrf.mxu2  ;;  %v5391_v15 = vpop.f32.mrf.mxu3 }
 0x5c1   : > { %v5557_v42 = vpop.f32.mrf.mxu0 }
 0x5c2   : > { %v5717_v5 = vpop.f32.mrf.mxu1 }
 0x5c3   : > { %7705 = vmatmul.msk.bf16.gmra.mxu0 %vm512_vm3, %v9426_v9  ;;  %7718 = vmatmul.msk.bf16.gmra.mxu1 %vm512_vm3, %v9426_v9 }
 0x5c4   : > { %v5296_v60 = vpop.f32.mrf.mxu2  ;;  %v5392_v8 = vpop.f32.mrf.mxu3 }
 0x5c9   : > { %7672 = vmatmul.msk.bf16.gmra.mxu2 %vm512_vm3, %v9466_v11  ;;  %7689 = vmatmul.msk.bf16.gmra.mxu3 %vm512_vm3, %v9466_v11  ;;  %v5558_v22 = vpop.f32.mrf.mxu0 }
 0x5ca   : > { %v5718_v51 = vpop.f32.mrf.mxu1 }
 0x5cc   : > { %v5298_v48 = vpop.f32.mrf.mxu2  ;;  %v5394_v21 = vpop.f32.mrf.mxu3 }
 0x5d1   : > { %v5560_v19 = vpop.f32.mrf.mxu0 }
 0x5d2   : > { %v5720_v43 = vpop.f32.mrf.mxu1 }
 0x5d3   : > { %7706 = vmatmul.msk.bf16.gmra.mxu0 %vm512_vm3, %v9466_v11  ;;  %7719 = vmatmul.msk.bf16.gmra.mxu1 %vm512_vm3, %v9466_v11 }
 0x5d4   : > { %v5299_v13 = vpop.f32.mrf.mxu2  ;;  %v5395_v44 = vpop.f32.mrf.mxu3 }
 0x5d9   : > { %7673 = vmatmul.msk.bf16.gmra.mxu2 %vm512_vm3, %v9488_v61  ;;  %7690 = vmatmul.msk.bf16.gmra.mxu3 %vm512_vm3, %v9488_v61  ;;  %v5561_v49 = vpop.f32.mrf.mxu0 }
 0x5da   : > { %v5721_v34 = vpop.f32.mrf.mxu1 }
 0x5dc   : > { %v5301_v27 = vpop.f32.mrf.mxu2  ;;  %v5397_v52 = vpop.f32.mrf.mxu3 }
 0x5e1   : > { %v5563_v59 = vpop.f32.mrf.mxu0 }
 0x5e2   : > { %v5723_v32 = vpop.f32.mrf.mxu1 }
 0x5e3   : > { %7707 = vmatmul.msk.bf16.gmra.mxu0 %vm512_vm3, %v9488_v61  ;;  %7720 = vmatmul.msk.bf16.gmra.mxu1 %vm512_vm3, %v9488_v61 }
 0x5e4   : > { %v5302_v47 = vpop.f32.mrf.mxu2  ;;  %v5398_v4 = vpop.f32.mrf.mxu3 }
 0x5e5   : > { %v5348_v38 = vadd.f32 %v5302_v47, %v10381_v2  ;;  %v5447_v1 = vrot.slane %v5398_v4, 1 }
 0x5e9   : > { %7674 = vmatmul.msk.bf16.gmra.mxu2 %vm512_vm3, %v9531_v50  ;;  %7691 = vmatmul.msk.bf16.gmra.mxu3 %vm512_vm3, %v9531_v50  ;;  %v5564_v6 = vpop.f32.mrf.mxu0 }
 0x5ea   : > { %v5724_v55 = vpop.f32.mrf.mxu1  ;;  %v5613_v5 = vrot.slane %v5564_v6, 2 }
 0x5eb   : > { %v5773_v51 = vrot.slane %v5724_v55, 3 }
 0x5ec   : > { %v5305_v7 = vpop.f32.mrf.mxu2  ;;  %v5401_v45 = vpop.f32.mrf.mxu3 }
 0x5ed   : > { %v5349_v54 = vadd.f32 %v5305_v7, %v10377_v28  ;;  %v5350_v37 = vadd.f32 %v5305_v7, %v10388_v3  ;;  %v5448_v12 = vrot.slane %v5401_v45, 1 }
 0x5ef   : > { %v5449_v2 = vsel %vm2414_vm6, %v5447_v1, %v5448_v12  ;;  %v5453_v0 = vadd.f32 %v5448_v12, %v5349_v54 }
 0x5f0   : > { %v5452_v15 = vadd.f32 %v5449_v2, %v5348_v38 }
 0x5f1   : > { %v5567_v42 = vpop.f32.mrf.mxu0 }
 0x5f2   : > { %v5614_v60 = vrot.slane %v5567_v42, 2  ;;  %v5727_v8 = vpop.f32.mrf.mxu1 }
 0x5f3   : > { %v5774_v22 = vrot.slane %v5727_v8, 3  ;;  %7708 = vmatmul.msk.bf16.gmra.mxu0 %vm512_vm3, %v9531_v50  ;;  %7721 = vmatmul.msk.bf16.gmra.mxu1 %vm512_vm3, %v9531_v50 }
 0x5f4   : > { %v5615_v48 = vsel %vm2581_vm7, %v5613_v5, %v5614_v60  ;;  %v5619_v21 = vadd.f32 %v5614_v60, %v5453_v0  ;;  %v5307_v19 = vpop.f32.mrf.mxu2  ;;  %v5403_v43 = vpop.f32.mrf.mxu3 }
 0x5f5   : > { %v5618_v28 = vadd.f32 %v5615_v48, %v5452_v15  ;;  %v5351_v3 = vadd.f32 %v5307_v19, %v10400_v29  ;;  %v5456_v13 = vrot.slane %v5403_v43, 1  ;;  %v5775_v44 = vsel %vm443_vm1, %v5773_v51, %v5774_v22 }
 0x5f6   : > { %v10596_v49 = vadd.f32 %v5774_v22, %v5619_v21 }
 0x5f7   : > { %v10598_v34 = vadd.f32 %v5775_v44, %v5618_v28  ;;  %v5457_v27 = vsel %vm2414_vm6, %v5448_v12, %v5456_v13 }
 0x5f8   : > { %v10601_v52 = vadd.f32 %v5457_v27, %v5350_v37  ;;  %v7968_v27 = vld [vmem:[%s11050_s5] sm:$0xff] }
 0x5f9   : > { %7722 = vmatmul.msk.bf16.vlgmr.msrb.gmra.mxu2 %vm512_vm3, %v9022_v58  ;;  %v10605_v59 = vpop.f32.mrf.mxu0  ;;  %6200 = vmatpush.bf16.msrb.mxu3 %v7968_v27 }
 0x5fa   : > { %v10607_v29 = vpop.f32.mrf.mxu1  ;;  %v5622_v45 = vrot.slane %v10605_v59, 2 }
 0x5fb   : > { %v5782_v58 = vrot.slane %v10607_v29, 3 }
 0x5fc   : > { %v5310_v32 = vpop.f32.mrf.mxu2  ;;  %v5406_v47 = vpop.f32.mrf.mxu3 }
 0x5fd   : > { %v5352_v4 = vadd.f32 %v5310_v32, %v10407_v30  ;;  %v5458_v38 = vrot.slane %v5406_v47, 1 }
 0x5ff   : > { %v5459_v6 = vsel %vm2414_vm6, %v5456_v13, %v5458_v38 }
 0x600   : > { %v5463_v55 = vadd.f32 %v5459_v6, %v5351_v3 }
 0x601   : > { %v5572_v7 = vpop.f32.mrf.mxu0 }
 0x602   : > { %v5623_v1 = vrot.slane %v5572_v7, 2  ;;  %v5732_v54 = vpop.f32.mrf.mxu1 }
 0x603   : > { %v5783_v37 = vrot.slane %v5732_v54, 3 }
 0x604   : > { %v5624_v12 = vsel %vm2581_vm7, %v5622_v45, %v5623_v1  ;;  %v5312_v2 = vpop.f32.mrf.mxu2  ;;  %v5408_v0 = vpop.f32.mrf.mxu3 }
 0x605   : > { %v5628_v15 = vadd.f32 %v5624_v12, %v5463_v55  ;;  %v5353_v30 = vadd.f32 %v5312_v2, %v10421_v14  ;;  %v5465_v42 = vrot.slane %v5408_v0, 1  ;;  %v5784_v5 = vsel %vm443_vm1, %v5782_v58, %v5783_v37 }
 0x607   : > { %v10620_v60 = vadd.f32 %v5784_v5, %v5628_v15  ;;  %v5466_v8 = vsel %vm2414_vm6, %v5458_v38, %v5465_v42  ;;  %v5470_v47 = vadd.f32 %v5465_v42, %v5353_v30 }
 0x608   : > { %v5469_v22 = vadd.f32 %v5466_v8, %v5352_v4 }
 0x609   : > { %7723 = vmatmul.msk.bf16.gmra.mxu2 %vm512_vm3, %v9085_v20  ;;  %v5574_v51 = vpop.f32.mrf.mxu0 }
 0x60a   : > { %v5630_v48 = vrot.slane %v5574_v51, 2  ;;  %v5734_v21 = vpop.f32.mrf.mxu1 }
 0x60b   : > { %v5791_v19 = vrot.slane %v5734_v21, 3 }
 0x60c   : > { %v5631_v43 = vsel %vm2581_vm7, %v5623_v1, %v5630_v48  ;;  %v5315_v14 = vpop.f32.mrf.mxu2  ;;  %v5411_v28 = vpop.f32.mrf.mxu3  ;;  %v5635_v6 = vadd.f32 %v5630_v48, %v5470_v47 }
 0x60d   : > { %v5354_v3 = vadd.f32 %v5315_v14, %v10429_v62  ;;  %v5634_v13 = vadd.f32 %v5631_v43, %v5469_v22  ;;  %v5792_v44 = vsel %vm443_vm1, %v5783_v37, %v5791_v19  ;;  %v5473_v1 = vrot.slane %v5411_v28, 1 }
 0x60f   : > { %v10631_v32 = vadd.f32 %v5792_v44, %v5634_v13 }
 0x611   : > { %v5577_v20 = vpop.f32.mrf.mxu0 }
 0x612   : > { %v5737_v4 = vpop.f32.mrf.mxu1  ;;  %v5638_v30 = vrot.slane %v5577_v20, 2 }
 0x613   : > { %v5793_v38 = vrot.slane %v5737_v4, 3 }
 0x614   : > { %v5317_v55 = vpop.f32.mrf.mxu2  ;;  %v10633_v7 = vpop.f32.mrf.mxu3 }
 0x615   : > { %v5794_v62 = vsel %vm443_vm1, %v5791_v19, %v5793_v38  ;;  %v10637_v54 = vadd.f32 %v5317_v55, %v10440_v17  ;;  %v5474_v37 = vrot.slane %v10633_v7, 1 }
 0x616   : > { %v10640_v12 = vadd.f32 %v5794_v62, %v5635_v6 }
 0x617   : > { %v5475_v2 = vsel %vm2414_vm6, %v5473_v1, %v5474_v37 }
 0x618   : > { %v5478_v0 = vadd.f32 %v5475_v2, %v5354_v3 }
 0x619   : > { %7724 = vmatmul.msk.bf16.gmra.mxu2 %vm512_vm3, %v9127_v35  ;;  %v10647_v15 = vpop.f32.mrf.mxu0 }
 0x61a   : > { %v5639_v42 = vrot.slane %v10647_v15, 2  ;;  %v10650_v5 = vpop.f32.mrf.mxu1 }
 0x61b   : > { %v5800_v17 = vrot.slane %v10650_v5, 3 }
 0x61c   : > { %v5640_v8 = vsel %vm2581_vm7, %v5638_v30, %v5639_v42  ;;  %v5320_v22 = vpop.f32.mrf.mxu2  ;;  %v5416_v51 = vpop.f32.mrf.mxu3 }
 0x61d   : > { %v5643_v48 = vadd.f32 %v5640_v8, %v5478_v0  ;;  %v5356_v21 = vadd.f32 %v5320_v22, %v10452_v18  ;;  %v5801_v35 = vsel %vm443_vm1, %v5793_v38, %v5800_v17  ;;  %v5482_v13 = vrot.slane %v5416_v51, 1 }
 0x61f   : > { %v10660_v19 = vadd.f32 %v5801_v35, %v5643_v48 }
 0x621   : > { %v5582_v43 = vpop.f32.mrf.mxu0 }
 0x622   : > { %v5742_v14 = vpop.f32.mrf.mxu1  ;;  %v5647_v38 = vrot.slane %v5582_v43, 2 }
 0x623   : > { %v5808_v1 = vrot.slane %v5742_v14, 3 }
 0x624   : > { %v5322_v28 = vpop.f32.mrf.mxu2  ;;  %v5418_v3 = vpop.f32.mrf.mxu3 }
 0x625   : > { %v10663_v44 = vadd.f32 %v5322_v28, %v10449_v63  ;;  %v5358_v27 = vadd.f32 %v5322_v28, %v10458_v10  ;;  %v10666_v20 = vrot.slane %v5418_v3, 1 }
 0x627   : > { %v5484_v18 = vsel %vm2414_vm6, %v5482_v13, %v10666_v20 }
 0x628   : > { %v5487_v47 = vadd.f32 %v5484_v18, %v5356_v21 }
 0x629   : > { %7725 = vmatmul.msk.bf16.gmra.mxu2 %vm512_vm3, %v9177_v57  ;;  %v10672_v4 = vpop.f32.mrf.mxu0 }
 0x62a   : > { %v5648_v6 = vrot.slane %v10672_v4, 2  ;;  %v10675_v55 = vpop.f32.mrf.mxu1 }
 0x62b   : > { %v11057_v63 = vrot.slane %v10675_v55, 3 }
 0x62c   : > { %v5649_v10 = vsel %vm2581_vm7, %v5647_v38, %v5648_v6  ;;  %v5325_v62 = vpop.f32.mrf.mxu2  ;;  %v5421_v2 = vpop.f32.mrf.mxu3 }
 0x62d   : > { %v5652_v0 = vadd.f32 %v5649_v10, %v5487_v47  ;;  %v5359_v30 = vadd.f32 %v5325_v62, %v10470_v56  ;;  %v5491_v57 = vrot.slane %v5421_v2, 1  ;;  %v5810_v8 = vsel %vm443_vm1, %v5808_v1, %v11057_v63 }
 0x62f   : > { %v10685_v22 = vadd.f32 %v5810_v8, %v5652_v0  ;;  %v5492_v51 = vsel %vm2414_vm6, %v10666_v20, %v5491_v57 }
 0x630   : > { %v5497_v48 = vadd.f32 %v5492_v51, %v5358_v27 }
 0x631   : > { %v5587_v21 = vpop.f32.mrf.mxu0 }
 0x632   : > { %v5656_v35 = vrot.slane %v5587_v21, 2  ;;  %v5747_v43 = vpop.f32.mrf.mxu1 }
 0x633   : > { %v5817_v28 = vrot.slane %v5747_v43, 3 }
 0x634   : > { %v5661_v14 = vadd.f32 %v5656_v35, %v5497_v48  ;;  %v5327_v3 = vpop.f32.mrf.mxu2  ;;  %v5423_v13 = vpop.f32.mrf.mxu3 }
 0x635   : > { %v5360_v56 = vadd.f32 %v5327_v3, %v10477_v36  ;;  %v5493_v18 = vrot.slane %v5423_v13, 1 }
 0x636   : > { %v10690_v47 = vadd.f32 %v5817_v28, %v5661_v14 }
 0x637   : > { %v5494_v38 = vsel %vm2414_vm6, %v5491_v57, %v5493_v18 }
 0x638   : > { %v5498_v1 = vadd.f32 %v5494_v38, %v5359_v30 }
 0x639   : > { %7726 = vmatmul.msk.bf16.gmra.mxu2 %vm512_vm3, %v9217_v23  ;;  %v5589_v10 = vpop.f32.mrf.mxu0 }
 0x63a   : > { %v5657_v27 = vrot.slane %v5589_v10, 2  ;;  %v5749_v62 = vpop.f32.mrf.mxu1 }
 0x63b   : > { %v5818_v2 = vrot.slane %v5749_v62, 3 }
 0x63c   : > { %v5658_v0 = vsel %vm2581_vm7, %v5656_v35, %v5657_v27  ;;  %v5330_v8 = vpop.f32.mrf.mxu2  ;;  %v5426_v51 = vpop.f32.mrf.mxu3 }
 0x63d   : > { %v5662_v48 = vadd.f32 %v5658_v0, %v5498_v1  ;;  %v5361_v36 = vadd.f32 %v5330_v8, %v10491_v46  ;;  %v5500_v21 = vrot.slane %v5426_v51, 1  ;;  %v5819_v43 = vsel %vm443_vm1, %v5817_v28, %v5818_v2 }
 0x63f   : > { %v10698_v14 = vadd.f32 %v5819_v43, %v5662_v48  ;;  %v5501_v30 = vsel %vm2414_vm6, %v5493_v18, %v5500_v21  ;;  %v5505_v57 = vadd.f32 %v5500_v21, %v5361_v36 }
 0x640   : > { %v5504_v23 = vadd.f32 %v5501_v30, %v5360_v56 }
 0x641   : > { %v5592_v3 = vpop.f32.mrf.mxu0 }
 0x642   : > { %v5664_v13 = vrot.slane %v5592_v3, 2  ;;  %v5752_v38 = vpop.f32.mrf.mxu1 }
 0x643   : > { %v5826_v10 = vrot.slane %v5752_v38, 3 }
 0x644   : > { %v5665_v35 = vsel %vm2581_vm7, %v5657_v27, %v5664_v13  ;;  %v5669_v62 = vadd.f32 %v5664_v13, %v5505_v57  ;;  %v5332_v63 = vpop.f32.mrf.mxu2  ;;  %v5428_v1 = vpop.f32.mrf.mxu3 }
 0x645   : > { %v5668_v0 = vadd.f32 %v5665_v35, %v5504_v23  ;;  %v5362_v46 = vadd.f32 %v5332_v63, %v10499_v26  ;;  %v5827_v28 = vsel %vm443_vm1, %v5818_v2, %v5826_v10  ;;  %v5508_v21 = vrot.slane %v5428_v1, 1 }
 0x647   : > { %v10704_v8 = vadd.f32 %v5827_v28, %v5668_v0 }
 0x649   : > { %7727 = vmatmul.msk.bf16.gmra.mxu2 %vm512_vm3, %v9267_v40  ;;  %v5594_v56 = vpop.f32.mrf.mxu0 }
 0x64a   : > { %v5754_v18 = vpop.f32.mrf.mxu1  ;;  %v5672_v3 = vrot.slane %v5594_v56, 2 }
 0x64b   : > { %v5828_v51 = vrot.slane %v5754_v18, 3 }
 0x64c   : > { %v5335_v48 = vpop.f32.mrf.mxu2  ;;  %v5431_v36 = vpop.f32.mrf.mxu3 }
 0x64d   : > { %v5829_v27 = vsel %vm443_vm1, %v5826_v10, %v5828_v51  ;;  %v5363_v43 = vadd.f32 %v5335_v48, %v10510_v41  ;;  %v5509_v30 = vrot.slane %v5431_v36, 1 }
 0x64e   : > { %v10710_v57 = vadd.f32 %v5829_v27, %v5669_v62 }
 0x64f   : > { %v5510_v26 = vsel %vm2414_vm6, %v5508_v21, %v5509_v30  ;;  %v5514_v63 = vadd.f32 %v5509_v30, %v5363_v43 }
 0x650   : > { %v5513_v2 = vadd.f32 %v5510_v26, %v5362_v46 }
 0x651   : > { %v5597_v23 = vpop.f32.mrf.mxu0 }
 0x652   : > { %v5673_v40 = vrot.slane %v5597_v23, 2  ;;  %v5757_v13 = vpop.f32.mrf.mxu1 }
 0x653   : > { %v5835_v38 = vrot.slane %v5757_v13, 3 }
 0x654   : > { %v5674_v35 = vsel %vm2581_vm7, %v5672_v3, %v5673_v40  ;;  %v5678_v0 = vadd.f32 %v5673_v40, %v5514_v63  ;;  %v5337_v1 = vpop.f32.mrf.mxu2  ;;  %v5433_v28 = vpop.f32.mrf.mxu3 }
 0x655   : > { %v5677_v10 = vadd.f32 %v5674_v35, %v5513_v2  ;;  %v5836_v41 = vsel %vm443_vm1, %v5828_v51, %v5835_v38  ;;  %v5364_v62 = vadd.f32 %v5337_v1, %v10522_v31  ;;  %v5517_v27 = vrot.slane %v5433_v28, 1 }
 0x656   : > { %v10716_v18 = vadd.f32 %v5835_v38, %v5678_v0 }
 0x657   : > { %v10718_v48 = vadd.f32 %v5836_v41, %v5677_v10 }
 0x659   : > { %7728 = vmatmul.msk.bf16.gmra.mxu2 %vm512_vm3, %v9313_v53  ;;  %v5599_v46 = vpop.f32.mrf.mxu0 }
 0x65a   : > { %v5759_v56 = vpop.f32.mrf.mxu1  ;;  %v5681_v23 = vrot.slane %v5599_v46, 2 }
 0x65b   : > { %v5843_v13 = vrot.slane %v5759_v56, 3 }
 0x65c   : > { %v5340_v36 = vpop.f32.mrf.mxu2  ;;  %v5436_v21 = vpop.f32.mrf.mxu3 }
 0x65d   : > { %v5365_v43 = vadd.f32 %v5340_v36, %v10519_v33  ;;  %v5366_v30 = vadd.f32 %v5340_v36, %v10528_v16  ;;  %v5518_v26 = vrot.slane %v5436_v21, 1  ;;  %v7973_v33 = vld [vmem:[%s11050_s5 + $0x28] sm:$0xff] }
 0x65e   : > { %6348 = vmatpush.bf16.msra.mxu1 %v7973_v33 }
 0x65f   : > { %v5519_v51 = vsel %vm2414_vm6, %v5517_v27, %v5518_v26  ;;  %v5523_v31 = vadd.f32 %v5518_v26, %v5365_v43 }
 0x660   : > { %v5522_v63 = vadd.f32 %v5519_v51, %v5364_v62 }
 0x661   : > { %v5602_v2 = vpop.f32.mrf.mxu0 }
 0x662   : > { %v5682_v3 = vrot.slane %v5602_v2, 2  ;;  %v5762_v40 = vpop.f32.mrf.mxu1 }
 0x663   : > { %v5844_v53 = vrot.slane %v5762_v40, 3 }
 0x664   : > { %v5683_v38 = vsel %vm2581_vm7, %v5681_v23, %v5682_v3  ;;  %v5687_v35 = vadd.f32 %v5682_v3, %v5523_v31  ;;  %v5342_v0 = vpop.f32.mrf.mxu2  ;;  %v5438_v1 = vpop.f32.mrf.mxu3 }
 0x665   : > { %v5686_v16 = vadd.f32 %v5683_v38, %v5522_v63  ;;  %v5845_v28 = vsel %vm443_vm1, %v5843_v13, %v5844_v53  ;;  %v5367_v10 = vadd.f32 %v5342_v0, %v10539_v25  ;;  %v5526_v41 = vrot.slane %v5438_v1, 1  ;;  %v7975_v25 = vld [vmem:[%s11050_s5 + $0x38] sm:$0xff] }
 0x666   : > { %v10731_v62 = vadd.f32 %v5844_v53, %v5687_v35  ;;  %6402 = vmatpush.bf16.msra.mxu0 %v7975_v25 }
 0x667   : > { %v10733_v46 = vadd.f32 %v5845_v28, %v5686_v16  ;;  %v5527_v56 = vsel %vm2414_vm6, %v5518_v26, %v5526_v41 }
 0x668   : > { %v5532_v36 = vadd.f32 %v5527_v56, %v5366_v30 }
 0x669   : > { %7729 = vmatmul.msk.bf16.gmra.mxu2 %vm512_vm3, %v9363_v39  ;;  %v5604_v21 = vpop.f32.mrf.mxu0 }
 0x66a   : > { %v5690_v27 = vrot.slane %v5604_v21, 2  ;;  %v5764_v43 = vpop.f32.mrf.mxu1 }
 0x66b   : > { %v5852_v31 = vrot.slane %v5764_v43, 3 }
 0x66c   : > { %v5695_v51 = vadd.f32 %v5690_v27, %v5532_v36  ;;  %v5345_v63 = vpop.f32.mrf.mxu2  ;;  %v5441_v2 = vpop.f32.mrf.mxu3 }
 0x66d   : > { %v5528_v23 = vrot.slane %v5441_v2, 1 }
 0x66e   : > { %v10741_v3 = vadd.f32 %v5852_v31, %v5695_v51 }
 0x66f   : > { %v5529_v30 = vsel %vm2414_vm6, %v5526_v41, %v5528_v23 }
 0x670   : > { %v5533_v26 = vadd.f32 %v5529_v30, %v5367_v10 }
 0x671   : > { %v5607_v40 = vpop.f32.mrf.mxu0 }
 0x672   : > { %v5691_v39 = vrot.slane %v5607_v40, 2  ;;  %v5767_v13 = vpop.f32.mrf.mxu1 }
 0x673   : > { %v5853_v53 = vrot.slane %v5767_v13, 3 }
 0x674   : > { %v5692_v38 = vsel %vm2581_vm7, %v5690_v27, %v5691_v39  ;;  %v5346_v35 = vpop.f32.mrf.mxu2  ;;  %v5443_v0 = vpop.f32.mrf.mxu3 }
 0x675   : > { %v5696_v1 = vadd.f32 %v5692_v38, %v5533_v26  ;;  %v5854_v33 = vsel %vm443_vm1, %v5852_v31, %v5853_v53  ;;  %vm6080_vm1 = vcmask 125952  }
 0x677   : > { %v10746_v16 = vadd.f32 %v5854_v33, %v5696_v1 }
 0x679   : > { %7730 = vmatmul.msk.bf16.gmra.mxu2 %vm512_vm3, %v9401_v24  ;;  %v5609_v28 = vpop.f32.mrf.mxu0 }
 0x67a   : > { %v5769_v56 = vpop.f32.mrf.mxu1 }
 0x67c   : > { %v5872_v41 = vpop.f32.mrf.mxu2 }
 0x684   : > { %v5873_v10 = vpop.f32.mrf.mxu2 }
 0x689   : > { %7731 = vmatmul.msk.bf16.gmra.mxu2 %vm512_vm3, %v9426_v9  ;;  %v10761_v9 = vld [vmem:[%s11049_s4] ss:$0 sm:$0xff] }
 0x68c   : > { %v5875_v36 = vpop.f32.mrf.mxu2 }
 0x694   : > { %v5876_v21 = vpop.f32.mrf.mxu2 }
 0x699   : > { %7732 = vmatmul.msk.bf16.gmra.mxu2 %vm512_vm3, %v9466_v11 }
 0x69c   : > { %v5878_v27 = vpop.f32.mrf.mxu2 }
 0x6a4   : > { %v5879_v43 = vpop.f32.mrf.mxu2 }
 0x6a9   : > { %7733 = vmatmul.msk.bf16.gmra.mxu2 %vm512_vm3, %v9488_v61  ;;  %v5627_v61 = vadd.f32 %v5622_v45, %v10601_v52 }
 0x6ab   : > { %v5787_v13 = vadd.f32 %v5782_v58, %v5627_v61 }
 0x6ac   : > { %v5881_v51 = vpop.f32.mrf.mxu2 }
 0x6b4   : > { %v5882_v31 = vpop.f32.mrf.mxu2 }
 0x6b5   : > { %v5931_v63 = vrot.slane %v5882_v31, 4 }
 0x6b9   : > { %7734 = vmatmul.msk.bf16.gmra.mxu2 %vm512_vm3, %v9531_v50  ;;  %vm7035_vm3 = vcmask 687104  }
 0x6bc   : > { %v5885_v24 = vpop.f32.mrf.mxu2 }
 0x6bd   : > { %v5932_v2 = vrot.slane %v5885_v24, 4 }
 0x6bf   : > { %v5933_v11 = vsel %vm442_vm0, %v5931_v63, %v5932_v2  ;;  %v5937_v25 = vadd.f32 %v5932_v2, %v10596_v49 }
 0x6c0   : > { %v5936_v23 = vadd.f32 %v5933_v11, %v10598_v34 }
 0x6c1   : > { %v6020_v50 = vadd.f32 %v10761_v9, %v5937_v25 }
 0x6c2   : > { %v6019_v30 = vadd.f32 %v10761_v9, %v5936_v23 }
 0x6c3   : > { %v6022_v26 = vsub.f32 0.0, %v6020_v50 }
 0x6c4   : > { %v6021_v40 = vsub.f32 0.0, %v6019_v30  ;;  %v5887_v39 = vpop.f32.mrf.mxu2  ;;  %v5479_v30 = vadd.f32 %v5474_v37, %v10637_v54 }
 0x6c5   : > { %v6025_v53 = vmul.f32 1.442695, %v6022_v26  ;;  %v5940_v38 = vrot.slane %v5887_v39, 4 }
 0x6c6   : > { %v6023_v35 = vmul.f32 1.442695, %v6021_v40  ;;  %v5644_v39 = vadd.f32 %v5639_v42, %v5479_v30 }
 0x6c7   : > { %8440 = vpow2.f32 %v6025_v53  ;;  %v5945_v49 = vadd.f32 %v5940_v38, %v5787_v13 }
 0x6c8   : > { %8442 = vpow2.f32 %v6023_v35  ;;  %v5805_v7 = vadd.f32 %v5800_v17, %v5644_v39 }
 0x6c9   : > { %v6035_v34 = vadd.f32 %v10761_v9, %v5945_v49 }
 0x6cb   : > { %v6037_v59 = vsub.f32 0.0, %v6035_v34 }
 0x6cc   : > { %v5890_v52 = vpop.f32.mrf.mxu2 }
 0x6cd   : > { %v8441_v45 = vpop.eup %8440  ;;  %v6039_v0 = vmul.f32 1.442695, %v6037_v59  ;;  %v5941_v1 = vrot.slane %v5890_v52, 4 }
 0x6ce   : > { %v8443_v33 = vpop.eup %8442  ;;  %v6028_v28 = vadd.f32 1.0, %v8441_v45 }
 0x6cf   : > { %v6027_v56 = vadd.f32 1.0, %v8443_v33  ;;  %8444 = vpow2.f32 %v6039_v0  ;;  %v5942_v29 = vsel %vm442_vm0, %v5940_v38, %v5941_v1 }
 0x6d0   : > { %8446 = vrcp.f32 %v6028_v28  ;;  %v5946_v58 = vadd.f32 %v5942_v29, %v10620_v60 }
 0x6d1   : > { %8448 = vrcp.f32 %v6027_v56 }
 0x6d2   : > { %v6036_v41 = vadd.f32 %v10761_v9, %v5946_v58 }
 0x6d4   : > { %v6038_v10 = vsub.f32 0.0, %v6036_v41  ;;  %v5892_v36 = vpop.f32.mrf.mxu2 }
 0x6d5   : > { %v8445_v21 = vpop.eup %8444  ;;  %v5949_v27 = vrot.slane %v5892_v36, 4 }
 0x6d6   : > { %v8447_v43 = vpop.eup %8446  ;;  %v6043_v51 = vadd.f32 1.0, %v8445_v21  ;;  %v6041_v31 = vmul.f32 1.442695, %v6038_v10 }
 0x6d7   : > { %v8449_v24 = vpop.eup %8448  ;;  %6034 = vst.msk [vmem:[#allocation4 + $0x8] sm:$0x3] %vm6033_vm10, %v8447_v43  ;;  %v5954_v63 = vadd.f32 %v5949_v27, %v10631_v32 }
 0x6d8   : > { %6032 = vst.msk [vmem:[#allocation4] sm:$0xff] %vm6031_vm11, %v8449_v24  ;;  %8450 = vrcp.f32 %v6043_v51  ;;  %v11064_v24 = vrot.slane %v10675_v55, 3 }
 0x6d9   : > { %8452 = vpow2.f32 %v6041_v31  ;;  %v6050_v60 = vadd.f32 %v10761_v9, %v5954_v63 }
 0x6db   : > { %v6052_v2 = vsub.f32 0.0, %v6050_v60 }
 0x6dc   : > { %v5895_v11 = vpop.f32.mrf.mxu2 }
 0x6dd   : > { %v6054_v25 = vmul.f32 1.442695, %v6052_v2  ;;  %v5950_v23 = vrot.slane %v5895_v11, 4 }
 0x6de   : > { %v8451_v61 = vpop.eup %8450 }
 0x6df   : > { %v8453_v50 = vpop.eup %8452  ;;  %8454 = vpow2.f32 %v6054_v25  ;;  %v5951_v32 = vsel %vm442_vm0, %v5949_v27, %v5950_v23  ;;  %6048 = vst.msk [vmem:[#allocation4 + $0x4] sm:$0xc0] %vm6047_vm12, %v8451_v61  ;;  %v6167_v45 = vld [vmem:[#allocation4] ss:$2 sm:$0x1f] }
 0x6e0   : > { %v6044_v26 = vadd.f32 1.0, %v8453_v50  ;;  %v5955_v40 = vadd.f32 %v5951_v32, %v10640_v12  ;;  %v6169_v17 = vld [vmem:[#allocation4 + $0x1] ss:$2 sm:$0x1f] }
 0x6e1   : > { %v6170_v58 = vadd.f32 %v6169_v17, %v6167_v45  ;;  %v7969_v50 = vld [vmem:[%s11050_s5 + $0x8] sm:$0xff] }
 0x6e2   : > { %8456 = vrcp.f32 %v6044_v26  ;;  %v6051_v13 = vadd.f32 %v10761_v9, %v5955_v40  ;;  %6227 = vmatpush.bf16.msra.mxu3 %v7969_v50 }
 0x6e4   : > { %v6053_v53 = vsub.f32 0.0, %v6051_v13  ;;  %v5897_v38 = vpop.f32.mrf.mxu2 }
 0x6e5   : > { %v8455_v35 = vpop.eup %8454  ;;  %v5957_v54 = vrot.slane %v5897_v38, 4 }
 0x6e6   : > { %v6058_v37 = vadd.f32 1.0, %v8455_v35  ;;  %v6056_v49 = vmul.f32 1.442695, %v6053_v53 }
 0x6e7   : > { %v5958_v34 = vsel %vm442_vm0, %v5950_v23, %v5957_v54  ;;  %v5962_v59 = vadd.f32 %v5957_v54, %v5805_v7 }
 0x6e8   : > { %v8457_v52 = vpop.eup %8456  ;;  %8458 = vrcp.f32 %v6058_v37  ;;  %v5961_v12 = vadd.f32 %v5958_v34, %v10660_v19  ;;  %v5488_v19 = vadd.f32 %v10666_v20, %v10663_v44 }
 0x6e9   : > { %6049 = vst.msk [vmem:[#allocation4 + $0xc] sm:$0xff] %vm6031_vm11, %v8457_v52  ;;  %8460 = vpow2.f32 %v6056_v49  ;;  %v6067_v15 = vadd.f32 %v10761_v9, %v5962_v59 }
 0x6ea   : > { %v6066_v42 = vadd.f32 %v10761_v9, %v5961_v12  ;;  %v5653_v10 = vadd.f32 %v5648_v6, %v5488_v19 }
 0x6eb   : > { %v6069_v5 = vsub.f32 0.0, %v6067_v15 }
 0x6ec   : > { %v6068_v0 = vsub.f32 0.0, %v6066_v42  ;;  %v5900_v1 = vpop.f32.mrf.mxu2  ;;  %v5814_v44 = vadd.f32 %v11064_v24, %v5653_v10 }
 0x6ed   : > { %v6072_v33 = vmul.f32 1.442695, %v6069_v5  ;;  %v5965_v63 = vrot.slane %v5900_v1, 4 }
 0x6ee   : > { %v8459_v28 = vpop.eup %8458  ;;  %v6070_v56 = vmul.f32 1.442695, %v6068_v0 }
 0x6ef   : > { %v8461_v29 = vpop.eup %8460  ;;  %6063 = vst.msk [vmem:[#allocation4 + $0x10] sm:$0xf0] %vm6062_vm13, %v8459_v28  ;;  %8462 = vpow2.f32 %v6072_v33 }
 0x6f0   : > { %v6172_v41 = vld [vmem:[#allocation4 + $0xa] ss:$2 sm:$0x1f]  ;;  %8464 = vpow2.f32 %v6070_v56  ;;  %v6059_v21 = vadd.f32 1.0, %v8461_v29 }
 0x6f1   : > { %v6173_v36 = vadd.f32 %v6172_v41, %v6170_v58  ;;  %v6175_v27 = vld [vmem:[#allocation4 + $0xb] ss:$2 sm:$0x1f] }
 0x6f2   : > { %8466 = vrcp.f32 %v6059_v21  ;;  %v7970_v58 = vld [vmem:[%s11050_s5 + $0x10] sm:$0xff] }
 0x6f3   : > { %v6176_v43 = vadd.f32 %v6175_v27, %v6173_v36 }
 0x6f4   : > { %v5902_v51 = vpop.f32.mrf.mxu2 }
 0x6f5   : > { %v8463_v31 = vpop.eup %8462  ;;  %v6177_v20 = vmul.f32 0.25, %v6176_v43  ;;  %v5966_v60 = vrot.slane %v5902_v51, 4 }
 0x6f6   : > { %v8465_v2 = vpop.eup %8464  ;;  %v6075_v11 = vadd.f32 1.0, %v8463_v31 }
 0x6f7   : > { %6179 = vst.msk [vmem:[#allocation5] sm:$0x1f] %vm6178_vm14, %v6177_v20  ;;  %v6074_v4 = vadd.f32 1.0, %v8465_v2  ;;  %v5967_v6 = vsel %vm442_vm0, %v5965_v63, %v5966_v60  ;;  %v5971_v25 = vadd.f32 %v5966_v60, %v5814_v44 }
 0x6f8   : > { %8468 = vrcp.f32 %v6075_v11  ;;  %v5970_v23 = vadd.f32 %v5967_v6, %v10685_v22  ;;  %v8467_v61 = vpop.eup %8466  ;;  %v7976_v6 = vld [vmem:[%s11050_s5 + $0x40] sm:$0xff] }
 0x6f9   : > { %8470 = vrcp.f32 %v6074_v4  ;;  %v6083_v55 = vadd.f32 %v10761_v9, %v5971_v25  ;;  %6065 = vst.msk [vmem:[#allocation4 + $0x18] sm:$0x3f] %vm6064_vm15, %v8467_v61  ;;  %6429 = vmatpush.bf16.msrb.mxu1 %v7976_v6 }
 0x6fa   : > { %v6082_v30 = vadd.f32 %v10761_v9, %v5970_v23 }
 0x6fb   : > { %v6085_v32 = vsub.f32 0.0, %v6083_v55 }
 0x6fc   : > { %v6084_v26 = vsub.f32 0.0, %v6082_v30  ;;  %v5905_v40 = vpop.f32.mrf.mxu2 }
 0x6fd   : > { %v6088_v39 = vmul.f32 1.442695, %v6085_v32  ;;  %v5974_v22 = vrot.slane %v5905_v40, 4 }
 0x6fe   : > { %v8469_v13 = vpop.eup %8468  ;;  %v6086_v53 = vmul.f32 1.442695, %v6084_v26  ;;  %v6180_v38 = vld [vmem:[#allocation5] sm:$0x1]  ;;  %v6207_v21 = vld [vmem:[#allocation5 + $0x1] sm:$0x1] }
 0x6ff   : > { %v8471_v35 = vpop.eup %8470  ;;  %6081 = vst.msk [vmem:[#allocation4 + $0x24] sm:$0xf] %vm6080_vm1, %v8469_v13  ;;  %8472 = vpow2.f32 %v6088_v39  ;;  %v5979_v7 = vadd.f32 %v5974_v22, %v10690_v47  ;;  %v6181_v54 = vpack.c.bf16 %v6180_v38, %v6180_v38  ;;  %v6234_v27 = vld [vmem:[#allocation5 + $0x2] sm:$0x1]  ;;  %v10824_v31 = vld [vmem:[#allocation5 + $0x3] sm:$0x1]  ;;  %v6208_v60 = vpack.c.bf16 %v6207_v21, %v6207_v21 }
 0x700   : > { %6079 = vst.msk [vmem:[#allocation4 + $0x1c] sm:$0xfc] %vm6078_vm2, %v8471_v35  ;;  %8474 = vpow2.f32 %v6086_v53  ;;  %v6316_v49 = vld [vmem:[#allocation4 + $0x14] ss:$2 sm:$0x1f] }
 0x701   : > { %v6096_v37 = vadd.f32 %v10761_v9, %v5979_v7  ;;  %7739 = vmatmul.msk.bf16.vlgmr.msrb.gmra.mxu3 %vm6031_vm11, %v6181_v54  ;;  %v6318_v34 = vld [vmem:[#allocation4 + $0x15] ss:$2 sm:$0x1f]  ;;  %v10826_v24 = vld [vmem:[#allocation5 + $0x4] sm:$0x1] }
 0x702   : > { %v6319_v5 = vadd.f32 %v6318_v34, %v6316_v49  ;;  %6254 = vmatpush.bf16.msrb.mxu3 %v7970_v58  ;;  %v7971_v53 = vld [vmem:[%s11050_s5 + $0x18] sm:$0xff] }
 0x703   : > { %v6098_v59 = vsub.f32 0.0, %v6096_v37 }
 0x704   : > { %v5907_v52 = vpop.f32.mrf.mxu2 }
 0x705   : > { %v8473_v12 = vpop.eup %8472  ;;  %v6100_v15 = vmul.f32 1.442695, %v6098_v59  ;;  %v5975_v42 = vrot.slane %v5907_v52, 4  ;;  %v6235_v59 = vpack.c.bf16 %v6234_v27, %v6234_v27  ;;  %v7972_v27 = vld [vmem:[%s11050_s5 + $0x20] sm:$0xff] }
 0x706   : > { %v8475_v45 = vpop.eup %8474  ;;  %v6091_v17 = vadd.f32 1.0, %v8473_v12 }
 0x707   : > { %v6321_v0 = vld [vmem:[#allocation4 + $0x1e] ss:$2 sm:$0x1f]  ;;  %8476 = vpow2.f32 %v6100_v15  ;;  %v5976_v47 = vsel %vm442_vm0, %v5974_v22, %v5975_v42  ;;  %v6090_v33 = vadd.f32 1.0, %v8475_v45 }
 0x708   : > { %v6322_v1 = vadd.f32 %v6321_v0, %v6319_v5  ;;  %8478 = vrcp.f32 %v6091_v17  ;;  %v5980_v28 = vadd.f32 %v5976_v47, %v10698_v14  ;;  %v6324_v56 = vld [vmem:[#allocation4 + $0x1f] ss:$2 sm:$0x1f]  ;;  %v7978_v5 = vld [vmem:[%s11050_s5 + $0x50] sm:$0xff] }
 0x709   : > { %8480 = vrcp.f32 %v6090_v33  ;;  %6496 = vmatpush.bf16.msrb.mxu0 %v7978_v5 }
 0x70a   : > { %v6325_v29 = vadd.f32 %v6324_v56, %v6322_v1  ;;  %v6097_v19 = vadd.f32 %v10761_v9, %v5980_v28 }
 0x70c   : > { %v6326_v41 = vmul.f32 0.25, %v6325_v29  ;;  %v6099_v10 = vsub.f32 0.0, %v6097_v19  ;;  %v5910_v36 = vpop.f32.mrf.mxu2 }
 0x70d   : > { %v8477_v43 = vpop.eup %8476  ;;  %v5983_v51 = vrot.slane %v5910_v36, 4 }
 0x70e   : > { %v8479_v14 = vpop.eup %8478  ;;  %v6104_v44 = vadd.f32 1.0, %v8477_v43  ;;  %v6102_v20 = vmul.f32 1.442695, %v6099_v10  ;;  %6327 = vst.msk [vmem:[#allocation5] sm:$0x1f] %vm6178_vm14, %v6326_v41 }
 0x70f   : > { %6095 = vst.msk [vmem:[#allocation4 + $0x30] sm:$0x3] %vm6033_vm10, %v8479_v14  ;;  %v5988_v63 = vadd.f32 %v5983_v51, %v10704_v8  ;;  %v8481_v2 = vpop.eup %8480 }
 0x710   : > { %8482 = vrcp.f32 %v6104_v44  ;;  %6094 = vst.msk [vmem:[#allocation4 + $0x28] sm:$0xff] %vm6031_vm11, %v8481_v2 }
 0x711   : > { %8484 = vpow2.f32 %v6102_v20  ;;  %v6110_v11 = vadd.f32 %v10761_v9, %v5988_v63  ;;  %7744 = vmatmul.msk.bf16.vlgmr.msra.gmra.mxu3 %vm6031_vm11, %v6208_v60 }
 0x712   : > { %6281 = vmatpush.bf16.msra.mxu3 %v7971_v53 }
 0x713   : > { %v6112_v4 = vsub.f32 0.0, %v6110_v11 }
 0x714   : > { %v5912_v25 = vpop.f32.mrf.mxu2 }
 0x715   : > { %v6114_v23 = vmul.f32 1.442695, %v6112_v4  ;;  %v5984_v8 = vrot.slane %v5912_v25, 4  ;;  %v6328_v55 = vld [vmem:[#allocation5] sm:$0x1] }
 0x716   : > { %v8483_v61 = vpop.eup %8482  ;;  %v6382_v50 = vld [vmem:[#allocation5 + $0x2] sm:$0x1]  ;;  %v6329_v32 = vpack.c.bf16 %v6328_v55, %v6328_v55  ;;  %v6409_v47 = vld [vmem:[#allocation5 + $0x3] sm:$0x1]  ;;  %v10864_v11 = vld [vmem:[#allocation5 + $0x1] sm:$0x1] }
 0x717   : > { %v8485_v30 = vpop.eup %8484  ;;  %6108 = vst.msk [vmem:[#allocation4 + $0x2c] sm:$0xc0] %vm6047_vm12, %v8483_v61  ;;  %8486 = vpow2.f32 %v6114_v23  ;;  %v6383_v26 = vpack.c.bf16 %v6382_v50, %v6382_v50  ;;  %v5985_v40 = vsel %vm442_vm0, %v5983_v51, %v5984_v8  ;;  %v6466_v1 = vld [vmem:[#allocation4 + $0x29] ss:$2 sm:$0x1f]  ;;  %v6410_v19 = vpack.c.bf16 %v6409_v47, %v6409_v47 }
 0x718   : > { %v6105_v39 = vadd.f32 1.0, %v8485_v30  ;;  %v5989_v22 = vadd.f32 %v5985_v40, %v10710_v57  ;;  %7764 = vmatmul.msk.bf16.vlgmr.msra.gmra.mxu1 %vm6031_vm11, %v6329_v32  ;;  %v10866_v4 = vld [vmem:[#allocation5 + $0x4] sm:$0x1]  ;;  %v6262_v61 = vpack.c.bf16 %v10824_v31, %v10824_v31  ;;  %v7982_v31 = vld [vmem:[%s11050_s5 + $0x70] sm:$0xff] }
 0x719   : > { %7774 = vmatmul.msk.bf16.vlgmr.msra.gmra.mxu0 %vm6031_vm11, %v6383_v26 }
 0x71a   : > { %8488 = vrcp.f32 %v6105_v39  ;;  %v6111_v13 = vadd.f32 %v10761_v9, %v5989_v22 }
 0x71c   : > { %v5915_v38 = vpop.f32.mrf.mxu2  ;;  %v6113_v7 = vsub.f32 0.0, %v6111_v13 }
 0x71d   : > { %v8487_v35 = vpop.eup %8486  ;;  %v5991_v54 = vrot.slane %v5915_v38, 4 }
 0x71e   : > { %v6118_v37 = vadd.f32 1.0, %v8487_v35  ;;  %v6116_v49 = vmul.f32 1.442695, %v6113_v7 }
 0x71f   : > { %v5992_v57 = vsel %vm442_vm0, %v5984_v8, %v5991_v54  ;;  %v5996_v34 = vadd.f32 %v5991_v54, %v10716_v18  ;;  %v7979_v18 = vld [vmem:[%s11050_s5 + $0x58] sm:$0xff] }
 0x720   : > { %8490 = vrcp.f32 %v6118_v37  ;;  %v5995_v52 = vadd.f32 %v5992_v57, %v10718_v48  ;;  %v8489_v12 = vpop.eup %8488  ;;  %v6464_v48 = vld [vmem:[#allocation4 + $0x28] ss:$2 sm:$0x1f]  ;;  %6523 = vmatpush.bf16.msra.mxu1 %v7979_v18  ;;  %v6289_v18 = vpack.c.bf16 %v10826_v24, %v10826_v24  ;;  %v7984_v24 = vld [vmem:[%s11050_s5 + $0x80] sm:$0xff] }
 0x721   : > { %8492 = vpow2.f32 %v6116_v49  ;;  %v6125_v15 = vadd.f32 %v10761_v9, %v5996_v34  ;;  %7749 = vmatmul.msk.bf16.vlgmr.msrb.gmra.mxu3 %vm6031_vm11, %v6235_v59  ;;  %6109 = vst.msk [vmem:[#allocation4 + $0x34] sm:$0xff] %vm6031_vm11, %v8489_v12  ;;  %v6467_v58 = vadd.f32 %v6466_v1, %v6464_v48  ;;  %v7974_v34 = vld [vmem:[%s11050_s5 + $0x30] sm:$0xff] }
 0x722   : > { %v6124_v42 = vadd.f32 %v10761_v9, %v5995_v52  ;;  %6308 = vmatpush.bf16.msrb.mxu3 %v7972_v27 }
 0x723   : > { %v6127_v45 = vsub.f32 0.0, %v6125_v15 }
 0x724   : > { %v6126_v17 = vsub.f32 0.0, %v6124_v42  ;;  %v5917_v0 = vpop.f32.mrf.mxu2 }
 0x725   : > { %v6130_v33 = vmul.f32 1.442695, %v6127_v45  ;;  %v5999_v44 = vrot.slane %v5917_v0, 4 }
 0x726   : > { %v8491_v28 = vpop.eup %8490  ;;  %v6128_v56 = vmul.f32 1.442695, %v6126_v17 }
 0x727   : > { %v8493_v29 = vpop.eup %8492  ;;  %6122 = vst.msk [vmem:[#allocation4 + $0x38] sm:$0xf0] %vm6062_vm13, %v8491_v28  ;;  %8494 = vpow2.f32 %v6130_v33 }
 0x728   : > { %v6119_v41 = vadd.f32 1.0, %v8493_v29  ;;  %8496 = vpow2.f32 %v6128_v56  ;;  %v6469_v10 = vld [vmem:[#allocation4 + $0x32] ss:$2 sm:$0x1f]  ;;  %7779 = vmatmul.msk.bf16.vlgmr.msrb.gmra.mxu1 %vm6031_vm11, %v6410_v19  ;;  %v7985_v19 = vld [vmem:[%s11050_s5 + $0x88] sm:$0xff] }
 0x729   : > { %v6470_v36 = vadd.f32 %v6469_v10, %v6467_v58  ;;  %v6472_v21 = vld [vmem:[#allocation4 + $0x33] ss:$2 sm:$0x1f]  ;;  %6604 = vmatpush.bf16.msrb.mxu1 %v7982_v31 }
 0x72a   : > { %8498 = vrcp.f32 %v6119_v41  ;;  %v7991_v31 = vld [vmem:[%s11050_s5 + $0xb8] sm:$0xff] }
 0x72b   : > { %v6473_v43 = vadd.f32 %v6472_v21, %v6470_v36  ;;  %v7977_v21 = vld [vmem:[%s11050_s5 + $0x48] sm:$0xff] }
 0x72c   : > { %v5920_v51 = vpop.f32.mrf.mxu2 }
 0x72d   : > { %v8495_v14 = vpop.eup %8494  ;;  %v6000_v20 = vrot.slane %v5920_v51, 4  ;;  %v6474_v60 = vmul.f32 0.25, %v6473_v43 }
 0x72e   : > { %v8497_v63 = vpop.eup %8496  ;;  %v6133_v2 = vadd.f32 1.0, %v8495_v14 }
 0x72f   : > { %v6132_v6 = vadd.f32 1.0, %v8497_v63  ;;  %v6001_v25 = vsel %vm442_vm0, %v5999_v44, %v6000_v20  ;;  %v6005_v23 = vadd.f32 %v6000_v20, %v10731_v62  ;;  %6475 = vst.msk [vmem:[#allocation5] sm:$0x1f] %vm6178_vm14, %v6474_v60  ;;  %v7981_v62 = vld [vmem:[%s11050_s5 + $0x68] sm:$0xff]  ;;  %v7987_v44 = vld [vmem:[%s11050_s5 + $0x98] sm:$0xff] }
 0x730   : > { %v8499_v8 = vpop.eup %8498  ;;  %8500 = vrcp.f32 %v6133_v2  ;;  %v6004_v55 = vadd.f32 %v6001_v25, %v10733_v46  ;;  %6577 = vmatpush.bf16.msra.mxu0 %v7981_v62  ;;  %v7988_v2 = vld [vmem:[%s11050_s5 + $0xa0] sm:$0xff] }
 0x731   : > { %6123 = vst.msk [vmem:[#allocation4 + $0x40] sm:$0x3f] %vm6064_vm15, %v8499_v8  ;;  %8502 = vrcp.f32 %v6132_v6  ;;  %v6139_v50 = vadd.f32 %v10761_v9, %v6005_v23  ;;  %7754 = vmatmul.msk.bf16.vlgmr.msra.gmra.mxu3 %vm6031_vm11, %v6262_v61  ;;  %v7980_v25 = vld [vmem:[%s11050_s5 + $0x60] sm:$0xff]  ;;  %v6356_v61 = vpack.c.bf16 %v10864_v11, %v10864_v11 }
 0x732   : > { %v6138_v30 = vadd.f32 %v10761_v9, %v6004_v55  ;;  %6375 = vmatpush.bf16.msra.mxu3 %v7974_v34 }
 0x733   : > { %v6141_v32 = vsub.f32 0.0, %v6139_v50 }
 0x734   : > { %v6140_v26 = vsub.f32 0.0, %v6138_v30  ;;  %v5922_v46 = vpop.f32.mrf.mxu2  ;;  %v7990_v30 = vld [vmem:[%s11050_s5 + $0xb0] sm:$0xff] }
 0x735   : > { %v6144_v40 = vmul.f32 1.442695, %v6141_v32  ;;  %v6008_v39 = vrot.slane %v5922_v46, 4 }
 0x736   : > { %v8501_v22 = vpop.eup %8500  ;;  %v6142_v13 = vmul.f32 1.442695, %v6140_v26  ;;  %v6476_v35 = vld [vmem:[#allocation5] sm:$0x1]  ;;  %v6503_v37 = vld [vmem:[#allocation5 + $0x1] sm:$0x1] }
 0x737   : > { %v8503_v53 = vpop.eup %8502  ;;  %6137 = vst.msk [vmem:[#allocation4 + $0x4c] sm:$0xf] %vm6080_vm1, %v8501_v22  ;;  %8504 = vpow2.f32 %v6144_v40  ;;  %v6013_v38 = vadd.f32 %v6008_v39, %v10741_v3  ;;  %v6477_v7 = vpack.c.bf16 %v6476_v35, %v6476_v35  ;;  %v6504_v49 = vpack.c.bf16 %v6503_v37, %v6503_v37  ;;  %v6557_v36 = vld [vmem:[#allocation5 + $0x3] sm:$0x1]  ;;  %v6584_v14 = vld [vmem:[#allocation5 + $0x4] sm:$0x1] }
 0x738   : > { %8506 = vpow2.f32 %v6142_v13  ;;  %6136 = vst.msk [vmem:[#allocation4 + $0x44] sm:$0xfc] %vm6078_vm2, %v8503_v53  ;;  %v6612_v59 = vld [vmem:[#allocation4 + $0x3c] ss:$2 sm:$0x1f]  ;;  %v6558_v63 = vpack.c.bf16 %v6557_v36, %v6557_v36  ;;  %v6585_v60 = vpack.c.bf16 %v6584_v14, %v6584_v14  ;;  %v6437_v22 = vpack.c.bf16 %v10866_v4, %v10866_v4  ;;  %v7986_v4 = vld [vmem:[%s11050_s5 + $0x90] sm:$0xff] }
 0x739   : > { %v6152_v54 = vadd.f32 %v10761_v9, %v6013_v38  ;;  %7789 = vmatmul.msk.bf16.vlgmr.msrb.gmra.mxu0 %vm6031_vm11, %v6477_v7  ;;  %v6614_v52 = vld [vmem:[#allocation4 + $0x3d] ss:$2 sm:$0x1f]  ;;  %7794 = vmatmul.msk.bf16.vlgmr.msra.gmra.mxu1 %vm6031_vm11, %v6504_v49  ;;  %v6530_v20 = vld [vmem:[#allocation5 + $0x2] sm:$0x1] }
 0x73a   : > { %v6615_v48 = vadd.f32 %v6614_v52, %v6612_v59  ;;  %6671 = vmatpush.bf16.msrb.mxu0 %v7984_v24  ;;  %6698 = vmatpush.bf16.msra.mxu1 %v7985_v19  ;;  %v7983_v40 = vld [vmem:[%s11050_s5 + $0x78] sm:$0xff]  ;;  %v6531_v59 = vpack.c.bf16 %v6530_v20, %v6530_v20 }
 0x73b   : > { %v6154_v57 = vsub.f32 0.0, %v6152_v54 }
 0x73c   : > { %v5925_v3 = vpop.f32.mrf.mxu2 }
 0x73d   : > { %v8505_v12 = vpop.eup %8504  ;;  %v6156_v15 = vmul.f32 1.442695, %v6154_v57  ;;  %v6009_v42 = vrot.slane %v5925_v3, 4 }
 0x73e   : > { %v8507_v45 = vpop.eup %8506  ;;  %v6147_v5 = vadd.f32 1.0, %v8505_v12 }
 0x73f   : > { %v6146_v17 = vadd.f32 1.0, %v8507_v45  ;;  %8508 = vpow2.f32 %v6156_v15  ;;  %v6010_v0 = vsel %vm442_vm0, %v6008_v39, %v6009_v42  ;;  %v6617_v47 = vld [vmem:[#allocation4 + $0x46] ss:$2 sm:$0x1f] }
 0x740   : > { %8510 = vrcp.f32 %v6147_v5  ;;  %v6014_v1 = vadd.f32 %v6010_v0, %v10746_v16  ;;  %v6618_v33 = vadd.f32 %v6617_v47, %v6615_v48  ;;  %v6620_v28 = vld [vmem:[#allocation4 + $0x47] ss:$2 sm:$0x1f]  ;;  %v6166_v47 = vld [vmem:[%s11051_s6] sm:$0x1] }
 0x741   : > { %8512 = vrcp.f32 %v6146_v17  ;;  %7759 = vmatmul.msk.bf16.vlgmr.msrb.gmra.mxu3 %vm6031_vm11, %v6289_v18  ;;  %v7989_v42 = vld [vmem:[%s11050_s5 + $0xa8] sm:$0xff]  ;;  %v7992_v17 = vld [vmem:[%s11050_s5 + $0xc0] sm:$0xff] }
 0x742   : > { %v6153_v56 = vadd.f32 %v10761_v9, %v6014_v1  ;;  %v6621_v29 = vadd.f32 %v6620_v28, %v6618_v33  ;;  %6456 = vmatpush.bf16.msrb.mxu3 %v7977_v21 }
 0x744   : > { %v6155_v58 = vsub.f32 0.0, %v6153_v56  ;;  %v5927_v41 = vpop.f32.mrf.mxu2  ;;  %v6622_v16 = vmul.f32 0.25, %v6621_v29 }
 0x745   : > { %v8509_v10 = vpop.eup %8508 }
 0x746   : > { %v8511_v9 = vpop.eup %8510  ;;  %v6160_v27 = vadd.f32 1.0, %v8509_v10  ;;  %v6158_v43 = vmul.f32 1.442695, %v6155_v58  ;;  %6623 = vst.msk [vmem:[#allocation5] sm:$0x1f] %vm6178_vm14, %v6622_v16 }
 0x747   : > { %v8513_v51 = vpop.eup %8512  ;;  %6151 = vst.msk [vmem:[#allocation4 + $0x58] sm:$0x3] %vm6033_vm10, %v8511_v9 }
 0x748   : > { %6150 = vst.msk [vmem:[#allocation4 + $0x50] sm:$0xff] %vm6031_vm11, %v8513_v51  ;;  %8514 = vrcp.f32 %v6160_v27 }
 0x749   : > { %8516 = vpow2.f32 %v6158_v43  ;;  %7804 = vmatmul.msk.bf16.vlgmr.msra.gmra.mxu0 %vm6031_vm11, %v6558_v63  ;;  %7809 = vmatmul.msk.bf16.vlgmr.msrb.gmra.mxu1 %vm6031_vm11, %v6585_v60 }
 0x74a   : > { %6752 = vmatpush.bf16.msra.mxu0 %v7987_v44  ;;  %6792 = vmatpush.bf16.msrb.mxu1 %v7988_v2 }
 0x74d   : > { %v6651_v55 = vld [vmem:[#allocation5 + $0x1] sm:$0x1]  ;;  %v6678_v50 = vld [vmem:[#allocation5 + $0x2] sm:$0x1]  ;;  %v6732_v54 = vld [vmem:[#allocation5 + $0x4] sm:$0x1] }
 0x74e   : > { %v8515_v6 = vpop.eup %8514  ;;  %v6652_v62 = vpack.c.bf16 %v6651_v55, %v6651_v55  ;;  %v6679_v11 = vpack.c.bf16 %v6678_v50, %v6678_v50  ;;  %v6624_v37 = vld [vmem:[#allocation5] sm:$0x1]  ;;  %v6705_v49 = vld [vmem:[#allocation5 + $0x3] sm:$0x1]  ;;  %v6733_v57 = vpack.c.bf16 %v6732_v54, %v6732_v54 }
 0x74f   : > { %v8517_v23 = vpop.eup %8516  ;;  %6164 = vst.msk [vmem:[#allocation4 + $0x54] sm:$0xc0] %vm6047_vm12, %v8515_v6  ;;  %v6760_v26 = vld [vmem:[#allocation4 + $0x50] ss:$2 sm:$0x1f]  ;;  %v6625_v45 = vpack.c.bf16 %v6624_v37, %v6624_v37  ;;  %v6706_v0 = vpack.c.bf16 %v6705_v49, %v6705_v49 }
 0x750   : > { %v6161_v8 = vadd.f32 1.0, %v8517_v23  ;;  %v6762_v46 = vld [vmem:[#allocation4 + $0x51] ss:$2 sm:$0x1f] }
 0x751   : > { %7769 = vmatmul.msk.bf16.vlgmr.msra.gmra.mxu3 %vm6031_vm11, %v6356_v61  ;;  %v6763_v39 = vadd.f32 %v6762_v46, %v6760_v26 }
 0x752   : > { %8518 = vrcp.f32 %v6161_v8  ;;  %6550 = vmatpush.bf16.msra.mxu3 %v7980_v25 }
 0x758   : > { %v8519_v32 = vpop.eup %8518 }
 0x759   : > { %6165 = vst.msk [vmem:[#allocation4 + $0x5c] sm:$0xff] %vm6031_vm11, %v8519_v32  ;;  %7819 = vmatmul.msk.bf16.vlgmr.msrb.gmra.mxu0 %vm6031_vm11, %v6652_v62  ;;  %7824 = vmatmul.msk.bf16.vlgmr.msra.gmra.mxu1 %vm6031_vm11, %v6679_v11 }
 0x75a   : > { %6846 = vmatpush.bf16.msrb.mxu0 %v7990_v30  ;;  %6873 = vmatpush.bf16.msra.mxu1 %v7991_v31 }
 0x760   : > { %v6765_v13 = vld [vmem:[#allocation4 + $0x5a] ss:$2 sm:$0x1f]  ;;  %v6768_v38 = vld [vmem:[#allocation4 + $0x5b] ss:$2 sm:$0x1f] }
 0x761   : > { %v6766_v53 = vadd.f32 %v6765_v13, %v6763_v39  ;;  %7784 = vmatmul.msk.bf16.vlgmr.msrb.gmra.mxu3 %vm6031_vm11, %v6437_v22 }
 0x762   : > { %6644 = vmatpush.bf16.msrb.mxu3 %v7983_v40 }
 0x763   : > { %v6769_v35 = vadd.f32 %v6768_v38, %v6766_v53 }
 0x765   : > { %v6770_v7 = vmul.f32 0.25, %v6769_v35 }
 0x767   : > { %6771 = vst.msk [vmem:[#allocation5] sm:$0x1f] %vm6178_vm14, %v6770_v7 }
 0x769   : > { %7834 = vmatmul.msk.bf16.vlgmr.msra.gmra.mxu0 %vm6031_vm11, %v6733_v57 }
 0x76e   : > { %v6772_v34 = vld [vmem:[#allocation5] sm:$0x1]  ;;  %v6826_v3 = vld [vmem:[#allocation5 + $0x2] sm:$0x1]  ;;  %v6853_v15 = vld [vmem:[#allocation5 + $0x3] sm:$0x1] }
 0x76f   : > { %v6773_v52 = vpack.c.bf16 %v6772_v34, %v6772_v34  ;;  %v6827_v12 = vpack.c.bf16 %v6826_v3, %v6826_v3  ;;  %v6854_v5 = vpack.c.bf16 %v6853_v15, %v6853_v15  ;;  %v6799_v19 = vld [vmem:[#allocation5 + $0x1] sm:$0x1]  ;;  %v6880_v27 = vld [vmem:[#allocation5 + $0x4] sm:$0x1] }
 0x770   : > { %v6800_v10 = vpack.c.bf16 %v6799_v19, %v6799_v19  ;;  %v6881_v51 = vpack.c.bf16 %v6880_v27, %v6880_v27  ;;  %v7996_v19 = vld [vmem:[%s11052_s7 + $0x18] sm:$0xff] }
 0x771   : > { %7799 = vmatmul.msk.bf16.vlgmr.msra.gmra.mxu3 %vm6031_vm11, %v6531_v59  ;;  %7839 = vmatmul.msk.bf16.vlgmr.msrb.gmra.mxu1 %vm6031_vm11, %v6773_v52 }
 0x772   : > { %6725 = vmatpush.bf16.msra.mxu3 %v7986_v4 }
 0x779   : > { %7849 = vmatmul.msk.bf16.vlgmr.msrb.gmra.mxu0 %vm6031_vm11, %v6827_v12  ;;  %v6922_v12 = vld [vmem:[%s11052_s7 + $0x38] sm:$0xf] }
 0x77a   : > { %v6953_v15 = vunpack.c.l.b16 %v6922_v12 }
 0x781   : > { %7814 = vmatmul.msk.bf16.vlgmr.msrb.gmra.mxu3 %vm6031_vm11, %v6625_v45  ;;  %7854 = vmatmul.msk.bf16.vlgmr.msra.gmra.mxu1 %vm6031_vm11, %v6854_v5  ;;  %v6961_v45 = vpack.c.b16 %v6953_v15, %v6953_v15 }
 0x782   : > { %6819 = vmatpush.bf16.msrb.mxu3 %v7989_v42 }
 0x784   : > { %v6202_v18 = vpop.f32.mrf.mxu3 }
 0x785   : > { %v6206_v1 = vadd.f32 %v6202_v18, %v6166_v47  ;;  %v6974_v18 = vsel %vm442_vm0, %v6961_v45, 0  ;;  %v7998_v47 = vld [vmem:[%s11052_s7 + $0x28] sm:$0xff]  ;;  %vm6969_vm0 = vcmask 982016  }
 0x786   : > { %6976 = vmatpush.bf16.msra.mxu0 %v6974_v18 }
 0x78c   : > { %v6204_v48 = vpop.f32.mrf.mxu3 }
 0x78d   : > { %v7999_v48 = vld [vmem:[%s11052_s7 + $0x30] sm:$0xff] }
 0x78e   : > { %6977 = vmatpush.bf16.msra.mxu0 %v7999_v48 }
 0x791   : > { %7829 = vmatmul.msk.bf16.vlgmr.msra.gmra.mxu3 %vm6031_vm11, %v6706_v0 }
 0x792   : > { %6900 = vmatpush.bf16.msra.mxu3 %v7992_v17  ;;  %6978 = vmatpush.bf16.msra.mxu0 %v7998_v47 }
 0x794   : > { %v6229_v33 = vpop.f32.mrf.mxu3 }
 0x795   : > { %v6233_v28 = vadd.f32 %v6229_v33, %v6206_v1  ;;  %v6350_v56 = vpop.f32.mrf.mxu1 }
 0x796   : > { %v6404_v29 = vpop.f32.mrf.mxu0 }
 0x79c   : > { %v6231_v24 = vpop.f32.mrf.mxu3 }
 0x79d   : > { %v6352_v58 = vpop.f32.mrf.mxu1 }
 0x79e   : > { %v6406_v41 = vpop.f32.mrf.mxu0 }
 0x79f   : > { %v7995_v41 = vld [vmem:[%s11052_s7 + $0x10] sm:$0xff] }
 0x7a1   : > { %7844 = vmatmul.msk.bf16.vlgmr.msrb.gmra.mxu3 %vm6031_vm11, %v6800_v10  ;;  %v7994_v10 = vld [vmem:[%s11052_s7 + $0x8] sm:$0xff] }
 0x7a4   : > { %v6256_v16 = vpop.f32.mrf.mxu3 }
 0x7a5   : > { %v6260_v36 = vadd.f32 %v6256_v16, %v6233_v28  ;;  %v6431_v21 = vpop.f32.mrf.mxu1 }
 0x7ac   : > { %v6258_v9 = vpop.f32.mrf.mxu3 }
 0x7ad   : > { %v6433_v43 = vpop.f32.mrf.mxu1  ;;  %v7993_v9 = vld [vmem:[%s11052_s7] sm:$0xff] }
 0x7ae   : > { %v7000_v43 = vld [vmem:[%s11054_s9 + $0x28] sm:$0x3] }
 0x7b1   : > { %7859 = vmatmul.msk.bf16.vlgmr.msra.gmra.mxu3 %vm6031_vm11, %v6881_v51  ;;  %v7023_v51 = vunpack.c.l.b16 %v7000_v43 }
 0x7b4   : > { %v6283_v14 = vpop.f32.mrf.mxu3 }
 0x7b5   : > { %v6287_v44 = vadd.f32 %v6283_v14, %v6260_v36  ;;  %v7029_v14 = vpack.c.b16 %v7023_v51, %v7023_v51 }
 0x7b6   : > { %v6498_v20 = vpop.f32.mrf.mxu0  ;;  %v6525_v63 = vpop.f32.mrf.mxu1 }
 0x7bc   : > { %v6285_v60 = vpop.f32.mrf.mxu3 }
 0x7bd   : > { %v8003_v60 = vld [vmem:[%s11054_s9 + $0x18] sm:$0xff] }
 0x7be   : > { %v6500_v2 = vpop.f32.mrf.mxu0  ;;  %v6527_v6 = vpop.f32.mrf.mxu1 }
 0x7bf   : > { %v8002_v6 = vld [vmem:[%s11054_s9 + $0x10] sm:$0xff] }
 0x7c4   : > { %v6310_v25 = vpop.f32.mrf.mxu3 }
 0x7c5   : > { %v6314_v23 = vadd.f32 %v6310_v25, %v6287_v44  ;;  %v7040_v44 = vsel %vm3063_vm8, %v7029_v14, 0 }
 0x7c6   : > { %v6579_v61 = vpop.f32.mrf.mxu0  ;;  %v6606_v55 = vpop.f32.mrf.mxu1  ;;  %7044 = vmatpush.bf16.msrb.mxu1 %v7040_v44 }
 0x7c7   : > { %v6354_v8 = vadd.f32 %v6350_v56, %v6314_v23 }
 0x7cc   : > { %v6312_v50 = vpop.f32.mrf.mxu3 }
 0x7ce   : > { %v6581_v30 = vpop.f32.mrf.mxu0  ;;  %v6608_v32 = vpop.f32.mrf.mxu1 }
 0x7d4   : > { %v6377_v62 = vpop.f32.mrf.mxu3 }
 0x7d5   : > { %v6381_v11 = vadd.f32 %v6377_v62, %v6354_v8 }
 0x7d6   : > { %v6673_v26 = vpop.f32.mrf.mxu0  ;;  %v6700_v46 = vpop.f32.mrf.mxu1 }
 0x7d7   : > { %v6408_v31 = vadd.f32 %v6404_v29, %v6381_v11  ;;  %v7997_v29 = vld [vmem:[%s11052_s7 + $0x20] sm:$0xff] }
 0x7d8   : > { %6979 = vmatpush.bf16.msra.mxu0 %v7997_v29  ;;  %v8000_v11 = vld [vmem:[%s11054_s9] sm:$0xff] }
 0x7d9   : > { %v6435_v40 = vadd.f32 %v6431_v21, %v6408_v31  ;;  %v6923_v31 = vld [vmem:[%s11053_s8] sm:$0x1] }
 0x7dc   : > { %v6379_v39 = vpop.f32.mrf.mxu3  ;;  %6980 = vmatpush.bf16.msra.mxu0 %v7996_v19 }
 0x7de   : > { %v6675_v22 = vpop.f32.mrf.mxu0  ;;  %v6702_v13 = vpop.f32.mrf.mxu1 }
 0x7df   : > { %v7001_v22 = vld [vmem:[%s11055_s10] sm:$0x1] }
 0x7e0   : > { %6981 = vmatpush.bf16.msra.mxu0 %v7995_v41 }
 0x7e4   : > { %v6458_v53 = vpop.f32.mrf.mxu3  ;;  %6982 = vmatpush.bf16.msra.mxu0 %v7994_v10 }
 0x7e5   : > { %v6462_v38 = vadd.f32 %v6458_v53, %v6435_v40 }
 0x7e6   : > { %v6754_v7 = vpop.f32.mrf.mxu0 }
 0x7e7   : > { %v6502_v35 = vadd.f32 %v6498_v20, %v6462_v38  ;;  %v8004_v20 = vld [vmem:[%s11054_s9 + $0x20] sm:$0xff] }
 0x7e8   : > { %6983 = vmatpush.bf16.msra.mxu0 %v7993_v9  ;;  %7045 = vmatpush.bf16.msrb.mxu1 %v8004_v20 }
 0x7e9   : > { %v6529_v54 = vadd.f32 %v6525_v63, %v6502_v35 }
 0x7ec   : > { %v6460_v37 = vpop.f32.mrf.mxu3  ;;  %7046 = vmatpush.bf16.msrb.mxu1 %v8003_v60 }
 0x7ee   : > { %v6794_v49 = vpop.f32.mrf.mxu1  ;;  %v6756_v57 = vpop.f32.mrf.mxu0 }
 0x7f0   : > { %7047 = vmatpush.bf16.msrb.mxu1 %v8002_v6 }
 0x7f4   : > { %v6552_v34 = vpop.f32.mrf.mxu3 }
 0x7f5   : > { %v6556_v4 = vadd.f32 %v6552_v34, %v6529_v54 }
 0x7f6   : > { %v6796_v59 = vpop.f32.mrf.mxu1  ;;  %v6848_v3 = vpop.f32.mrf.mxu0 }
 0x7f7   : > { %v6583_v52 = vadd.f32 %v6579_v61, %v6556_v4  ;;  %v8001_v61 = vld [vmem:[%s11054_s9 + $0x8] sm:$0xff] }
 0x7f8   : > { %7048 = vmatpush.bf16.msrb.mxu1 %v8001_v61 }
 0x7f9   : > { %v6610_v42 = vadd.f32 %v6606_v55, %v6583_v52 }
 0x7fc   : > { %v6554_v5 = vpop.f32.mrf.mxu3  ;;  %7049 = vmatpush.bf16.msrb.mxu1 %v8000_v11 }
 0x7fe   : > { %v6875_v17 = vpop.f32.mrf.mxu1  ;;  %v6850_v0 = vpop.f32.mrf.mxu0 }
 0x804   : > { %v6646_v1 = vpop.f32.mrf.mxu3 }
 0x805   : > { %v6650_v33 = vadd.f32 %v6646_v1, %v6610_v42 }
 0x806   : > { %v6877_v28 = vpop.f32.mrf.mxu1 }
 0x807   : > { %v6677_v56 = vadd.f32 %v6673_v26, %v6650_v33 }
 0x809   : > { %v6704_v24 = vadd.f32 %v6700_v46, %v6677_v56 }
 0x80c   : > { %v6648_v58 = vpop.f32.mrf.mxu3 }
 0x814   : > { %v6727_v16 = vpop.f32.mrf.mxu3 }
 0x815   : > { %v6731_v36 = vadd.f32 %v6727_v16, %v6704_v24 }
 0x817   : > { %v6758_v21 = vadd.f32 %v6754_v7, %v6731_v36 }
 0x819   : > { %v6798_v2 = vadd.f32 %v6794_v49, %v6758_v21 }
 0x81c   : > { %v6729_v27 = vpop.f32.mrf.mxu3 }
 0x824   : > { %v6821_v63 = vpop.f32.mrf.mxu3 }
 0x825   : > { %v6825_v25 = vadd.f32 %v6821_v63, %v6798_v2 }
 0x827   : > { %v6852_v8 = vadd.f32 %v6848_v3, %v6825_v25 }
 0x829   : > { %v6879_v55 = vadd.f32 %v6875_v17, %v6852_v8 }
 0x82c   : > { %v6823_v23 = vpop.f32.mrf.mxu3 }
 0x834   : > { %v6902_v50 = vpop.f32.mrf.mxu3 }
 0x835   : > { %v6906_v30 = vadd.f32 %v6902_v50, %v6879_v55 }
 0x837   : > { %v6907_v32 = vpack.c.bf16 %v6906_v30, %v6906_v30 }
 0x839   : > { %7888 = vmatmul.msk.bf16.vlgmr.msra.gmra.mxu0 %vm6969_vm0, %v6907_v32 }
 0x83c   : > { %v6904_v62 = vpop.f32.mrf.mxu3 }
 0x8b6   : > { %v6985_v26 = vpop.f32.mrf.mxu0 }
 0x8b7   : > { %v6986_v46 = vadd.f32 %v6985_v26, %v6923_v31 }
 0x8b9   : > { %v6989_v40 = vpack.c.bf16 %v6986_v46, %v6986_v46 }
 0x8bb   : > { %7909 = vmatmul.msk.bf16.vlgmr.msrb.gmra.mxu1 %vm7035_vm3, %v6989_v40 }
 0x8be   : > { %v6987_v39 = vpop.f32.mrf.mxu0 }
 0x938   : > { %v7051_v13 = vpop.f32.mrf.mxu1 }
 0x939   : > { %v7052_v53 = vadd.f32 %v7051_v13, %v7001_v22 }
 0x93b   : > { %7056 = vst.msk [vmem:[%s378_s30] sm:$0x1] %vm7055_vm4, %v7052_v53 }
 0x93c   : > { %8549 = shalt.err (!%p8546_p3)
}
 0x93d   : > { %8006 = dma.vmem_to_hbm [thread:$0]  (%p8685_p5), %s7069_s12, 16, %s7071_s13, %s7058_s14  }
 0x940   : > { %v7053_v38 = vpop.f32.mrf.mxu1 }
 0x941 PF: > { %p8012_p4 = scmp.ge.s32.totalorder %s8584_s20, 2  ;;  %s7082_s15 = sand.u32 1, %s8572_s17  }
 0x942   : > { %s7083_s29 = scalar_lea.sflag [#allocation7], %s7082_s15 }
 0x943   : > { %p8009_p7 = pnand %p8012_p4, %p8689_p6 }
 0x945   : > { %p8010_p8 = pneg %p8009_p7 }
 0x947   : > { %8567 = dma.done.wait (%p8010_p8), %s7083_s29, 16  }
 0x948   : > { %8569 = vsyncadd (%p8010_p8), %s7083_s29, 4294967280  ;;  %p21_p9 = scmp.ge.s32.totalorder %s8672_s23, 4   ;;  %s11065_s17 = smov %s8576_s18 }
 0x949   : > { %s11066_s18 = smov %s8580_s19  ;;  %s11067_s19 = smov %s8683_s26 }
 0x94a   : > { %s11068_s20 = smov %s8672_s23  ;;  %23 = sbr.rel (!%p21_p9) target bundleno = 6 (0x6), region = 125 }
 0x94f   :  { %7088 = vsyncpa [#allocation7], 1 }
 0x950   :  { %7090 = vsyncpa [#allocation7 + $0x1], 1 }

</bundles_post_ra>
